<compile_context>
chip_gen: v6e
topology: v6e:2x2x1
jax: 0.10.0
libtpu: 0.0.40
codegen_flags: <defaults>
</compile_context>

<pallas_src>
import jax
import jax.numpy as jnp
from jax import lax
from jax.experimental import pallas as pl
from jax.experimental.pallas import tpu as pltpu


B_TILE = 8  # batch tile (sublane multiple) for the attention/pool kernel


# ----------------------------- fused bidirectional GRU layer -----------------------------

def _bigru_layer_kernel(x_ref, wih_ref, whh_f_ref, whh_b_ref, bih_ref,
                        bhh_f_ref, bhh_b_ref, len_ref,
                        out_ref, gi_ref, hf_ref, hb_ref):
    """One bidirectional GRU layer over a padded batch (both directions fused).

    x_ref:     (T, B, D)   f32 time-major inputs (B padded to a multiple of 8)
    wih_ref:   (D, 6H)     bf16 fused input weights   [fwd r,z,n | bwd r,z,n]
    whh_f_ref: (H, 3H) f32, whh_b_ref: (H, 3H) f32 recurrent weights
    bih_ref:   (1, 6H) f32 fused input bias
    bhh_f_ref: (1, 3H) f32, bhh_b_ref: (1, 3H) f32
    len_ref:   (B, 1) int32 sentence lengths (0 for padded batch rows)
    out_ref:   (T, B, 2H)  f32 outputs  [:, :, :H]=fwd, [:, :, H:]=bwd, zero past length
    gi_ref:    (T, B, 6H)  f32 scratch: hoisted input-gate projections
    hf_ref, hb_ref: (B, H) f32 running hidden states
    """
    T, B, D = x_ref.shape
    H = whh_f_ref.shape[0]

    # ---- hoisted input projection: one MXU GEMM for all timesteps & both directions ----
    # B is a multiple of 8 sublanes, so merging (T, B) is layout-preserving (no copy).
    x2 = x_ref[...].reshape(T * B, D).astype(jnp.bfloat16)
    gi = jnp.dot(x2, wih_ref[...], preferred_element_type=jnp.float32)      # (T*B, 6H)
    gi_ref[...] = gi.reshape(T, B, 6 * H) + bih_ref[...]

    hf_ref[...] = jnp.zeros_like(hf_ref)
    hb_ref[...] = jnp.zeros_like(hb_ref)
    lengths = len_ref[...]                                                   # (B, 1) int32

    def step(i, carry):
        # ---------------- forward direction, t = i ----------------
        tf = i
        gi_f = gi_ref[tf]                                                    # (B, 6H)
        hf = hf_ref[...]                                                     # (B, H)
        gh_f = jnp.dot(hf, whh_f_ref[...],
                       preferred_element_type=jnp.float32) + bhh_f_ref[...]  # (B, 3H)
        rf = jax.nn.sigmoid(gi_f[:, 0:H] + gh_f[:, 0:H])
        zf = jax.nn.sigmoid(gi_f[:, H:2 * H] + gh_f[:, H:2 * H])
        nf = jnp.tanh(gi_f[:, 2 * H:3 * H] + rf * gh_f[:, 2 * H:3 * H])
        hf_new = (1.0 - zf) * nf + zf * hf
        mf = (tf < lengths).astype(jnp.float32)                              # (B, 1)
        hf_upd = hf + mf * (hf_new - hf)                                     # freeze on pad
        hf_ref[...] = hf_upd
        out_ref[tf, :, 0:H] = hf_upd * mf                                    # zero past length

        # ---------------- backward direction, t = T-1-i ----------------
        tb = T - 1 - i
        gi_b = gi_ref[tb]                                                    # (B, 6H)
        hb = hb_ref[...]
        gh_b = jnp.dot(hb, whh_b_ref[...],
                       preferred_element_type=jnp.float32) + bhh_b_ref[...]
        rb = jax.nn.sigmoid(gi_b[:, 3 * H:4 * H] + gh_b[:, 0:H])
        zb = jax.nn.sigmoid(gi_b[:, 4 * H:5 * H] + gh_b[:, H:2 * H])
        nb = jnp.tanh(gi_b[:, 5 * H:6 * H] + rb * gh_b[:, 2 * H:3 * H])
        hb_new = (1.0 - zb) * nb + zb * hb
        mb = (tb < lengths).astype(jnp.float32)
        hb_upd = hb + mb * (hb_new - hb)
        hb_ref[...] = hb_upd
        out_ref[tb, :, H:2 * H] = hb_upd * mb
        return carry

    # Short, fixed trip count: unroll so the LLO scheduler sees across steps.
    lax.fori_loop(0, T, step, 0, unroll=True)


def bigru_layer(x_tm, layer_p, lengths_col):
    T, B, _ = x_tm.shape
    H = layer_p["whh_f"].shape[0]
    return pl.pallas_call(
        _bigru_layer_kernel,
        out_shape=jax.ShapeDtypeStruct((T, B, 2 * H), jnp.float32),
        in_specs=[pl.BlockSpec(memory_space=pltpu.MemorySpace.VMEM)] * 8,
        out_specs=pl.BlockSpec(memory_space=pltpu.MemorySpace.VMEM),
        scratch_shapes=[
            pltpu.VMEM((T, B, 6 * H), jnp.float32),   # hoisted input-gate projections
            pltpu.VMEM((B, H), jnp.float32),          # forward hidden state
            pltpu.VMEM((B, H), jnp.float32),          # backward hidden state
        ],
        compiler_params=pltpu.CompilerParams(vmem_limit_bytes=64 * 1024 * 1024),
    )(x_tm, layer_p["w_ih_cat"], layer_p["whh_f"], layer_p["whh_b"],
      layer_p["b_ih_cat"], layer_p["bhh_f"], layer_p["bhh_b"], lengths_col)


# ----------------------------- attention + weighted pooling -----------------------------

def _word_attention_kernel(h_ref, watt_ref, batt_ref, ctx_ref, len_ref,
                           sent_ref, alpha_ref):
    """Word attention + weighted pooling for a batch tile.

    h_ref:    (Bt, T, 2H)  GRU outputs (zero past each sentence's length)
    watt_ref: (2H, A)      bf16 attention projection (pre-transposed Linear weight)
    batt_ref: (1, A)       f32 attention bias
    ctx_ref:  (1, A)       f32 word context vector
    len_ref:  (Bt, 1) int32 lengths (0 for padded rows)
    sent_ref: (Bt, 2H)     pooled sentence embeddings
    alpha_ref:(Bt, T, A)   attention weights (A == 2H)
    """
    Bt, T, H2 = h_ref.shape
    A = watt_ref.shape[1]

    h = h_ref[...]
    # T is the sublane axis (multiple of 8 here), so this leading-dim merge is a view.
    att = jnp.dot(h.reshape(Bt * T, H2).astype(jnp.bfloat16), watt_ref[...],
                  preferred_element_type=jnp.float32) + batt_ref[...]
    att = jnp.tanh(att)
    att = ctx_ref[...] * att                     # (1, A) * (Bt*T, A)
    att = att.reshape(Bt, T, A)

    t_idx = lax.broadcasted_iota(jnp.int32, (Bt, T, 1), 1)
    valid = t_idx < len_ref[...].reshape(Bt, 1, 1)            # (Bt, T, 1)

    # per-(sentence, att-dim) max over valid words; guard empty rows (length 0)
    att_masked = jnp.where(valid, att, -jnp.inf)
    row_max = jnp.max(att_masked, axis=1, keepdims=True)      # (Bt, 1, A)
    row_max = jnp.where(row_max == -jnp.inf, 0.0, row_max)

    e = jnp.where(valid, jnp.exp(att - row_max), 0.0)
    denom = jnp.sum(e, axis=1, keepdims=True)                 # (Bt, 1, A); >= 1 if non-empty
    inv_denom = pl.reciprocal(jnp.maximum(denom, 1e-6), approx=True)
    alphas = e * inv_denom

    alpha_ref[...] = alphas
    sent_ref[...] = jnp.sum(h * alphas, axis=1)


def word_attention_pool(h_padded, w_att_t, b_att, ctx, lengths_col):
    B, T, H2 = h_padded.shape
    A = w_att_t.shape[1]
    assert A == H2, "word_att_size must equal 2*word_rnn_size for this module's pooling"
    assert B % B_TILE == 0
    grid = (B // B_TILE,)
    return pl.pallas_call(
        _word_attention_kernel,
        out_shape=(jax.ShapeDtypeStruct((B, H2), jnp.float32),
                   jax.ShapeDtypeStruct((B, T, A), jnp.float32)),
        grid=grid,
        in_specs=[
            pl.BlockSpec((B_TILE, T, H2), lambda i: (i, 0, 0)),
            pl.BlockSpec((H2, A), lambda i: (0, 0)),
            pl.BlockSpec((1, A), lambda i: (0, 0)),
            pl.BlockSpec((1, A), lambda i: (0, 0)),
            pl.BlockSpec((B_TILE, 1), lambda i: (i, 0)),
        ],
        out_specs=(
            pl.BlockSpec((B_TILE, H2), lambda i: (i, 0)),
            pl.BlockSpec((B_TILE, T, A), lambda i: (i, 0, 0)),
        ),
        compiler_params=pltpu.CompilerParams(
            dimension_semantics=("parallel",),
            vmem_limit_bytes=64 * 1024 * 1024),
    )(h_padded, w_att_t, b_att, ctx, lengths_col)


# ----------------------------- parameters & forward -----------------------------

def init_params(key, vocab_size, emb_size, word_rnn_size, word_rnn_layers, word_att_size):
    H = word_rnn_size
    keys = iter(jax.random.split(key, 4 + 8 * word_rnn_layers))

    def u(k, shape, lo, hi):
        return jax.random.uniform(k, shape, jnp.float32, lo, hi)

    params = {}
    params["embedding"] = jax.random.normal(next(keys), (vocab_size, emb_size),
                                            jnp.float32) * 0.1

    gru_layers = []
    s = 1.0 / float(H) ** 0.5
    for layer in range(word_rnn_layers):
        in_size = emb_size if layer == 0 else 2 * H
        # PyTorch shapes are (3H, in) / (3H, H); stored here pre-transposed for the kernel.
        wih_f = u(next(keys), (in_size, 3 * H), -s, s)
        whh_f = u(next(keys), (H, 3 * H), -s, s)
        bih_f = u(next(keys), (1, 3 * H), -s, s)
        bhh_f = u(next(keys), (1, 3 * H), -s, s)
        wih_b = u(next(keys), (in_size, 3 * H), -s, s)
        whh_b = u(next(keys), (H, 3 * H), -s, s)
        bih_b = u(next(keys), (1, 3 * H), -s, s)
        bhh_b = u(next(keys), (1, 3 * H), -s, s)
        gru_layers.append({
            # fused fwd|bwd input weights, bf16 operands for the hoisted MXU GEMM
            "w_ih_cat": jnp.concatenate([wih_f, wih_b], axis=1).astype(jnp.bfloat16),
            "b_ih_cat": jnp.concatenate([bih_f, bih_b], axis=1),
            "whh_f": whh_f, "whh_b": whh_b,
            "bhh_f": bhh_f, "bhh_b": bhh_b,
        })
    params["gru"] = gru_layers

    sa = 1.0 / float(2 * H) ** 0.5
    params["w_att_t"] = u(next(keys), (2 * H, word_att_size), -sa, sa).astype(jnp.bfloat16)
    params["b_att"] = u(next(keys), (1, word_att_size), -sa, sa)
    params["ctx"] = u(next(keys), (1, word_att_size), -0.1, 0.1)   # word_context_vector
    return params


def word_attention_forward(params, sentences, words_per_sentence):
    """sentences: (B, T) int32 token ids; words_per_sentence: (B,) int32 lengths."""
    B, T = sentences.shape
    H = params["gru"][0]["whh_f"].shape[0]
    A = params["w_att_t"].shape[1]
    assert A == 2 * H, "word_att_size must equal 2*word_rnn_size for this module"

    # Pad batch to a multiple of 8 sublanes; padded sentences have length 0 and are
    # sliced off at the end (they contribute nothing and cannot NaN thanks to the guards).
    B_pad = ((B + B_TILE - 1) // B_TILE) * B_TILE
    pad = B_pad - B
    sentences_p = jnp.pad(sentences, ((0, pad), (0, 0)))
    lengths = jnp.pad(words_per_sentence.astype(jnp.int32), ((0, pad),))
    lengths_col = lengths.reshape(-1, 1)

    emb = params["embedding"][sentences_p]                   # (B_pad, T, E) XLA gather
    # nn.Dropout: identity in eval mode.
    x = jnp.transpose(emb, (1, 0, 2)).astype(jnp.float32)    # (T, B_pad, E) time-major

    for layer_p in params["gru"]:
        x = bigru_layer(x, layer_p, lengths_col)             # (T, B_pad, 2H), fused fwd+bwd

    h_padded = jnp.transpose(x, (1, 0, 2))                   # (B_pad, T, 2H)
    sent, alphas = word_attention_pool(
        h_padded, params["w_att_t"], params["b_att"], params["ctx"], lengths_col)
    return sent[:B], alphas[:B]


# ----------------------------- demo -----------------------------

if __name__ == "__main__":
    vocab_size = 50
    emb_size = 16
    word_rnn_size = 16
    word_rnn_layers = 2
    word_att_size = 2 * word_rnn_size   # required for this module's elementwise broadcast
    B, T = 3, 8

    key = jax.random.PRNGKey(0)
    kp, ks = jax.random.split(key)
    params = init_params(kp, vocab_size, emb_size, word_rnn_size, word_rnn_layers,
                         word_att_size)

    sentences = jax.random.randint(ks, (B, T), 0, vocab_size, dtype=jnp.int32)
    # max length == T so the padded width matches PyTorch's pad_packed_sequence output.
    words_per_sentence = jnp.array([T, 5, 3], dtype=jnp.int32)

    fwd = jax.jit(word_attention_forward)
    sent_emb, word_alphas = fwd(params, sentences, words_per_sentence)
    jax.block_until_ready((sent_emb, word_alphas))

    # sanity checks
    assert sent_emb.shape == (B, 2 * word_rnn_size)
    assert word_alphas.shape == (B, T, word_att_size)
    sums = jnp.sum(word_alphas, axis=1)                      # softmax over words sums to 1
    assert bool(jnp.all(jnp.abs(sums - 1.0) < 5e-3))         # approx-reciprocal tolerance
    assert bool(jnp.all(jnp.isfinite(sent_emb)))
    assert bool(jnp.all(jnp.isfinite(word_alphas)))

    print("KERNEL_OK")
</pallas_src>

<mosaic_0001>
module attributes {stable_mosaic.version = 11 : i64} {
  func.func @_word_attention_kernel(%arg0: i32, %arg1: memref<8x8x32xf32, #tpu.memory_space<vmem>>, %arg2: memref<32x32xbf16, #tpu.memory_space<vmem>>, %arg3: memref<1x32xf32, #tpu.memory_space<vmem>>, %arg4: memref<1x32xf32, #tpu.memory_space<vmem>>, %arg5: memref<8x1xi32, #tpu.memory_space<vmem>>, %arg6: memref<8x32xf32, #tpu.memory_space<vmem>>, %arg7: memref<8x8x32xf32, #tpu.memory_space<vmem>>) attributes {dimension_semantics = [#tpu.dimension_semantics<parallel>], iteration_bounds = array<i64: 1>, scalar_prefetch = 0 : i64, scratch_operands = 0 : i64, tpu.core_type = #tpu.core_type<tc>, window_params = [{transform_indices = @transform_0, window_bounds = array<i64: 8, 8, 32>}, {pipeline_mode = #tpu.pipeline_mode<synchronous>, transform_indices = @transform_1, window_bounds = array<i64: 32, 32>}, {pipeline_mode = #tpu.pipeline_mode<synchronous>, transform_indices = @transform_2, window_bounds = array<i64: 1, 32>}, {pipeline_mode = #tpu.pipeline_mode<synchronous>, transform_indices = @transform_3, window_bounds = array<i64: 1, 32>}, {transform_indices = @transform_4, window_bounds = array<i64: 8, 1>}, {transform_indices = @transform_5, window_bounds = array<i64: 8, 32>}, {transform_indices = @transform_6, window_bounds = array<i64: 8, 8, 32>}]} {
    %c0 = arith.constant 0 : index
    %c0_0 = arith.constant 0 : index
    %c0_1 = arith.constant 0 : index
    %0 = vector.load %arg1[%c0, %c0_0, %c0_1] : memref<8x8x32xf32, #tpu.memory_space<vmem>>, vector<8x8x32xf32>
    %1 = vector.shape_cast %0 : vector<8x8x32xf32> to vector<64x32xf32>
    %2 = arith.truncf %1 : vector<64x32xf32> to vector<64x32xbf16>
    %c0_2 = arith.constant 0 : index
    %c0_3 = arith.constant 0 : index
    %3 = vector.load %arg2[%c0_2, %c0_3] : memref<32x32xbf16, #tpu.memory_space<vmem>>, vector<32x32xbf16>
    %cst = arith.constant dense<0.000000e+00> : vector<64x32xf32>
    %4 = tpu.matmul %2, %3, %cst {dimension_numbers = #tpu.dot_dimension_numbers<[1], [0], [0], [1], [0, 0, 1, 1], [], []>} : vector<64x32xbf16>, vector<32x32xbf16>, vector<64x32xf32> -> vector<64x32xf32>
    %c0_4 = arith.constant 0 : index
    %c0_5 = arith.constant 0 : index
    %5 = vector.load %arg3[%c0_4, %c0_5] : memref<1x32xf32, #tpu.memory_space<vmem>>, vector<1x32xf32>
    %6 = vector.broadcast %5 : vector<1x32xf32> to vector<64x32xf32>
    %7 = arith.addf %4, %6 : vector<64x32xf32>
    %8 = math.tanh %7 : vector<64x32xf32>
    %c0_6 = arith.constant 0 : index
    %c0_7 = arith.constant 0 : index
    %9 = vector.load %arg4[%c0_6, %c0_7] : memref<1x32xf32, #tpu.memory_space<vmem>>, vector<1x32xf32>
    %10 = vector.broadcast %9 : vector<1x32xf32> to vector<64x32xf32>
    %11 = arith.mulf %10, %8 : vector<64x32xf32>
    %12 = vector.shape_cast %11 : vector<64x32xf32> to vector<8x8x32xf32>
    %13 = tpu.iota {dimensions = array<i32: 1>} : vector<8x8x1xi32>
    %c0_8 = arith.constant 0 : index
    %c0_9 = arith.constant 0 : index
    %14 = vector.load %arg5[%c0_8, %c0_9] : memref<8x1xi32, #tpu.memory_space<vmem>>, vector<8x1xi32>
    %15 = vector.shape_cast %14 : vector<8x1xi32> to vector<8x1x1xi32>
    %16 = vector.broadcast %15 : vector<8x1x1xi32> to vector<8x8x1xi32>
    %17 = arith.cmpi slt, %13, %16 : vector<8x8x1xi32>
    %cst_10 = arith.constant 0xFF800000 : f32
    %18 = vector.shape_cast %17 : vector<8x8x1xi1> to vector<8x8x1xi1>
    %19 = vector.broadcast %18 : vector<8x8x1xi1> to vector<8x8x32xi1>
    %20 = vector.broadcast %cst_10 : f32 to vector<8x8x32xf32>
    %21 = arith.select %19, %12, %20 : vector<8x8x32xi1>, vector<8x8x32xf32>
    %cst_11 = arith.constant dense<0xFF800000> : vector<8x32xf32>
    %22 = vector.multi_reduction <maximumf>, %21, %cst_11 [1] : vector<8x8x32xf32> to vector<8x32xf32>
    %23 = vector.shape_cast %22 : vector<8x32xf32> to vector<8x1x32xf32>
    %cst_12 = arith.constant 0xFF800000 : f32
    %24 = vector.broadcast %cst_12 : f32 to vector<8x1x32xf32>
    %25 = arith.cmpf oeq, %23, %24 : vector<8x1x32xf32>
    %cst_13 = arith.constant 0.000000e+00 : f32
    %26 = vector.broadcast %cst_13 : f32 to vector<8x1x32xf32>
    %27 = arith.select %25, %26, %23 : vector<8x1x32xi1>, vector<8x1x32xf32>
    %28 = vector.broadcast %27 : vector<8x1x32xf32> to vector<8x8x32xf32>
    %29 = arith.subf %12, %28 : vector<8x8x32xf32>
    %30 = math.exp %29 : vector<8x8x32xf32>
    %cst_14 = arith.constant 0.000000e+00 : f32
    %31 = vector.shape_cast %17 : vector<8x8x1xi1> to vector<8x8x1xi1>
    %32 = vector.broadcast %31 : vector<8x8x1xi1> to vector<8x8x32xi1>
    %33 = vector.broadcast %cst_14 : f32 to vector<8x8x32xf32>
    %34 = arith.select %32, %30, %33 : vector<8x8x32xi1>, vector<8x8x32xf32>
    %cst_15 = arith.constant dense<0.000000e+00> : vector<8x32xf32>
    %35 = vector.multi_reduction <add>, %34, %cst_15 [1] : vector<8x8x32xf32> to vector<8x32xf32>
    %36 = vector.shape_cast %35 : vector<8x32xf32> to vector<8x1x32xf32>
    %cst_16 = arith.constant 9.99999997E-7 : f32
    %37 = vector.broadcast %cst_16 : f32 to vector<8x1x32xf32>
    %38 = arith.maximumf %36, %37 : vector<8x1x32xf32>
    %39 = tpu.reciprocal %38 {approx = true} : vector<8x1x32xf32> -> vector<8x1x32xf32>
    %40 = vector.broadcast %39 : vector<8x1x32xf32> to vector<8x8x32xf32>
    %41 = arith.mulf %34, %40 : vector<8x8x32xf32>
    %c0_17 = arith.constant 0 : index
    %c0_18 = arith.constant 0 : index
    %c0_19 = arith.constant 0 : index
    %42 = vector.load %arg7[%c0_17, %c0_18, %c0_19] : memref<8x8x32xf32, #tpu.memory_space<vmem>>, vector<8x8x32xf32>
    tpu.vector_store %arg7[%c0_17, %c0_18, %c0_19], %41 {strides = array<i32>} : memref<8x8x32xf32, #tpu.memory_space<vmem>>, vector<8x8x32xf32>,
    %43 = arith.mulf %0, %41 : vector<8x8x32xf32>
    %cst_20 = arith.constant dense<0.000000e+00> : vector<8x32xf32>
    %44 = vector.multi_reduction <add>, %43, %cst_20 [1] : vector<8x8x32xf32> to vector<8x32xf32>
    %c0_21 = arith.constant 0 : index
    %c0_22 = arith.constant 0 : index
    %45 = vector.load %arg6[%c0_21, %c0_22] : memref<8x32xf32, #tpu.memory_space<vmem>>, vector<8x32xf32>
    tpu.vector_store %arg6[%c0_21, %c0_22], %44 {strides = array<i32>} : memref<8x32xf32, #tpu.memory_space<vmem>>, vector<8x32xf32>,
    return
  }
  func.func @transform_0(%arg0: i32) -> (i32, i32, i32) {
    %c0_i32 = arith.constant 0 : i32
    %c0_i32_0 = arith.constant 0 : i32
    %c0_i32_1 = arith.constant 0 : i32
    return %arg0, %c0_i32, %c0_i32_0 : i32, i32, i32
  }
  func.func @transform_1(%arg0: i32) -> (i32, i32) {
    %c0_i32 = arith.constant 0 : i32
    %c0_i32_0 = arith.constant 0 : i32
    %c0_i32_1 = arith.constant 0 : i32
    return %c0_i32, %c0_i32_0 : i32, i32
  }
  func.func @transform_2(%arg0: i32) -> (i32, i32) {
    %c0_i32 = arith.constant 0 : i32
    %c0_i32_0 = arith.constant 0 : i32
    %c0_i32_1 = arith.constant 0 : i32
    return %c0_i32, %c0_i32_0 : i32, i32
  }
  func.func @transform_3(%arg0: i32) -> (i32, i32) {
    %c0_i32 = arith.constant 0 : i32
    %c0_i32_0 = arith.constant 0 : i32
    %c0_i32_1 = arith.constant 0 : i32
    return %c0_i32, %c0_i32_0 : i32, i32
  }
  func.func @transform_4(%arg0: i32) -> (i32, i32) {
    %c0_i32 = arith.constant 0 : i32
    %c0_i32_0 = arith.constant 0 : i32
    return %arg0, %c0_i32 : i32, i32
  }
  func.func @transform_5(%arg0: i32) -> (i32, i32) {
    %c0_i32 = arith.constant 0 : i32
    %c0_i32_0 = arith.constant 0 : i32
    return %arg0, %c0_i32 : i32, i32
  }
  func.func @transform_6(%arg0: i32) -> (i32, i32, i32) {
    %c0_i32 = arith.constant 0 : i32
    %c0_i32_0 = arith.constant 0 : i32
    %c0_i32_1 = arith.constant 0 : i32
    return %arg0, %c0_i32, %c0_i32_0 : i32, i32, i32
  }
}

module attributes {stable_mosaic.version = 11 : i64} {
  func.func @_bigru_layer_kernel(%arg0: memref<8x8x16xf32, #tpu.memory_space<vmem>>, %arg1: memref<16x96xbf16, #tpu.memory_space<vmem>>, %arg2: memref<16x48xf32, #tpu.memory_space<vmem>>, %arg3: memref<16x48xf32, #tpu.memory_space<vmem>>, %arg4: memref<1x96xf32, #tpu.memory_space<vmem>>, %arg5: memref<1x48xf32, #tpu.memory_space<vmem>>, %arg6: memref<1x48xf32, #tpu.memory_space<vmem>>, %arg7: memref<8x1xi32, #tpu.memory_space<vmem>>, %arg8: memref<8x8x32xf32, #tpu.memory_space<vmem>>, %arg9: memref<8x8x96xf32, #tpu.memory_space<vmem>>, %arg10: memref<8x16xf32, #tpu.memory_space<vmem>>, %arg11: memref<8x16xf32, #tpu.memory_space<vmem>>) attributes {dimension_semantics = [], scalar_prefetch = 0 : i64, scratch_operands = 3 : i64, tpu.core_type = #tpu.core_type<tc>} {
    %c0 = arith.constant 0 : index
    %c0_0 = arith.constant 0 : index
    %c0_1 = arith.constant 0 : index
    %0 = vector.load %arg0[%c0, %c0_0, %c0_1] : memref<8x8x16xf32, #tpu.memory_space<vmem>>, vector<8x8x16xf32>
    %1 = vector.shape_cast %0 : vector<8x8x16xf32> to vector<64x16xf32>
    %2 = arith.truncf %1 : vector<64x16xf32> to vector<64x16xbf16>
    %c0_2 = arith.constant 0 : index
    %c0_3 = arith.constant 0 : index
    %3 = vector.load %arg1[%c0_2, %c0_3] : memref<16x96xbf16, #tpu.memory_space<vmem>>, vector<16x96xbf16>
    %cst = arith.constant dense<0.000000e+00> : vector<64x96xf32>
    %4 = tpu.matmul %2, %3, %cst {dimension_numbers = #tpu.dot_dimension_numbers<[1], [0], [0], [1], [0, 0, 1, 1], [], []>} : vector<64x16xbf16>, vector<16x96xbf16>, vector<64x96xf32> -> vector<64x96xf32>
    %5 = vector.shape_cast %4 : vector<64x96xf32> to vector<8x8x96xf32>
    %c0_4 = arith.constant 0 : index
    %c0_5 = arith.constant 0 : index
    %6 = vector.load %arg4[%c0_4, %c0_5] : memref<1x96xf32, #tpu.memory_space<vmem>>, vector<1x96xf32>
    %7 = vector.shape_cast %6 : vector<1x96xf32> to vector<1x1x96xf32>
    %8 = vector.broadcast %7 : vector<1x1x96xf32> to vector<8x8x96xf32>
    %9 = arith.addf %5, %8 : vector<8x8x96xf32>
    %c0_6 = arith.constant 0 : index
    %c0_7 = arith.constant 0 : index
    %c0_8 = arith.constant 0 : index
    %10 = vector.load %arg9[%c0_6, %c0_7, %c0_8] : memref<8x8x96xf32, #tpu.memory_space<vmem>>, vector<8x8x96xf32>
    tpu.vector_store %arg9[%c0_6, %c0_7, %c0_8], %9 {strides = array<i32>} : memref<8x8x96xf32, #tpu.memory_space<vmem>>, vector<8x8x96xf32>,
    %cst_9 = arith.constant 0.000000e+00 : f32
    %11 = vector.broadcast %cst_9 : f32 to vector<8x16xf32>
    %c0_10 = arith.constant 0 : index
    %c0_11 = arith.constant 0 : index
    %12 = vector.load %arg10[%c0_10, %c0_11] : memref<8x16xf32, #tpu.memory_space<vmem>>, vector<8x16xf32>
    tpu.vector_store %arg10[%c0_10, %c0_11], %11 {strides = array<i32>} : memref<8x16xf32, #tpu.memory_space<vmem>>, vector<8x16xf32>,
    %cst_12 = arith.constant 0.000000e+00 : f32
    %13 = vector.broadcast %cst_12 : f32 to vector<8x16xf32>
    %c0_13 = arith.constant 0 : index
    %c0_14 = arith.constant 0 : index
    %14 = vector.load %arg11[%c0_13, %c0_14] : memref<8x16xf32, #tpu.memory_space<vmem>>, vector<8x16xf32>
    tpu.vector_store %arg11[%c0_13, %c0_14], %13 {strides = array<i32>} : memref<8x16xf32, #tpu.memory_space<vmem>>, vector<8x16xf32>,
    %c0_15 = arith.constant 0 : index
    %c0_16 = arith.constant 0 : index
    %15 = vector.load %arg7[%c0_15, %c0_16] : memref<8x1xi32, #tpu.memory_space<vmem>>, vector<8x1xi32>
    %c0_i32 = arith.constant 0 : i32
    %16 = arith.index_cast %c0_i32 : i32 to index
    %c0_17 = arith.constant 0 : index
    %c0_18 = arith.constant 0 : index
    %17 = vector.load %arg9[%16, %c0_17, %c0_18] : memref<8x8x96xf32, #tpu.memory_space<vmem>>, vector<1x8x96xf32>
    %18 = vector.shape_cast %17 : vector<1x8x96xf32> to vector<8x96xf32>
    %c0_19 = arith.constant 0 : index
    %c0_20 = arith.constant 0 : index
    %19 = vector.load %arg10[%c0_19, %c0_20] : memref<8x16xf32, #tpu.memory_space<vmem>>, vector<8x16xf32>
    %c0_21 = arith.constant 0 : index
    %c0_22 = arith.constant 0 : index
    %20 = vector.load %arg2[%c0_21, %c0_22] : memref<16x48xf32, #tpu.memory_space<vmem>>, vector<16x48xf32>
    %cst_23 = arith.constant dense<0.000000e+00> : vector<8x48xf32>
    %21 = tpu.matmul %19, %20, %cst_23 {dimension_numbers = #tpu.dot_dimension_numbers<[1], [0], [0], [1], [0, 0, 1, 1], [], []>} : vector<8x16xf32>, vector<16x48xf32>, vector<8x48xf32> -> vector<8x48xf32>
    %c0_24 = arith.constant 0 : index
    %c0_25 = arith.constant 0 : index
    %22 = vector.load %arg5[%c0_24, %c0_25] : memref<1x48xf32, #tpu.memory_space<vmem>>, vector<1x48xf32>
    %23 = vector.broadcast %22 : vector<1x48xf32> to vector<8x48xf32>
    %24 = arith.addf %21, %23 : vector<8x48xf32>
    %25 = vector.extract_strided_slice %18 {offsets = [0, 0], sizes = [8, 16], strides = [1, 1]} : vector<8x96xf32> to vector<8x16xf32>
    %26 = vector.extract_strided_slice %24 {offsets = [0, 0], sizes = [8, 16], strides = [1, 1]} : vector<8x48xf32> to vector<8x16xf32>
    %27 = arith.addf %25, %26 : vector<8x16xf32>
    %28 = arith.negf %27 : vector<8x16xf32>
    %29 = math.exp %28 : vector<8x16xf32>
    %cst_26 = arith.constant 1.000000e+00 : f32
    %30 = vector.broadcast %cst_26 : f32 to vector<8x16xf32>
    %31 = arith.addf %30, %29 : vector<8x16xf32>
    %32 = arith.divf %30, %31 : vector<8x16xf32>
    %33 = vector.extract_strided_slice %18 {offsets = [0, 16], sizes = [8, 16], strides = [1, 1]} : vector<8x96xf32> to vector<8x16xf32>
    %34 = vector.extract_strided_slice %24 {offsets = [0, 16], sizes = [8, 16], strides = [1, 1]} : vector<8x48xf32> to vector<8x16xf32>
    %35 = arith.addf %33, %34 : vector<8x16xf32>
    %36 = arith.negf %35 : vector<8x16xf32>
    %37 = math.exp %36 : vector<8x16xf32>
    %cst_27 = arith.constant 1.000000e+00 : f32
    %38 = vector.broadcast %cst_27 : f32 to vector<8x16xf32>
    %39 = arith.addf %38, %37 : vector<8x16xf32>
    %40 = arith.divf %38, %39 : vector<8x16xf32>
    %41 = vector.extract_strided_slice %18 {offsets = [0, 32], sizes = [8, 16], strides = [1, 1]} : vector<8x96xf32> to vector<8x16xf32>
    %42 = vector.extract_strided_slice %24 {offsets = [0, 32], sizes = [8, 16], strides = [1, 1]} : vector<8x48xf32> to vector<8x16xf32>
    %43 = arith.mulf %32, %42 : vector<8x16xf32>
    %44 = arith.addf %41, %43 : vector<8x16xf32>
    %45 = math.tanh %44 : vector<8x16xf32>
    %cst_28 = arith.constant 1.000000e+00 : f32
    %46 = vector.broadcast %cst_28 : f32 to vector<8x16xf32>
    %47 = arith.subf %46, %40 : vector<8x16xf32>
    %48 = arith.mulf %47, %45 : vector<8x16xf32>
    %49 = arith.mulf %40, %19 : vector<8x16xf32>
    %50 = arith.addf %48, %49 : vector<8x16xf32>
    %51 = vector.broadcast %c0_i32 : i32 to vector<8x1xi32>
    %52 = arith.cmpi slt, %51, %15 : vector<8x1xi32>
    %53 = arith.extui %52 : vector<8x1xi1> to vector<8x1xi32>
    %54 = arith.sitofp %53 : vector<8x1xi32> to vector<8x1xf32>
    %55 = arith.subf %50, %19 : vector<8x16xf32>
    %56 = vector.broadcast %54 : vector<8x1xf32> to vector<8x16xf32>
    %57 = arith.mulf %56, %55 : vector<8x16xf32>
    %58 = arith.addf %19, %57 : vector<8x16xf32>
    %c0_29 = arith.constant 0 : index
    %c0_30 = arith.constant 0 : index
    %59 = vector.load %arg10[%c0_29, %c0_30] : memref<8x16xf32, #tpu.memory_space<vmem>>, vector<8x16xf32>
    tpu.vector_store %arg10[%c0_29, %c0_30], %58 {strides = array<i32>} : memref<8x16xf32, #tpu.memory_space<vmem>>, vector<8x16xf32>,
    %60 = vector.broadcast %54 : vector<8x1xf32> to vector<8x16xf32>
    %61 = arith.mulf %58, %60 : vector<8x16xf32>
    %62 = arith.index_cast %c0_i32 : i32 to index
    %c0_31 = arith.constant 0 : index
    %c0_32 = arith.constant 0 : index
    %63 = vector.load %arg8[%62, %c0_31, %c0_32] : memref<8x8x32xf32, #tpu.memory_space<vmem>>, vector<1x8x16xf32>
    %64 = vector.shape_cast %63 : vector<1x8x16xf32> to vector<8x16xf32>
    %65 = vector.shape_cast %61 : vector<8x16xf32> to vector<1x8x16xf32>
    tpu.vector_store %arg8[%62, %c0_31, %c0_32], %65 {strides = array<i32>} : memref<8x8x32xf32, #tpu.memory_space<vmem>>, vector<1x8x16xf32>,
    %c7_i32 = arith.constant 7 : i32
    %66 = arith.subi %c7_i32, %c0_i32 : i32
    %67 = arith.index_cast %66 : i32 to index
    %c0_33 = arith.constant 0 : index
    %c0_34 = arith.constant 0 : index
    %68 = vector.load %arg9[%67, %c0_33, %c0_34] : memref<8x8x96xf32, #tpu.memory_space<vmem>>, vector<1x8x96xf32>
    %69 = vector.shape_cast %68 : vector<1x8x96xf32> to vector<8x96xf32>
    %c0_35 = arith.constant 0 : index
    %c0_36 = arith.constant 0 : index
    %70 = vector.load %arg11[%c0_35, %c0_36] : memref<8x16xf32, #tpu.memory_space<vmem>>, vector<8x16xf32>
    %c0_37 = arith.constant 0 : index
    %c0_38 = arith.constant 0 : index
    %71 = vector.load %arg3[%c0_37, %c0_38] : memref<16x48xf32, #tpu.memory_space<vmem>>, vector<16x48xf32>
    %cst_39 = arith.constant dense<0.000000e+00> : vector<8x48xf32>
    %72 = tpu.matmul %70, %71, %cst_39 {dimension_numbers = #tpu.dot_dimension_numbers<[1], [0], [0], [1], [0, 0, 1, 1], [], []>} : vector<8x16xf32>, vector<16x48xf32>, vector<8x48xf32> -> vector<8x48xf32>
    %c0_40 = arith.constant 0 : index
    %c0_41 = arith.constant 0 : index
    %73 = vector.load %arg6[%c0_40, %c0_41] : memref<1x48xf32, #tpu.memory_space<vmem>>, vector<1x48xf32>
    %74 = vector.broadcast %73 : vector<1x48xf32> to vector<8x48xf32>
    %75 = arith.addf %72, %74 : vector<8x48xf32>
    %76 = vector.extract_strided_slice %69 {offsets = [0, 48], sizes = [8, 16], strides = [1, 1]} : vector<8x96xf32> to vector<8x16xf32>
    %77 = vector.extract_strided_slice %75 {offsets = [0, 0], sizes = [8, 16], strides = [1, 1]} : vector<8x48xf32> to vector<8x16xf32>
    %78 = arith.addf %76, %77 : vector<8x16xf32>
    %79 = arith.negf %78 : vector<8x16xf32>
    %80 = math.exp %79 : vector<8x16xf32>
    %cst_42 = arith.constant 1.000000e+00 : f32
    %81 = vector.broadcast %cst_42 : f32 to vector<8x16xf32>
    %82 = arith.addf %81, %80 : vector<8x16xf32>
    %83 = arith.divf %81, %82 : vector<8x16xf32>
    %84 = vector.extract_strided_slice %69 {offsets = [0, 64], sizes = [8, 16], strides = [1, 1]} : vector<8x96xf32> to vector<8x16xf32>
    %85 = vector.extract_strided_slice %75 {offsets = [0, 16], sizes = [8, 16], strides = [1, 1]} : vector<8x48xf32> to vector<8x16xf32>
    %86 = arith.addf %84, %85 : vector<8x16xf32>
    %87 = arith.negf %86 : vector<8x16xf32>
    %88 = math.exp %87 : vector<8x16xf32>
    %cst_43 = arith.constant 1.000000e+00 : f32
    %89 = vector.broadcast %cst_43 : f32 to vector<8x16xf32>
    %90 = arith.addf %89, %88 : vector<8x16xf32>
    %91 = arith.divf %89, %90 : vector<8x16xf32>
    %92 = vector.extract_strided_slice %69 {offsets = [0, 80], sizes = [8, 16], strides = [1, 1]} : vector<8x96xf32> to vector<8x16xf32>
    %93 = vector.extract_strided_slice %75 {offsets = [0, 32], sizes = [8, 16], strides = [1, 1]} : vector<8x48xf32> to vector<8x16xf32>
    %94 = arith.mulf %83, %93 : vector<8x16xf32>
    %95 = arith.addf %92, %94 : vector<8x16xf32>
    %96 = math.tanh %95 : vector<8x16xf32>
    %cst_44 = arith.constant 1.000000e+00 : f32
    %97 = vector.broadcast %cst_44 : f32 to vector<8x16xf32>
    %98 = arith.subf %97, %91 : vector<8x16xf32>
    %99 = arith.mulf %98, %96 : vector<8x16xf32>
    %100 = arith.mulf %91, %70 : vector<8x16xf32>
    %101 = arith.addf %99, %100 : vector<8x16xf32>
    %102 = vector.broadcast %66 : i32 to vector<8x1xi32>
    %103 = arith.cmpi slt, %102, %15 : vector<8x1xi32>
    %104 = arith.extui %103 : vector<8x1xi1> to vector<8x1xi32>
    %105 = arith.sitofp %104 : vector<8x1xi32> to vector<8x1xf32>
    %106 = arith.subf %101, %70 : vector<8x16xf32>
    %107 = vector.broadcast %105 : vector<8x1xf32> to vector<8x16xf32>
    %108 = arith.mulf %107, %106 : vector<8x16xf32>
    %109 = arith.addf %70, %108 : vector<8x16xf32>
    %c0_45 = arith.constant 0 : index
    %c0_46 = arith.constant 0 : index
    %110 = vector.load %arg11[%c0_45, %c0_46] : memref<8x16xf32, #tpu.memory_space<vmem>>, vector<8x16xf32>
    tpu.vector_store %arg11[%c0_45, %c0_46], %109 {strides = array<i32>} : memref<8x16xf32, #tpu.memory_space<vmem>>, vector<8x16xf32>,
    %111 = vector.broadcast %105 : vector<8x1xf32> to vector<8x16xf32>
    %112 = arith.mulf %109, %111 : vector<8x16xf32>
    %113 = arith.index_cast %66 : i32 to index
    %c0_47 = arith.constant 0 : index
    %c16 = arith.constant 16 : index
    %114 = vector.load %arg8[%113, %c0_47, %c16] : memref<8x8x32xf32, #tpu.memory_space<vmem>>, vector<1x8x16xf32>
    %115 = vector.shape_cast %114 : vector<1x8x16xf32> to vector<8x16xf32>
    %116 = vector.shape_cast %112 : vector<8x16xf32> to vector<1x8x16xf32>
    tpu.vector_store %arg8[%113, %c0_47, %c16], %116 {strides = array<i32>} : memref<8x8x32xf32, #tpu.memory_space<vmem>>, vector<1x8x16xf32>,
    %c1_i32 = arith.constant 1 : i32
    %117 = arith.index_cast %c1_i32 : i32 to index
    %c0_48 = arith.constant 0 : index
    %c0_49 = arith.constant 0 : index
    %118 = vector.load %arg9[%117, %c0_48, %c0_49] : memref<8x8x96xf32, #tpu.memory_space<vmem>>, vector<1x8x96xf32>
    %119 = vector.shape_cast %118 : vector<1x8x96xf32> to vector<8x96xf32>
    %c0_50 = arith.constant 0 : index
    %c0_51 = arith.constant 0 : index
    %120 = vector.load %arg10[%c0_50, %c0_51] : memref<8x16xf32, #tpu.memory_space<vmem>>, vector<8x16xf32>
    %c0_52 = arith.constant 0 : index
    %c0_53 = arith.constant 0 : index
    %121 = vector.load %arg2[%c0_52, %c0_53] : memref<16x48xf32, #tpu.memory_space<vmem>>, vector<16x48xf32>
    %cst_54 = arith.constant dense<0.000000e+00> : vector<8x48xf32>
    %122 = tpu.matmul %120, %121, %cst_54 {dimension_numbers = #tpu.dot_dimension_numbers<[1], [0], [0], [1], [0, 0, 1, 1], [], []>} : vector<8x16xf32>, vector<16x48xf32>, vector<8x48xf32> -> vector<8x48xf32>
    %c0_55 = arith.constant 0 : index
    %c0_56 = arith.constant 0 : index
    %123 = vector.load %arg5[%c0_55, %c0_56] : memref<1x48xf32, #tpu.memory_space<vmem>>, vector<1x48xf32>
    %124 = vector.broadcast %123 : vector<1x48xf32> to vector<8x48xf32>
    %125 = arith.addf %122, %124 : vector<8x48xf32>
    %126 = vector.extract_strided_slice %119 {offsets = [0, 0], sizes = [8, 16], strides = [1, 1]} : vector<8x96xf32> to vector<8x16xf32>
    %127 = vector.extract_strided_slice %125 {offsets = [0, 0], sizes = [8, 16], strides = [1, 1]} : vector<8x48xf32> to vector<8x16xf32>
    %128 = arith.addf %126, %127 : vector<8x16xf32>
    %129 = arith.negf %128 : vector<8x16xf32>
    %130 = math.exp %129 : vector<8x16xf32>
    %cst_57 = arith.constant 1.000000e+00 : f32
    %131 = vector.broadcast %cst_57 : f32 to vector<8x16xf32>
    %132 = arith.addf %131, %130 : vector<8x16xf32>
    %133 = arith.divf %131, %132 : vector<8x16xf32>
    %134 = vector.extract_strided_slice %119 {offsets = [0, 16], sizes = [8, 16], strides = [1, 1]} : vector<8x96xf32> to vector<8x16xf32>
    %135 = vector.extract_strided_slice %125 {offsets = [0, 16], sizes = [8, 16], strides = [1, 1]} : vector<8x48xf32> to vector<8x16xf32>
    %136 = arith.addf %134, %135 : vector<8x16xf32>
    %137 = arith.negf %136 : vector<8x16xf32>
    %138 = math.exp %137 : vector<8x16xf32>
    %cst_58 = arith.constant 1.000000e+00 : f32
    %139 = vector.broadcast %cst_58 : f32 to vector<8x16xf32>
    %140 = arith.addf %139, %138 : vector<8x16xf32>
    %141 = arith.divf %139, %140 : vector<8x16xf32>
    %142 = vector.extract_strided_slice %119 {offsets = [0, 32], sizes = [8, 16], strides = [1, 1]} : vector<8x96xf32> to vector<8x16xf32>
    %143 = vector.extract_strided_slice %125 {offsets = [0, 32], sizes = [8, 16], strides = [1, 1]} : vector<8x48xf32> to vector<8x16xf32>
    %144 = arith.mulf %133, %143 : vector<8x16xf32>
    %145 = arith.addf %142, %144 : vector<8x16xf32>
    %146 = math.tanh %145 : vector<8x16xf32>
    %cst_59 = arith.constant 1.000000e+00 : f32
    %147 = vector.broadcast %cst_59 : f32 to vector<8x16xf32>
    %148 = arith.subf %147, %141 : vector<8x16xf32>
    %149 = arith.mulf %148, %146 : vector<8x16xf32>
    %150 = arith.mulf %141, %120 : vector<8x16xf32>
    %151 = arith.addf %149, %150 : vector<8x16xf32>
    %152 = vector.broadcast %c1_i32 : i32 to vector<8x1xi32>
    %153 = arith.cmpi slt, %152, %15 : vector<8x1xi32>
    %154 = arith.extui %153 : vector<8x1xi1> to vector<8x1xi32>
    %155 = arith.sitofp %154 : vector<8x1xi32> to vector<8x1xf32>
    %156 = arith.subf %151, %120 : vector<8x16xf32>
    %157 = vector.broadcast %155 : vector<8x1xf32> to vector<8x16xf32>
    %158 = arith.mulf %157, %156 : vector<8x16xf32>
    %159 = arith.addf %120, %158 : vector<8x16xf32>
    %c0_60 = arith.constant 0 : index
    %c0_61 = arith.constant 0 : index
    %160 = vector.load %arg10[%c0_60, %c0_61] : memref<8x16xf32, #tpu.memory_space<vmem>>, vector<8x16xf32>
    tpu.vector_store %arg10[%c0_60, %c0_61], %159 {strides = array<i32>} : memref<8x16xf32, #tpu.memory_space<vmem>>, vector<8x16xf32>,
    %161 = vector.broadcast %155 : vector<8x1xf32> to vector<8x16xf32>
    %162 = arith.mulf %159, %161 : vector<8x16xf32>
    %163 = arith.index_cast %c1_i32 : i32 to index
    %c0_62 = arith.constant 0 : index
    %c0_63 = arith.constant 0 : index
    %164 = vector.load %arg8[%163, %c0_62, %c0_63] : memref<8x8x32xf32, #tpu.memory_space<vmem>>, vector<1x8x16xf32>
    %165 = vector.shape_cast %164 : vector<1x8x16xf32> to vector<8x16xf32>
    %166 = vector.shape_cast %162 : vector<8x16xf32> to vector<1x8x16xf32>
    tpu.vector_store %arg8[%163, %c0_62, %c0_63], %166 {strides = array<i32>} : memref<8x8x32xf32, #tpu.memory_space<vmem>>, vector<1x8x16xf32>,
    %c7_i32_64 = arith.constant 7 : i32
    %167 = arith.subi %c7_i32_64, %c1_i32 : i32
    %168 = arith.index_cast %167 : i32 to index
    %c0_65 = arith.constant 0 : index
    %c0_66 = arith.constant 0 : index
    %169 = vector.load %arg9[%168, %c0_65, %c0_66] : memref<8x8x96xf32, #tpu.memory_space<vmem>>, vector<1x8x96xf32>
    %170 = vector.shape_cast %169 : vector<1x8x96xf32> to vector<8x96xf32>
    %c0_67 = arith.constant 0 : index
    %c0_68 = arith.constant 0 : index
    %171 = vector.load %arg11[%c0_67, %c0_68] : memref<8x16xf32, #tpu.memory_space<vmem>>, vector<8x16xf32>
    %c0_69 = arith.constant 0 : index
    %c0_70 = arith.constant 0 : index
    %172 = vector.load %arg3[%c0_69, %c0_70] : memref<16x48xf32, #tpu.memory_space<vmem>>, vector<16x48xf32>
    %cst_71 = arith.constant dense<0.000000e+00> : vector<8x48xf32>
    %173 = tpu.matmul %171, %172, %cst_71 {dimension_numbers = #tpu.dot_dimension_numbers<[1], [0], [0], [1], [0, 0, 1, 1], [], []>} : vector<8x16xf32>, vector<16x48xf32>, vector<8x48xf32> -> vector<8x48xf32>
    %c0_72 = arith.constant 0 : index
    %c0_73 = arith.constant 0 : index
    %174 = vector.load %arg6[%c0_72, %c0_73] : memref<1x48xf32, #tpu.memory_space<vmem>>, vector<1x48xf32>
    %175 = vector.broadcast %174 : vector<1x48xf32> to vector<8x48xf32>
    %176 = arith.addf %173, %175 : vector<8x48xf32>
    %177 = vector.extract_strided_slice %170 {offsets = [0, 48], sizes = [8, 16], strides = [1, 1]} : vector<8x96xf32> to vector<8x16xf32>
    %178 = vector.extract_strided_slice %176 {offsets = [0, 0], sizes = [8, 16], strides = [1, 1]} : vector<8x48xf32> to vector<8x16xf32>
    %179 = arith.addf %177, %178 : vector<8x16xf32>
    %180 = arith.negf %179 : vector<8x16xf32>
    %181 = math.exp %180 : vector<8x16xf32>
    %cst_74 = arith.constant 1.000000e+00 : f32
    %182 = vector.broadcast %cst_74 : f32 to vector<8x16xf32>
    %183 = arith.addf %182, %181 : vector<8x16xf32>
    %184 = arith.divf %182, %183 : vector<8x16xf32>
    %185 = vector.extract_strided_slice %170 {offsets = [0, 64], sizes = [8, 16], strides = [1, 1]} : vector<8x96xf32> to vector<8x16xf32>
    %186 = vector.extract_strided_slice %176 {offsets = [0, 16], sizes = [8, 16], strides = [1, 1]} : vector<8x48xf32> to vector<8x16xf32>
    %187 = arith.addf %185, %186 : vector<8x16xf32>
    %188 = arith.negf %187 : vector<8x16xf32>
    %189 = math.exp %188 : vector<8x16xf32>
    %cst_75 = arith.constant 1.000000e+00 : f32
    %190 = vector.broadcast %cst_75 : f32 to vector<8x16xf32>
    %191 = arith.addf %190, %189 : vector<8x16xf32>
    %192 = arith.divf %190, %191 : vector<8x16xf32>
    %193 = vector.extract_strided_slice %170 {offsets = [0, 80], sizes = [8, 16], strides = [1, 1]} : vector<8x96xf32> to vector<8x16xf32>
    %194 = vector.extract_strided_slice %176 {offsets = [0, 32], sizes = [8, 16], strides = [1, 1]} : vector<8x48xf32> to vector<8x16xf32>
    %195 = arith.mulf %184, %194 : vector<8x16xf32>
    %196 = arith.addf %193, %195 : vector<8x16xf32>
    %197 = math.tanh %196 : vector<8x16xf32>
    %cst_76 = arith.constant 1.000000e+00 : f32
    %198 = vector.broadcast %cst_76 : f32 to vector<8x16xf32>
    %199 = arith.subf %198, %192 : vector<8x16xf32>
    %200 = arith.mulf %199, %197 : vector<8x16xf32>
    %201 = arith.mulf %192, %171 : vector<8x16xf32>
    %202 = arith.addf %200, %201 : vector<8x16xf32>
    %203 = vector.broadcast %167 : i32 to vector<8x1xi32>
    %204 = arith.cmpi slt, %203, %15 : vector<8x1xi32>
    %205 = arith.extui %204 : vector<8x1xi1> to vector<8x1xi32>
    %206 = arith.sitofp %205 : vector<8x1xi32> to vector<8x1xf32>
    %207 = arith.subf %202, %171 : vector<8x16xf32>
    %208 = vector.broadcast %206 : vector<8x1xf32> to vector<8x16xf32>
    %209 = arith.mulf %208, %207 : vector<8x16xf32>
    %210 = arith.addf %171, %209 : vector<8x16xf32>
    %c0_77 = arith.constant 0 : index
    %c0_78 = arith.constant 0 : index
    %211 = vector.load %arg11[%c0_77, %c0_78] : memref<8x16xf32, #tpu.memory_space<vmem>>, vector<8x16xf32>
    tpu.vector_store %arg11[%c0_77, %c0_78], %210 {strides = array<i32>} : memref<8x16xf32, #tpu.memory_space<vmem>>, vector<8x16xf32>,
    %212 = vector.broadcast %206 : vector<8x1xf32> to vector<8x16xf32>
    %213 = arith.mulf %210, %212 : vector<8x16xf32>
    %214 = arith.index_cast %167 : i32 to index
    %c0_79 = arith.constant 0 : index
    %c16_80 = arith.constant 16 : index
    %215 = vector.load %arg8[%214, %c0_79, %c16_80] : memref<8x8x32xf32, #tpu.memory_space<vmem>>, vector<1x8x16xf32>
    %216 = vector.shape_cast %215 : vector<1x8x16xf32> to vector<8x16xf32>
    %217 = vector.shape_cast %213 : vector<8x16xf32> to vector<1x8x16xf32>
    tpu.vector_store %arg8[%214, %c0_79, %c16_80], %217 {strides = array<i32>} : memref<8x8x32xf32, #tpu.memory_space<vmem>>, vector<1x8x16xf32>,
    %c2_i32 = arith.constant 2 : i32
    %218 = arith.index_cast %c2_i32 : i32 to index
    %c0_81 = arith.constant 0 : index
    %c0_82 = arith.constant 0 : index
    %219 = vector.load %arg9[%218, %c0_81, %c0_82] : memref<8x8x96xf32, #tpu.memory_space<vmem>>, vector<1x8x96xf32>
    %220 = vector.shape_cast %219 : vector<1x8x96xf32> to vector<8x96xf32>
    %c0_83 = arith.constant 0 : index
    %c0_84 = arith.constant 0 : index
    %221 = vector.load %arg10[%c0_83, %c0_84] : memref<8x16xf32, #tpu.memory_space<vmem>>, vector<8x16xf32>
    %c0_85 = arith.constant 0 : index
    %c0_86 = arith.constant 0 : index
    %222 = vector.load %arg2[%c0_85, %c0_86] : memref<16x48xf32, #tpu.memory_space<vmem>>, vector<16x48xf32>
    %cst_87 = arith.constant dense<0.000000e+00> : vector<8x48xf32>
    %223 = tpu.matmul %221, %222, %cst_87 {dimension_numbers = #tpu.dot_dimension_numbers<[1], [0], [0], [1], [0, 0, 1, 1], [], []>} : vector<8x16xf32>, vector<16x48xf32>, vector<8x48xf32> -> vector<8x48xf32>
    %c0_88 = arith.constant 0 : index
    %c0_89 = arith.constant 0 : index
    %224 = vector.load %arg5[%c0_88, %c0_89] : memref<1x48xf32, #tpu.memory_space<vmem>>, vector<1x48xf32>
    %225 = vector.broadcast %224 : vector<1x48xf32> to vector<8x48xf32>
    %226 = arith.addf %223, %225 : vector<8x48xf32>
    %227 = vector.extract_strided_slice %220 {offsets = [0, 0], sizes = [8, 16], strides = [1, 1]} : vector<8x96xf32> to vector<8x16xf32>
    %228 = vector.extract_strided_slice %226 {offsets = [0, 0], sizes = [8, 16], strides = [1, 1]} : vector<8x48xf32> to vector<8x16xf32>
    %229 = arith.addf %227, %228 : vector<8x16xf32>
    %230 = arith.negf %229 : vector<8x16xf32>
    %231 = math.exp %230 : vector<8x16xf32>
    %cst_90 = arith.constant 1.000000e+00 : f32
    %232 = vector.broadcast %cst_90 : f32 to vector<8x16xf32>
    %233 = arith.addf %232, %231 : vector<8x16xf32>
    %234 = arith.divf %232, %233 : vector<8x16xf32>
    %235 = vector.extract_strided_slice %220 {offsets = [0, 16], sizes = [8, 16], strides = [1, 1]} : vector<8x96xf32> to vector<8x16xf32>
    %236 = vector.extract_strided_slice %226 {offsets = [0, 16], sizes = [8, 16], strides = [1, 1]} : vector<8x48xf32> to vector<8x16xf32>
    %237 = arith.addf %235, %236 : vector<8x16xf32>
    %238 = arith.negf %237 : vector<8x16xf32>
    %239 = math.exp %238 : vector<8x16xf32>
    %cst_91 = arith.constant 1.000000e+00 : f32
    %240 = vector.broadcast %cst_91 : f32 to vector<8x16xf32>
    %241 = arith.addf %240, %239 : vector<8x16xf32>
    %242 = arith.divf %240, %241 : vector<8x16xf32>
    %243 = vector.extract_strided_slice %220 {offsets = [0, 32], sizes = [8, 16], strides = [1, 1]} : vector<8x96xf32> to vector<8x16xf32>
    %244 = vector.extract_strided_slice %226 {offsets = [0, 32], sizes = [8, 16], strides = [1, 1]} : vector<8x48xf32> to vector<8x16xf32>
    %245 = arith.mulf %234, %244 : vector<8x16xf32>
    %246 = arith.addf %243, %245 : vector<8x16xf32>
    %247 = math.tanh %246 : vector<8x16xf32>
    %cst_92 = arith.constant 1.000000e+00 : f32
    %248 = vector.broadcast %cst_92 : f32 to vector<8x16xf32>
    %249 = arith.subf %248, %242 : vector<8x16xf32>
    %250 = arith.mulf %249, %247 : vector<8x16xf32>
    %251 = arith.mulf %242, %221 : vector<8x16xf32>
    %252 = arith.addf %250, %251 : vector<8x16xf32>
    %253 = vector.broadcast %c2_i32 : i32 to vector<8x1xi32>
    %254 = arith.cmpi slt, %253, %15 : vector<8x1xi32>
    %255 = arith.extui %254 : vector<8x1xi1> to vector<8x1xi32>
    %256 = arith.sitofp %255 : vector<8x1xi32> to vector<8x1xf32>
    %257 = arith.subf %252, %221 : vector<8x16xf32>
    %258 = vector.broadcast %256 : vector<8x1xf32> to vector<8x16xf32>
    %259 = arith.mulf %258, %257 : vector<8x16xf32>
    %260 = arith.addf %221, %259 : vector<8x16xf32>
    %c0_93 = arith.constant 0 : index
    %c0_94 = arith.constant 0 : index
    %261 = vector.load %arg10[%c0_93, %c0_94] : memref<8x16xf32, #tpu.memory_space<vmem>>, vector<8x16xf32>
    tpu.vector_store %arg10[%c0_93, %c0_94], %260 {strides = array<i32>} : memref<8x16xf32, #tpu.memory_space<vmem>>, vector<8x16xf32>,
    %262 = vector.broadcast %256 : vector<8x1xf32> to vector<8x16xf32>
    %263 = arith.mulf %260, %262 : vector<8x16xf32>
    %264 = arith.index_cast %c2_i32 : i32 to index
    %c0_95 = arith.constant 0 : index
    %c0_96 = arith.constant 0 : index
    %265 = vector.load %arg8[%264, %c0_95, %c0_96] : memref<8x8x32xf32, #tpu.memory_space<vmem>>, vector<1x8x16xf32>
    %266 = vector.shape_cast %265 : vector<1x8x16xf32> to vector<8x16xf32>
    %267 = vector.shape_cast %263 : vector<8x16xf32> to vector<1x8x16xf32>
    tpu.vector_store %arg8[%264, %c0_95, %c0_96], %267 {strides = array<i32>} : memref<8x8x32xf32, #tpu.memory_space<vmem>>, vector<1x8x16xf32>,
    %c7_i32_97 = arith.constant 7 : i32
    %268 = arith.subi %c7_i32_97, %c2_i32 : i32
    %269 = arith.index_cast %268 : i32 to index
    %c0_98 = arith.constant 0 : index
    %c0_99 = arith.constant 0 : index
    %270 = vector.load %arg9[%269, %c0_98, %c0_99] : memref<8x8x96xf32, #tpu.memory_space<vmem>>, vector<1x8x96xf32>
    %271 = vector.shape_cast %270 : vector<1x8x96xf32> to vector<8x96xf32>
    %c0_100 = arith.constant 0 : index
    %c0_101 = arith.constant 0 : index
    %272 = vector.load %arg11[%c0_100, %c0_101] : memref<8x16xf32, #tpu.memory_space<vmem>>, vector<8x16xf32>
    %c0_102 = arith.constant 0 : index
    %c0_103 = arith.constant 0 : index
    %273 = vector.load %arg3[%c0_102, %c0_103] : memref<16x48xf32, #tpu.memory_space<vmem>>, vector<16x48xf32>
    %cst_104 = arith.constant dense<0.000000e+00> : vector<8x48xf32>
    %274 = tpu.matmul %272, %273, %cst_104 {dimension_numbers = #tpu.dot_dimension_numbers<[1], [0], [0], [1], [0, 0, 1, 1], [], []>} : vector<8x16xf32>, vector<16x48xf32>, vector<8x48xf32> -> vector<8x48xf32>
    %c0_105 = arith.constant 0 : index
    %c0_106 = arith.constant 0 : index
    %275 = vector.load %arg6[%c0_105, %c0_106] : memref<1x48xf32, #tpu.memory_space<vmem>>, vector<1x48xf32>
    %276 = vector.broadcast %275 : vector<1x48xf32> to vector<8x48xf32>
    %277 = arith.addf %274, %276 : vector<8x48xf32>
    %278 = vector.extract_strided_slice %271 {offsets = [0, 48], sizes = [8, 16], strides = [1, 1]} : vector<8x96xf32> to vector<8x16xf32>
    %279 = vector.extract_strided_slice %277 {offsets = [0, 0], sizes = [8, 16], strides = [1, 1]} : vector<8x48xf32> to vector<8x16xf32>
    %280 = arith.addf %278, %279 : vector<8x16xf32>
    %281 = arith.negf %280 : vector<8x16xf32>
    %282 = math.exp %281 : vector<8x16xf32>
    %cst_107 = arith.constant 1.000000e+00 : f32
    %283 = vector.broadcast %cst_107 : f32 to vector<8x16xf32>
    %284 = arith.addf %283, %282 : vector<8x16xf32>
    %285 = arith.divf %283, %284 : vector<8x16xf32>
    %286 = vector.extract_strided_slice %271 {offsets = [0, 64], sizes = [8, 16], strides = [1, 1]} : vector<8x96xf32> to vector<8x16xf32>
    %287 = vector.extract_strided_slice %277 {offsets = [0, 16], sizes = [8, 16], strides = [1, 1]} : vector<8x48xf32> to vector<8x16xf32>
    %288 = arith.addf %286, %287 : vector<8x16xf32>
    %289 = arith.negf %288 : vector<8x16xf32>
    %290 = math.exp %289 : vector<8x16xf32>
    %cst_108 = arith.constant 1.000000e+00 : f32
    %291 = vector.broadcast %cst_108 : f32 to vector<8x16xf32>
    %292 = arith.addf %291, %290 : vector<8x16xf32>
    %293 = arith.divf %291, %292 : vector<8x16xf32>
    %294 = vector.extract_strided_slice %271 {offsets = [0, 80], sizes = [8, 16], strides = [1, 1]} : vector<8x96xf32> to vector<8x16xf32>
    %295 = vector.extract_strided_slice %277 {offsets = [0, 32], sizes = [8, 16], strides = [1, 1]} : vector<8x48xf32> to vector<8x16xf32>
    %296 = arith.mulf %285, %295 : vector<8x16xf32>
    %297 = arith.addf %294, %296 : vector<8x16xf32>
    %298 = math.tanh %297 : vector<8x16xf32>
    %cst_109 = arith.constant 1.000000e+00 : f32
    %299 = vector.broadcast %cst_109 : f32 to vector<8x16xf32>
    %300 = arith.subf %299, %293 : vector<8x16xf32>
    %301 = arith.mulf %300, %298 : vector<8x16xf32>
    %302 = arith.mulf %293, %272 : vector<8x16xf32>
    %303 = arith.addf %301, %302 : vector<8x16xf32>
    %304 = vector.broadcast %268 : i32 to vector<8x1xi32>
    %305 = arith.cmpi slt, %304, %15 : vector<8x1xi32>
    %306 = arith.extui %305 : vector<8x1xi1> to vector<8x1xi32>
    %307 = arith.sitofp %306 : vector<8x1xi32> to vector<8x1xf32>
    %308 = arith.subf %303, %272 : vector<8x16xf32>
    %309 = vector.broadcast %307 : vector<8x1xf32> to vector<8x16xf32>
    %310 = arith.mulf %309, %308 : vector<8x16xf32>
    %311 = arith.addf %272, %310 : vector<8x16xf32>
    %c0_110 = arith.constant 0 : index
    %c0_111 = arith.constant 0 : index
    %312 = vector.load %arg11[%c0_110, %c0_111] : memref<8x16xf32, #tpu.memory_space<vmem>>, vector<8x16xf32>
    tpu.vector_store %arg11[%c0_110, %c0_111], %311 {strides = array<i32>} : memref<8x16xf32, #tpu.memory_space<vmem>>, vector<8x16xf32>,
    %313 = vector.broadcast %307 : vector<8x1xf32> to vector<8x16xf32>
    %314 = arith.mulf %311, %313 : vector<8x16xf32>
    %315 = arith.index_cast %268 : i32 to index
    %c0_112 = arith.constant 0 : index
    %c16_113 = arith.constant 16 : index
    %316 = vector.load %arg8[%315, %c0_112, %c16_113] : memref<8x8x32xf32, #tpu.memory_space<vmem>>, vector<1x8x16xf32>
    %317 = vector.shape_cast %316 : vector<1x8x16xf32> to vector<8x16xf32>
    %318 = vector.shape_cast %314 : vector<8x16xf32> to vector<1x8x16xf32>
    tpu.vector_store %arg8[%315, %c0_112, %c16_113], %318 {strides = array<i32>} : memref<8x8x32xf32, #tpu.memory_space<vmem>>, vector<1x8x16xf32>,
    %c3_i32 = arith.constant 3 : i32
    %319 = arith.index_cast %c3_i32 : i32 to index
    %c0_114 = arith.constant 0 : index
    %c0_115 = arith.constant 0 : index
    %320 = vector.load %arg9[%319, %c0_114, %c0_115] : memref<8x8x96xf32, #tpu.memory_space<vmem>>, vector<1x8x96xf32>
    %321 = vector.shape_cast %320 : vector<1x8x96xf32> to vector<8x96xf32>
    %c0_116 = arith.constant 0 : index
    %c0_117 = arith.constant 0 : index
    %322 = vector.load %arg10[%c0_116, %c0_117] : memref<8x16xf32, #tpu.memory_space<vmem>>, vector<8x16xf32>
    %c0_118 = arith.constant 0 : index
    %c0_119 = arith.constant 0 : index
    %323 = vector.load %arg2[%c0_118, %c0_119] : memref<16x48xf32, #tpu.memory_space<vmem>>, vector<16x48xf32>
    %cst_120 = arith.constant dense<0.000000e+00> : vector<8x48xf32>
    %324 = tpu.matmul %322, %323, %cst_120 {dimension_numbers = #tpu.dot_dimension_numbers<[1], [0], [0], [1], [0, 0, 1, 1], [], []>} : vector<8x16xf32>, vector<16x48xf32>, vector<8x48xf32> -> vector<8x48xf32>
    %c0_121 = arith.constant 0 : index
    %c0_122 = arith.constant 0 : index
    %325 = vector.load %arg5[%c0_121, %c0_122] : memref<1x48xf32, #tpu.memory_space<vmem>>, vector<1x48xf32>
    %326 = vector.broadcast %325 : vector<1x48xf32> to vector<8x48xf32>
    %327 = arith.addf %324, %326 : vector<8x48xf32>
    %328 = vector.extract_strided_slice %321 {offsets = [0, 0], sizes = [8, 16], strides = [1, 1]} : vector<8x96xf32> to vector<8x16xf32>
    %329 = vector.extract_strided_slice %327 {offsets = [0, 0], sizes = [8, 16], strides = [1, 1]} : vector<8x48xf32> to vector<8x16xf32>
    %330 = arith.addf %328, %329 : vector<8x16xf32>
    %331 = arith.negf %330 : vector<8x16xf32>
    %332 = math.exp %331 : vector<8x16xf32>
    %cst_123 = arith.constant 1.000000e+00 : f32
    %333 = vector.broadcast %cst_123 : f32 to vector<8x16xf32>
    %334 = arith.addf %333, %332 : vector<8x16xf32>
    %335 = arith.divf %333, %334 : vector<8x16xf32>
    %336 = vector.extract_strided_slice %321 {offsets = [0, 16], sizes = [8, 16], strides = [1, 1]} : vector<8x96xf32> to vector<8x16xf32>
    %337 = vector.extract_strided_slice %327 {offsets = [0, 16], sizes = [8, 16], strides = [1, 1]} : vector<8x48xf32> to vector<8x16xf32>
    %338 = arith.addf %336, %337 : vector<8x16xf32>
    %339 = arith.negf %338 : vector<8x16xf32>
    %340 = math.exp %339 : vector<8x16xf32>
    %cst_124 = arith.constant 1.000000e+00 : f32
    %341 = vector.broadcast %cst_124 : f32 to vector<8x16xf32>
    %342 = arith.addf %341, %340 : vector<8x16xf32>
    %343 = arith.divf %341, %342 : vector<8x16xf32>
    %344 = vector.extract_strided_slice %321 {offsets = [0, 32], sizes = [8, 16], strides = [1, 1]} : vector<8x96xf32> to vector<8x16xf32>
    %345 = vector.extract_strided_slice %327 {offsets = [0, 32], sizes = [8, 16], strides = [1, 1]} : vector<8x48xf32> to vector<8x16xf32>
    %346 = arith.mulf %335, %345 : vector<8x16xf32>
    %347 = arith.addf %344, %346 : vector<8x16xf32>
    %348 = math.tanh %347 : vector<8x16xf32>
    %cst_125 = arith.constant 1.000000e+00 : f32
    %349 = vector.broadcast %cst_125 : f32 to vector<8x16xf32>
    %350 = arith.subf %349, %343 : vector<8x16xf32>
    %351 = arith.mulf %350, %348 : vector<8x16xf32>
    %352 = arith.mulf %343, %322 : vector<8x16xf32>
    %353 = arith.addf %351, %352 : vector<8x16xf32>
    %354 = vector.broadcast %c3_i32 : i32 to vector<8x1xi32>
    %355 = arith.cmpi slt, %354, %15 : vector<8x1xi32>
    %356 = arith.extui %355 : vector<8x1xi1> to vector<8x1xi32>
    %357 = arith.sitofp %356 : vector<8x1xi32> to vector<8x1xf32>
    %358 = arith.subf %353, %322 : vector<8x16xf32>
    %359 = vector.broadcast %357 : vector<8x1xf32> to vector<8x16xf32>
    %360 = arith.mulf %359, %358 : vector<8x16xf32>
    %361 = arith.addf %322, %360 : vector<8x16xf32>
    %c0_126 = arith.constant 0 : index
    %c0_127 = arith.constant 0 : index
    %362 = vector.load %arg10[%c0_126, %c0_127] : memref<8x16xf32, #tpu.memory_space<vmem>>, vector<8x16xf32>
    tpu.vector_store %arg10[%c0_126, %c0_127], %361 {strides = array<i32>} : memref<8x16xf32, #tpu.memory_space<vmem>>, vector<8x16xf32>,
    %363 = vector.broadcast %357 : vector<8x1xf32> to vector<8x16xf32>
    %364 = arith.mulf %361, %363 : vector<8x16xf32>
    %365 = arith.index_cast %c3_i32 : i32 to index
    %c0_128 = arith.constant 0 : index
    %c0_129 = arith.constant 0 : index
    %366 = vector.load %arg8[%365, %c0_128, %c0_129] : memref<8x8x32xf32, #tpu.memory_space<vmem>>, vector<1x8x16xf32>
    %367 = vector.shape_cast %366 : vector<1x8x16xf32> to vector<8x16xf32>
    %368 = vector.shape_cast %364 : vector<8x16xf32> to vector<1x8x16xf32>
    tpu.vector_store %arg8[%365, %c0_128, %c0_129], %368 {strides = array<i32>} : memref<8x8x32xf32, #tpu.memory_space<vmem>>, vector<1x8x16xf32>,
    %c7_i32_130 = arith.constant 7 : i32
    %369 = arith.subi %c7_i32_130, %c3_i32 : i32
    %370 = arith.index_cast %369 : i32 to index
    %c0_131 = arith.constant 0 : index
    %c0_132 = arith.constant 0 : index
    %371 = vector.load %arg9[%370, %c0_131, %c0_132] : memref<8x8x96xf32, #tpu.memory_space<vmem>>, vector<1x8x96xf32>
    %372 = vector.shape_cast %371 : vector<1x8x96xf32> to vector<8x96xf32>
    %c0_133 = arith.constant 0 : index
    %c0_134 = arith.constant 0 : index
    %373 = vector.load %arg11[%c0_133, %c0_134] : memref<8x16xf32, #tpu.memory_space<vmem>>, vector<8x16xf32>
    %c0_135 = arith.constant 0 : index
    %c0_136 = arith.constant 0 : index
    %374 = vector.load %arg3[%c0_135, %c0_136] : memref<16x48xf32, #tpu.memory_space<vmem>>, vector<16x48xf32>
    %cst_137 = arith.constant dense<0.000000e+00> : vector<8x48xf32>
    %375 = tpu.matmul %373, %374, %cst_137 {dimension_numbers = #tpu.dot_dimension_numbers<[1], [0], [0], [1], [0, 0, 1, 1], [], []>} : vector<8x16xf32>, vector<16x48xf32>, vector<8x48xf32> -> vector<8x48xf32>
    %c0_138 = arith.constant 0 : index
    %c0_139 = arith.constant 0 : index
    %376 = vector.load %arg6[%c0_138, %c0_139] : memref<1x48xf32, #tpu.memory_space<vmem>>, vector<1x48xf32>
    %377 = vector.broadcast %376 : vector<1x48xf32> to vector<8x48xf32>
    %378 = arith.addf %375, %377 : vector<8x48xf32>
    %379 = vector.extract_strided_slice %372 {offsets = [0, 48], sizes = [8, 16], strides = [1, 1]} : vector<8x96xf32> to vector<8x16xf32>
    %380 = vector.extract_strided_slice %378 {offsets = [0, 0], sizes = [8, 16], strides = [1, 1]} : vector<8x48xf32> to vector<8x16xf32>
    %381 = arith.addf %379, %380 : vector<8x16xf32>
    %382 = arith.negf %381 : vector<8x16xf32>
    %383 = math.exp %382 : vector<8x16xf32>
    %cst_140 = arith.constant 1.000000e+00 : f32
    %384 = vector.broadcast %cst_140 : f32 to vector<8x16xf32>
    %385 = arith.addf %384, %383 : vector<8x16xf32>
    %386 = arith.divf %384, %385 : vector<8x16xf32>
    %387 = vector.extract_strided_slice %372 {offsets = [0, 64], sizes = [8, 16], strides = [1, 1]} : vector<8x96xf32> to vector<8x16xf32>
    %388 = vector.extract_strided_slice %378 {offsets = [0, 16], sizes = [8, 16], strides = [1, 1]} : vector<8x48xf32> to vector<8x16xf32>
    %389 = arith.addf %387, %388 : vector<8x16xf32>
    %390 = arith.negf %389 : vector<8x16xf32>
    %391 = math.exp %390 : vector<8x16xf32>
    %cst_141 = arith.constant 1.000000e+00 : f32
    %392 = vector.broadcast %cst_141 : f32 to vector<8x16xf32>
    %393 = arith.addf %392, %391 : vector<8x16xf32>
    %394 = arith.divf %392, %393 : vector<8x16xf32>
    %395 = vector.extract_strided_slice %372 {offsets = [0, 80], sizes = [8, 16], strides = [1, 1]} : vector<8x96xf32> to vector<8x16xf32>
    %396 = vector.extract_strided_slice %378 {offsets = [0, 32], sizes = [8, 16], strides = [1, 1]} : vector<8x48xf32> to vector<8x16xf32>
    %397 = arith.mulf %386, %396 : vector<8x16xf32>
    %398 = arith.addf %395, %397 : vector<8x16xf32>
    %399 = math.tanh %398 : vector<8x16xf32>
    %cst_142 = arith.constant 1.000000e+00 : f32
    %400 = vector.broadcast %cst_142 : f32 to vector<8x16xf32>
    %401 = arith.subf %400, %394 : vector<8x16xf32>
    %402 = arith.mulf %401, %399 : vector<8x16xf32>
    %403 = arith.mulf %394, %373 : vector<8x16xf32>
    %404 = arith.addf %402, %403 : vector<8x16xf32>
    %405 = vector.broadcast %369 : i32 to vector<8x1xi32>
    %406 = arith.cmpi slt, %405, %15 : vector<8x1xi32>
    %407 = arith.extui %406 : vector<8x1xi1> to vector<8x1xi32>
    %408 = arith.sitofp %407 : vector<8x1xi32> to vector<8x1xf32>
    %409 = arith.subf %404, %373 : vector<8x16xf32>
    %410 = vector.broadcast %408 : vector<8x1xf32> to vector<8x16xf32>
    %411 = arith.mulf %410, %409 : vector<8x16xf32>
    %412 = arith.addf %373, %411 : vector<8x16xf32>
    %c0_143 = arith.constant 0 : index
    %c0_144 = arith.constant 0 : index
    %413 = vector.load %arg11[%c0_143, %c0_144] : memref<8x16xf32, #tpu.memory_space<vmem>>, vector<8x16xf32>
    tpu.vector_store %arg11[%c0_143, %c0_144], %412 {strides = array<i32>} : memref<8x16xf32, #tpu.memory_space<vmem>>, vector<8x16xf32>,
    %414 = vector.broadcast %408 : vector<8x1xf32> to vector<8x16xf32>
    %415 = arith.mulf %412, %414 : vector<8x16xf32>
    %416 = arith.index_cast %369 : i32 to index
    %c0_145 = arith.constant 0 : index
    %c16_146 = arith.constant 16 : index
    %417 = vector.load %arg8[%416, %c0_145, %c16_146] : memref<8x8x32xf32, #tpu.memory_space<vmem>>, vector<1x8x16xf32>
    %418 = vector.shape_cast %417 : vector<1x8x16xf32> to vector<8x16xf32>
    %419 = vector.shape_cast %415 : vector<8x16xf32> to vector<1x8x16xf32>
    tpu.vector_store %arg8[%416, %c0_145, %c16_146], %419 {strides = array<i32>} : memref<8x8x32xf32, #tpu.memory_space<vmem>>, vector<1x8x16xf32>,
    %c4_i32 = arith.constant 4 : i32
    %420 = arith.index_cast %c4_i32 : i32 to index
    %c0_147 = arith.constant 0 : index
    %c0_148 = arith.constant 0 : index
    %421 = vector.load %arg9[%420, %c0_147, %c0_148] : memref<8x8x96xf32, #tpu.memory_space<vmem>>, vector<1x8x96xf32>
    %422 = vector.shape_cast %421 : vector<1x8x96xf32> to vector<8x96xf32>
    %c0_149 = arith.constant 0 : index
    %c0_150 = arith.constant 0 : index
    %423 = vector.load %arg10[%c0_149, %c0_150] : memref<8x16xf32, #tpu.memory_space<vmem>>, vector<8x16xf32>
    %c0_151 = arith.constant 0 : index
    %c0_152 = arith.constant 0 : index
    %424 = vector.load %arg2[%c0_151, %c0_152] : memref<16x48xf32, #tpu.memory_space<vmem>>, vector<16x48xf32>
    %cst_153 = arith.constant dense<0.000000e+00> : vector<8x48xf32>
    %425 = tpu.matmul %423, %424, %cst_153 {dimension_numbers = #tpu.dot_dimension_numbers<[1], [0], [0], [1], [0, 0, 1, 1], [], []>} : vector<8x16xf32>, vector<16x48xf32>, vector<8x48xf32> -> vector<8x48xf32>
    %c0_154 = arith.constant 0 : index
    %c0_155 = arith.constant 0 : index
    %426 = vector.load %arg5[%c0_154, %c0_155] : memref<1x48xf32, #tpu.memory_space<vmem>>, vector<1x48xf32>
    %427 = vector.broadcast %426 : vector<1x48xf32> to vector<8x48xf32>
    %428 = arith.addf %425, %427 : vector<8x48xf32>
    %429 = vector.extract_strided_slice %422 {offsets = [0, 0], sizes = [8, 16], strides = [1, 1]} : vector<8x96xf32> to vector<8x16xf32>
    %430 = vector.extract_strided_slice %428 {offsets = [0, 0], sizes = [8, 16], strides = [1, 1]} : vector<8x48xf32> to vector<8x16xf32>
    %431 = arith.addf %429, %430 : vector<8x16xf32>
    %432 = arith.negf %431 : vector<8x16xf32>
    %433 = math.exp %432 : vector<8x16xf32>
    %cst_156 = arith.constant 1.000000e+00 : f32
    %434 = vector.broadcast %cst_156 : f32 to vector<8x16xf32>
    %435 = arith.addf %434, %433 : vector<8x16xf32>
    %436 = arith.divf %434, %435 : vector<8x16xf32>
    %437 = vector.extract_strided_slice %422 {offsets = [0, 16], sizes = [8, 16], strides = [1, 1]} : vector<8x96xf32> to vector<8x16xf32>
    %438 = vector.extract_strided_slice %428 {offsets = [0, 16], sizes = [8, 16], strides = [1, 1]} : vector<8x48xf32> to vector<8x16xf32>
    %439 = arith.addf %437, %438 : vector<8x16xf32>
    %440 = arith.negf %439 : vector<8x16xf32>
    %441 = math.exp %440 : vector<8x16xf32>
    %cst_157 = arith.constant 1.000000e+00 : f32
    %442 = vector.broadcast %cst_157 : f32 to vector<8x16xf32>
    %443 = arith.addf %442, %441 : vector<8x16xf32>
    %444 = arith.divf %442, %443 : vector<8x16xf32>
    %445 = vector.extract_strided_slice %422 {offsets = [0, 32], sizes = [8, 16], strides = [1, 1]} : vector<8x96xf32> to vector<8x16xf32>
    %446 = vector.extract_strided_slice %428 {offsets = [0, 32], sizes = [8, 16], strides = [1, 1]} : vector<8x48xf32> to vector<8x16xf32>
    %447 = arith.mulf %436, %446 : vector<8x16xf32>
    %448 = arith.addf %445, %447 : vector<8x16xf32>
    %449 = math.tanh %448 : vector<8x16xf32>
    %cst_158 = arith.constant 1.000000e+00 : f32
    %450 = vector.broadcast %cst_158 : f32 to vector<8x16xf32>
    %451 = arith.subf %450, %444 : vector<8x16xf32>
    %452 = arith.mulf %451, %449 : vector<8x16xf32>
    %453 = arith.mulf %444, %423 : vector<8x16xf32>
    %454 = arith.addf %452, %453 : vector<8x16xf32>
    %455 = vector.broadcast %c4_i32 : i32 to vector<8x1xi32>
    %456 = arith.cmpi slt, %455, %15 : vector<8x1xi32>
    %457 = arith.extui %456 : vector<8x1xi1> to vector<8x1xi32>
    %458 = arith.sitofp %457 : vector<8x1xi32> to vector<8x1xf32>
    %459 = arith.subf %454, %423 : vector<8x16xf32>
    %460 = vector.broadcast %458 : vector<8x1xf32> to vector<8x16xf32>
    %461 = arith.mulf %460, %459 : vector<8x16xf32>
    %462 = arith.addf %423, %461 : vector<8x16xf32>
    %c0_159 = arith.constant 0 : index
    %c0_160 = arith.constant 0 : index
    %463 = vector.load %arg10[%c0_159, %c0_160] : memref<8x16xf32, #tpu.memory_space<vmem>>, vector<8x16xf32>
    tpu.vector_store %arg10[%c0_159, %c0_160], %462 {strides = array<i32>} : memref<8x16xf32, #tpu.memory_space<vmem>>, vector<8x16xf32>,
    %464 = vector.broadcast %458 : vector<8x1xf32> to vector<8x16xf32>
    %465 = arith.mulf %462, %464 : vector<8x16xf32>
    %466 = arith.index_cast %c4_i32 : i32 to index
    %c0_161 = arith.constant 0 : index
    %c0_162 = arith.constant 0 : index
    %467 = vector.load %arg8[%466, %c0_161, %c0_162] : memref<8x8x32xf32, #tpu.memory_space<vmem>>, vector<1x8x16xf32>
    %468 = vector.shape_cast %467 : vector<1x8x16xf32> to vector<8x16xf32>
    %469 = vector.shape_cast %465 : vector<8x16xf32> to vector<1x8x16xf32>
    tpu.vector_store %arg8[%466, %c0_161, %c0_162], %469 {strides = array<i32>} : memref<8x8x32xf32, #tpu.memory_space<vmem>>, vector<1x8x16xf32>,
    %c7_i32_163 = arith.constant 7 : i32
    %470 = arith.subi %c7_i32_163, %c4_i32 : i32
    %471 = arith.index_cast %470 : i32 to index
    %c0_164 = arith.constant 0 : index
    %c0_165 = arith.constant 0 : index
    %472 = vector.load %arg9[%471, %c0_164, %c0_165] : memref<8x8x96xf32, #tpu.memory_space<vmem>>, vector<1x8x96xf32>
    %473 = vector.shape_cast %472 : vector<1x8x96xf32> to vector<8x96xf32>
    %c0_166 = arith.constant 0 : index
    %c0_167 = arith.constant 0 : index
    %474 = vector.load %arg11[%c0_166, %c0_167] : memref<8x16xf32, #tpu.memory_space<vmem>>, vector<8x16xf32>
    %c0_168 = arith.constant 0 : index
    %c0_169 = arith.constant 0 : index
    %475 = vector.load %arg3[%c0_168, %c0_169] : memref<16x48xf32, #tpu.memory_space<vmem>>, vector<16x48xf32>
    %cst_170 = arith.constant dense<0.000000e+00> : vector<8x48xf32>
    %476 = tpu.matmul %474, %475, %cst_170 {dimension_numbers = #tpu.dot_dimension_numbers<[1], [0], [0], [1], [0, 0, 1, 1], [], []>} : vector<8x16xf32>, vector<16x48xf32>, vector<8x48xf32> -> vector<8x48xf32>
    %c0_171 = arith.constant 0 : index
    %c0_172 = arith.constant 0 : index
    %477 = vector.load %arg6[%c0_171, %c0_172] : memref<1x48xf32, #tpu.memory_space<vmem>>, vector<1x48xf32>
    %478 = vector.broadcast %477 : vector<1x48xf32> to vector<8x48xf32>
    %479 = arith.addf %476, %478 : vector<8x48xf32>
    %480 = vector.extract_strided_slice %473 {offsets = [0, 48], sizes = [8, 16], strides = [1, 1]} : vector<8x96xf32> to vector<8x16xf32>
    %481 = vector.extract_strided_slice %479 {offsets = [0, 0], sizes = [8, 16], strides = [1, 1]} : vector<8x48xf32> to vector<8x16xf32>
    %482 = arith.addf %480, %481 : vector<8x16xf32>
    %483 = arith.negf %482 : vector<8x16xf32>
    %484 = math.exp %483 : vector<8x16xf32>
    %cst_173 = arith.constant 1.000000e+00 : f32
    %485 = vector.broadcast %cst_173 : f32 to vector<8x16xf32>
    %486 = arith.addf %485, %484 : vector<8x16xf32>
    %487 = arith.divf %485, %486 : vector<8x16xf32>
    %488 = vector.extract_strided_slice %473 {offsets = [0, 64], sizes = [8, 16], strides = [1, 1]} : vector<8x96xf32> to vector<8x16xf32>
    %489 = vector.extract_strided_slice %479 {offsets = [0, 16], sizes = [8, 16], strides = [1, 1]} : vector<8x48xf32> to vector<8x16xf32>
    %490 = arith.addf %488, %489 : vector<8x16xf32>
    %491 = arith.negf %490 : vector<8x16xf32>
    %492 = math.exp %491 : vector<8x16xf32>
    %cst_174 = arith.constant 1.000000e+00 : f32
    %493 = vector.broadcast %cst_174 : f32 to vector<8x16xf32>
    %494 = arith.addf %493, %492 : vector<8x16xf32>
    %495 = arith.divf %493, %494 : vector<8x16xf32>
    %496 = vector.extract_strided_slice %473 {offsets = [0, 80], sizes = [8, 16], strides = [1, 1]} : vector<8x96xf32> to vector<8x16xf32>
    %497 = vector.extract_strided_slice %479 {offsets = [0, 32], sizes = [8, 16], strides = [1, 1]} : vector<8x48xf32> to vector<8x16xf32>
    %498 = arith.mulf %487, %497 : vector<8x16xf32>
    %499 = arith.addf %496, %498 : vector<8x16xf32>
    %500 = math.tanh %499 : vector<8x16xf32>
    %cst_175 = arith.constant 1.000000e+00 : f32
    %501 = vector.broadcast %cst_175 : f32 to vector<8x16xf32>
    %502 = arith.subf %501, %495 : vector<8x16xf32>
    %503 = arith.mulf %502, %500 : vector<8x16xf32>
    %504 = arith.mulf %495, %474 : vector<8x16xf32>
    %505 = arith.addf %503, %504 : vector<8x16xf32>
    %506 = vector.broadcast %470 : i32 to vector<8x1xi32>
    %507 = arith.cmpi slt, %506, %15 : vector<8x1xi32>
    %508 = arith.extui %507 : vector<8x1xi1> to vector<8x1xi32>
    %509 = arith.sitofp %508 : vector<8x1xi32> to vector<8x1xf32>
    %510 = arith.subf %505, %474 : vector<8x16xf32>
    %511 = vector.broadcast %509 : vector<8x1xf32> to vector<8x16xf32>
    %512 = arith.mulf %511, %510 : vector<8x16xf32>
    %513 = arith.addf %474, %512 : vector<8x16xf32>
    %c0_176 = arith.constant 0 : index
    %c0_177 = arith.constant 0 : index
    %514 = vector.load %arg11[%c0_176, %c0_177] : memref<8x16xf32, #tpu.memory_space<vmem>>, vector<8x16xf32>
    tpu.vector_store %arg11[%c0_176, %c0_177], %513 {strides = array<i32>} : memref<8x16xf32, #tpu.memory_space<vmem>>, vector<8x16xf32>,
    %515 = vector.broadcast %509 : vector<8x1xf32> to vector<8x16xf32>
    %516 = arith.mulf %513, %515 : vector<8x16xf32>
    %517 = arith.index_cast %470 : i32 to index
    %c0_178 = arith.constant 0 : index
    %c16_179 = arith.constant 16 : index
    %518 = vector.load %arg8[%517, %c0_178, %c16_179] : memref<8x8x32xf32, #tpu.memory_space<vmem>>, vector<1x8x16xf32>
    %519 = vector.shape_cast %518 : vector<1x8x16xf32> to vector<8x16xf32>
    %520 = vector.shape_cast %516 : vector<8x16xf32> to vector<1x8x16xf32>
    tpu.vector_store %arg8[%517, %c0_178, %c16_179], %520 {strides = array<i32>} : memref<8x8x32xf32, #tpu.memory_space<vmem>>, vector<1x8x16xf32>,
    %c5_i32 = arith.constant 5 : i32
    %521 = arith.index_cast %c5_i32 : i32 to index
    %c0_180 = arith.constant 0 : index
    %c0_181 = arith.constant 0 : index
    %522 = vector.load %arg9[%521, %c0_180, %c0_181] : memref<8x8x96xf32, #tpu.memory_space<vmem>>, vector<1x8x96xf32>
    %523 = vector.shape_cast %522 : vector<1x8x96xf32> to vector<8x96xf32>
    %c0_182 = arith.constant 0 : index
    %c0_183 = arith.constant 0 : index
    %524 = vector.load %arg10[%c0_182, %c0_183] : memref<8x16xf32, #tpu.memory_space<vmem>>, vector<8x16xf32>
    %c0_184 = arith.constant 0 : index
    %c0_185 = arith.constant 0 : index
    %525 = vector.load %arg2[%c0_184, %c0_185] : memref<16x48xf32, #tpu.memory_space<vmem>>, vector<16x48xf32>
    %cst_186 = arith.constant dense<0.000000e+00> : vector<8x48xf32>
    %526 = tpu.matmul %524, %525, %cst_186 {dimension_numbers = #tpu.dot_dimension_numbers<[1], [0], [0], [1], [0, 0, 1, 1], [], []>} : vector<8x16xf32>, vector<16x48xf32>, vector<8x48xf32> -> vector<8x48xf32>
    %c0_187 = arith.constant 0 : index
    %c0_188 = arith.constant 0 : index
    %527 = vector.load %arg5[%c0_187, %c0_188] : memref<1x48xf32, #tpu.memory_space<vmem>>, vector<1x48xf32>
    %528 = vector.broadcast %527 : vector<1x48xf32> to vector<8x48xf32>
    %529 = arith.addf %526, %528 : vector<8x48xf32>
    %530 = vector.extract_strided_slice %523 {offsets = [0, 0], sizes = [8, 16], strides = [1, 1]} : vector<8x96xf32> to vector<8x16xf32>
    %531 = vector.extract_strided_slice %529 {offsets = [0, 0], sizes = [8, 16], strides = [1, 1]} : vector<8x48xf32> to vector<8x16xf32>
    %532 = arith.addf %530, %531 : vector<8x16xf32>
    %533 = arith.negf %532 : vector<8x16xf32>
    %534 = math.exp %533 : vector<8x16xf32>
    %cst_189 = arith.constant 1.000000e+00 : f32
    %535 = vector.broadcast %cst_189 : f32 to vector<8x16xf32>
    %536 = arith.addf %535, %534 : vector<8x16xf32>
    %537 = arith.divf %535, %536 : vector<8x16xf32>
    %538 = vector.extract_strided_slice %523 {offsets = [0, 16], sizes = [8, 16], strides = [1, 1]} : vector<8x96xf32> to vector<8x16xf32>
    %539 = vector.extract_strided_slice %529 {offsets = [0, 16], sizes = [8, 16], strides = [1, 1]} : vector<8x48xf32> to vector<8x16xf32>
    %540 = arith.addf %538, %539 : vector<8x16xf32>
    %541 = arith.negf %540 : vector<8x16xf32>
    %542 = math.exp %541 : vector<8x16xf32>
    %cst_190 = arith.constant 1.000000e+00 : f32
    %543 = vector.broadcast %cst_190 : f32 to vector<8x16xf32>
    %544 = arith.addf %543, %542 : vector<8x16xf32>
    %545 = arith.divf %543, %544 : vector<8x16xf32>
    %546 = vector.extract_strided_slice %523 {offsets = [0, 32], sizes = [8, 16], strides = [1, 1]} : vector<8x96xf32> to vector<8x16xf32>
    %547 = vector.extract_strided_slice %529 {offsets = [0, 32], sizes = [8, 16], strides = [1, 1]} : vector<8x48xf32> to vector<8x16xf32>
    %548 = arith.mulf %537, %547 : vector<8x16xf32>
    %549 = arith.addf %546, %548 : vector<8x16xf32>
    %550 = math.tanh %549 : vector<8x16xf32>
    %cst_191 = arith.constant 1.000000e+00 : f32
    %551 = vector.broadcast %cst_191 : f32 to vector<8x16xf32>
    %552 = arith.subf %551, %545 : vector<8x16xf32>
    %553 = arith.mulf %552, %550 : vector<8x16xf32>
    %554 = arith.mulf %545, %524 : vector<8x16xf32>
    %555 = arith.addf %553, %554 : vector<8x16xf32>
    %556 = vector.broadcast %c5_i32 : i32 to vector<8x1xi32>
    %557 = arith.cmpi slt, %556, %15 : vector<8x1xi32>
    %558 = arith.extui %557 : vector<8x1xi1> to vector<8x1xi32>
    %559 = arith.sitofp %558 : vector<8x1xi32> to vector<8x1xf32>
    %560 = arith.subf %555, %524 : vector<8x16xf32>
    %561 = vector.broadcast %559 : vector<8x1xf32> to vector<8x16xf32>
    %562 = arith.mulf %561, %560 : vector<8x16xf32>
    %563 = arith.addf %524, %562 : vector<8x16xf32>
    %c0_192 = arith.constant 0 : index
    %c0_193 = arith.constant 0 : index
    %564 = vector.load %arg10[%c0_192, %c0_193] : memref<8x16xf32, #tpu.memory_space<vmem>>, vector<8x16xf32>
    tpu.vector_store %arg10[%c0_192, %c0_193], %563 {strides = array<i32>} : memref<8x16xf32, #tpu.memory_space<vmem>>, vector<8x16xf32>,
    %565 = vector.broadcast %559 : vector<8x1xf32> to vector<8x16xf32>
    %566 = arith.mulf %563, %565 : vector<8x16xf32>
    %567 = arith.index_cast %c5_i32 : i32 to index
    %c0_194 = arith.constant 0 : index
    %c0_195 = arith.constant 0 : index
    %568 = vector.load %arg8[%567, %c0_194, %c0_195] : memref<8x8x32xf32, #tpu.memory_space<vmem>>, vector<1x8x16xf32>
    %569 = vector.shape_cast %568 : vector<1x8x16xf32> to vector<8x16xf32>
    %570 = vector.shape_cast %566 : vector<8x16xf32> to vector<1x8x16xf32>
    tpu.vector_store %arg8[%567, %c0_194, %c0_195], %570 {strides = array<i32>} : memref<8x8x32xf32, #tpu.memory_space<vmem>>, vector<1x8x16xf32>,
    %c7_i32_196 = arith.constant 7 : i32
    %571 = arith.subi %c7_i32_196, %c5_i32 : i32
    %572 = arith.index_cast %571 : i32 to index
    %c0_197 = arith.constant 0 : index
    %c0_198 = arith.constant 0 : index
    %573 = vector.load %arg9[%572, %c0_197, %c0_198] : memref<8x8x96xf32, #tpu.memory_space<vmem>>, vector<1x8x96xf32>
    %574 = vector.shape_cast %573 : vector<1x8x96xf32> to vector<8x96xf32>
    %c0_199 = arith.constant 0 : index
    %c0_200 = arith.constant 0 : index
    %575 = vector.load %arg11[%c0_199, %c0_200] : memref<8x16xf32, #tpu.memory_space<vmem>>, vector<8x16xf32>
    %c0_201 = arith.constant 0 : index
    %c0_202 = arith.constant 0 : index
    %576 = vector.load %arg3[%c0_201, %c0_202] : memref<16x48xf32, #tpu.memory_space<vmem>>, vector<16x48xf32>
    %cst_203 = arith.constant dense<0.000000e+00> : vector<8x48xf32>
    %577 = tpu.matmul %575, %576, %cst_203 {dimension_numbers = #tpu.dot_dimension_numbers<[1], [0], [0], [1], [0, 0, 1, 1], [], []>} : vector<8x16xf32>, vector<16x48xf32>, vector<8x48xf32> -> vector<8x48xf32>
    %c0_204 = arith.constant 0 : index
    %c0_205 = arith.constant 0 : index
    %578 = vector.load %arg6[%c0_204, %c0_205] : memref<1x48xf32, #tpu.memory_space<vmem>>, vector<1x48xf32>
    %579 = vector.broadcast %578 : vector<1x48xf32> to vector<8x48xf32>
    %580 = arith.addf %577, %579 : vector<8x48xf32>
    %581 = vector.extract_strided_slice %574 {offsets = [0, 48], sizes = [8, 16], strides = [1, 1]} : vector<8x96xf32> to vector<8x16xf32>
    %582 = vector.extract_strided_slice %580 {offsets = [0, 0], sizes = [8, 16], strides = [1, 1]} : vector<8x48xf32> to vector<8x16xf32>
    %583 = arith.addf %581, %582 : vector<8x16xf32>
    %584 = arith.negf %583 : vector<8x16xf32>
    %585 = math.exp %584 : vector<8x16xf32>
    %cst_206 = arith.constant 1.000000e+00 : f32
    %586 = vector.broadcast %cst_206 : f32 to vector<8x16xf32>
    %587 = arith.addf %586, %585 : vector<8x16xf32>
    %588 = arith.divf %586, %587 : vector<8x16xf32>
    %589 = vector.extract_strided_slice %574 {offsets = [0, 64], sizes = [8, 16], strides = [1, 1]} : vector<8x96xf32> to vector<8x16xf32>
    %590 = vector.extract_strided_slice %580 {offsets = [0, 16], sizes = [8, 16], strides = [1, 1]} : vector<8x48xf32> to vector<8x16xf32>
    %591 = arith.addf %589, %590 : vector<8x16xf32>
    %592 = arith.negf %591 : vector<8x16xf32>
    %593 = math.exp %592 : vector<8x16xf32>
    %cst_207 = arith.constant 1.000000e+00 : f32
    %594 = vector.broadcast %cst_207 : f32 to vector<8x16xf32>
    %595 = arith.addf %594, %593 : vector<8x16xf32>
    %596 = arith.divf %594, %595 : vector<8x16xf32>
    %597 = vector.extract_strided_slice %574 {offsets = [0, 80], sizes = [8, 16], strides = [1, 1]} : vector<8x96xf32> to vector<8x16xf32>
    %598 = vector.extract_strided_slice %580 {offsets = [0, 32], sizes = [8, 16], strides = [1, 1]} : vector<8x48xf32> to vector<8x16xf32>
    %599 = arith.mulf %588, %598 : vector<8x16xf32>
    %600 = arith.addf %597, %599 : vector<8x16xf32>
    %601 = math.tanh %600 : vector<8x16xf32>
    %cst_208 = arith.constant 1.000000e+00 : f32
    %602 = vector.broadcast %cst_208 : f32 to vector<8x16xf32>
    %603 = arith.subf %602, %596 : vector<8x16xf32>
    %604 = arith.mulf %603, %601 : vector<8x16xf32>
    %605 = arith.mulf %596, %575 : vector<8x16xf32>
    %606 = arith.addf %604, %605 : vector<8x16xf32>
    %607 = vector.broadcast %571 : i32 to vector<8x1xi32>
    %608 = arith.cmpi slt, %607, %15 : vector<8x1xi32>
    %609 = arith.extui %608 : vector<8x1xi1> to vector<8x1xi32>
    %610 = arith.sitofp %609 : vector<8x1xi32> to vector<8x1xf32>
    %611 = arith.subf %606, %575 : vector<8x16xf32>
    %612 = vector.broadcast %610 : vector<8x1xf32> to vector<8x16xf32>
    %613 = arith.mulf %612, %611 : vector<8x16xf32>
    %614 = arith.addf %575, %613 : vector<8x16xf32>
    %c0_209 = arith.constant 0 : index
    %c0_210 = arith.constant 0 : index
    %615 = vector.load %arg11[%c0_209, %c0_210] : memref<8x16xf32, #tpu.memory_space<vmem>>, vector<8x16xf32>
    tpu.vector_store %arg11[%c0_209, %c0_210], %614 {strides = array<i32>} : memref<8x16xf32, #tpu.memory_space<vmem>>, vector<8x16xf32>,
    %616 = vector.broadcast %610 : vector<8x1xf32> to vector<8x16xf32>
    %617 = arith.mulf %614, %616 : vector<8x16xf32>
    %618 = arith.index_cast %571 : i32 to index
    %c0_211 = arith.constant 0 : index
    %c16_212 = arith.constant 16 : index
    %619 = vector.load %arg8[%618, %c0_211, %c16_212] : memref<8x8x32xf32, #tpu.memory_space<vmem>>, vector<1x8x16xf32>
    %620 = vector.shape_cast %619 : vector<1x8x16xf32> to vector<8x16xf32>
    %621 = vector.shape_cast %617 : vector<8x16xf32> to vector<1x8x16xf32>
    tpu.vector_store %arg8[%618, %c0_211, %c16_212], %621 {strides = array<i32>} : memref<8x8x32xf32, #tpu.memory_space<vmem>>, vector<1x8x16xf32>,
    %c6_i32 = arith.constant 6 : i32
    %622 = arith.index_cast %c6_i32 : i32 to index
    %c0_213 = arith.constant 0 : index
    %c0_214 = arith.constant 0 : index
    %623 = vector.load %arg9[%622, %c0_213, %c0_214] : memref<8x8x96xf32, #tpu.memory_space<vmem>>, vector<1x8x96xf32>
    %624 = vector.shape_cast %623 : vector<1x8x96xf32> to vector<8x96xf32>
    %c0_215 = arith.constant 0 : index
    %c0_216 = arith.constant 0 : index
    %625 = vector.load %arg10[%c0_215, %c0_216] : memref<8x16xf32, #tpu.memory_space<vmem>>, vector<8x16xf32>
    %c0_217 = arith.constant 0 : index
    %c0_218 = arith.constant 0 : index
    %626 = vector.load %arg2[%c0_217, %c0_218] : memref<16x48xf32, #tpu.memory_space<vmem>>, vector<16x48xf32>
    %cst_219 = arith.constant dense<0.000000e+00> : vector<8x48xf32>
    %627 = tpu.matmul %625, %626, %cst_219 {dimension_numbers = #tpu.dot_dimension_numbers<[1], [0], [0], [1], [0, 0, 1, 1], [], []>} : vector<8x16xf32>, vector<16x48xf32>, vector<8x48xf32> -> vector<8x48xf32>
    %c0_220 = arith.constant 0 : index
    %c0_221 = arith.constant 0 : index
    %628 = vector.load %arg5[%c0_220, %c0_221] : memref<1x48xf32, #tpu.memory_space<vmem>>, vector<1x48xf32>
    %629 = vector.broadcast %628 : vector<1x48xf32> to vector<8x48xf32>
    %630 = arith.addf %627, %629 : vector<8x48xf32>
    %631 = vector.extract_strided_slice %624 {offsets = [0, 0], sizes = [8, 16], strides = [1, 1]} : vector<8x96xf32> to vector<8x16xf32>
    %632 = vector.extract_strided_slice %630 {offsets = [0, 0], sizes = [8, 16], strides = [1, 1]} : vector<8x48xf32> to vector<8x16xf32>
    %633 = arith.addf %631, %632 : vector<8x16xf32>
    %634 = arith.negf %633 : vector<8x16xf32>
    %635 = math.exp %634 : vector<8x16xf32>
    %cst_222 = arith.constant 1.000000e+00 : f32
    %636 = vector.broadcast %cst_222 : f32 to vector<8x16xf32>
    %637 = arith.addf %636, %635 : vector<8x16xf32>
    %638 = arith.divf %636, %637 : vector<8x16xf32>
    %639 = vector.extract_strided_slice %624 {offsets = [0, 16], sizes = [8, 16], strides = [1, 1]} : vector<8x96xf32> to vector<8x16xf32>
    %640 = vector.extract_strided_slice %630 {offsets = [0, 16], sizes = [8, 16], strides = [1, 1]} : vector<8x48xf32> to vector<8x16xf32>
    %641 = arith.addf %639, %640 : vector<8x16xf32>
    %642 = arith.negf %641 : vector<8x16xf32>
    %643 = math.exp %642 : vector<8x16xf32>
    %cst_223 = arith.constant 1.000000e+00 : f32
    %644 = vector.broadcast %cst_223 : f32 to vector<8x16xf32>
    %645 = arith.addf %644, %643 : vector<8x16xf32>
    %646 = arith.divf %644, %645 : vector<8x16xf32>
    %647 = vector.extract_strided_slice %624 {offsets = [0, 32], sizes = [8, 16], strides = [1, 1]} : vector<8x96xf32> to vector<8x16xf32>
    %648 = vector.extract_strided_slice %630 {offsets = [0, 32], sizes = [8, 16], strides = [1, 1]} : vector<8x48xf32> to vector<8x16xf32>
    %649 = arith.mulf %638, %648 : vector<8x16xf32>
    %650 = arith.addf %647, %649 : vector<8x16xf32>
    %651 = math.tanh %650 : vector<8x16xf32>
    %cst_224 = arith.constant 1.000000e+00 : f32
    %652 = vector.broadcast %cst_224 : f32 to vector<8x16xf32>
    %653 = arith.subf %652, %646 : vector<8x16xf32>
    %654 = arith.mulf %653, %651 : vector<8x16xf32>
    %655 = arith.mulf %646, %625 : vector<8x16xf32>
    %656 = arith.addf %654, %655 : vector<8x16xf32>
    %657 = vector.broadcast %c6_i32 : i32 to vector<8x1xi32>
    %658 = arith.cmpi slt, %657, %15 : vector<8x1xi32>
    %659 = arith.extui %658 : vector<8x1xi1> to vector<8x1xi32>
    %660 = arith.sitofp %659 : vector<8x1xi32> to vector<8x1xf32>
    %661 = arith.subf %656, %625 : vector<8x16xf32>
    %662 = vector.broadcast %660 : vector<8x1xf32> to vector<8x16xf32>
    %663 = arith.mulf %662, %661 : vector<8x16xf32>
    %664 = arith.addf %625, %663 : vector<8x16xf32>
    %c0_225 = arith.constant 0 : index
    %c0_226 = arith.constant 0 : index
    %665 = vector.load %arg10[%c0_225, %c0_226] : memref<8x16xf32, #tpu.memory_space<vmem>>, vector<8x16xf32>
    tpu.vector_store %arg10[%c0_225, %c0_226], %664 {strides = array<i32>} : memref<8x16xf32, #tpu.memory_space<vmem>>, vector<8x16xf32>,
    %666 = vector.broadcast %660 : vector<8x1xf32> to vector<8x16xf32>
    %667 = arith.mulf %664, %666 : vector<8x16xf32>
    %668 = arith.index_cast %c6_i32 : i32 to index
    %c0_227 = arith.constant 0 : index
    %c0_228 = arith.constant 0 : index
    %669 = vector.load %arg8[%668, %c0_227, %c0_228] : memref<8x8x32xf32, #tpu.memory_space<vmem>>, vector<1x8x16xf32>
    %670 = vector.shape_cast %669 : vector<1x8x16xf32> to vector<8x16xf32>
    %671 = vector.shape_cast %667 : vector<8x16xf32> to vector<1x8x16xf32>
    tpu.vector_store %arg8[%668, %c0_227, %c0_228], %671 {strides = array<i32>} : memref<8x8x32xf32, #tpu.memory_space<vmem>>, vector<1x8x16xf32>,
    %c7_i32_229 = arith.constant 7 : i32
    %672 = arith.subi %c7_i32_229, %c6_i32 : i32
    %673 = arith.index_cast %672 : i32 to index
    %c0_230 = arith.constant 0 : index
    %c0_231 = arith.constant 0 : index
    %674 = vector.load %arg9[%673, %c0_230, %c0_231] : memref<8x8x96xf32, #tpu.memory_space<vmem>>, vector<1x8x96xf32>
    %675 = vector.shape_cast %674 : vector<1x8x96xf32> to vector<8x96xf32>
    %c0_232 = arith.constant 0 : index
    %c0_233 = arith.constant 0 : index
    %676 = vector.load %arg11[%c0_232, %c0_233] : memref<8x16xf32, #tpu.memory_space<vmem>>, vector<8x16xf32>
    %c0_234 = arith.constant 0 : index
    %c0_235 = arith.constant 0 : index
    %677 = vector.load %arg3[%c0_234, %c0_235] : memref<16x48xf32, #tpu.memory_space<vmem>>, vector<16x48xf32>
    %cst_236 = arith.constant dense<0.000000e+00> : vector<8x48xf32>
    %678 = tpu.matmul %676, %677, %cst_236 {dimension_numbers = #tpu.dot_dimension_numbers<[1], [0], [0], [1], [0, 0, 1, 1], [], []>} : vector<8x16xf32>, vector<16x48xf32>, vector<8x48xf32> -> vector<8x48xf32>
    %c0_237 = arith.constant 0 : index
    %c0_238 = arith.constant 0 : index
    %679 = vector.load %arg6[%c0_237, %c0_238] : memref<1x48xf32, #tpu.memory_space<vmem>>, vector<1x48xf32>
    %680 = vector.broadcast %679 : vector<1x48xf32> to vector<8x48xf32>
    %681 = arith.addf %678, %680 : vector<8x48xf32>
    %682 = vector.extract_strided_slice %675 {offsets = [0, 48], sizes = [8, 16], strides = [1, 1]} : vector<8x96xf32> to vector<8x16xf32>
    %683 = vector.extract_strided_slice %681 {offsets = [0, 0], sizes = [8, 16], strides = [1, 1]} : vector<8x48xf32> to vector<8x16xf32>
    %684 = arith.addf %682, %683 : vector<8x16xf32>
    %685 = arith.negf %684 : vector<8x16xf32>
    %686 = math.exp %685 : vector<8x16xf32>
    %cst_239 = arith.constant 1.000000e+00 : f32
    %687 = vector.broadcast %cst_239 : f32 to vector<8x16xf32>
    %688 = arith.addf %687, %686 : vector<8x16xf32>
    %689 = arith.divf %687, %688 : vector<8x16xf32>
    %690 = vector.extract_strided_slice %675 {offsets = [0, 64], sizes = [8, 16], strides = [1, 1]} : vector<8x96xf32> to vector<8x16xf32>
    %691 = vector.extract_strided_slice %681 {offsets = [0, 16], sizes = [8, 16], strides = [1, 1]} : vector<8x48xf32> to vector<8x16xf32>
    %692 = arith.addf %690, %691 : vector<8x16xf32>
    %693 = arith.negf %692 : vector<8x16xf32>
    %694 = math.exp %693 : vector<8x16xf32>
    %cst_240 = arith.constant 1.000000e+00 : f32
    %695 = vector.broadcast %cst_240 : f32 to vector<8x16xf32>
    %696 = arith.addf %695, %694 : vector<8x16xf32>
    %697 = arith.divf %695, %696 : vector<8x16xf32>
    %698 = vector.extract_strided_slice %675 {offsets = [0, 80], sizes = [8, 16], strides = [1, 1]} : vector<8x96xf32> to vector<8x16xf32>
    %699 = vector.extract_strided_slice %681 {offsets = [0, 32], sizes = [8, 16], strides = [1, 1]} : vector<8x48xf32> to vector<8x16xf32>
    %700 = arith.mulf %689, %699 : vector<8x16xf32>
    %701 = arith.addf %698, %700 : vector<8x16xf32>
    %702 = math.tanh %701 : vector<8x16xf32>
    %cst_241 = arith.constant 1.000000e+00 : f32
    %703 = vector.broadcast %cst_241 : f32 to vector<8x16xf32>
    %704 = arith.subf %703, %697 : vector<8x16xf32>
    %705 = arith.mulf %704, %702 : vector<8x16xf32>
    %706 = arith.mulf %697, %676 : vector<8x16xf32>
    %707 = arith.addf %705, %706 : vector<8x16xf32>
    %708 = vector.broadcast %672 : i32 to vector<8x1xi32>
    %709 = arith.cmpi slt, %708, %15 : vector<8x1xi32>
    %710 = arith.extui %709 : vector<8x1xi1> to vector<8x1xi32>
    %711 = arith.sitofp %710 : vector<8x1xi32> to vector<8x1xf32>
    %712 = arith.subf %707, %676 : vector<8x16xf32>
    %713 = vector.broadcast %711 : vector<8x1xf32> to vector<8x16xf32>
    %714 = arith.mulf %713, %712 : vector<8x16xf32>
    %715 = arith.addf %676, %714 : vector<8x16xf32>
    %c0_242 = arith.constant 0 : index
    %c0_243 = arith.constant 0 : index
    %716 = vector.load %arg11[%c0_242, %c0_243] : memref<8x16xf32, #tpu.memory_space<vmem>>, vector<8x16xf32>
    tpu.vector_store %arg11[%c0_242, %c0_243], %715 {strides = array<i32>} : memref<8x16xf32, #tpu.memory_space<vmem>>, vector<8x16xf32>,
    %717 = vector.broadcast %711 : vector<8x1xf32> to vector<8x16xf32>
    %718 = arith.mulf %715, %717 : vector<8x16xf32>
    %719 = arith.index_cast %672 : i32 to index
    %c0_244 = arith.constant 0 : index
    %c16_245 = arith.constant 16 : index
    %720 = vector.load %arg8[%719, %c0_244, %c16_245] : memref<8x8x32xf32, #tpu.memory_space<vmem>>, vector<1x8x16xf32>
    %721 = vector.shape_cast %720 : vector<1x8x16xf32> to vector<8x16xf32>
    %722 = vector.shape_cast %718 : vector<8x16xf32> to vector<1x8x16xf32>
    tpu.vector_store %arg8[%719, %c0_244, %c16_245], %722 {strides = array<i32>} : memref<8x8x32xf32, #tpu.memory_space<vmem>>, vector<1x8x16xf32>,
    %c7_i32_246 = arith.constant 7 : i32
    %723 = arith.index_cast %c7_i32_246 : i32 to index
    %c0_247 = arith.constant 0 : index
    %c0_248 = arith.constant 0 : index
    %724 = vector.load %arg9[%723, %c0_247, %c0_248] : memref<8x8x96xf32, #tpu.memory_space<vmem>>, vector<1x8x96xf32>
    %725 = vector.shape_cast %724 : vector<1x8x96xf32> to vector<8x96xf32>
    %c0_249 = arith.constant 0 : index
    %c0_250 = arith.constant 0 : index
    %726 = vector.load %arg10[%c0_249, %c0_250] : memref<8x16xf32, #tpu.memory_space<vmem>>, vector<8x16xf32>
    %c0_251 = arith.constant 0 : index
    %c0_252 = arith.constant 0 : index
    %727 = vector.load %arg2[%c0_251, %c0_252] : memref<16x48xf32, #tpu.memory_space<vmem>>, vector<16x48xf32>
    %cst_253 = arith.constant dense<0.000000e+00> : vector<8x48xf32>
    %728 = tpu.matmul %726, %727, %cst_253 {dimension_numbers = #tpu.dot_dimension_numbers<[1], [0], [0], [1], [0, 0, 1, 1], [], []>} : vector<8x16xf32>, vector<16x48xf32>, vector<8x48xf32> -> vector<8x48xf32>
    %c0_254 = arith.constant 0 : index
    %c0_255 = arith.constant 0 : index
    %729 = vector.load %arg5[%c0_254, %c0_255] : memref<1x48xf32, #tpu.memory_space<vmem>>, vector<1x48xf32>
    %730 = vector.broadcast %729 : vector<1x48xf32> to vector<8x48xf32>
    %731 = arith.addf %728, %730 : vector<8x48xf32>
    %732 = vector.extract_strided_slice %725 {offsets = [0, 0], sizes = [8, 16], strides = [1, 1]} : vector<8x96xf32> to vector<8x16xf32>
    %733 = vector.extract_strided_slice %731 {offsets = [0, 0], sizes = [8, 16], strides = [1, 1]} : vector<8x48xf32> to vector<8x16xf32>
    %734 = arith.addf %732, %733 : vector<8x16xf32>
    %735 = arith.negf %734 : vector<8x16xf32>
    %736 = math.exp %735 : vector<8x16xf32>
    %cst_256 = arith.constant 1.000000e+00 : f32
    %737 = vector.broadcast %cst_256 : f32 to vector<8x16xf32>
    %738 = arith.addf %737, %736 : vector<8x16xf32>
    %739 = arith.divf %737, %738 : vector<8x16xf32>
    %740 = vector.extract_strided_slice %725 {offsets = [0, 16], sizes = [8, 16], strides = [1, 1]} : vector<8x96xf32> to vector<8x16xf32>
    %741 = vector.extract_strided_slice %731 {offsets = [0, 16], sizes = [8, 16], strides = [1, 1]} : vector<8x48xf32> to vector<8x16xf32>
    %742 = arith.addf %740, %741 : vector<8x16xf32>
    %743 = arith.negf %742 : vector<8x16xf32>
    %744 = math.exp %743 : vector<8x16xf32>
    %cst_257 = arith.constant 1.000000e+00 : f32
    %745 = vector.broadcast %cst_257 : f32 to vector<8x16xf32>
    %746 = arith.addf %745, %744 : vector<8x16xf32>
    %747 = arith.divf %745, %746 : vector<8x16xf32>
    %748 = vector.extract_strided_slice %725 {offsets = [0, 32], sizes = [8, 16], strides = [1, 1]} : vector<8x96xf32> to vector<8x16xf32>
    %749 = vector.extract_strided_slice %731 {offsets = [0, 32], sizes = [8, 16], strides = [1, 1]} : vector<8x48xf32> to vector<8x16xf32>
    %750 = arith.mulf %739, %749 : vector<8x16xf32>
    %751 = arith.addf %748, %750 : vector<8x16xf32>
    %752 = math.tanh %751 : vector<8x16xf32>
    %cst_258 = arith.constant 1.000000e+00 : f32
    %753 = vector.broadcast %cst_258 : f32 to vector<8x16xf32>
    %754 = arith.subf %753, %747 : vector<8x16xf32>
    %755 = arith.mulf %754, %752 : vector<8x16xf32>
    %756 = arith.mulf %747, %726 : vector<8x16xf32>
    %757 = arith.addf %755, %756 : vector<8x16xf32>
    %758 = vector.broadcast %c7_i32_246 : i32 to vector<8x1xi32>
    %759 = arith.cmpi slt, %758, %15 : vector<8x1xi32>
    %760 = arith.extui %759 : vector<8x1xi1> to vector<8x1xi32>
    %761 = arith.sitofp %760 : vector<8x1xi32> to vector<8x1xf32>
    %762 = arith.subf %757, %726 : vector<8x16xf32>
    %763 = vector.broadcast %761 : vector<8x1xf32> to vector<8x16xf32>
    %764 = arith.mulf %763, %762 : vector<8x16xf32>
    %765 = arith.addf %726, %764 : vector<8x16xf32>
    %c0_259 = arith.constant 0 : index
    %c0_260 = arith.constant 0 : index
    %766 = vector.load %arg10[%c0_259, %c0_260] : memref<8x16xf32, #tpu.memory_space<vmem>>, vector<8x16xf32>
    tpu.vector_store %arg10[%c0_259, %c0_260], %765 {strides = array<i32>} : memref<8x16xf32, #tpu.memory_space<vmem>>, vector<8x16xf32>,
    %767 = vector.broadcast %761 : vector<8x1xf32> to vector<8x16xf32>
    %768 = arith.mulf %765, %767 : vector<8x16xf32>
    %769 = arith.index_cast %c7_i32_246 : i32 to index
    %c0_261 = arith.constant 0 : index
    %c0_262 = arith.constant 0 : index
    %770 = vector.load %arg8[%769, %c0_261, %c0_262] : memref<8x8x32xf32, #tpu.memory_space<vmem>>, vector<1x8x16xf32>
    %771 = vector.shape_cast %770 : vector<1x8x16xf32> to vector<8x16xf32>
    %772 = vector.shape_cast %768 : vector<8x16xf32> to vector<1x8x16xf32>
    tpu.vector_store %arg8[%769, %c0_261, %c0_262], %772 {strides = array<i32>} : memref<8x8x32xf32, #tpu.memory_space<vmem>>, vector<1x8x16xf32>,
    %c7_i32_263 = arith.constant 7 : i32
    %773 = arith.subi %c7_i32_263, %c7_i32_246 : i32
    %774 = arith.index_cast %773 : i32 to index
    %c0_264 = arith.constant 0 : index
    %c0_265 = arith.constant 0 : index
    %775 = vector.load %arg9[%774, %c0_264, %c0_265] : memref<8x8x96xf32, #tpu.memory_space<vmem>>, vector<1x8x96xf32>
    %776 = vector.shape_cast %775 : vector<1x8x96xf32> to vector<8x96xf32>
    %c0_266 = arith.constant 0 : index
    %c0_267 = arith.constant 0 : index
    %777 = vector.load %arg11[%c0_266, %c0_267] : memref<8x16xf32, #tpu.memory_space<vmem>>, vector<8x16xf32>
    %c0_268 = arith.constant 0 : index
    %c0_269 = arith.constant 0 : index
    %778 = vector.load %arg3[%c0_268, %c0_269] : memref<16x48xf32, #tpu.memory_space<vmem>>, vector<16x48xf32>
    %cst_270 = arith.constant dense<0.000000e+00> : vector<8x48xf32>
    %779 = tpu.matmul %777, %778, %cst_270 {dimension_numbers = #tpu.dot_dimension_numbers<[1], [0], [0], [1], [0, 0, 1, 1], [], []>} : vector<8x16xf32>, vector<16x48xf32>, vector<8x48xf32> -> vector<8x48xf32>
    %c0_271 = arith.constant 0 : index
    %c0_272 = arith.constant 0 : index
    %780 = vector.load %arg6[%c0_271, %c0_272] : memref<1x48xf32, #tpu.memory_space<vmem>>, vector<1x48xf32>
    %781 = vector.broadcast %780 : vector<1x48xf32> to vector<8x48xf32>
    %782 = arith.addf %779, %781 : vector<8x48xf32>
    %783 = vector.extract_strided_slice %776 {offsets = [0, 48], sizes = [8, 16], strides = [1, 1]} : vector<8x96xf32> to vector<8x16xf32>
    %784 = vector.extract_strided_slice %782 {offsets = [0, 0], sizes = [8, 16], strides = [1, 1]} : vector<8x48xf32> to vector<8x16xf32>
    %785 = arith.addf %783, %784 : vector<8x16xf32>
    %786 = arith.negf %785 : vector<8x16xf32>
    %787 = math.exp %786 : vector<8x16xf32>
    %cst_273 = arith.constant 1.000000e+00 : f32
    %788 = vector.broadcast %cst_273 : f32 to vector<8x16xf32>
    %789 = arith.addf %788, %787 : vector<8x16xf32>
    %790 = arith.divf %788, %789 : vector<8x16xf32>
    %791 = vector.extract_strided_slice %776 {offsets = [0, 64], sizes = [8, 16], strides = [1, 1]} : vector<8x96xf32> to vector<8x16xf32>
    %792 = vector.extract_strided_slice %782 {offsets = [0, 16], sizes = [8, 16], strides = [1, 1]} : vector<8x48xf32> to vector<8x16xf32>
    %793 = arith.addf %791, %792 : vector<8x16xf32>
    %794 = arith.negf %793 : vector<8x16xf32>
    %795 = math.exp %794 : vector<8x16xf32>
    %cst_274 = arith.constant 1.000000e+00 : f32
    %796 = vector.broadcast %cst_274 : f32 to vector<8x16xf32>
    %797 = arith.addf %796, %795 : vector<8x16xf32>
    %798 = arith.divf %796, %797 : vector<8x16xf32>
    %799 = vector.extract_strided_slice %776 {offsets = [0, 80], sizes = [8, 16], strides = [1, 1]} : vector<8x96xf32> to vector<8x16xf32>
    %800 = vector.extract_strided_slice %782 {offsets = [0, 32], sizes = [8, 16], strides = [1, 1]} : vector<8x48xf32> to vector<8x16xf32>
    %801 = arith.mulf %790, %800 : vector<8x16xf32>
    %802 = arith.addf %799, %801 : vector<8x16xf32>
    %803 = math.tanh %802 : vector<8x16xf32>
    %cst_275 = arith.constant 1.000000e+00 : f32
    %804 = vector.broadcast %cst_275 : f32 to vector<8x16xf32>
    %805 = arith.subf %804, %798 : vector<8x16xf32>
    %806 = arith.mulf %805, %803 : vector<8x16xf32>
    %807 = arith.mulf %798, %777 : vector<8x16xf32>
    %808 = arith.addf %806, %807 : vector<8x16xf32>
    %809 = vector.broadcast %773 : i32 to vector<8x1xi32>
    %810 = arith.cmpi slt, %809, %15 : vector<8x1xi32>
    %811 = arith.extui %810 : vector<8x1xi1> to vector<8x1xi32>
    %812 = arith.sitofp %811 : vector<8x1xi32> to vector<8x1xf32>
    %813 = arith.subf %808, %777 : vector<8x16xf32>
    %814 = vector.broadcast %812 : vector<8x1xf32> to vector<8x16xf32>
    %815 = arith.mulf %814, %813 : vector<8x16xf32>
    %816 = arith.addf %777, %815 : vector<8x16xf32>
    %c0_276 = arith.constant 0 : index
    %c0_277 = arith.constant 0 : index
    %817 = vector.load %arg11[%c0_276, %c0_277] : memref<8x16xf32, #tpu.memory_space<vmem>>, vector<8x16xf32>
    tpu.vector_store %arg11[%c0_276, %c0_277], %816 {strides = array<i32>} : memref<8x16xf32, #tpu.memory_space<vmem>>, vector<8x16xf32>,
    %818 = vector.broadcast %812 : vector<8x1xf32> to vector<8x16xf32>
    %819 = arith.mulf %816, %818 : vector<8x16xf32>
    %820 = arith.index_cast %773 : i32 to index
    %c0_278 = arith.constant 0 : index
    %c16_279 = arith.constant 16 : index
    %821 = vector.load %arg8[%820, %c0_278, %c16_279] : memref<8x8x32xf32, #tpu.memory_space<vmem>>, vector<1x8x16xf32>
    %822 = vector.shape_cast %821 : vector<1x8x16xf32> to vector<8x16xf32>
    %823 = vector.shape_cast %819 : vector<8x16xf32> to vector<1x8x16xf32>
    tpu.vector_store %arg8[%820, %c0_278, %c16_279], %823 {strides = array<i32>} : memref<8x8x32xf32, #tpu.memory_space<vmem>>, vector<1x8x16xf32>,
    %c8_i32 = arith.constant 8 : i32
    return
  }
}

module attributes {stable_mosaic.version = 11 : i64} {
  func.func @_bigru_layer_kernel(%arg0: memref<8x8x32xf32, #tpu.memory_space<vmem>>, %arg1: memref<32x96xbf16, #tpu.memory_space<vmem>>, %arg2: memref<16x48xf32, #tpu.memory_space<vmem>>, %arg3: memref<16x48xf32, #tpu.memory_space<vmem>>, %arg4: memref<1x96xf32, #tpu.memory_space<vmem>>, %arg5: memref<1x48xf32, #tpu.memory_space<vmem>>, %arg6: memref<1x48xf32, #tpu.memory_space<vmem>>, %arg7: memref<8x1xi32, #tpu.memory_space<vmem>>, %arg8: memref<8x8x32xf32, #tpu.memory_space<vmem>>, %arg9: memref<8x8x96xf32, #tpu.memory_space<vmem>>, %arg10: memref<8x16xf32, #tpu.memory_space<vmem>>, %arg11: memref<8x16xf32, #tpu.memory_space<vmem>>) attributes {dimension_semantics = [], scalar_prefetch = 0 : i64, scratch_operands = 3 : i64, tpu.core_type = #tpu.core_type<tc>} {
    %c0 = arith.constant 0 : index
    %c0_0 = arith.constant 0 : index
    %c0_1 = arith.constant 0 : index
    %0 = vector.load %arg0[%c0, %c0_0, %c0_1] : memref<8x8x32xf32, #tpu.memory_space<vmem>>, vector<8x8x32xf32>
    %1 = vector.shape_cast %0 : vector<8x8x32xf32> to vector<64x32xf32>
    %2 = arith.truncf %1 : vector<64x32xf32> to vector<64x32xbf16>
    %c0_2 = arith.constant 0 : index
    %c0_3 = arith.constant 0 : index
    %3 = vector.load %arg1[%c0_2, %c0_3] : memref<32x96xbf16, #tpu.memory_space<vmem>>, vector<32x96xbf16>
    %cst = arith.constant dense<0.000000e+00> : vector<64x96xf32>
    %4 = tpu.matmul %2, %3, %cst {dimension_numbers = #tpu.dot_dimension_numbers<[1], [0], [0], [1], [0, 0, 1, 1], [], []>} : vector<64x32xbf16>, vector<32x96xbf16>, vector<64x96xf32> -> vector<64x96xf32>
    %5 = vector.shape_cast %4 : vector<64x96xf32> to vector<8x8x96xf32>
    %c0_4 = arith.constant 0 : index
    %c0_5 = arith.constant 0 : index
    %6 = vector.load %arg4[%c0_4, %c0_5] : memref<1x96xf32, #tpu.memory_space<vmem>>, vector<1x96xf32>
    %7 = vector.shape_cast %6 : vector<1x96xf32> to vector<1x1x96xf32>
    %8 = vector.broadcast %7 : vector<1x1x96xf32> to vector<8x8x96xf32>
    %9 = arith.addf %5, %8 : vector<8x8x96xf32>
    %c0_6 = arith.constant 0 : index
    %c0_7 = arith.constant 0 : index
    %c0_8 = arith.constant 0 : index
    %10 = vector.load %arg9[%c0_6, %c0_7, %c0_8] : memref<8x8x96xf32, #tpu.memory_space<vmem>>, vector<8x8x96xf32>
    tpu.vector_store %arg9[%c0_6, %c0_7, %c0_8], %9 {strides = array<i32>} : memref<8x8x96xf32, #tpu.memory_space<vmem>>, vector<8x8x96xf32>,
    %cst_9 = arith.constant 0.000000e+00 : f32
    %11 = vector.broadcast %cst_9 : f32 to vector<8x16xf32>
    %c0_10 = arith.constant 0 : index
    %c0_11 = arith.constant 0 : index
    %12 = vector.load %arg10[%c0_10, %c0_11] : memref<8x16xf32, #tpu.memory_space<vmem>>, vector<8x16xf32>
    tpu.vector_store %arg10[%c0_10, %c0_11], %11 {strides = array<i32>} : memref<8x16xf32, #tpu.memory_space<vmem>>, vector<8x16xf32>,
    %cst_12 = arith.constant 0.000000e+00 : f32
    %13 = vector.broadcast %cst_12 : f32 to vector<8x16xf32>
    %c0_13 = arith.constant 0 : index
    %c0_14 = arith.constant 0 : index
    %14 = vector.load %arg11[%c0_13, %c0_14] : memref<8x16xf32, #tpu.memory_space<vmem>>, vector<8x16xf32>
    tpu.vector_store %arg11[%c0_13, %c0_14], %13 {strides = array<i32>} : memref<8x16xf32, #tpu.memory_space<vmem>>, vector<8x16xf32>,
    %c0_15 = arith.constant 0 : index
    %c0_16 = arith.constant 0 : index
    %15 = vector.load %arg7[%c0_15, %c0_16] : memref<8x1xi32, #tpu.memory_space<vmem>>, vector<8x1xi32>
    %c0_i32 = arith.constant 0 : i32
    %16 = arith.index_cast %c0_i32 : i32 to index
    %c0_17 = arith.constant 0 : index
    %c0_18 = arith.constant 0 : index
    %17 = vector.load %arg9[%16, %c0_17, %c0_18] : memref<8x8x96xf32, #tpu.memory_space<vmem>>, vector<1x8x96xf32>
    %18 = vector.shape_cast %17 : vector<1x8x96xf32> to vector<8x96xf32>
    %c0_19 = arith.constant 0 : index
    %c0_20 = arith.constant 0 : index
    %19 = vector.load %arg10[%c0_19, %c0_20] : memref<8x16xf32, #tpu.memory_space<vmem>>, vector<8x16xf32>
    %c0_21 = arith.constant 0 : index
    %c0_22 = arith.constant 0 : index
    %20 = vector.load %arg2[%c0_21, %c0_22] : memref<16x48xf32, #tpu.memory_space<vmem>>, vector<16x48xf32>
    %cst_23 = arith.constant dense<0.000000e+00> : vector<8x48xf32>
    %21 = tpu.matmul %19, %20, %cst_23 {dimension_numbers = #tpu.dot_dimension_numbers<[1], [0], [0], [1], [0, 0, 1, 1], [], []>} : vector<8x16xf32>, vector<16x48xf32>, vector<8x48xf32> -> vector<8x48xf32>
    %c0_24 = arith.constant 0 : index
    %c0_25 = arith.constant 0 : index
    %22 = vector.load %arg5[%c0_24, %c0_25] : memref<1x48xf32, #tpu.memory_space<vmem>>, vector<1x48xf32>
    %23 = vector.broadcast %22 : vector<1x48xf32> to vector<8x48xf32>
    %24 = arith.addf %21, %23 : vector<8x48xf32>
    %25 = vector.extract_strided_slice %18 {offsets = [0, 0], sizes = [8, 16], strides = [1, 1]} : vector<8x96xf32> to vector<8x16xf32>
    %26 = vector.extract_strided_slice %24 {offsets = [0, 0], sizes = [8, 16], strides = [1, 1]} : vector<8x48xf32> to vector<8x16xf32>
    %27 = arith.addf %25, %26 : vector<8x16xf32>
    %28 = arith.negf %27 : vector<8x16xf32>
    %29 = math.exp %28 : vector<8x16xf32>
    %cst_26 = arith.constant 1.000000e+00 : f32
    %30 = vector.broadcast %cst_26 : f32 to vector<8x16xf32>
    %31 = arith.addf %30, %29 : vector<8x16xf32>
    %32 = arith.divf %30, %31 : vector<8x16xf32>
    %33 = vector.extract_strided_slice %18 {offsets = [0, 16], sizes = [8, 16], strides = [1, 1]} : vector<8x96xf32> to vector<8x16xf32>
    %34 = vector.extract_strided_slice %24 {offsets = [0, 16], sizes = [8, 16], strides = [1, 1]} : vector<8x48xf32> to vector<8x16xf32>
    %35 = arith.addf %33, %34 : vector<8x16xf32>
    %36 = arith.negf %35 : vector<8x16xf32>
    %37 = math.exp %36 : vector<8x16xf32>
    %cst_27 = arith.constant 1.000000e+00 : f32
    %38 = vector.broadcast %cst_27 : f32 to vector<8x16xf32>
    %39 = arith.addf %38, %37 : vector<8x16xf32>
    %40 = arith.divf %38, %39 : vector<8x16xf32>
    %41 = vector.extract_strided_slice %18 {offsets = [0, 32], sizes = [8, 16], strides = [1, 1]} : vector<8x96xf32> to vector<8x16xf32>
    %42 = vector.extract_strided_slice %24 {offsets = [0, 32], sizes = [8, 16], strides = [1, 1]} : vector<8x48xf32> to vector<8x16xf32>
    %43 = arith.mulf %32, %42 : vector<8x16xf32>
    %44 = arith.addf %41, %43 : vector<8x16xf32>
    %45 = math.tanh %44 : vector<8x16xf32>
    %cst_28 = arith.constant 1.000000e+00 : f32
    %46 = vector.broadcast %cst_28 : f32 to vector<8x16xf32>
    %47 = arith.subf %46, %40 : vector<8x16xf32>
    %48 = arith.mulf %47, %45 : vector<8x16xf32>
    %49 = arith.mulf %40, %19 : vector<8x16xf32>
    %50 = arith.addf %48, %49 : vector<8x16xf32>
    %51 = vector.broadcast %c0_i32 : i32 to vector<8x1xi32>
    %52 = arith.cmpi slt, %51, %15 : vector<8x1xi32>
    %53 = arith.extui %52 : vector<8x1xi1> to vector<8x1xi32>
    %54 = arith.sitofp %53 : vector<8x1xi32> to vector<8x1xf32>
    %55 = arith.subf %50, %19 : vector<8x16xf32>
    %56 = vector.broadcast %54 : vector<8x1xf32> to vector<8x16xf32>
    %57 = arith.mulf %56, %55 : vector<8x16xf32>
    %58 = arith.addf %19, %57 : vector<8x16xf32>
    %c0_29 = arith.constant 0 : index
    %c0_30 = arith.constant 0 : index
    %59 = vector.load %arg10[%c0_29, %c0_30] : memref<8x16xf32, #tpu.memory_space<vmem>>, vector<8x16xf32>
    tpu.vector_store %arg10[%c0_29, %c0_30], %58 {strides = array<i32>} : memref<8x16xf32, #tpu.memory_space<vmem>>, vector<8x16xf32>,
    %60 = vector.broadcast %54 : vector<8x1xf32> to vector<8x16xf32>
    %61 = arith.mulf %58, %60 : vector<8x16xf32>
    %62 = arith.index_cast %c0_i32 : i32 to index
    %c0_31 = arith.constant 0 : index
    %c0_32 = arith.constant 0 : index
    %63 = vector.load %arg8[%62, %c0_31, %c0_32] : memref<8x8x32xf32, #tpu.memory_space<vmem>>, vector<1x8x16xf32>
    %64 = vector.shape_cast %63 : vector<1x8x16xf32> to vector<8x16xf32>
    %65 = vector.shape_cast %61 : vector<8x16xf32> to vector<1x8x16xf32>
    tpu.vector_store %arg8[%62, %c0_31, %c0_32], %65 {strides = array<i32>} : memref<8x8x32xf32, #tpu.memory_space<vmem>>, vector<1x8x16xf32>,
    %c7_i32 = arith.constant 7 : i32
    %66 = arith.subi %c7_i32, %c0_i32 : i32
    %67 = arith.index_cast %66 : i32 to index
    %c0_33 = arith.constant 0 : index
    %c0_34 = arith.constant 0 : index
    %68 = vector.load %arg9[%67, %c0_33, %c0_34] : memref<8x8x96xf32, #tpu.memory_space<vmem>>, vector<1x8x96xf32>
    %69 = vector.shape_cast %68 : vector<1x8x96xf32> to vector<8x96xf32>
    %c0_35 = arith.constant 0 : index
    %c0_36 = arith.constant 0 : index
    %70 = vector.load %arg11[%c0_35, %c0_36] : memref<8x16xf32, #tpu.memory_space<vmem>>, vector<8x16xf32>
    %c0_37 = arith.constant 0 : index
    %c0_38 = arith.constant 0 : index
    %71 = vector.load %arg3[%c0_37, %c0_38] : memref<16x48xf32, #tpu.memory_space<vmem>>, vector<16x48xf32>
    %cst_39 = arith.constant dense<0.000000e+00> : vector<8x48xf32>
    %72 = tpu.matmul %70, %71, %cst_39 {dimension_numbers = #tpu.dot_dimension_numbers<[1], [0], [0], [1], [0, 0, 1, 1], [], []>} : vector<8x16xf32>, vector<16x48xf32>, vector<8x48xf32> -> vector<8x48xf32>
    %c0_40 = arith.constant 0 : index
    %c0_41 = arith.constant 0 : index
    %73 = vector.load %arg6[%c0_40, %c0_41] : memref<1x48xf32, #tpu.memory_space<vmem>>, vector<1x48xf32>
    %74 = vector.broadcast %73 : vector<1x48xf32> to vector<8x48xf32>
    %75 = arith.addf %72, %74 : vector<8x48xf32>
    %76 = vector.extract_strided_slice %69 {offsets = [0, 48], sizes = [8, 16], strides = [1, 1]} : vector<8x96xf32> to vector<8x16xf32>
    %77 = vector.extract_strided_slice %75 {offsets = [0, 0], sizes = [8, 16], strides = [1, 1]} : vector<8x48xf32> to vector<8x16xf32>
    %78 = arith.addf %76, %77 : vector<8x16xf32>
    %79 = arith.negf %78 : vector<8x16xf32>
    %80 = math.exp %79 : vector<8x16xf32>
    %cst_42 = arith.constant 1.000000e+00 : f32
    %81 = vector.broadcast %cst_42 : f32 to vector<8x16xf32>
    %82 = arith.addf %81, %80 : vector<8x16xf32>
    %83 = arith.divf %81, %82 : vector<8x16xf32>
    %84 = vector.extract_strided_slice %69 {offsets = [0, 64], sizes = [8, 16], strides = [1, 1]} : vector<8x96xf32> to vector<8x16xf32>
    %85 = vector.extract_strided_slice %75 {offsets = [0, 16], sizes = [8, 16], strides = [1, 1]} : vector<8x48xf32> to vector<8x16xf32>
    %86 = arith.addf %84, %85 : vector<8x16xf32>
    %87 = arith.negf %86 : vector<8x16xf32>
    %88 = math.exp %87 : vector<8x16xf32>
    %cst_43 = arith.constant 1.000000e+00 : f32
    %89 = vector.broadcast %cst_43 : f32 to vector<8x16xf32>
    %90 = arith.addf %89, %88 : vector<8x16xf32>
    %91 = arith.divf %89, %90 : vector<8x16xf32>
    %92 = vector.extract_strided_slice %69 {offsets = [0, 80], sizes = [8, 16], strides = [1, 1]} : vector<8x96xf32> to vector<8x16xf32>
    %93 = vector.extract_strided_slice %75 {offsets = [0, 32], sizes = [8, 16], strides = [1, 1]} : vector<8x48xf32> to vector<8x16xf32>
    %94 = arith.mulf %83, %93 : vector<8x16xf32>
    %95 = arith.addf %92, %94 : vector<8x16xf32>
    %96 = math.tanh %95 : vector<8x16xf32>
    %cst_44 = arith.constant 1.000000e+00 : f32
    %97 = vector.broadcast %cst_44 : f32 to vector<8x16xf32>
    %98 = arith.subf %97, %91 : vector<8x16xf32>
    %99 = arith.mulf %98, %96 : vector<8x16xf32>
    %100 = arith.mulf %91, %70 : vector<8x16xf32>
    %101 = arith.addf %99, %100 : vector<8x16xf32>
    %102 = vector.broadcast %66 : i32 to vector<8x1xi32>
    %103 = arith.cmpi slt, %102, %15 : vector<8x1xi32>
    %104 = arith.extui %103 : vector<8x1xi1> to vector<8x1xi32>
    %105 = arith.sitofp %104 : vector<8x1xi32> to vector<8x1xf32>
    %106 = arith.subf %101, %70 : vector<8x16xf32>
    %107 = vector.broadcast %105 : vector<8x1xf32> to vector<8x16xf32>
    %108 = arith.mulf %107, %106 : vector<8x16xf32>
    %109 = arith.addf %70, %108 : vector<8x16xf32>
    %c0_45 = arith.constant 0 : index
    %c0_46 = arith.constant 0 : index
    %110 = vector.load %arg11[%c0_45, %c0_46] : memref<8x16xf32, #tpu.memory_space<vmem>>, vector<8x16xf32>
    tpu.vector_store %arg11[%c0_45, %c0_46], %109 {strides = array<i32>} : memref<8x16xf32, #tpu.memory_space<vmem>>, vector<8x16xf32>,
    %111 = vector.broadcast %105 : vector<8x1xf32> to vector<8x16xf32>
    %112 = arith.mulf %109, %111 : vector<8x16xf32>
    %113 = arith.index_cast %66 : i32 to index
    %c0_47 = arith.constant 0 : index
    %c16 = arith.constant 16 : index
    %114 = vector.load %arg8[%113, %c0_47, %c16] : memref<8x8x32xf32, #tpu.memory_space<vmem>>, vector<1x8x16xf32>
    %115 = vector.shape_cast %114 : vector<1x8x16xf32> to vector<8x16xf32>
    %116 = vector.shape_cast %112 : vector<8x16xf32> to vector<1x8x16xf32>
    tpu.vector_store %arg8[%113, %c0_47, %c16], %116 {strides = array<i32>} : memref<8x8x32xf32, #tpu.memory_space<vmem>>, vector<1x8x16xf32>,
    %c1_i32 = arith.constant 1 : i32
    %117 = arith.index_cast %c1_i32 : i32 to index
    %c0_48 = arith.constant 0 : index
    %c0_49 = arith.constant 0 : index
    %118 = vector.load %arg9[%117, %c0_48, %c0_49] : memref<8x8x96xf32, #tpu.memory_space<vmem>>, vector<1x8x96xf32>
    %119 = vector.shape_cast %118 : vector<1x8x96xf32> to vector<8x96xf32>
    %c0_50 = arith.constant 0 : index
    %c0_51 = arith.constant 0 : index
    %120 = vector.load %arg10[%c0_50, %c0_51] : memref<8x16xf32, #tpu.memory_space<vmem>>, vector<8x16xf32>
    %c0_52 = arith.constant 0 : index
    %c0_53 = arith.constant 0 : index
    %121 = vector.load %arg2[%c0_52, %c0_53] : memref<16x48xf32, #tpu.memory_space<vmem>>, vector<16x48xf32>
    %cst_54 = arith.constant dense<0.000000e+00> : vector<8x48xf32>
    %122 = tpu.matmul %120, %121, %cst_54 {dimension_numbers = #tpu.dot_dimension_numbers<[1], [0], [0], [1], [0, 0, 1, 1], [], []>} : vector<8x16xf32>, vector<16x48xf32>, vector<8x48xf32> -> vector<8x48xf32>
    %c0_55 = arith.constant 0 : index
    %c0_56 = arith.constant 0 : index
    %123 = vector.load %arg5[%c0_55, %c0_56] : memref<1x48xf32, #tpu.memory_space<vmem>>, vector<1x48xf32>
    %124 = vector.broadcast %123 : vector<1x48xf32> to vector<8x48xf32>
    %125 = arith.addf %122, %124 : vector<8x48xf32>
    %126 = vector.extract_strided_slice %119 {offsets = [0, 0], sizes = [8, 16], strides = [1, 1]} : vector<8x96xf32> to vector<8x16xf32>
    %127 = vector.extract_strided_slice %125 {offsets = [0, 0], sizes = [8, 16], strides = [1, 1]} : vector<8x48xf32> to vector<8x16xf32>
    %128 = arith.addf %126, %127 : vector<8x16xf32>
    %129 = arith.negf %128 : vector<8x16xf32>
    %130 = math.exp %129 : vector<8x16xf32>
    %cst_57 = arith.constant 1.000000e+00 : f32
    %131 = vector.broadcast %cst_57 : f32 to vector<8x16xf32>
    %132 = arith.addf %131, %130 : vector<8x16xf32>
    %133 = arith.divf %131, %132 : vector<8x16xf32>
    %134 = vector.extract_strided_slice %119 {offsets = [0, 16], sizes = [8, 16], strides = [1, 1]} : vector<8x96xf32> to vector<8x16xf32>
    %135 = vector.extract_strided_slice %125 {offsets = [0, 16], sizes = [8, 16], strides = [1, 1]} : vector<8x48xf32> to vector<8x16xf32>
    %136 = arith.addf %134, %135 : vector<8x16xf32>
    %137 = arith.negf %136 : vector<8x16xf32>
    %138 = math.exp %137 : vector<8x16xf32>
    %cst_58 = arith.constant 1.000000e+00 : f32
    %139 = vector.broadcast %cst_58 : f32 to vector<8x16xf32>
    %140 = arith.addf %139, %138 : vector<8x16xf32>
    %141 = arith.divf %139, %140 : vector<8x16xf32>
    %142 = vector.extract_strided_slice %119 {offsets = [0, 32], sizes = [8, 16], strides = [1, 1]} : vector<8x96xf32> to vector<8x16xf32>
    %143 = vector.extract_strided_slice %125 {offsets = [0, 32], sizes = [8, 16], strides = [1, 1]} : vector<8x48xf32> to vector<8x16xf32>
    %144 = arith.mulf %133, %143 : vector<8x16xf32>
    %145 = arith.addf %142, %144 : vector<8x16xf32>
    %146 = math.tanh %145 : vector<8x16xf32>
    %cst_59 = arith.constant 1.000000e+00 : f32
    %147 = vector.broadcast %cst_59 : f32 to vector<8x16xf32>
    %148 = arith.subf %147, %141 : vector<8x16xf32>
    %149 = arith.mulf %148, %146 : vector<8x16xf32>
    %150 = arith.mulf %141, %120 : vector<8x16xf32>
    %151 = arith.addf %149, %150 : vector<8x16xf32>
    %152 = vector.broadcast %c1_i32 : i32 to vector<8x1xi32>
    %153 = arith.cmpi slt, %152, %15 : vector<8x1xi32>
    %154 = arith.extui %153 : vector<8x1xi1> to vector<8x1xi32>
    %155 = arith.sitofp %154 : vector<8x1xi32> to vector<8x1xf32>
    %156 = arith.subf %151, %120 : vector<8x16xf32>
    %157 = vector.broadcast %155 : vector<8x1xf32> to vector<8x16xf32>
    %158 = arith.mulf %157, %156 : vector<8x16xf32>
    %159 = arith.addf %120, %158 : vector<8x16xf32>
    %c0_60 = arith.constant 0 : index
    %c0_61 = arith.constant 0 : index
    %160 = vector.load %arg10[%c0_60, %c0_61] : memref<8x16xf32, #tpu.memory_space<vmem>>, vector<8x16xf32>
    tpu.vector_store %arg10[%c0_60, %c0_61], %159 {strides = array<i32>} : memref<8x16xf32, #tpu.memory_space<vmem>>, vector<8x16xf32>,
    %161 = vector.broadcast %155 : vector<8x1xf32> to vector<8x16xf32>
    %162 = arith.mulf %159, %161 : vector<8x16xf32>
    %163 = arith.index_cast %c1_i32 : i32 to index
    %c0_62 = arith.constant 0 : index
    %c0_63 = arith.constant 0 : index
    %164 = vector.load %arg8[%163, %c0_62, %c0_63] : memref<8x8x32xf32, #tpu.memory_space<vmem>>, vector<1x8x16xf32>
    %165 = vector.shape_cast %164 : vector<1x8x16xf32> to vector<8x16xf32>
    %166 = vector.shape_cast %162 : vector<8x16xf32> to vector<1x8x16xf32>
    tpu.vector_store %arg8[%163, %c0_62, %c0_63], %166 {strides = array<i32>} : memref<8x8x32xf32, #tpu.memory_space<vmem>>, vector<1x8x16xf32>,
    %c7_i32_64 = arith.constant 7 : i32
    %167 = arith.subi %c7_i32_64, %c1_i32 : i32
    %168 = arith.index_cast %167 : i32 to index
    %c0_65 = arith.constant 0 : index
    %c0_66 = arith.constant 0 : index
    %169 = vector.load %arg9[%168, %c0_65, %c0_66] : memref<8x8x96xf32, #tpu.memory_space<vmem>>, vector<1x8x96xf32>
    %170 = vector.shape_cast %169 : vector<1x8x96xf32> to vector<8x96xf32>
    %c0_67 = arith.constant 0 : index
    %c0_68 = arith.constant 0 : index
    %171 = vector.load %arg11[%c0_67, %c0_68] : memref<8x16xf32, #tpu.memory_space<vmem>>, vector<8x16xf32>
    %c0_69 = arith.constant 0 : index
    %c0_70 = arith.constant 0 : index
    %172 = vector.load %arg3[%c0_69, %c0_70] : memref<16x48xf32, #tpu.memory_space<vmem>>, vector<16x48xf32>
    %cst_71 = arith.constant dense<0.000000e+00> : vector<8x48xf32>
    %173 = tpu.matmul %171, %172, %cst_71 {dimension_numbers = #tpu.dot_dimension_numbers<[1], [0], [0], [1], [0, 0, 1, 1], [], []>} : vector<8x16xf32>, vector<16x48xf32>, vector<8x48xf32> -> vector<8x48xf32>
    %c0_72 = arith.constant 0 : index
    %c0_73 = arith.constant 0 : index
    %174 = vector.load %arg6[%c0_72, %c0_73] : memref<1x48xf32, #tpu.memory_space<vmem>>, vector<1x48xf32>
    %175 = vector.broadcast %174 : vector<1x48xf32> to vector<8x48xf32>
    %176 = arith.addf %173, %175 : vector<8x48xf32>
    %177 = vector.extract_strided_slice %170 {offsets = [0, 48], sizes = [8, 16], strides = [1, 1]} : vector<8x96xf32> to vector<8x16xf32>
    %178 = vector.extract_strided_slice %176 {offsets = [0, 0], sizes = [8, 16], strides = [1, 1]} : vector<8x48xf32> to vector<8x16xf32>
    %179 = arith.addf %177, %178 : vector<8x16xf32>
    %180 = arith.negf %179 : vector<8x16xf32>
    %181 = math.exp %180 : vector<8x16xf32>
    %cst_74 = arith.constant 1.000000e+00 : f32
    %182 = vector.broadcast %cst_74 : f32 to vector<8x16xf32>
    %183 = arith.addf %182, %181 : vector<8x16xf32>
    %184 = arith.divf %182, %183 : vector<8x16xf32>
    %185 = vector.extract_strided_slice %170 {offsets = [0, 64], sizes = [8, 16], strides = [1, 1]} : vector<8x96xf32> to vector<8x16xf32>
    %186 = vector.extract_strided_slice %176 {offsets = [0, 16], sizes = [8, 16], strides = [1, 1]} : vector<8x48xf32> to vector<8x16xf32>
    %187 = arith.addf %185, %186 : vector<8x16xf32>
    %188 = arith.negf %187 : vector<8x16xf32>
    %189 = math.exp %188 : vector<8x16xf32>
    %cst_75 = arith.constant 1.000000e+00 : f32
    %190 = vector.broadcast %cst_75 : f32 to vector<8x16xf32>
    %191 = arith.addf %190, %189 : vector<8x16xf32>
    %192 = arith.divf %190, %191 : vector<8x16xf32>
    %193 = vector.extract_strided_slice %170 {offsets = [0, 80], sizes = [8, 16], strides = [1, 1]} : vector<8x96xf32> to vector<8x16xf32>
    %194 = vector.extract_strided_slice %176 {offsets = [0, 32], sizes = [8, 16], strides = [1, 1]} : vector<8x48xf32> to vector<8x16xf32>
    %195 = arith.mulf %184, %194 : vector<8x16xf32>
    %196 = arith.addf %193, %195 : vector<8x16xf32>
    %197 = math.tanh %196 : vector<8x16xf32>
    %cst_76 = arith.constant 1.000000e+00 : f32
    %198 = vector.broadcast %cst_76 : f32 to vector<8x16xf32>
    %199 = arith.subf %198, %192 : vector<8x16xf32>
    %200 = arith.mulf %199, %197 : vector<8x16xf32>
    %201 = arith.mulf %192, %171 : vector<8x16xf32>
    %202 = arith.addf %200, %201 : vector<8x16xf32>
    %203 = vector.broadcast %167 : i32 to vector<8x1xi32>
    %204 = arith.cmpi slt, %203, %15 : vector<8x1xi32>
    %205 = arith.extui %204 : vector<8x1xi1> to vector<8x1xi32>
    %206 = arith.sitofp %205 : vector<8x1xi32> to vector<8x1xf32>
    %207 = arith.subf %202, %171 : vector<8x16xf32>
    %208 = vector.broadcast %206 : vector<8x1xf32> to vector<8x16xf32>
    %209 = arith.mulf %208, %207 : vector<8x16xf32>
    %210 = arith.addf %171, %209 : vector<8x16xf32>
    %c0_77 = arith.constant 0 : index
    %c0_78 = arith.constant 0 : index
    %211 = vector.load %arg11[%c0_77, %c0_78] : memref<8x16xf32, #tpu.memory_space<vmem>>, vector<8x16xf32>
    tpu.vector_store %arg11[%c0_77, %c0_78], %210 {strides = array<i32>} : memref<8x16xf32, #tpu.memory_space<vmem>>, vector<8x16xf32>,
    %212 = vector.broadcast %206 : vector<8x1xf32> to vector<8x16xf32>
    %213 = arith.mulf %210, %212 : vector<8x16xf32>
    %214 = arith.index_cast %167 : i32 to index
    %c0_79 = arith.constant 0 : index
    %c16_80 = arith.constant 16 : index
    %215 = vector.load %arg8[%214, %c0_79, %c16_80] : memref<8x8x32xf32, #tpu.memory_space<vmem>>, vector<1x8x16xf32>
    %216 = vector.shape_cast %215 : vector<1x8x16xf32> to vector<8x16xf32>
    %217 = vector.shape_cast %213 : vector<8x16xf32> to vector<1x8x16xf32>
    tpu.vector_store %arg8[%214, %c0_79, %c16_80], %217 {strides = array<i32>} : memref<8x8x32xf32, #tpu.memory_space<vmem>>, vector<1x8x16xf32>,
    %c2_i32 = arith.constant 2 : i32
    %218 = arith.index_cast %c2_i32 : i32 to index
    %c0_81 = arith.constant 0 : index
    %c0_82 = arith.constant 0 : index
    %219 = vector.load %arg9[%218, %c0_81, %c0_82] : memref<8x8x96xf32, #tpu.memory_space<vmem>>, vector<1x8x96xf32>
    %220 = vector.shape_cast %219 : vector<1x8x96xf32> to vector<8x96xf32>
    %c0_83 = arith.constant 0 : index
    %c0_84 = arith.constant 0 : index
    %221 = vector.load %arg10[%c0_83, %c0_84] : memref<8x16xf32, #tpu.memory_space<vmem>>, vector<8x16xf32>
    %c0_85 = arith.constant 0 : index
    %c0_86 = arith.constant 0 : index
    %222 = vector.load %arg2[%c0_85, %c0_86] : memref<16x48xf32, #tpu.memory_space<vmem>>, vector<16x48xf32>
    %cst_87 = arith.constant dense<0.000000e+00> : vector<8x48xf32>
    %223 = tpu.matmul %221, %222, %cst_87 {dimension_numbers = #tpu.dot_dimension_numbers<[1], [0], [0], [1], [0, 0, 1, 1], [], []>} : vector<8x16xf32>, vector<16x48xf32>, vector<8x48xf32> -> vector<8x48xf32>
    %c0_88 = arith.constant 0 : index
    %c0_89 = arith.constant 0 : index
    %224 = vector.load %arg5[%c0_88, %c0_89] : memref<1x48xf32, #tpu.memory_space<vmem>>, vector<1x48xf32>
    %225 = vector.broadcast %224 : vector<1x48xf32> to vector<8x48xf32>
    %226 = arith.addf %223, %225 : vector<8x48xf32>
    %227 = vector.extract_strided_slice %220 {offsets = [0, 0], sizes = [8, 16], strides = [1, 1]} : vector<8x96xf32> to vector<8x16xf32>
    %228 = vector.extract_strided_slice %226 {offsets = [0, 0], sizes = [8, 16], strides = [1, 1]} : vector<8x48xf32> to vector<8x16xf32>
    %229 = arith.addf %227, %228 : vector<8x16xf32>
    %230 = arith.negf %229 : vector<8x16xf32>
    %231 = math.exp %230 : vector<8x16xf32>
    %cst_90 = arith.constant 1.000000e+00 : f32
    %232 = vector.broadcast %cst_90 : f32 to vector<8x16xf32>
    %233 = arith.addf %232, %231 : vector<8x16xf32>
    %234 = arith.divf %232, %233 : vector<8x16xf32>
    %235 = vector.extract_strided_slice %220 {offsets = [0, 16], sizes = [8, 16], strides = [1, 1]} : vector<8x96xf32> to vector<8x16xf32>
    %236 = vector.extract_strided_slice %226 {offsets = [0, 16], sizes = [8, 16], strides = [1, 1]} : vector<8x48xf32> to vector<8x16xf32>
    %237 = arith.addf %235, %236 : vector<8x16xf32>
    %238 = arith.negf %237 : vector<8x16xf32>
    %239 = math.exp %238 : vector<8x16xf32>
    %cst_91 = arith.constant 1.000000e+00 : f32
    %240 = vector.broadcast %cst_91 : f32 to vector<8x16xf32>
    %241 = arith.addf %240, %239 : vector<8x16xf32>
    %242 = arith.divf %240, %241 : vector<8x16xf32>
    %243 = vector.extract_strided_slice %220 {offsets = [0, 32], sizes = [8, 16], strides = [1, 1]} : vector<8x96xf32> to vector<8x16xf32>
    %244 = vector.extract_strided_slice %226 {offsets = [0, 32], sizes = [8, 16], strides = [1, 1]} : vector<8x48xf32> to vector<8x16xf32>
    %245 = arith.mulf %234, %244 : vector<8x16xf32>
    %246 = arith.addf %243, %245 : vector<8x16xf32>
    %247 = math.tanh %246 : vector<8x16xf32>
    %cst_92 = arith.constant 1.000000e+00 : f32
    %248 = vector.broadcast %cst_92 : f32 to vector<8x16xf32>
    %249 = arith.subf %248, %242 : vector<8x16xf32>
    %250 = arith.mulf %249, %247 : vector<8x16xf32>
    %251 = arith.mulf %242, %221 : vector<8x16xf32>
    %252 = arith.addf %250, %251 : vector<8x16xf32>
    %253 = vector.broadcast %c2_i32 : i32 to vector<8x1xi32>
    %254 = arith.cmpi slt, %253, %15 : vector<8x1xi32>
    %255 = arith.extui %254 : vector<8x1xi1> to vector<8x1xi32>
    %256 = arith.sitofp %255 : vector<8x1xi32> to vector<8x1xf32>
    %257 = arith.subf %252, %221 : vector<8x16xf32>
    %258 = vector.broadcast %256 : vector<8x1xf32> to vector<8x16xf32>
    %259 = arith.mulf %258, %257 : vector<8x16xf32>
    %260 = arith.addf %221, %259 : vector<8x16xf32>
    %c0_93 = arith.constant 0 : index
    %c0_94 = arith.constant 0 : index
    %261 = vector.load %arg10[%c0_93, %c0_94] : memref<8x16xf32, #tpu.memory_space<vmem>>, vector<8x16xf32>
    tpu.vector_store %arg10[%c0_93, %c0_94], %260 {strides = array<i32>} : memref<8x16xf32, #tpu.memory_space<vmem>>, vector<8x16xf32>,
    %262 = vector.broadcast %256 : vector<8x1xf32> to vector<8x16xf32>
    %263 = arith.mulf %260, %262 : vector<8x16xf32>
    %264 = arith.index_cast %c2_i32 : i32 to index
    %c0_95 = arith.constant 0 : index
    %c0_96 = arith.constant 0 : index
    %265 = vector.load %arg8[%264, %c0_95, %c0_96] : memref<8x8x32xf32, #tpu.memory_space<vmem>>, vector<1x8x16xf32>
    %266 = vector.shape_cast %265 : vector<1x8x16xf32> to vector<8x16xf32>
    %267 = vector.shape_cast %263 : vector<8x16xf32> to vector<1x8x16xf32>
    tpu.vector_store %arg8[%264, %c0_95, %c0_96], %267 {strides = array<i32>} : memref<8x8x32xf32, #tpu.memory_space<vmem>>, vector<1x8x16xf32>,
    %c7_i32_97 = arith.constant 7 : i32
    %268 = arith.subi %c7_i32_97, %c2_i32 : i32
    %269 = arith.index_cast %268 : i32 to index
    %c0_98 = arith.constant 0 : index
    %c0_99 = arith.constant 0 : index
    %270 = vector.load %arg9[%269, %c0_98, %c0_99] : memref<8x8x96xf32, #tpu.memory_space<vmem>>, vector<1x8x96xf32>
    %271 = vector.shape_cast %270 : vector<1x8x96xf32> to vector<8x96xf32>
    %c0_100 = arith.constant 0 : index
    %c0_101 = arith.constant 0 : index
    %272 = vector.load %arg11[%c0_100, %c0_101] : memref<8x16xf32, #tpu.memory_space<vmem>>, vector<8x16xf32>
    %c0_102 = arith.constant 0 : index
    %c0_103 = arith.constant 0 : index
    %273 = vector.load %arg3[%c0_102, %c0_103] : memref<16x48xf32, #tpu.memory_space<vmem>>, vector<16x48xf32>
    %cst_104 = arith.constant dense<0.000000e+00> : vector<8x48xf32>
    %274 = tpu.matmul %272, %273, %cst_104 {dimension_numbers = #tpu.dot_dimension_numbers<[1], [0], [0], [1], [0, 0, 1, 1], [], []>} : vector<8x16xf32>, vector<16x48xf32>, vector<8x48xf32> -> vector<8x48xf32>
    %c0_105 = arith.constant 0 : index
    %c0_106 = arith.constant 0 : index
    %275 = vector.load %arg6[%c0_105, %c0_106] : memref<1x48xf32, #tpu.memory_space<vmem>>, vector<1x48xf32>
    %276 = vector.broadcast %275 : vector<1x48xf32> to vector<8x48xf32>
    %277 = arith.addf %274, %276 : vector<8x48xf32>
    %278 = vector.extract_strided_slice %271 {offsets = [0, 48], sizes = [8, 16], strides = [1, 1]} : vector<8x96xf32> to vector<8x16xf32>
    %279 = vector.extract_strided_slice %277 {offsets = [0, 0], sizes = [8, 16], strides = [1, 1]} : vector<8x48xf32> to vector<8x16xf32>
    %280 = arith.addf %278, %279 : vector<8x16xf32>
    %281 = arith.negf %280 : vector<8x16xf32>
    %282 = math.exp %281 : vector<8x16xf32>
    %cst_107 = arith.constant 1.000000e+00 : f32
    %283 = vector.broadcast %cst_107 : f32 to vector<8x16xf32>
    %284 = arith.addf %283, %282 : vector<8x16xf32>
    %285 = arith.divf %283, %284 : vector<8x16xf32>
    %286 = vector.extract_strided_slice %271 {offsets = [0, 64], sizes = [8, 16], strides = [1, 1]} : vector<8x96xf32> to vector<8x16xf32>
    %287 = vector.extract_strided_slice %277 {offsets = [0, 16], sizes = [8, 16], strides = [1, 1]} : vector<8x48xf32> to vector<8x16xf32>
    %288 = arith.addf %286, %287 : vector<8x16xf32>
    %289 = arith.negf %288 : vector<8x16xf32>
    %290 = math.exp %289 : vector<8x16xf32>
    %cst_108 = arith.constant 1.000000e+00 : f32
    %291 = vector.broadcast %cst_108 : f32 to vector<8x16xf32>
    %292 = arith.addf %291, %290 : vector<8x16xf32>
    %293 = arith.divf %291, %292 : vector<8x16xf32>
    %294 = vector.extract_strided_slice %271 {offsets = [0, 80], sizes = [8, 16], strides = [1, 1]} : vector<8x96xf32> to vector<8x16xf32>
    %295 = vector.extract_strided_slice %277 {offsets = [0, 32], sizes = [8, 16], strides = [1, 1]} : vector<8x48xf32> to vector<8x16xf32>
    %296 = arith.mulf %285, %295 : vector<8x16xf32>
    %297 = arith.addf %294, %296 : vector<8x16xf32>
    %298 = math.tanh %297 : vector<8x16xf32>
    %cst_109 = arith.constant 1.000000e+00 : f32
    %299 = vector.broadcast %cst_109 : f32 to vector<8x16xf32>
    %300 = arith.subf %299, %293 : vector<8x16xf32>
    %301 = arith.mulf %300, %298 : vector<8x16xf32>
    %302 = arith.mulf %293, %272 : vector<8x16xf32>
    %303 = arith.addf %301, %302 : vector<8x16xf32>
    %304 = vector.broadcast %268 : i32 to vector<8x1xi32>
    %305 = arith.cmpi slt, %304, %15 : vector<8x1xi32>
    %306 = arith.extui %305 : vector<8x1xi1> to vector<8x1xi32>
    %307 = arith.sitofp %306 : vector<8x1xi32> to vector<8x1xf32>
    %308 = arith.subf %303, %272 : vector<8x16xf32>
    %309 = vector.broadcast %307 : vector<8x1xf32> to vector<8x16xf32>
    %310 = arith.mulf %309, %308 : vector<8x16xf32>
    %311 = arith.addf %272, %310 : vector<8x16xf32>
    %c0_110 = arith.constant 0 : index
    %c0_111 = arith.constant 0 : index
    %312 = vector.load %arg11[%c0_110, %c0_111] : memref<8x16xf32, #tpu.memory_space<vmem>>, vector<8x16xf32>
    tpu.vector_store %arg11[%c0_110, %c0_111], %311 {strides = array<i32>} : memref<8x16xf32, #tpu.memory_space<vmem>>, vector<8x16xf32>,
    %313 = vector.broadcast %307 : vector<8x1xf32> to vector<8x16xf32>
    %314 = arith.mulf %311, %313 : vector<8x16xf32>
    %315 = arith.index_cast %268 : i32 to index
    %c0_112 = arith.constant 0 : index
    %c16_113 = arith.constant 16 : index
    %316 = vector.load %arg8[%315, %c0_112, %c16_113] : memref<8x8x32xf32, #tpu.memory_space<vmem>>, vector<1x8x16xf32>
    %317 = vector.shape_cast %316 : vector<1x8x16xf32> to vector<8x16xf32>
    %318 = vector.shape_cast %314 : vector<8x16xf32> to vector<1x8x16xf32>
    tpu.vector_store %arg8[%315, %c0_112, %c16_113], %318 {strides = array<i32>} : memref<8x8x32xf32, #tpu.memory_space<vmem>>, vector<1x8x16xf32>,
    %c3_i32 = arith.constant 3 : i32
    %319 = arith.index_cast %c3_i32 : i32 to index
    %c0_114 = arith.constant 0 : index
    %c0_115 = arith.constant 0 : index
    %320 = vector.load %arg9[%319, %c0_114, %c0_115] : memref<8x8x96xf32, #tpu.memory_space<vmem>>, vector<1x8x96xf32>
    %321 = vector.shape_cast %320 : vector<1x8x96xf32> to vector<8x96xf32>
    %c0_116 = arith.constant 0 : index
    %c0_117 = arith.constant 0 : index
    %322 = vector.load %arg10[%c0_116, %c0_117] : memref<8x16xf32, #tpu.memory_space<vmem>>, vector<8x16xf32>
    %c0_118 = arith.constant 0 : index
    %c0_119 = arith.constant 0 : index
    %323 = vector.load %arg2[%c0_118, %c0_119] : memref<16x48xf32, #tpu.memory_space<vmem>>, vector<16x48xf32>
    %cst_120 = arith.constant dense<0.000000e+00> : vector<8x48xf32>
    %324 = tpu.matmul %322, %323, %cst_120 {dimension_numbers = #tpu.dot_dimension_numbers<[1], [0], [0], [1], [0, 0, 1, 1], [], []>} : vector<8x16xf32>, vector<16x48xf32>, vector<8x48xf32> -> vector<8x48xf32>
    %c0_121 = arith.constant 0 : index
    %c0_122 = arith.constant 0 : index
    %325 = vector.load %arg5[%c0_121, %c0_122] : memref<1x48xf32, #tpu.memory_space<vmem>>, vector<1x48xf32>
    %326 = vector.broadcast %325 : vector<1x48xf32> to vector<8x48xf32>
    %327 = arith.addf %324, %326 : vector<8x48xf32>
    %328 = vector.extract_strided_slice %321 {offsets = [0, 0], sizes = [8, 16], strides = [1, 1]} : vector<8x96xf32> to vector<8x16xf32>
    %329 = vector.extract_strided_slice %327 {offsets = [0, 0], sizes = [8, 16], strides = [1, 1]} : vector<8x48xf32> to vector<8x16xf32>
    %330 = arith.addf %328, %329 : vector<8x16xf32>
    %331 = arith.negf %330 : vector<8x16xf32>
    %332 = math.exp %331 : vector<8x16xf32>
    %cst_123 = arith.constant 1.000000e+00 : f32
    %333 = vector.broadcast %cst_123 : f32 to vector<8x16xf32>
    %334 = arith.addf %333, %332 : vector<8x16xf32>
    %335 = arith.divf %333, %334 : vector<8x16xf32>
    %336 = vector.extract_strided_slice %321 {offsets = [0, 16], sizes = [8, 16], strides = [1, 1]} : vector<8x96xf32> to vector<8x16xf32>
    %337 = vector.extract_strided_slice %327 {offsets = [0, 16], sizes = [8, 16], strides = [1, 1]} : vector<8x48xf32> to vector<8x16xf32>
    %338 = arith.addf %336, %337 : vector<8x16xf32>
    %339 = arith.negf %338 : vector<8x16xf32>
    %340 = math.exp %339 : vector<8x16xf32>
    %cst_124 = arith.constant 1.000000e+00 : f32
    %341 = vector.broadcast %cst_124 : f32 to vector<8x16xf32>
    %342 = arith.addf %341, %340 : vector<8x16xf32>
    %343 = arith.divf %341, %342 : vector<8x16xf32>
    %344 = vector.extract_strided_slice %321 {offsets = [0, 32], sizes = [8, 16], strides = [1, 1]} : vector<8x96xf32> to vector<8x16xf32>
    %345 = vector.extract_strided_slice %327 {offsets = [0, 32], sizes = [8, 16], strides = [1, 1]} : vector<8x48xf32> to vector<8x16xf32>
    %346 = arith.mulf %335, %345 : vector<8x16xf32>
    %347 = arith.addf %344, %346 : vector<8x16xf32>
    %348 = math.tanh %347 : vector<8x16xf32>
    %cst_125 = arith.constant 1.000000e+00 : f32
    %349 = vector.broadcast %cst_125 : f32 to vector<8x16xf32>
    %350 = arith.subf %349, %343 : vector<8x16xf32>
    %351 = arith.mulf %350, %348 : vector<8x16xf32>
    %352 = arith.mulf %343, %322 : vector<8x16xf32>
    %353 = arith.addf %351, %352 : vector<8x16xf32>
    %354 = vector.broadcast %c3_i32 : i32 to vector<8x1xi32>
    %355 = arith.cmpi slt, %354, %15 : vector<8x1xi32>
    %356 = arith.extui %355 : vector<8x1xi1> to vector<8x1xi32>
    %357 = arith.sitofp %356 : vector<8x1xi32> to vector<8x1xf32>
    %358 = arith.subf %353, %322 : vector<8x16xf32>
    %359 = vector.broadcast %357 : vector<8x1xf32> to vector<8x16xf32>
    %360 = arith.mulf %359, %358 : vector<8x16xf32>
    %361 = arith.addf %322, %360 : vector<8x16xf32>
    %c0_126 = arith.constant 0 : index
    %c0_127 = arith.constant 0 : index
    %362 = vector.load %arg10[%c0_126, %c0_127] : memref<8x16xf32, #tpu.memory_space<vmem>>, vector<8x16xf32>
    tpu.vector_store %arg10[%c0_126, %c0_127], %361 {strides = array<i32>} : memref<8x16xf32, #tpu.memory_space<vmem>>, vector<8x16xf32>,
    %363 = vector.broadcast %357 : vector<8x1xf32> to vector<8x16xf32>
    %364 = arith.mulf %361, %363 : vector<8x16xf32>
    %365 = arith.index_cast %c3_i32 : i32 to index
    %c0_128 = arith.constant 0 : index
    %c0_129 = arith.constant 0 : index
    %366 = vector.load %arg8[%365, %c0_128, %c0_129] : memref<8x8x32xf32, #tpu.memory_space<vmem>>, vector<1x8x16xf32>
    %367 = vector.shape_cast %366 : vector<1x8x16xf32> to vector<8x16xf32>
    %368 = vector.shape_cast %364 : vector<8x16xf32> to vector<1x8x16xf32>
    tpu.vector_store %arg8[%365, %c0_128, %c0_129], %368 {strides = array<i32>} : memref<8x8x32xf32, #tpu.memory_space<vmem>>, vector<1x8x16xf32>,
    %c7_i32_130 = arith.constant 7 : i32
    %369 = arith.subi %c7_i32_130, %c3_i32 : i32
    %370 = arith.index_cast %369 : i32 to index
    %c0_131 = arith.constant 0 : index
    %c0_132 = arith.constant 0 : index
    %371 = vector.load %arg9[%370, %c0_131, %c0_132] : memref<8x8x96xf32, #tpu.memory_space<vmem>>, vector<1x8x96xf32>
    %372 = vector.shape_cast %371 : vector<1x8x96xf32> to vector<8x96xf32>
    %c0_133 = arith.constant 0 : index
    %c0_134 = arith.constant 0 : index
    %373 = vector.load %arg11[%c0_133, %c0_134] : memref<8x16xf32, #tpu.memory_space<vmem>>, vector<8x16xf32>
    %c0_135 = arith.constant 0 : index
    %c0_136 = arith.constant 0 : index
    %374 = vector.load %arg3[%c0_135, %c0_136] : memref<16x48xf32, #tpu.memory_space<vmem>>, vector<16x48xf32>
    %cst_137 = arith.constant dense<0.000000e+00> : vector<8x48xf32>
    %375 = tpu.matmul %373, %374, %cst_137 {dimension_numbers = #tpu.dot_dimension_numbers<[1], [0], [0], [1], [0, 0, 1, 1], [], []>} : vector<8x16xf32>, vector<16x48xf32>, vector<8x48xf32> -> vector<8x48xf32>
    %c0_138 = arith.constant 0 : index
    %c0_139 = arith.constant 0 : index
    %376 = vector.load %arg6[%c0_138, %c0_139] : memref<1x48xf32, #tpu.memory_space<vmem>>, vector<1x48xf32>
    %377 = vector.broadcast %376 : vector<1x48xf32> to vector<8x48xf32>
    %378 = arith.addf %375, %377 : vector<8x48xf32>
    %379 = vector.extract_strided_slice %372 {offsets = [0, 48], sizes = [8, 16], strides = [1, 1]} : vector<8x96xf32> to vector<8x16xf32>
    %380 = vector.extract_strided_slice %378 {offsets = [0, 0], sizes = [8, 16], strides = [1, 1]} : vector<8x48xf32> to vector<8x16xf32>
    %381 = arith.addf %379, %380 : vector<8x16xf32>
    %382 = arith.negf %381 : vector<8x16xf32>
    %383 = math.exp %382 : vector<8x16xf32>
    %cst_140 = arith.constant 1.000000e+00 : f32
    %384 = vector.broadcast %cst_140 : f32 to vector<8x16xf32>
    %385 = arith.addf %384, %383 : vector<8x16xf32>
    %386 = arith.divf %384, %385 : vector<8x16xf32>
    %387 = vector.extract_strided_slice %372 {offsets = [0, 64], sizes = [8, 16], strides = [1, 1]} : vector<8x96xf32> to vector<8x16xf32>
    %388 = vector.extract_strided_slice %378 {offsets = [0, 16], sizes = [8, 16], strides = [1, 1]} : vector<8x48xf32> to vector<8x16xf32>
    %389 = arith.addf %387, %388 : vector<8x16xf32>
    %390 = arith.negf %389 : vector<8x16xf32>
    %391 = math.exp %390 : vector<8x16xf32>
    %cst_141 = arith.constant 1.000000e+00 : f32
    %392 = vector.broadcast %cst_141 : f32 to vector<8x16xf32>
    %393 = arith.addf %392, %391 : vector<8x16xf32>
    %394 = arith.divf %392, %393 : vector<8x16xf32>
    %395 = vector.extract_strided_slice %372 {offsets = [0, 80], sizes = [8, 16], strides = [1, 1]} : vector<8x96xf32> to vector<8x16xf32>
    %396 = vector.extract_strided_slice %378 {offsets = [0, 32], sizes = [8, 16], strides = [1, 1]} : vector<8x48xf32> to vector<8x16xf32>
    %397 = arith.mulf %386, %396 : vector<8x16xf32>
    %398 = arith.addf %395, %397 : vector<8x16xf32>
    %399 = math.tanh %398 : vector<8x16xf32>
    %cst_142 = arith.constant 1.000000e+00 : f32
    %400 = vector.broadcast %cst_142 : f32 to vector<8x16xf32>
    %401 = arith.subf %400, %394 : vector<8x16xf32>
    %402 = arith.mulf %401, %399 : vector<8x16xf32>
    %403 = arith.mulf %394, %373 : vector<8x16xf32>
    %404 = arith.addf %402, %403 : vector<8x16xf32>
    %405 = vector.broadcast %369 : i32 to vector<8x1xi32>
    %406 = arith.cmpi slt, %405, %15 : vector<8x1xi32>
    %407 = arith.extui %406 : vector<8x1xi1> to vector<8x1xi32>
    %408 = arith.sitofp %407 : vector<8x1xi32> to vector<8x1xf32>
    %409 = arith.subf %404, %373 : vector<8x16xf32>
    %410 = vector.broadcast %408 : vector<8x1xf32> to vector<8x16xf32>
    %411 = arith.mulf %410, %409 : vector<8x16xf32>
    %412 = arith.addf %373, %411 : vector<8x16xf32>
    %c0_143 = arith.constant 0 : index
    %c0_144 = arith.constant 0 : index
    %413 = vector.load %arg11[%c0_143, %c0_144] : memref<8x16xf32, #tpu.memory_space<vmem>>, vector<8x16xf32>
    tpu.vector_store %arg11[%c0_143, %c0_144], %412 {strides = array<i32>} : memref<8x16xf32, #tpu.memory_space<vmem>>, vector<8x16xf32>,
    %414 = vector.broadcast %408 : vector<8x1xf32> to vector<8x16xf32>
    %415 = arith.mulf %412, %414 : vector<8x16xf32>
    %416 = arith.index_cast %369 : i32 to index
    %c0_145 = arith.constant 0 : index
    %c16_146 = arith.constant 16 : index
    %417 = vector.load %arg8[%416, %c0_145, %c16_146] : memref<8x8x32xf32, #tpu.memory_space<vmem>>, vector<1x8x16xf32>
    %418 = vector.shape_cast %417 : vector<1x8x16xf32> to vector<8x16xf32>
    %419 = vector.shape_cast %415 : vector<8x16xf32> to vector<1x8x16xf32>
    tpu.vector_store %arg8[%416, %c0_145, %c16_146], %419 {strides = array<i32>} : memref<8x8x32xf32, #tpu.memory_space<vmem>>, vector<1x8x16xf32>,
    %c4_i32 = arith.constant 4 : i32
    %420 = arith.index_cast %c4_i32 : i32 to index
    %c0_147 = arith.constant 0 : index
    %c0_148 = arith.constant 0 : index
    %421 = vector.load %arg9[%420, %c0_147, %c0_148] : memref<8x8x96xf32, #tpu.memory_space<vmem>>, vector<1x8x96xf32>
    %422 = vector.shape_cast %421 : vector<1x8x96xf32> to vector<8x96xf32>
    %c0_149 = arith.constant 0 : index
    %c0_150 = arith.constant 0 : index
    %423 = vector.load %arg10[%c0_149, %c0_150] : memref<8x16xf32, #tpu.memory_space<vmem>>, vector<8x16xf32>
    %c0_151 = arith.constant 0 : index
    %c0_152 = arith.constant 0 : index
    %424 = vector.load %arg2[%c0_151, %c0_152] : memref<16x48xf32, #tpu.memory_space<vmem>>, vector<16x48xf32>
    %cst_153 = arith.constant dense<0.000000e+00> : vector<8x48xf32>
    %425 = tpu.matmul %423, %424, %cst_153 {dimension_numbers = #tpu.dot_dimension_numbers<[1], [0], [0], [1], [0, 0, 1, 1], [], []>} : vector<8x16xf32>, vector<16x48xf32>, vector<8x48xf32> -> vector<8x48xf32>
    %c0_154 = arith.constant 0 : index
    %c0_155 = arith.constant 0 : index
    %426 = vector.load %arg5[%c0_154, %c0_155] : memref<1x48xf32, #tpu.memory_space<vmem>>, vector<1x48xf32>
    %427 = vector.broadcast %426 : vector<1x48xf32> to vector<8x48xf32>
    %428 = arith.addf %425, %427 : vector<8x48xf32>
    %429 = vector.extract_strided_slice %422 {offsets = [0, 0], sizes = [8, 16], strides = [1, 1]} : vector<8x96xf32> to vector<8x16xf32>
    %430 = vector.extract_strided_slice %428 {offsets = [0, 0], sizes = [8, 16], strides = [1, 1]} : vector<8x48xf32> to vector<8x16xf32>
    %431 = arith.addf %429, %430 : vector<8x16xf32>
    %432 = arith.negf %431 : vector<8x16xf32>
    %433 = math.exp %432 : vector<8x16xf32>
    %cst_156 = arith.constant 1.000000e+00 : f32
    %434 = vector.broadcast %cst_156 : f32 to vector<8x16xf32>
    %435 = arith.addf %434, %433 : vector<8x16xf32>
    %436 = arith.divf %434, %435 : vector<8x16xf32>
    %437 = vector.extract_strided_slice %422 {offsets = [0, 16], sizes = [8, 16], strides = [1, 1]} : vector<8x96xf32> to vector<8x16xf32>
    %438 = vector.extract_strided_slice %428 {offsets = [0, 16], sizes = [8, 16], strides = [1, 1]} : vector<8x48xf32> to vector<8x16xf32>
    %439 = arith.addf %437, %438 : vector<8x16xf32>
    %440 = arith.negf %439 : vector<8x16xf32>
    %441 = math.exp %440 : vector<8x16xf32>
    %cst_157 = arith.constant 1.000000e+00 : f32
    %442 = vector.broadcast %cst_157 : f32 to vector<8x16xf32>
    %443 = arith.addf %442, %441 : vector<8x16xf32>
    %444 = arith.divf %442, %443 : vector<8x16xf32>
    %445 = vector.extract_strided_slice %422 {offsets = [0, 32], sizes = [8, 16], strides = [1, 1]} : vector<8x96xf32> to vector<8x16xf32>
    %446 = vector.extract_strided_slice %428 {offsets = [0, 32], sizes = [8, 16], strides = [1, 1]} : vector<8x48xf32> to vector<8x16xf32>
    %447 = arith.mulf %436, %446 : vector<8x16xf32>
    %448 = arith.addf %445, %447 : vector<8x16xf32>
    %449 = math.tanh %448 : vector<8x16xf32>
    %cst_158 = arith.constant 1.000000e+00 : f32
    %450 = vector.broadcast %cst_158 : f32 to vector<8x16xf32>
    %451 = arith.subf %450, %444 : vector<8x16xf32>
    %452 = arith.mulf %451, %449 : vector<8x16xf32>
    %453 = arith.mulf %444, %423 : vector<8x16xf32>
    %454 = arith.addf %452, %453 : vector<8x16xf32>
    %455 = vector.broadcast %c4_i32 : i32 to vector<8x1xi32>
    %456 = arith.cmpi slt, %455, %15 : vector<8x1xi32>
    %457 = arith.extui %456 : vector<8x1xi1> to vector<8x1xi32>
    %458 = arith.sitofp %457 : vector<8x1xi32> to vector<8x1xf32>
    %459 = arith.subf %454, %423 : vector<8x16xf32>
    %460 = vector.broadcast %458 : vector<8x1xf32> to vector<8x16xf32>
    %461 = arith.mulf %460, %459 : vector<8x16xf32>
    %462 = arith.addf %423, %461 : vector<8x16xf32>
    %c0_159 = arith.constant 0 : index
    %c0_160 = arith.constant 0 : index
    %463 = vector.load %arg10[%c0_159, %c0_160] : memref<8x16xf32, #tpu.memory_space<vmem>>, vector<8x16xf32>
    tpu.vector_store %arg10[%c0_159, %c0_160], %462 {strides = array<i32>} : memref<8x16xf32, #tpu.memory_space<vmem>>, vector<8x16xf32>,
    %464 = vector.broadcast %458 : vector<8x1xf32> to vector<8x16xf32>
    %465 = arith.mulf %462, %464 : vector<8x16xf32>
    %466 = arith.index_cast %c4_i32 : i32 to index
    %c0_161 = arith.constant 0 : index
    %c0_162 = arith.constant 0 : index
    %467 = vector.load %arg8[%466, %c0_161, %c0_162] : memref<8x8x32xf32, #tpu.memory_space<vmem>>, vector<1x8x16xf32>
    %468 = vector.shape_cast %467 : vector<1x8x16xf32> to vector<8x16xf32>
    %469 = vector.shape_cast %465 : vector<8x16xf32> to vector<1x8x16xf32>
    tpu.vector_store %arg8[%466, %c0_161, %c0_162], %469 {strides = array<i32>} : memref<8x8x32xf32, #tpu.memory_space<vmem>>, vector<1x8x16xf32>,
    %c7_i32_163 = arith.constant 7 : i32
    %470 = arith.subi %c7_i32_163, %c4_i32 : i32
    %471 = arith.index_cast %470 : i32 to index
    %c0_164 = arith.constant 0 : index
    %c0_165 = arith.constant 0 : index
    %472 = vector.load %arg9[%471, %c0_164, %c0_165] : memref<8x8x96xf32, #tpu.memory_space<vmem>>, vector<1x8x96xf32>
    %473 = vector.shape_cast %472 : vector<1x8x96xf32> to vector<8x96xf32>
    %c0_166 = arith.constant 0 : index
    %c0_167 = arith.constant 0 : index
    %474 = vector.load %arg11[%c0_166, %c0_167] : memref<8x16xf32, #tpu.memory_space<vmem>>, vector<8x16xf32>
    %c0_168 = arith.constant 0 : index
    %c0_169 = arith.constant 0 : index
    %475 = vector.load %arg3[%c0_168, %c0_169] : memref<16x48xf32, #tpu.memory_space<vmem>>, vector<16x48xf32>
    %cst_170 = arith.constant dense<0.000000e+00> : vector<8x48xf32>
    %476 = tpu.matmul %474, %475, %cst_170 {dimension_numbers = #tpu.dot_dimension_numbers<[1], [0], [0], [1], [0, 0, 1, 1], [], []>} : vector<8x16xf32>, vector<16x48xf32>, vector<8x48xf32> -> vector<8x48xf32>
    %c0_171 = arith.constant 0 : index
    %c0_172 = arith.constant 0 : index
    %477 = vector.load %arg6[%c0_171, %c0_172] : memref<1x48xf32, #tpu.memory_space<vmem>>, vector<1x48xf32>
    %478 = vector.broadcast %477 : vector<1x48xf32> to vector<8x48xf32>
    %479 = arith.addf %476, %478 : vector<8x48xf32>
    %480 = vector.extract_strided_slice %473 {offsets = [0, 48], sizes = [8, 16], strides = [1, 1]} : vector<8x96xf32> to vector<8x16xf32>
    %481 = vector.extract_strided_slice %479 {offsets = [0, 0], sizes = [8, 16], strides = [1, 1]} : vector<8x48xf32> to vector<8x16xf32>
    %482 = arith.addf %480, %481 : vector<8x16xf32>
    %483 = arith.negf %482 : vector<8x16xf32>
    %484 = math.exp %483 : vector<8x16xf32>
    %cst_173 = arith.constant 1.000000e+00 : f32
    %485 = vector.broadcast %cst_173 : f32 to vector<8x16xf32>
    %486 = arith.addf %485, %484 : vector<8x16xf32>
    %487 = arith.divf %485, %486 : vector<8x16xf32>
    %488 = vector.extract_strided_slice %473 {offsets = [0, 64], sizes = [8, 16], strides = [1, 1]} : vector<8x96xf32> to vector<8x16xf32>
    %489 = vector.extract_strided_slice %479 {offsets = [0, 16], sizes = [8, 16], strides = [1, 1]} : vector<8x48xf32> to vector<8x16xf32>
    %490 = arith.addf %488, %489 : vector<8x16xf32>
    %491 = arith.negf %490 : vector<8x16xf32>
    %492 = math.exp %491 : vector<8x16xf32>
    %cst_174 = arith.constant 1.000000e+00 : f32
    %493 = vector.broadcast %cst_174 : f32 to vector<8x16xf32>
    %494 = arith.addf %493, %492 : vector<8x16xf32>
    %495 = arith.divf %493, %494 : vector<8x16xf32>
    %496 = vector.extract_strided_slice %473 {offsets = [0, 80], sizes = [8, 16], strides = [1, 1]} : vector<8x96xf32> to vector<8x16xf32>
    %497 = vector.extract_strided_slice %479 {offsets = [0, 32], sizes = [8, 16], strides = [1, 1]} : vector<8x48xf32> to vector<8x16xf32>
    %498 = arith.mulf %487, %497 : vector<8x16xf32>
    %499 = arith.addf %496, %498 : vector<8x16xf32>
    %500 = math.tanh %499 : vector<8x16xf32>
    %cst_175 = arith.constant 1.000000e+00 : f32
    %501 = vector.broadcast %cst_175 : f32 to vector<8x16xf32>
    %502 = arith.subf %501, %495 : vector<8x16xf32>
    %503 = arith.mulf %502, %500 : vector<8x16xf32>
    %504 = arith.mulf %495, %474 : vector<8x16xf32>
    %505 = arith.addf %503, %504 : vector<8x16xf32>
    %506 = vector.broadcast %470 : i32 to vector<8x1xi32>
    %507 = arith.cmpi slt, %506, %15 : vector<8x1xi32>
    %508 = arith.extui %507 : vector<8x1xi1> to vector<8x1xi32>
    %509 = arith.sitofp %508 : vector<8x1xi32> to vector<8x1xf32>
    %510 = arith.subf %505, %474 : vector<8x16xf32>
    %511 = vector.broadcast %509 : vector<8x1xf32> to vector<8x16xf32>
    %512 = arith.mulf %511, %510 : vector<8x16xf32>
    %513 = arith.addf %474, %512 : vector<8x16xf32>
    %c0_176 = arith.constant 0 : index
    %c0_177 = arith.constant 0 : index
    %514 = vector.load %arg11[%c0_176, %c0_177] : memref<8x16xf32, #tpu.memory_space<vmem>>, vector<8x16xf32>
    tpu.vector_store %arg11[%c0_176, %c0_177], %513 {strides = array<i32>} : memref<8x16xf32, #tpu.memory_space<vmem>>, vector<8x16xf32>,
    %515 = vector.broadcast %509 : vector<8x1xf32> to vector<8x16xf32>
    %516 = arith.mulf %513, %515 : vector<8x16xf32>
    %517 = arith.index_cast %470 : i32 to index
    %c0_178 = arith.constant 0 : index
    %c16_179 = arith.constant 16 : index
    %518 = vector.load %arg8[%517, %c0_178, %c16_179] : memref<8x8x32xf32, #tpu.memory_space<vmem>>, vector<1x8x16xf32>
    %519 = vector.shape_cast %518 : vector<1x8x16xf32> to vector<8x16xf32>
    %520 = vector.shape_cast %516 : vector<8x16xf32> to vector<1x8x16xf32>
    tpu.vector_store %arg8[%517, %c0_178, %c16_179], %520 {strides = array<i32>} : memref<8x8x32xf32, #tpu.memory_space<vmem>>, vector<1x8x16xf32>,
    %c5_i32 = arith.constant 5 : i32
    %521 = arith.index_cast %c5_i32 : i32 to index
    %c0_180 = arith.constant 0 : index
    %c0_181 = arith.constant 0 : index
    %522 = vector.load %arg9[%521, %c0_180, %c0_181] : memref<8x8x96xf32, #tpu.memory_space<vmem>>, vector<1x8x96xf32>
    %523 = vector.shape_cast %522 : vector<1x8x96xf32> to vector<8x96xf32>
    %c0_182 = arith.constant 0 : index
    %c0_183 = arith.constant 0 : index
    %524 = vector.load %arg10[%c0_182, %c0_183] : memref<8x16xf32, #tpu.memory_space<vmem>>, vector<8x16xf32>
    %c0_184 = arith.constant 0 : index
    %c0_185 = arith.constant 0 : index
    %525 = vector.load %arg2[%c0_184, %c0_185] : memref<16x48xf32, #tpu.memory_space<vmem>>, vector<16x48xf32>
    %cst_186 = arith.constant dense<0.000000e+00> : vector<8x48xf32>
    %526 = tpu.matmul %524, %525, %cst_186 {dimension_numbers = #tpu.dot_dimension_numbers<[1], [0], [0], [1], [0, 0, 1, 1], [], []>} : vector<8x16xf32>, vector<16x48xf32>, vector<8x48xf32> -> vector<8x48xf32>
    %c0_187 = arith.constant 0 : index
    %c0_188 = arith.constant 0 : index
    %527 = vector.load %arg5[%c0_187, %c0_188] : memref<1x48xf32, #tpu.memory_space<vmem>>, vector<1x48xf32>
    %528 = vector.broadcast %527 : vector<1x48xf32> to vector<8x48xf32>
    %529 = arith.addf %526, %528 : vector<8x48xf32>
    %530 = vector.extract_strided_slice %523 {offsets = [0, 0], sizes = [8, 16], strides = [1, 1]} : vector<8x96xf32> to vector<8x16xf32>
    %531 = vector.extract_strided_slice %529 {offsets = [0, 0], sizes = [8, 16], strides = [1, 1]} : vector<8x48xf32> to vector<8x16xf32>
    %532 = arith.addf %530, %531 : vector<8x16xf32>
    %533 = arith.negf %532 : vector<8x16xf32>
    %534 = math.exp %533 : vector<8x16xf32>
    %cst_189 = arith.constant 1.000000e+00 : f32
    %535 = vector.broadcast %cst_189 : f32 to vector<8x16xf32>
    %536 = arith.addf %535, %534 : vector<8x16xf32>
    %537 = arith.divf %535, %536 : vector<8x16xf32>
    %538 = vector.extract_strided_slice %523 {offsets = [0, 16], sizes = [8, 16], strides = [1, 1]} : vector<8x96xf32> to vector<8x16xf32>
    %539 = vector.extract_strided_slice %529 {offsets = [0, 16], sizes = [8, 16], strides = [1, 1]} : vector<8x48xf32> to vector<8x16xf32>
    %540 = arith.addf %538, %539 : vector<8x16xf32>
    %541 = arith.negf %540 : vector<8x16xf32>
    %542 = math.exp %541 : vector<8x16xf32>
    %cst_190 = arith.constant 1.000000e+00 : f32
    %543 = vector.broadcast %cst_190 : f32 to vector<8x16xf32>
    %544 = arith.addf %543, %542 : vector<8x16xf32>
    %545 = arith.divf %543, %544 : vector<8x16xf32>
    %546 = vector.extract_strided_slice %523 {offsets = [0, 32], sizes = [8, 16], strides = [1, 1]} : vector<8x96xf32> to vector<8x16xf32>
    %547 = vector.extract_strided_slice %529 {offsets = [0, 32], sizes = [8, 16], strides = [1, 1]} : vector<8x48xf32> to vector<8x16xf32>
    %548 = arith.mulf %537, %547 : vector<8x16xf32>
    %549 = arith.addf %546, %548 : vector<8x16xf32>
    %550 = math.tanh %549 : vector<8x16xf32>
    %cst_191 = arith.constant 1.000000e+00 : f32
    %551 = vector.broadcast %cst_191 : f32 to vector<8x16xf32>
    %552 = arith.subf %551, %545 : vector<8x16xf32>
    %553 = arith.mulf %552, %550 : vector<8x16xf32>
    %554 = arith.mulf %545, %524 : vector<8x16xf32>
    %555 = arith.addf %553, %554 : vector<8x16xf32>
    %556 = vector.broadcast %c5_i32 : i32 to vector<8x1xi32>
    %557 = arith.cmpi slt, %556, %15 : vector<8x1xi32>
    %558 = arith.extui %557 : vector<8x1xi1> to vector<8x1xi32>
    %559 = arith.sitofp %558 : vector<8x1xi32> to vector<8x1xf32>
    %560 = arith.subf %555, %524 : vector<8x16xf32>
    %561 = vector.broadcast %559 : vector<8x1xf32> to vector<8x16xf32>
    %562 = arith.mulf %561, %560 : vector<8x16xf32>
    %563 = arith.addf %524, %562 : vector<8x16xf32>
    %c0_192 = arith.constant 0 : index
    %c0_193 = arith.constant 0 : index
    %564 = vector.load %arg10[%c0_192, %c0_193] : memref<8x16xf32, #tpu.memory_space<vmem>>, vector<8x16xf32>
    tpu.vector_store %arg10[%c0_192, %c0_193], %563 {strides = array<i32>} : memref<8x16xf32, #tpu.memory_space<vmem>>, vector<8x16xf32>,
    %565 = vector.broadcast %559 : vector<8x1xf32> to vector<8x16xf32>
    %566 = arith.mulf %563, %565 : vector<8x16xf32>
    %567 = arith.index_cast %c5_i32 : i32 to index
    %c0_194 = arith.constant 0 : index
    %c0_195 = arith.constant 0 : index
    %568 = vector.load %arg8[%567, %c0_194, %c0_195] : memref<8x8x32xf32, #tpu.memory_space<vmem>>, vector<1x8x16xf32>
    %569 = vector.shape_cast %568 : vector<1x8x16xf32> to vector<8x16xf32>
    %570 = vector.shape_cast %566 : vector<8x16xf32> to vector<1x8x16xf32>
    tpu.vector_store %arg8[%567, %c0_194, %c0_195], %570 {strides = array<i32>} : memref<8x8x32xf32, #tpu.memory_space<vmem>>, vector<1x8x16xf32>,
    %c7_i32_196 = arith.constant 7 : i32
    %571 = arith.subi %c7_i32_196, %c5_i32 : i32
    %572 = arith.index_cast %571 : i32 to index
    %c0_197 = arith.constant 0 : index
    %c0_198 = arith.constant 0 : index
    %573 = vector.load %arg9[%572, %c0_197, %c0_198] : memref<8x8x96xf32, #tpu.memory_space<vmem>>, vector<1x8x96xf32>
    %574 = vector.shape_cast %573 : vector<1x8x96xf32> to vector<8x96xf32>
    %c0_199 = arith.constant 0 : index
    %c0_200 = arith.constant 0 : index
    %575 = vector.load %arg11[%c0_199, %c0_200] : memref<8x16xf32, #tpu.memory_space<vmem>>, vector<8x16xf32>
    %c0_201 = arith.constant 0 : index
    %c0_202 = arith.constant 0 : index
    %576 = vector.load %arg3[%c0_201, %c0_202] : memref<16x48xf32, #tpu.memory_space<vmem>>, vector<16x48xf32>
    %cst_203 = arith.constant dense<0.000000e+00> : vector<8x48xf32>
    %577 = tpu.matmul %575, %576, %cst_203 {dimension_numbers = #tpu.dot_dimension_numbers<[1], [0], [0], [1], [0, 0, 1, 1], [], []>} : vector<8x16xf32>, vector<16x48xf32>, vector<8x48xf32> -> vector<8x48xf32>
    %c0_204 = arith.constant 0 : index
    %c0_205 = arith.constant 0 : index
    %578 = vector.load %arg6[%c0_204, %c0_205] : memref<1x48xf32, #tpu.memory_space<vmem>>, vector<1x48xf32>
    %579 = vector.broadcast %578 : vector<1x48xf32> to vector<8x48xf32>
    %580 = arith.addf %577, %579 : vector<8x48xf32>
    %581 = vector.extract_strided_slice %574 {offsets = [0, 48], sizes = [8, 16], strides = [1, 1]} : vector<8x96xf32> to vector<8x16xf32>
    %582 = vector.extract_strided_slice %580 {offsets = [0, 0], sizes = [8, 16], strides = [1, 1]} : vector<8x48xf32> to vector<8x16xf32>
    %583 = arith.addf %581, %582 : vector<8x16xf32>
    %584 = arith.negf %583 : vector<8x16xf32>
    %585 = math.exp %584 : vector<8x16xf32>
    %cst_206 = arith.constant 1.000000e+00 : f32
    %586 = vector.broadcast %cst_206 : f32 to vector<8x16xf32>
    %587 = arith.addf %586, %585 : vector<8x16xf32>
    %588 = arith.divf %586, %587 : vector<8x16xf32>
    %589 = vector.extract_strided_slice %574 {offsets = [0, 64], sizes = [8, 16], strides = [1, 1]} : vector<8x96xf32> to vector<8x16xf32>
    %590 = vector.extract_strided_slice %580 {offsets = [0, 16], sizes = [8, 16], strides = [1, 1]} : vector<8x48xf32> to vector<8x16xf32>
    %591 = arith.addf %589, %590 : vector<8x16xf32>
    %592 = arith.negf %591 : vector<8x16xf32>
    %593 = math.exp %592 : vector<8x16xf32>
    %cst_207 = arith.constant 1.000000e+00 : f32
    %594 = vector.broadcast %cst_207 : f32 to vector<8x16xf32>
    %595 = arith.addf %594, %593 : vector<8x16xf32>
    %596 = arith.divf %594, %595 : vector<8x16xf32>
    %597 = vector.extract_strided_slice %574 {offsets = [0, 80], sizes = [8, 16], strides = [1, 1]} : vector<8x96xf32> to vector<8x16xf32>
    %598 = vector.extract_strided_slice %580 {offsets = [0, 32], sizes = [8, 16], strides = [1, 1]} : vector<8x48xf32> to vector<8x16xf32>
    %599 = arith.mulf %588, %598 : vector<8x16xf32>
    %600 = arith.addf %597, %599 : vector<8x16xf32>
    %601 = math.tanh %600 : vector<8x16xf32>
    %cst_208 = arith.constant 1.000000e+00 : f32
    %602 = vector.broadcast %cst_208 : f32 to vector<8x16xf32>
    %603 = arith.subf %602, %596 : vector<8x16xf32>
    %604 = arith.mulf %603, %601 : vector<8x16xf32>
    %605 = arith.mulf %596, %575 : vector<8x16xf32>
    %606 = arith.addf %604, %605 : vector<8x16xf32>
    %607 = vector.broadcast %571 : i32 to vector<8x1xi32>
    %608 = arith.cmpi slt, %607, %15 : vector<8x1xi32>
    %609 = arith.extui %608 : vector<8x1xi1> to vector<8x1xi32>
    %610 = arith.sitofp %609 : vector<8x1xi32> to vector<8x1xf32>
    %611 = arith.subf %606, %575 : vector<8x16xf32>
    %612 = vector.broadcast %610 : vector<8x1xf32> to vector<8x16xf32>
    %613 = arith.mulf %612, %611 : vector<8x16xf32>
    %614 = arith.addf %575, %613 : vector<8x16xf32>
    %c0_209 = arith.constant 0 : index
    %c0_210 = arith.constant 0 : index
    %615 = vector.load %arg11[%c0_209, %c0_210] : memref<8x16xf32, #tpu.memory_space<vmem>>, vector<8x16xf32>
    tpu.vector_store %arg11[%c0_209, %c0_210], %614 {strides = array<i32>} : memref<8x16xf32, #tpu.memory_space<vmem>>, vector<8x16xf32>,
    %616 = vector.broadcast %610 : vector<8x1xf32> to vector<8x16xf32>
    %617 = arith.mulf %614, %616 : vector<8x16xf32>
    %618 = arith.index_cast %571 : i32 to index
    %c0_211 = arith.constant 0 : index
    %c16_212 = arith.constant 16 : index
    %619 = vector.load %arg8[%618, %c0_211, %c16_212] : memref<8x8x32xf32, #tpu.memory_space<vmem>>, vector<1x8x16xf32>
    %620 = vector.shape_cast %619 : vector<1x8x16xf32> to vector<8x16xf32>
    %621 = vector.shape_cast %617 : vector<8x16xf32> to vector<1x8x16xf32>
    tpu.vector_store %arg8[%618, %c0_211, %c16_212], %621 {strides = array<i32>} : memref<8x8x32xf32, #tpu.memory_space<vmem>>, vector<1x8x16xf32>,
    %c6_i32 = arith.constant 6 : i32
    %622 = arith.index_cast %c6_i32 : i32 to index
    %c0_213 = arith.constant 0 : index
    %c0_214 = arith.constant 0 : index
    %623 = vector.load %arg9[%622, %c0_213, %c0_214] : memref<8x8x96xf32, #tpu.memory_space<vmem>>, vector<1x8x96xf32>
    %624 = vector.shape_cast %623 : vector<1x8x96xf32> to vector<8x96xf32>
    %c0_215 = arith.constant 0 : index
    %c0_216 = arith.constant 0 : index
    %625 = vector.load %arg10[%c0_215, %c0_216] : memref<8x16xf32, #tpu.memory_space<vmem>>, vector<8x16xf32>
    %c0_217 = arith.constant 0 : index
    %c0_218 = arith.constant 0 : index
    %626 = vector.load %arg2[%c0_217, %c0_218] : memref<16x48xf32, #tpu.memory_space<vmem>>, vector<16x48xf32>
    %cst_219 = arith.constant dense<0.000000e+00> : vector<8x48xf32>
    %627 = tpu.matmul %625, %626, %cst_219 {dimension_numbers = #tpu.dot_dimension_numbers<[1], [0], [0], [1], [0, 0, 1, 1], [], []>} : vector<8x16xf32>, vector<16x48xf32>, vector<8x48xf32> -> vector<8x48xf32>
    %c0_220 = arith.constant 0 : index
    %c0_221 = arith.constant 0 : index
    %628 = vector.load %arg5[%c0_220, %c0_221] : memref<1x48xf32, #tpu.memory_space<vmem>>, vector<1x48xf32>
    %629 = vector.broadcast %628 : vector<1x48xf32> to vector<8x48xf32>
    %630 = arith.addf %627, %629 : vector<8x48xf32>
    %631 = vector.extract_strided_slice %624 {offsets = [0, 0], sizes = [8, 16], strides = [1, 1]} : vector<8x96xf32> to vector<8x16xf32>
    %632 = vector.extract_strided_slice %630 {offsets = [0, 0], sizes = [8, 16], strides = [1, 1]} : vector<8x48xf32> to vector<8x16xf32>
    %633 = arith.addf %631, %632 : vector<8x16xf32>
    %634 = arith.negf %633 : vector<8x16xf32>
    %635 = math.exp %634 : vector<8x16xf32>
    %cst_222 = arith.constant 1.000000e+00 : f32
    %636 = vector.broadcast %cst_222 : f32 to vector<8x16xf32>
    %637 = arith.addf %636, %635 : vector<8x16xf32>
    %638 = arith.divf %636, %637 : vector<8x16xf32>
    %639 = vector.extract_strided_slice %624 {offsets = [0, 16], sizes = [8, 16], strides = [1, 1]} : vector<8x96xf32> to vector<8x16xf32>
    %640 = vector.extract_strided_slice %630 {offsets = [0, 16], sizes = [8, 16], strides = [1, 1]} : vector<8x48xf32> to vector<8x16xf32>
    %641 = arith.addf %639, %640 : vector<8x16xf32>
    %642 = arith.negf %641 : vector<8x16xf32>
    %643 = math.exp %642 : vector<8x16xf32>
    %cst_223 = arith.constant 1.000000e+00 : f32
    %644 = vector.broadcast %cst_223 : f32 to vector<8x16xf32>
    %645 = arith.addf %644, %643 : vector<8x16xf32>
    %646 = arith.divf %644, %645 : vector<8x16xf32>
    %647 = vector.extract_strided_slice %624 {offsets = [0, 32], sizes = [8, 16], strides = [1, 1]} : vector<8x96xf32> to vector<8x16xf32>
    %648 = vector.extract_strided_slice %630 {offsets = [0, 32], sizes = [8, 16], strides = [1, 1]} : vector<8x48xf32> to vector<8x16xf32>
    %649 = arith.mulf %638, %648 : vector<8x16xf32>
    %650 = arith.addf %647, %649 : vector<8x16xf32>
    %651 = math.tanh %650 : vector<8x16xf32>
    %cst_224 = arith.constant 1.000000e+00 : f32
    %652 = vector.broadcast %cst_224 : f32 to vector<8x16xf32>
    %653 = arith.subf %652, %646 : vector<8x16xf32>
    %654 = arith.mulf %653, %651 : vector<8x16xf32>
    %655 = arith.mulf %646, %625 : vector<8x16xf32>
    %656 = arith.addf %654, %655 : vector<8x16xf32>
    %657 = vector.broadcast %c6_i32 : i32 to vector<8x1xi32>
    %658 = arith.cmpi slt, %657, %15 : vector<8x1xi32>
    %659 = arith.extui %658 : vector<8x1xi1> to vector<8x1xi32>
    %660 = arith.sitofp %659 : vector<8x1xi32> to vector<8x1xf32>
    %661 = arith.subf %656, %625 : vector<8x16xf32>
    %662 = vector.broadcast %660 : vector<8x1xf32> to vector<8x16xf32>
    %663 = arith.mulf %662, %661 : vector<8x16xf32>
    %664 = arith.addf %625, %663 : vector<8x16xf32>
    %c0_225 = arith.constant 0 : index
    %c0_226 = arith.constant 0 : index
    %665 = vector.load %arg10[%c0_225, %c0_226] : memref<8x16xf32, #tpu.memory_space<vmem>>, vector<8x16xf32>
    tpu.vector_store %arg10[%c0_225, %c0_226], %664 {strides = array<i32>} : memref<8x16xf32, #tpu.memory_space<vmem>>, vector<8x16xf32>,
    %666 = vector.broadcast %660 : vector<8x1xf32> to vector<8x16xf32>
    %667 = arith.mulf %664, %666 : vector<8x16xf32>
    %668 = arith.index_cast %c6_i32 : i32 to index
    %c0_227 = arith.constant 0 : index
    %c0_228 = arith.constant 0 : index
    %669 = vector.load %arg8[%668, %c0_227, %c0_228] : memref<8x8x32xf32, #tpu.memory_space<vmem>>, vector<1x8x16xf32>
    %670 = vector.shape_cast %669 : vector<1x8x16xf32> to vector<8x16xf32>
    %671 = vector.shape_cast %667 : vector<8x16xf32> to vector<1x8x16xf32>
    tpu.vector_store %arg8[%668, %c0_227, %c0_228], %671 {strides = array<i32>} : memref<8x8x32xf32, #tpu.memory_space<vmem>>, vector<1x8x16xf32>,
    %c7_i32_229 = arith.constant 7 : i32
    %672 = arith.subi %c7_i32_229, %c6_i32 : i32
    %673 = arith.index_cast %672 : i32 to index
    %c0_230 = arith.constant 0 : index
    %c0_231 = arith.constant 0 : index
    %674 = vector.load %arg9[%673, %c0_230, %c0_231] : memref<8x8x96xf32, #tpu.memory_space<vmem>>, vector<1x8x96xf32>
    %675 = vector.shape_cast %674 : vector<1x8x96xf32> to vector<8x96xf32>
    %c0_232 = arith.constant 0 : index
    %c0_233 = arith.constant 0 : index
    %676 = vector.load %arg11[%c0_232, %c0_233] : memref<8x16xf32, #tpu.memory_space<vmem>>, vector<8x16xf32>
    %c0_234 = arith.constant 0 : index
    %c0_235 = arith.constant 0 : index
    %677 = vector.load %arg3[%c0_234, %c0_235] : memref<16x48xf32, #tpu.memory_space<vmem>>, vector<16x48xf32>
    %cst_236 = arith.constant dense<0.000000e+00> : vector<8x48xf32>
    %678 = tpu.matmul %676, %677, %cst_236 {dimension_numbers = #tpu.dot_dimension_numbers<[1], [0], [0], [1], [0, 0, 1, 1], [], []>} : vector<8x16xf32>, vector<16x48xf32>, vector<8x48xf32> -> vector<8x48xf32>
    %c0_237 = arith.constant 0 : index
    %c0_238 = arith.constant 0 : index
    %679 = vector.load %arg6[%c0_237, %c0_238] : memref<1x48xf32, #tpu.memory_space<vmem>>, vector<1x48xf32>
    %680 = vector.broadcast %679 : vector<1x48xf32> to vector<8x48xf32>
    %681 = arith.addf %678, %680 : vector<8x48xf32>
    %682 = vector.extract_strided_slice %675 {offsets = [0, 48], sizes = [8, 16], strides = [1, 1]} : vector<8x96xf32> to vector<8x16xf32>
    %683 = vector.extract_strided_slice %681 {offsets = [0, 0], sizes = [8, 16], strides = [1, 1]} : vector<8x48xf32> to vector<8x16xf32>
    %684 = arith.addf %682, %683 : vector<8x16xf32>
    %685 = arith.negf %684 : vector<8x16xf32>
    %686 = math.exp %685 : vector<8x16xf32>
    %cst_239 = arith.constant 1.000000e+00 : f32
    %687 = vector.broadcast %cst_239 : f32 to vector<8x16xf32>
    %688 = arith.addf %687, %686 : vector<8x16xf32>
    %689 = arith.divf %687, %688 : vector<8x16xf32>
    %690 = vector.extract_strided_slice %675 {offsets = [0, 64], sizes = [8, 16], strides = [1, 1]} : vector<8x96xf32> to vector<8x16xf32>
    %691 = vector.extract_strided_slice %681 {offsets = [0, 16], sizes = [8, 16], strides = [1, 1]} : vector<8x48xf32> to vector<8x16xf32>
    %692 = arith.addf %690, %691 : vector<8x16xf32>
    %693 = arith.negf %692 : vector<8x16xf32>
    %694 = math.exp %693 : vector<8x16xf32>
    %cst_240 = arith.constant 1.000000e+00 : f32
    %695 = vector.broadcast %cst_240 : f32 to vector<8x16xf32>
    %696 = arith.addf %695, %694 : vector<8x16xf32>
    %697 = arith.divf %695, %696 : vector<8x16xf32>
    %698 = vector.extract_strided_slice %675 {offsets = [0, 80], sizes = [8, 16], strides = [1, 1]} : vector<8x96xf32> to vector<8x16xf32>
    %699 = vector.extract_strided_slice %681 {offsets = [0, 32], sizes = [8, 16], strides = [1, 1]} : vector<8x48xf32> to vector<8x16xf32>
    %700 = arith.mulf %689, %699 : vector<8x16xf32>
    %701 = arith.addf %698, %700 : vector<8x16xf32>
    %702 = math.tanh %701 : vector<8x16xf32>
    %cst_241 = arith.constant 1.000000e+00 : f32
    %703 = vector.broadcast %cst_241 : f32 to vector<8x16xf32>
    %704 = arith.subf %703, %697 : vector<8x16xf32>
    %705 = arith.mulf %704, %702 : vector<8x16xf32>
    %706 = arith.mulf %697, %676 : vector<8x16xf32>
    %707 = arith.addf %705, %706 : vector<8x16xf32>
    %708 = vector.broadcast %672 : i32 to vector<8x1xi32>
    %709 = arith.cmpi slt, %708, %15 : vector<8x1xi32>
    %710 = arith.extui %709 : vector<8x1xi1> to vector<8x1xi32>
    %711 = arith.sitofp %710 : vector<8x1xi32> to vector<8x1xf32>
    %712 = arith.subf %707, %676 : vector<8x16xf32>
    %713 = vector.broadcast %711 : vector<8x1xf32> to vector<8x16xf32>
    %714 = arith.mulf %713, %712 : vector<8x16xf32>
    %715 = arith.addf %676, %714 : vector<8x16xf32>
    %c0_242 = arith.constant 0 : index
    %c0_243 = arith.constant 0 : index
    %716 = vector.load %arg11[%c0_242, %c0_243] : memref<8x16xf32, #tpu.memory_space<vmem>>, vector<8x16xf32>
    tpu.vector_store %arg11[%c0_242, %c0_243], %715 {strides = array<i32>} : memref<8x16xf32, #tpu.memory_space<vmem>>, vector<8x16xf32>,
    %717 = vector.broadcast %711 : vector<8x1xf32> to vector<8x16xf32>
    %718 = arith.mulf %715, %717 : vector<8x16xf32>
    %719 = arith.index_cast %672 : i32 to index
    %c0_244 = arith.constant 0 : index
    %c16_245 = arith.constant 16 : index
    %720 = vector.load %arg8[%719, %c0_244, %c16_245] : memref<8x8x32xf32, #tpu.memory_space<vmem>>, vector<1x8x16xf32>
    %721 = vector.shape_cast %720 : vector<1x8x16xf32> to vector<8x16xf32>
    %722 = vector.shape_cast %718 : vector<8x16xf32> to vector<1x8x16xf32>
    tpu.vector_store %arg8[%719, %c0_244, %c16_245], %722 {strides = array<i32>} : memref<8x8x32xf32, #tpu.memory_space<vmem>>, vector<1x8x16xf32>,
    %c7_i32_246 = arith.constant 7 : i32
    %723 = arith.index_cast %c7_i32_246 : i32 to index
    %c0_247 = arith.constant 0 : index
    %c0_248 = arith.constant 0 : index
    %724 = vector.load %arg9[%723, %c0_247, %c0_248] : memref<8x8x96xf32, #tpu.memory_space<vmem>>, vector<1x8x96xf32>
    %725 = vector.shape_cast %724 : vector<1x8x96xf32> to vector<8x96xf32>
    %c0_249 = arith.constant 0 : index
    %c0_250 = arith.constant 0 : index
    %726 = vector.load %arg10[%c0_249, %c0_250] : memref<8x16xf32, #tpu.memory_space<vmem>>, vector<8x16xf32>
    %c0_251 = arith.constant 0 : index
    %c0_252 = arith.constant 0 : index
    %727 = vector.load %arg2[%c0_251, %c0_252] : memref<16x48xf32, #tpu.memory_space<vmem>>, vector<16x48xf32>
    %cst_253 = arith.constant dense<0.000000e+00> : vector<8x48xf32>
    %728 = tpu.matmul %726, %727, %cst_253 {dimension_numbers = #tpu.dot_dimension_numbers<[1], [0], [0], [1], [0, 0, 1, 1], [], []>} : vector<8x16xf32>, vector<16x48xf32>, vector<8x48xf32> -> vector<8x48xf32>
    %c0_254 = arith.constant 0 : index
    %c0_255 = arith.constant 0 : index
    %729 = vector.load %arg5[%c0_254, %c0_255] : memref<1x48xf32, #tpu.memory_space<vmem>>, vector<1x48xf32>
    %730 = vector.broadcast %729 : vector<1x48xf32> to vector<8x48xf32>
    %731 = arith.addf %728, %730 : vector<8x48xf32>
    %732 = vector.extract_strided_slice %725 {offsets = [0, 0], sizes = [8, 16], strides = [1, 1]} : vector<8x96xf32> to vector<8x16xf32>
    %733 = vector.extract_strided_slice %731 {offsets = [0, 0], sizes = [8, 16], strides = [1, 1]} : vector<8x48xf32> to vector<8x16xf32>
    %734 = arith.addf %732, %733 : vector<8x16xf32>
    %735 = arith.negf %734 : vector<8x16xf32>
    %736 = math.exp %735 : vector<8x16xf32>
    %cst_256 = arith.constant 1.000000e+00 : f32
    %737 = vector.broadcast %cst_256 : f32 to vector<8x16xf32>
    %738 = arith.addf %737, %736 : vector<8x16xf32>
    %739 = arith.divf %737, %738 : vector<8x16xf32>
    %740 = vector.extract_strided_slice %725 {offsets = [0, 16], sizes = [8, 16], strides = [1, 1]} : vector<8x96xf32> to vector<8x16xf32>
    %741 = vector.extract_strided_slice %731 {offsets = [0, 16], sizes = [8, 16], strides = [1, 1]} : vector<8x48xf32> to vector<8x16xf32>
    %742 = arith.addf %740, %741 : vector<8x16xf32>
    %743 = arith.negf %742 : vector<8x16xf32>
    %744 = math.exp %743 : vector<8x16xf32>
    %cst_257 = arith.constant 1.000000e+00 : f32
    %745 = vector.broadcast %cst_257 : f32 to vector<8x16xf32>
    %746 = arith.addf %745, %744 : vector<8x16xf32>
    %747 = arith.divf %745, %746 : vector<8x16xf32>
    %748 = vector.extract_strided_slice %725 {offsets = [0, 32], sizes = [8, 16], strides = [1, 1]} : vector<8x96xf32> to vector<8x16xf32>
    %749 = vector.extract_strided_slice %731 {offsets = [0, 32], sizes = [8, 16], strides = [1, 1]} : vector<8x48xf32> to vector<8x16xf32>
    %750 = arith.mulf %739, %749 : vector<8x16xf32>
    %751 = arith.addf %748, %750 : vector<8x16xf32>
    %752 = math.tanh %751 : vector<8x16xf32>
    %cst_258 = arith.constant 1.000000e+00 : f32
    %753 = vector.broadcast %cst_258 : f32 to vector<8x16xf32>
    %754 = arith.subf %753, %747 : vector<8x16xf32>
    %755 = arith.mulf %754, %752 : vector<8x16xf32>
    %756 = arith.mulf %747, %726 : vector<8x16xf32>
    %757 = arith.addf %755, %756 : vector<8x16xf32>
    %758 = vector.broadcast %c7_i32_246 : i32 to vector<8x1xi32>
    %759 = arith.cmpi slt, %758, %15 : vector<8x1xi32>
    %760 = arith.extui %759 : vector<8x1xi1> to vector<8x1xi32>
    %761 = arith.sitofp %760 : vector<8x1xi32> to vector<8x1xf32>
    %762 = arith.subf %757, %726 : vector<8x16xf32>
    %763 = vector.broadcast %761 : vector<8x1xf32> to vector<8x16xf32>
    %764 = arith.mulf %763, %762 : vector<8x16xf32>
    %765 = arith.addf %726, %764 : vector<8x16xf32>
    %c0_259 = arith.constant 0 : index
    %c0_260 = arith.constant 0 : index
    %766 = vector.load %arg10[%c0_259, %c0_260] : memref<8x16xf32, #tpu.memory_space<vmem>>, vector<8x16xf32>
    tpu.vector_store %arg10[%c0_259, %c0_260], %765 {strides = array<i32>} : memref<8x16xf32, #tpu.memory_space<vmem>>, vector<8x16xf32>,
    %767 = vector.broadcast %761 : vector<8x1xf32> to vector<8x16xf32>
    %768 = arith.mulf %765, %767 : vector<8x16xf32>
    %769 = arith.index_cast %c7_i32_246 : i32 to index
    %c0_261 = arith.constant 0 : index
    %c0_262 = arith.constant 0 : index
    %770 = vector.load %arg8[%769, %c0_261, %c0_262] : memref<8x8x32xf32, #tpu.memory_space<vmem>>, vector<1x8x16xf32>
    %771 = vector.shape_cast %770 : vector<1x8x16xf32> to vector<8x16xf32>
    %772 = vector.shape_cast %768 : vector<8x16xf32> to vector<1x8x16xf32>
    tpu.vector_store %arg8[%769, %c0_261, %c0_262], %772 {strides = array<i32>} : memref<8x8x32xf32, #tpu.memory_space<vmem>>, vector<1x8x16xf32>,
    %c7_i32_263 = arith.constant 7 : i32
    %773 = arith.subi %c7_i32_263, %c7_i32_246 : i32
    %774 = arith.index_cast %773 : i32 to index
    %c0_264 = arith.constant 0 : index
    %c0_265 = arith.constant 0 : index
    %775 = vector.load %arg9[%774, %c0_264, %c0_265] : memref<8x8x96xf32, #tpu.memory_space<vmem>>, vector<1x8x96xf32>
    %776 = vector.shape_cast %775 : vector<1x8x96xf32> to vector<8x96xf32>
    %c0_266 = arith.constant 0 : index
    %c0_267 = arith.constant 0 : index
    %777 = vector.load %arg11[%c0_266, %c0_267] : memref<8x16xf32, #tpu.memory_space<vmem>>, vector<8x16xf32>
    %c0_268 = arith.constant 0 : index
    %c0_269 = arith.constant 0 : index
    %778 = vector.load %arg3[%c0_268, %c0_269] : memref<16x48xf32, #tpu.memory_space<vmem>>, vector<16x48xf32>
    %cst_270 = arith.constant dense<0.000000e+00> : vector<8x48xf32>
    %779 = tpu.matmul %777, %778, %cst_270 {dimension_numbers = #tpu.dot_dimension_numbers<[1], [0], [0], [1], [0, 0, 1, 1], [], []>} : vector<8x16xf32>, vector<16x48xf32>, vector<8x48xf32> -> vector<8x48xf32>
    %c0_271 = arith.constant 0 : index
    %c0_272 = arith.constant 0 : index
    %780 = vector.load %arg6[%c0_271, %c0_272] : memref<1x48xf32, #tpu.memory_space<vmem>>, vector<1x48xf32>
    %781 = vector.broadcast %780 : vector<1x48xf32> to vector<8x48xf32>
    %782 = arith.addf %779, %781 : vector<8x48xf32>
    %783 = vector.extract_strided_slice %776 {offsets = [0, 48], sizes = [8, 16], strides = [1, 1]} : vector<8x96xf32> to vector<8x16xf32>
    %784 = vector.extract_strided_slice %782 {offsets = [0, 0], sizes = [8, 16], strides = [1, 1]} : vector<8x48xf32> to vector<8x16xf32>
    %785 = arith.addf %783, %784 : vector<8x16xf32>
    %786 = arith.negf %785 : vector<8x16xf32>
    %787 = math.exp %786 : vector<8x16xf32>
    %cst_273 = arith.constant 1.000000e+00 : f32
    %788 = vector.broadcast %cst_273 : f32 to vector<8x16xf32>
    %789 = arith.addf %788, %787 : vector<8x16xf32>
    %790 = arith.divf %788, %789 : vector<8x16xf32>
    %791 = vector.extract_strided_slice %776 {offsets = [0, 64], sizes = [8, 16], strides = [1, 1]} : vector<8x96xf32> to vector<8x16xf32>
    %792 = vector.extract_strided_slice %782 {offsets = [0, 16], sizes = [8, 16], strides = [1, 1]} : vector<8x48xf32> to vector<8x16xf32>
    %793 = arith.addf %791, %792 : vector<8x16xf32>
    %794 = arith.negf %793 : vector<8x16xf32>
    %795 = math.exp %794 : vector<8x16xf32>
    %cst_274 = arith.constant 1.000000e+00 : f32
    %796 = vector.broadcast %cst_274 : f32 to vector<8x16xf32>
    %797 = arith.addf %796, %795 : vector<8x16xf32>
    %798 = arith.divf %796, %797 : vector<8x16xf32>
    %799 = vector.extract_strided_slice %776 {offsets = [0, 80], sizes = [8, 16], strides = [1, 1]} : vector<8x96xf32> to vector<8x16xf32>
    %800 = vector.extract_strided_slice %782 {offsets = [0, 32], sizes = [8, 16], strides = [1, 1]} : vector<8x48xf32> to vector<8x16xf32>
    %801 = arith.mulf %790, %800 : vector<8x16xf32>
    %802 = arith.addf %799, %801 : vector<8x16xf32>
    %803 = math.tanh %802 : vector<8x16xf32>
    %cst_275 = arith.constant 1.000000e+00 : f32
    %804 = vector.broadcast %cst_275 : f32 to vector<8x16xf32>
    %805 = arith.subf %804, %798 : vector<8x16xf32>
    %806 = arith.mulf %805, %803 : vector<8x16xf32>
    %807 = arith.mulf %798, %777 : vector<8x16xf32>
    %808 = arith.addf %806, %807 : vector<8x16xf32>
    %809 = vector.broadcast %773 : i32 to vector<8x1xi32>
    %810 = arith.cmpi slt, %809, %15 : vector<8x1xi32>
    %811 = arith.extui %810 : vector<8x1xi1> to vector<8x1xi32>
    %812 = arith.sitofp %811 : vector<8x1xi32> to vector<8x1xf32>
    %813 = arith.subf %808, %777 : vector<8x16xf32>
    %814 = vector.broadcast %812 : vector<8x1xf32> to vector<8x16xf32>
    %815 = arith.mulf %814, %813 : vector<8x16xf32>
    %816 = arith.addf %777, %815 : vector<8x16xf32>
    %c0_276 = arith.constant 0 : index
    %c0_277 = arith.constant 0 : index
    %817 = vector.load %arg11[%c0_276, %c0_277] : memref<8x16xf32, #tpu.memory_space<vmem>>, vector<8x16xf32>
    tpu.vector_store %arg11[%c0_276, %c0_277], %816 {strides = array<i32>} : memref<8x16xf32, #tpu.memory_space<vmem>>, vector<8x16xf32>,
    %818 = vector.broadcast %812 : vector<8x1xf32> to vector<8x16xf32>
    %819 = arith.mulf %816, %818 : vector<8x16xf32>
    %820 = arith.index_cast %773 : i32 to index
    %c0_278 = arith.constant 0 : index
    %c16_279 = arith.constant 16 : index
    %821 = vector.load %arg8[%820, %c0_278, %c16_279] : memref<8x8x32xf32, #tpu.memory_space<vmem>>, vector<1x8x16xf32>
    %822 = vector.shape_cast %821 : vector<1x8x16xf32> to vector<8x16xf32>
    %823 = vector.shape_cast %819 : vector<8x16xf32> to vector<1x8x16xf32>
    tpu.vector_store %arg8[%820, %c0_278, %c16_279], %823 {strides = array<i32>} : memref<8x8x32xf32, #tpu.memory_space<vmem>>, vector<1x8x16xf32>,
    %c8_i32 = arith.constant 8 : i32
    return
  }
}

</mosaic_0001>

<bundles_post_ra>
// kernel: word_attention_forward.5
= control target key start
LH: loop header
LB: loop body
LE: loop exit
PB: predicated region body
PF: predicated region fallthrough
CT: control target
= control target key end

     0   :  { %v159_v0 = vlaneseq  ;;  %v672_v2 = vmov 0   ;;  %v673_v3 = vmov 1966171168   ;;  %vm58_vm0 = vcmask 261120   ;;  %s986_s1 = inlined_call_operand.vmem [shape: bf16[32,32], index: 1, kind: input, shape index: {}]   ;;  %s987_s0 = inlined_call_operand.vmem [shape: f32[8,8,32], index: 0, kind: input, shape index: {}]   ;;  %s988_s4 = inlined_call_operand.vmem [shape: s32[8,1], index: 4, kind: input, shape index: {}]   ;;  %s989_s2 = inlined_call_operand.vmem [shape: f32[1,32], index: 2, kind: input, shape index: {}]   ;;  %s990_s3 = inlined_call_operand.vmem [shape: f32[1,32], index: 3, kind: input, shape index: {}]   ;;  %s991_s6 = inlined_call_operand.vmem [shape: f32[8,8,32], index: 6, kind: output, shape index: {1}]   ;;  %s992_s5 = inlined_call_operand.vmem [shape: f32[8,32], index: 5, kind: output, shape index: {0}]  }
   0x1   :  { %v621_v1 = vld [vmem:[%s986_s1 + $0x8] sm:$0xff]   ;;  %619 = vset.pattern.permute.xlu0 %v672_v2  ;;  %620 = vset.pattern.permute.xlu1 %v672_v2  ;;  %v164_v4 = vunpack.c.l.s4 %v673_v3  ;;  %v622_v5 = vld [vmem:[%s986_s1] sm:$0xff]   ;;  %v744_v13 = vld [vmem:[%s987_s0 + $0x10] sm:$0xff] }
   0x2   :  { %v717_v6 = vshrl.u32 %v159_v0, 7  ;;  %601 = vmatprep.subr.bf16.mxu0 %v621_v1  ;;  %613 = vmatprep.subr.bf16.mxu1 %v621_v1  ;;  %v722_v7 = vld [vmem:[%s987_s0] sm:$0xff]  ;;  %v727_v8 = vld [vmem:[%s987_s0 + $0x8] sm:$0xff]  ;;  %v749_v14 = vld [vmem:[%s987_s0 + $0x18] sm:$0xff] }
   0x3   :  { %v732_v9 = vld [vmem:[%s987_s0 + $0x20] sm:$0xff]  ;;  %v165_v10 = vunpack.c.0.s8 %v164_v4  ;;  %602 = vmatpush3.bf16.msra.mxu0 %v621_v1  ;;  %615 = vmatpush3.bf16.msra.mxu1 %v621_v1  ;;  %v31_v11 = vpack.c.bf16 %v727_v8, %v722_v7  ;;  %v739_v12 = vld [vmem:[%s987_s0 + $0x28] sm:$0xff]  ;;  %v756_v16 = vld [vmem:[%s987_s0 + $0x30] sm:$0xff]  ;;  %v32_v21 = vpack.c.bf16 %v749_v14, %v744_v13 }
   0x4   :  { %603 = vmatprep.subr.bf16.mxu0 %v622_v5  ;;  %614 = vmatprep.subr.bf16.mxu1 %v622_v5  ;;  %v33_v15 = vpack.c.bf16 %v739_v12, %v732_v9  ;;  %v761_v17 = vld [vmem:[%s987_s0 + $0x38] sm:$0xff]  ;;  %v161_v18 = vld [vmem:[%s988_s4] sm:$0xff]  ;;  %v213_v24 = vsub.s32 0, %v717_v6 }
   0x5   :  { %v168_v19 = vsub.s32 %v165_v10, %v717_v6  ;;  %605 = vmatprep.mubr.msk.bf16.mxu0 %vm58_vm0, %v31_v11  ;;  %v162_v20 = vcombine.high %v161_v18, %v161_v18  ;;  %v34_v22 = vpack.c.bf16 %v761_v17, %v756_v16  ;;  %v587_v53 = vld [vmem:[%s989_s2] ss:$0 sm:$0xff] }
   0x6   :  { %609 = vmatprep.mubr.msk.bf16.mxu1 %vm58_vm0, %v33_v15 }
   0x7   :  { %v169_v23 = vrot.slane %v161_v18, %v168_v19  ;;  %604 = vmatpush3.bf16.msra.mxu0 %v622_v5  ;;  %616 = vmatpush3.bf16.msra.mxu1 %v622_v5  ;;  %v176_v25 = vrot.slane %v162_v20, %v168_v19 }
   0x9   :  { %v185_v26 = vrot.slane %v169_v23, %v168_v19  ;;  %v177_v27 = vcombine.high %v169_v23, %v169_v23  ;;  %v178_v28 = vcombine.high %v176_v25, %v176_v25  ;;  %v192_v29 = vrot.slane %v176_v25, %v168_v19 }
   0xa   :  { %606 = vmatmul.mubr.msk.bf16.vlgmr.msra.gmra.mxu0 %vm58_vm0, %v32_v21  ;;  %610 = vmatmul.mubr.msk.bf16.vlgmr.msra.gmra.mxu1 %vm58_vm0, %v34_v22 }
   0xb   :  { %v214_v30 = vrot.slane %v185_v26, %v213_v24  ;;  %v207_v31 = vcombine.high %v185_v26, %v185_v26  ;;  %v199_v32 = vrot.slane %v177_v27, %v168_v19  ;;  %v206_v33 = vrot.slane %v178_v28, %v168_v19  ;;  %v594_v19 = vld [vmem:[%s990_s3] ss:$0 sm:$0xff] }
   0xc   :  { %v230_v34 = vrot.slane %v192_v29, %v213_v24  ;;  %v208_v35 = vcombine.high %v192_v29, %v192_v29 }
   0xd   :  { %vm243_vm1 = vcmp.lt.s32.totalorder %v717_v6, %v214_v30  ;;  %v222_v36 = vrot.slane %v207_v31, %v213_v24  ;;  %v218_v37 = vrot.slane %v199_v32, %v213_v24  ;;  %v209_v38 = vcombine.high %v199_v32, %v199_v32 }
   0xe   :  { %v251_v39 = vsel %vm243_vm1, 1, %v672_v2  ;;  %v234_v40 = vrot.slane %v206_v33, %v213_v24  ;;  %vm247_vm5 = vcmp.lt.s32.totalorder %v717_v6, %v230_v34  ;;  %v238_v44 = vrot.slane %v208_v35, %v213_v24 }
   0xf   :  { %260 = vperm.xlu0 %619, %v251_v39   ;;  %vm245_vm2 = vcmp.lt.s32.totalorder %v717_v6, %v222_v36  ;;  %vm244_vm3 = vcmp.lt.s32.totalorder %v717_v6, %v218_v37  ;;  %v226_v41 = vrot.slane %v209_v38, %v213_v24  ;;  %v210_v45 = vcombine.high %v206_v33, %v206_v33 }
  0x10   :  { %v253_v42 = vsel %vm245_vm2, 1, %v672_v2  ;;  %v252_v43 = vsel %vm244_vm3, 1, %v672_v2  ;;  %vm248_vm4 = vcmp.lt.s32.totalorder %v717_v6, %v234_v40  ;;  %v255_v48 = vsel %vm247_vm5, 1, %v672_v2 }
  0x11   :  { %266 = vperm.xlu1 %620, %v253_v42   ;;  %v256_v46 = vsel %vm248_vm4, 1, %v672_v2  ;;  %vm246_vm6 = vcmp.lt.s32.totalorder %v717_v6, %v226_v41  ;;  %v242_v47 = vrot.slane %v210_v45, %v213_v24  ;;  %vm249_vm7 = vcmp.lt.s32.totalorder %v717_v6, %v238_v44 }
  0x12   :  { %v254_v49 = vsel %vm246_vm6, 1, %v672_v2  ;;  %v257_v50 = vsel %vm249_vm7, 1, %v672_v2 }
  0x13   :  { %263 = vperm.xlu0 %619, %v252_v43   ;;  %vm250_vm8 = vcmp.lt.s32.totalorder %v717_v6, %v242_v47 }
  0x14   :  { %v258_v51 = vsel %vm250_vm8, 1, %v672_v2 }
  0x15   :  { %275 = vperm.xlu1 %620, %v256_v46  }
  0x17   :  { %272 = vperm.xlu0 %619, %v255_v48  }
  0x19   :  { %269 = vperm.xlu1 %620, %v254_v49  }
  0x1b   :  { %278 = vperm.xlu0 %619, %v257_v50  }
  0x1d   :  { %281 = vperm.xlu1 %620, %v258_v51  }
  0x8a   :  { %v792_v52 = vpop.permute.xlu0 %260 }
  0x8b   :  { %vm283_vm11 = vcmp.eq.s32.totalorder %v792_v52, 1 }
  0x8c   :  { %v797_v54 = vpop.permute.xlu1 %266 }
  0x8d   :  { %vm285_vm9 = vcmp.eq.s32.totalorder %v797_v54, 1 }
  0x8e   :  { %v799_v59 = vpop.permute.xlu0 %263 }
  0x8f   :  { %vm284_vm12 = vcmp.eq.s32.totalorder %v799_v59, 1 }
  0x90   :  { %v801_v4 = vpop.permute.xlu1 %275 }
  0x91   :  { %vm288_vm13 = vcmp.eq.s32.totalorder %v801_v4, 1 }
  0x92   :  { %v803_v15 = vpop.permute.xlu0 %272 }
  0x93   :  { %vm287_vm14 = vcmp.eq.s32.totalorder %v803_v15, 1 }
  0x94   :  { %v805_v18 = vpop.permute.xlu1 %269 }
  0x95   :  { %vm286_vm15 = vcmp.eq.s32.totalorder %v805_v18, 1 }
  0x96   :  { %v810_v20 = vpop.permute.xlu0 %278 }
  0x97   :  { %vm289_vm10 = vcmp.eq.s32.totalorder %v810_v20, 1 }
  0x98   :  { %v816_v24 = vpop.permute.xlu1 %281 }
  0x99   :  { %vm290_vm1 = vcmp.eq.s32.totalorder %v816_v24, 1 }
  0xca   :  { %v607_v55 = vpop.f32.mrf.mxu0  ;;  %v611_v56 = vpop.f32.mrf.mxu1 }
  0xcb   :  { %v114_v57 = vadd.f32 %v607_v55, %v587_v53  ;;  %v130_v58 = vadd.f32 %v611_v56, %v587_v53 }
  0xcc   :  { %v105_v60 = vpop.f32.mrf.mxu0  ;;  %v121_v61 = vpop.f32.mrf.mxu1 }
  0xcd   :  { %624 = vtanh.f32 %v114_v57  ;;  %v106_v62 = vadd.f32 %v587_v53, %v105_v60  ;;  %v122_v63 = vadd.f32 %v587_v53, %v121_v61 }
  0xce   :  { %626 = vtanh.f32 %v130_v58  ;;  %v608_v0 = vpop.f32.mrf.mxu0  ;;  %v612_v1 = vpop.f32.mrf.mxu1 }
  0xcf   :  { %628 = vtanh.f32 %v106_v62  ;;  %v117_v2 = vadd.f32 %v608_v0, %v587_v53  ;;  %v133_v3 = vadd.f32 %v612_v1, %v587_v53 }
  0xd0   :  { %630 = vtanh.f32 %v122_v63  ;;  %v108_v5 = vpop.f32.mrf.mxu0  ;;  %v124_v6 = vpop.f32.mrf.mxu1 }
  0xd1   :  { %632 = vtanh.f32 %v117_v2  ;;  %v109_v10 = vadd.f32 %v587_v53, %v108_v5  ;;  %v125_v11 = vadd.f32 %v587_v53, %v124_v6 }
  0xd2   :  { %634 = vtanh.f32 %v133_v3 }
  0xd3   :  { %636 = vtanh.f32 %v109_v10 }
  0xd4   :  { %638 = vtanh.f32 %v125_v11 }
  0xda   :  { %v625_v21 = vpop.eup %624 }
  0xdb   :  { %v627_v22 = vpop.eup %626  ;;  %v813_v23 = vmul.f32 %v625_v21, %v594_v19 }
  0xdc   :  { %v629_v25 = vpop.eup %628  ;;  %v821_v26 = vmul.f32 %v627_v22, %v594_v19 }
  0xdd   :  { %v631_v27 = vpop.eup %630  ;;  %v823_v28 = vmul.f32 %v629_v25, %v594_v19  ;;  %v293_v29 = vsel %vm285_vm9, %v813_v23, -inf }
  0xde   :  { %v633_v30 = vpop.eup %632  ;;  %v313_v31 = vsel %vm58_vm0, %v293_v29, -inf  ;;  %v831_v32 = vmul.f32 %v631_v27, %v594_v19  ;;  %v297_v33 = vsel %vm289_vm10, %v821_v26, -inf }
  0xdf   :  { %v635_v34 = vpop.eup %634  ;;  %v291_v35 = vsel %vm283_vm11, %v823_v28, -inf  ;;  %v314_v36 = vrot.slane %v313_v31, 4  ;;  %v840_v37 = vmul.f32 %v633_v30, %v594_v19  ;;  %v341_v38 = vsel %vm58_vm0, %v297_v33, -inf }
  0xe0   :  { %v637_v39 = vpop.eup %636  ;;  %v299_v40 = vsel %vm58_vm0, %v291_v35, -inf  ;;  %v295_v41 = vsel %vm287_vm14, %v831_v32, -inf  ;;  %v342_v42 = vrot.slane %v341_v38, 4  ;;  %v847_v43 = vmul.f32 %v635_v34, %v594_v19 }
  0xe1   :  { %v639_v44 = vpop.eup %638  ;;  %v300_v45 = vrot.slane %v299_v40, 4  ;;  %v315_v46 = vmax.f32 %v313_v31, %v314_v36  ;;  %v849_v47 = vmul.f32 %v637_v39, %v594_v19  ;;  %v327_v48 = vsel %vm58_vm0, %v295_v41, -inf }
  0xe2   :  { %v852_v49 = vmul.f32 %v639_v44, %v594_v19  ;;  %v328_v50 = vrot.slane %v327_v48, 4  ;;  %v294_v51 = vsel %vm286_vm15, %v840_v37, -inf  ;;  %v343_v53 = vmax.f32 %v341_v38, %v342_v42 }
  0xe3   :  { %v301_v55 = vmax.f32 %v299_v40, %v300_v45  ;;  %v316_v56 = vrot.slane %v315_v46, 2  ;;  %v292_v57 = vsel %vm284_vm12, %v849_v47, -inf  ;;  %v320_v58 = vsel %vm58_vm0, %v294_v51, -inf }
  0xe4   :  { %v306_v60 = vsel %vm58_vm0, %v292_v57, -inf  ;;  %v296_v61 = vsel %vm288_vm13, %v852_v49, -inf  ;;  %v329_v62 = vmax.f32 %v327_v48, %v328_v50  ;;  %v321_v63 = vrot.slane %v320_v58, 4 }
  0xe5   :  { %v302_v0 = vrot.slane %v301_v55, 2  ;;  %v317_v1 = vmax.f32 %v315_v46, %v316_v56  ;;  %v307_v2 = vrot.slane %v306_v60, 4  ;;  %v334_v3 = vsel %vm58_vm0, %v296_v61, -inf }
  0xe6   :  { %v335_v5 = vrot.slane %v334_v3, 4  ;;  %v330_v6 = vrot.slane %v329_v62, 2  ;;  %v322_v10 = vmax.f32 %v320_v58, %v321_v63  ;;  %v344_v11 = vrot.slane %v343_v53, 2 }
  0xe7   :  { %v303_v19 = vmax.f32 %v301_v55, %v302_v0  ;;  %v318_v21 = vrot.slane %v317_v1, 1  ;;  %v308_v22 = vmax.f32 %v306_v60, %v307_v2  ;;  %v298_v25 = vsel %vm290_vm1, %v847_v43, -inf }
  0xe8   :  { %v336_v27 = vmax.f32 %v334_v3, %v335_v5  ;;  %v331_v29 = vmax.f32 %v329_v62, %v330_v6  ;;  %v323_v30 = vrot.slane %v322_v10, 2  ;;  %v345_v31 = vmax.f32 %v343_v53, %v344_v11 }
  0xe9   :  { %v304_v33 = vrot.slane %v303_v19, 1  ;;  %v319_v34 = vmax.f32 %v317_v1, %v318_v21  ;;  %v309_v35 = vrot.slane %v308_v22, 2  ;;  %v348_v36 = vsel %vm58_vm0, %v298_v25, -inf }
  0xea   :  { %v337_v38 = vrot.slane %v336_v27, 2  ;;  %v332_v39 = vrot.slane %v331_v29, 1  ;;  %v324_v40 = vmax.f32 %v322_v10, %v323_v30  ;;  %v346_v41 = vrot.slane %v345_v31, 1 }
  0xeb   :  { %v305_v42 = vmax.f32 %v303_v19, %v304_v33  ;;  %vm357_vm2 = vcmp.eq.f32.partialorder %v319_v34, -inf  ;;  %v310_v44 = vmax.f32 %v308_v22, %v309_v35  ;;  %v349_v45 = vrot.slane %v348_v36, 4 }
  0xec   :  { %v365_v46 = vsel %vm357_vm2, 0.0, %v319_v34  ;;  %v338_v48 = vmax.f32 %v336_v27, %v337_v38  ;;  %v333_v50 = vmax.f32 %v331_v29, %v332_v39  ;;  %v325_v51 = vrot.slane %v324_v40, 1 }
  0xed   :  { %vm355_vm3 = vcmp.eq.f32.partialorder %v305_v42, -inf  ;;  %v373_v53 = vsub.f32 %v813_v23, %v365_v46  ;;  %v311_v55 = vrot.slane %v310_v44, 1  ;;  %v347_v56 = vmax.f32 %v345_v31, %v346_v41 }
  0xee   :  { %v363_v57 = vsel %vm355_vm3, 0.0, %v305_v42  ;;  %v339_v58 = vrot.slane %v338_v48, 1  ;;  %vm359_vm4 = vcmp.eq.f32.partialorder %v333_v50, -inf  ;;  %v326_v60 = vmax.f32 %v324_v40, %v325_v51 }
  0xef   :  { %v371_v61 = vsub.f32 %v823_v28, %v363_v57  ;;  %v383_v62 = vmul.f32 1.442695, %v373_v53  ;;  %v312_v63 = vmax.f32 %v310_v44, %v311_v55  ;;  %v367_v0 = vsel %vm359_vm4, 0.0, %v333_v50 }
  0xf0   :  { %v340_v1 = vmax.f32 %v338_v48, %v339_v58  ;;  %v375_v2 = vsub.f32 %v831_v32, %v367_v0  ;;  %vm358_vm5 = vcmp.eq.f32.partialorder %v326_v60, -inf  ;;  %vm361_vm6 = vcmp.eq.f32.partialorder %v347_v56, -inf }
  0xf1   :  { %v379_v3 = vmul.f32 1.442695, %v371_v61  ;;  %640 = vpow2.f32 %v383_v62  ;;  %vm356_vm7 = vcmp.eq.f32.partialorder %v312_v63, -inf  ;;  %v366_v23 = vsel %vm358_vm5, 0.0, %v326_v60 }
  0xf2   :  { %v364_v5 = vsel %vm356_vm7, 0.0, %v312_v63  ;;  %vm360_vm8 = vcmp.eq.f32.partialorder %v340_v1, -inf  ;;  %v387_v6 = vmul.f32 1.442695, %v375_v2  ;;  %v374_v10 = vsub.f32 %v840_v37, %v366_v23 }
  0xf3   :  { %642 = vpow2.f32 %v379_v3  ;;  %v372_v28 = vsub.f32 %v849_v47, %v364_v5  ;;  %v368_v11 = vsel %vm360_vm8, 0.0, %v340_v1  ;;  %v369_v19 = vsel %vm361_vm6, 0.0, %v347_v56 }
  0xf4   :  { %v376_v21 = vsub.f32 %v852_v49, %v368_v11  ;;  %644 = vpow2.f32 %v387_v6  ;;  %v385_v32 = vmul.f32 1.442695, %v374_v10  ;;  %v377_v22 = vsub.f32 %v821_v26, %v369_v19 }
  0xf5   :  { %v381_v25 = vmul.f32 1.442695, %v372_v28  ;;  %v350_v27 = vmax.f32 %v348_v36, %v349_v45 }
  0xf6   :  { %v389_v29 = vmul.f32 1.442695, %v376_v21  ;;  %646 = vpow2.f32 %v385_v32  ;;  %v391_v30 = vmul.f32 1.442695, %v377_v22 }
  0xf7   :  { %648 = vpow2.f32 %v381_v25  ;;  %v351_v31 = vrot.slane %v350_v27, 2 }
  0xf8   :  { %650 = vpow2.f32 %v389_v29 }
  0xf9   :  { %652 = vpow2.f32 %v391_v30  ;;  %v352_v37 = vmax.f32 %v350_v27, %v351_v31 }
  0xfb   :  { %v353_v33 = vrot.slane %v352_v37, 1 }
  0xfd   :  { %v354_v47 = vmax.f32 %v352_v37, %v353_v33 }
  0xfe   :  { %v641_v34 = vpop.eup %640 }
  0xff   :  { %v879_v49 = vsel %vm285_vm9, %v641_v34, 0.0  ;;  %vm362_vm2 = vcmp.eq.f32.partialorder %v354_v47, -inf  ;;  %vm563_vm9 = vcmask 1041409  }
 0x100   :  { %v643_v35 = vpop.eup %642  ;;  %v417_v26 = vsel %vm58_vm0, %v879_v49, 0.0  ;;  %v370_v36 = vsel %vm362_vm2, 0.0, %v354_v47 }
 0x101   :  { %v645_v38 = vpop.eup %644  ;;  %v885_v39 = vsel %vm283_vm11, %v643_v35, 0.0  ;;  %v418_v40 = vrot.slane %v417_v26, 4  ;;  %v378_v41 = vsub.f32 %v847_v43, %v370_v36  ;;  %vm567_vm11 = vcmask 1043459  }
 0x102   :  { %v403_v42 = vsel %vm58_vm0, %v885_v39, 0.0  ;;  %v892_v54 = vsel %vm287_vm14, %v645_v38, 0.0  ;;  %vm573_vm14 = vcmask 1046534  }
 0x103   :  { %v647_v44 = vpop.eup %646  ;;  %v404_v45 = vrot.slane %v403_v42, 4  ;;  %v419_v46 = vadd.f32 %v418_v40, %v417_v26  ;;  %v431_v48 = vsel %vm58_vm0, %v892_v54, 0.0  ;;  %v393_v43 = vmul.f32 1.442695, %v378_v41 }
 0x104   :  { %v649_v50 = vpop.eup %648  ;;  %v432_v52 = vrot.slane %v431_v48, 4  ;;  %v898_v51 = vsel %vm286_vm15, %v647_v44, 0.0  ;;  %vm575_vm15 = vcmask 1047559  }
 0x105   :  { %v651_v53 = vpop.eup %650  ;;  %v405_v55 = vadd.f32 %v404_v45, %v403_v42  ;;  %v420_v56 = vrot.slane %v419_v46, 2  ;;  %v902_v15 = vsel %vm284_vm12, %v649_v50, 0.0  ;;  %v424_v57 = vsel %vm58_vm0, %v898_v51, 0.0 }
 0x106   :  { %v653_v58 = vpop.eup %652  ;;  %v410_v60 = vsel %vm58_vm0, %v902_v15, 0.0  ;;  %v910_v18 = vsel %vm288_vm13, %v651_v53, 0.0  ;;  %v433_v61 = vadd.f32 %v432_v52, %v431_v48  ;;  %v425_v62 = vrot.slane %v424_v57, 4 }
 0x107   :  { %v406_v63 = vrot.slane %v405_v55, 2  ;;  %v421_v0 = vadd.f32 %v420_v56, %v419_v46  ;;  %v411_v1 = vrot.slane %v410_v60, 4  ;;  %v438_v59 = vsel %vm58_vm0, %v910_v18, 0.0 }
 0x108   :  { %v439_v2 = vrot.slane %v438_v59, 4  ;;  %v434_v3 = vrot.slane %v433_v61, 2  ;;  %v426_v23 = vadd.f32 %v425_v62, %v424_v57  ;;  %v916_v5 = vsel %vm289_vm10, %v653_v58, 0.0 }
 0x109   :  { %v407_v6 = vadd.f32 %v406_v63, %v405_v55  ;;  %v422_v10 = vrot.slane %v421_v0, 1  ;;  %v412_v4 = vadd.f32 %v411_v1, %v410_v60  ;;  %v445_v28 = vsel %vm58_vm0, %v916_v5, 0.0 }
 0x10a   :  { %v440_v11 = vadd.f32 %v439_v2, %v438_v59  ;;  %v435_v19 = vadd.f32 %v434_v3, %v433_v61  ;;  %v427_v21 = vrot.slane %v426_v23, 2  ;;  %v446_v32 = vrot.slane %v445_v28, 4 }
 0x10b   :  { %v408_v22 = vrot.slane %v407_v6, 1  ;;  %v423_v25 = vadd.f32 %v422_v10, %v421_v0  ;;  %v413_v27 = vrot.slane %v412_v4, 2  ;;  %654 = vpow2.f32 %v393_v43 }
 0x10c   :  { %v441_v29 = vrot.slane %v440_v11, 2  ;;  %v436_v30 = vrot.slane %v435_v19, 1  ;;  %v428_v31 = vadd.f32 %v427_v21, %v426_v23  ;;  %v447_v20 = vadd.f32 %v446_v32, %v445_v28 }
 0x10d   :  { %v409_v37 = vadd.f32 %v408_v22, %v407_v6  ;;  %v461_v33 = vmax.f32 %v423_v25, 1e-06  ;;  %v414_v47 = vadd.f32 %v413_v27, %v412_v4  ;;  %vm565_vm10 = vcmask 1042434  }
 0x10e   :  { %v442_v34 = vadd.f32 %v441_v29, %v440_v11  ;;  %v437_v35 = vadd.f32 %v436_v30, %v435_v19  ;;  %v429_v26 = vrot.slane %v428_v31, 1  ;;  %v448_v36 = vrot.slane %v447_v20, 2 }
 0x10f   :  { %v459_v38 = vmax.f32 %v409_v37, 1e-06  ;;  %656 = vrcp.f32 %v461_v33  ;;  %v415_v40 = vrot.slane %v414_v47, 1  ;;  %vm569_vm12 = vcmask 1044484  }
 0x110   :  { %v443_v41 = vrot.slane %v442_v34, 1  ;;  %v463_v42 = vmax.f32 %v437_v35, 1e-06  ;;  %v430_v44 = vadd.f32 %v429_v26, %v428_v31  ;;  %v449_v45 = vadd.f32 %v448_v36, %v447_v20 }
 0x111   :  { %658 = vrcp.f32 %v459_v38  ;;  %v416_v46 = vadd.f32 %v415_v40, %v414_v47  ;;  %vm571_vm13 = vcmask 1045509  }
 0x112   :  { %v444_v48 = vadd.f32 %v443_v41, %v442_v34  ;;  %660 = vrcp.f32 %v463_v42  ;;  %v462_v50 = vmax.f32 %v430_v44, 1e-06  ;;  %v450_v52 = vrot.slane %v449_v45, 1 }
 0x113   :  { %v460_v43 = vmax.f32 %v416_v46, 1e-06 }
 0x114   :  { %v464_v53 = vmax.f32 %v444_v48, 1e-06  ;;  %662 = vrcp.f32 %v462_v50  ;;  %v451_v55 = vadd.f32 %v450_v52, %v449_v45 }
 0x115   :  { %664 = vrcp.f32 %v460_v43 }
 0x116   :  { %666 = vrcp.f32 %v464_v53  ;;  %v465_v56 = vmax.f32 %v451_v55, 1e-06 }
 0x118   :  { %v655_v57 = vpop.eup %654  ;;  %668 = vrcp.f32 %v465_v56 }
 0x119   :  { %v922_v58 = vsel %vm290_vm1, %v655_v57, 0.0 }
 0x11a   :  { %v452_v60 = vsel %vm58_vm0, %v922_v58, 0.0 }
 0x11b   :  { %v453_v61 = vrot.slane %v452_v60, 4 }
 0x11c   :  { %v657_v62 = vpop.eup %656 }
 0x11d   :  { %v477_v63 = vmul.f32 %v657_v62, %v879_v49  ;;  %v454_v0 = vadd.f32 %v453_v61, %v452_v60 }
 0x11e   :  { %v659_v1 = vpop.eup %658 }
 0x11f   :  { %v661_v59 = vpop.eup %660  ;;  %v475_v2 = vmul.f32 %v659_v1, %v885_v39  ;;  %485 = vst.msk [vmem:[%s991_s6 + $0x10] sm:$0xff] %vm58_vm0, %v477_v63  ;;  %v493_v24 = vmul.f32 %v477_v63, %v744_v13  ;;  %v455_v3 = vrot.slane %v454_v0, 2 }
 0x120   :  { %v479_v23 = vmul.f32 %v661_v59, %v892_v54 }
 0x121   :  { %v663_v6 = vpop.eup %662  ;;  %483 = vst.msk [vmem:[%s991_s6] sm:$0xff] %vm58_vm0, %v475_v2  ;;  %v491_v49 = vmul.f32 %v475_v2, %v722_v7  ;;  %v513_v39 = vsel %vm58_vm0, %v493_v24, 0.0  ;;  %v456_v10 = vadd.f32 %v455_v3, %v454_v0 }
 0x122   :  { %v665_v4 = vpop.eup %664  ;;  %487 = vst.msk [vmem:[%s991_s6 + $0x20] sm:$0xff] %vm58_vm0, %v479_v23  ;;  %v478_v13 = vmul.f32 %v663_v6, %v898_v51  ;;  %v495_v19 = vmul.f32 %v479_v23, %v732_v9  ;;  %v514_v32 = vrot.slane %v513_v39, 4 }
 0x123   :  { %v667_v54 = vpop.eup %666  ;;  %v499_v28 = vsel %vm58_vm0, %v491_v49, 0.0  ;;  %v476_v11 = vmul.f32 %v665_v4, %v902_v15  ;;  %v457_v21 = vrot.slane %v456_v10, 1 }
 0x124   :  { %v500_v7 = vrot.slane %v499_v28, 4  ;;  %v480_v22 = vmul.f32 %v667_v54, %v910_v18  ;;  %486 = vst.msk [vmem:[%s991_s6 + $0x18] sm:$0xff] %vm58_vm0, %v478_v13  ;;  %v494_v9 = vmul.f32 %v478_v13, %v749_v14  ;;  %v527_v31 = vsel %vm58_vm0, %v495_v19, 0.0 }
 0x125   :  { %v669_v25 = vpop.eup %668  ;;  %484 = vst.msk [vmem:[%s991_s6 + $0x8] sm:$0xff] %vm58_vm0, %v476_v11  ;;  %v492_v51 = vmul.f32 %v476_v11, %v727_v8  ;;  %v458_v15 = vadd.f32 %v457_v21, %v456_v10  ;;  %v515_v37 = vadd.f32 %v514_v32, %v513_v39  ;;  %v528_v35 = vrot.slane %v527_v31, 4 }
 0x126   :  { %v501_v27 = vadd.f32 %v500_v7, %v499_v28  ;;  %488 = vst.msk [vmem:[%s991_s6 + $0x28] sm:$0xff] %vm58_vm0, %v480_v22  ;;  %v496_v18 = vmul.f32 %v480_v22, %v739_v12  ;;  %v481_v29 = vmul.f32 %v669_v25, %v916_v5  ;;  %v520_v20 = vsel %vm58_vm0, %v494_v9, 0.0 }
 0x127   :  { %v506_v30 = vsel %vm58_vm0, %v492_v51, 0.0  ;;  %v466_v8 = vmax.f32 %v458_v15, 1e-06  ;;  %v521_v47 = vrot.slane %v520_v20, 4  ;;  %v516_v36 = vrot.slane %v515_v37, 2 }
 0x128   :  { %v507_v14 = vrot.slane %v506_v30, 4  ;;  %489 = vst.msk [vmem:[%s991_s6 + $0x30] sm:$0xff] %vm58_vm0, %v481_v29  ;;  %v502_v33 = vrot.slane %v501_v27, 2  ;;  %v497_v12 = vmul.f32 %v481_v29, %v756_v16  ;;  %v534_v5 = vsel %vm58_vm0, %v496_v18, 0.0 }
 0x129   :  { %670 = vrcp.f32 %v466_v8  ;;  %v522_v26 = vadd.f32 %v521_v47, %v520_v20  ;;  %v535_v41 = vrot.slane %v534_v5, 4  ;;  %v529_v45 = vadd.f32 %v528_v35, %v527_v31 }
 0x12a   :  { %v508_v34 = vadd.f32 %v507_v14, %v506_v30  ;;  %v503_v40 = vadd.f32 %v502_v33, %v501_v27  ;;  %v541_v42 = vsel %vm58_vm0, %v497_v12, 0.0  ;;  %v517_v48 = vadd.f32 %v516_v36, %v515_v37 }
 0x12b   :  { %v523_v46 = vrot.slane %v522_v26, 2  ;;  %v542_v52 = vrot.slane %v541_v42, 4  ;;  %v536_v16 = vadd.f32 %v535_v41, %v534_v5  ;;  %v530_v53 = vrot.slane %v529_v45, 2 }
 0x12c   :  { %v509_v38 = vrot.slane %v508_v34, 2  ;;  %v504_v43 = vrot.slane %v503_v40, 1  ;;  %v518_v57 = vrot.slane %v517_v48, 1 }
 0x12d   :  { %v524_v56 = vadd.f32 %v523_v46, %v522_v26  ;;  %v543_v60 = vadd.f32 %v542_v52, %v541_v42  ;;  %v537_v62 = vrot.slane %v536_v16, 2  ;;  %v531_v63 = vadd.f32 %v530_v53, %v529_v45 }
 0x12e   :  { %v510_v44 = vadd.f32 %v509_v38, %v508_v34  ;;  %v505_v61 = vadd.f32 %v504_v43, %v503_v40  ;;  %v519_v2 = vadd.f32 %v518_v57, %v517_v48 }
 0x12f   :  { %v525_v59 = vrot.slane %v524_v56, 1  ;;  %v544_v24 = vrot.slane %v543_v60, 2  ;;  %v538_v23 = vadd.f32 %v537_v62, %v536_v16  ;;  %v532_v6 = vrot.slane %v531_v63, 1 }
 0x130   :  { %v511_v50 = vrot.slane %v510_v44, 1 }
 0x131   :  { %v526_v10 = vadd.f32 %v525_v59, %v524_v56  ;;  %v545_v4 = vadd.f32 %v544_v24, %v543_v60  ;;  %v539_v54 = vrot.slane %v538_v23, 1 }
 0x132   :  { %v512_v55 = vadd.f32 %v511_v50, %v510_v44 }
 0x133   :  { %v546_v7 = vrot.slane %v545_v4, 1  ;;  %v540_v32 = vadd.f32 %v539_v54, %v538_v23 }
 0x134   :  { %v564_v1 = vsel %vm563_vm9, %v512_v55, %v505_v61 }
 0x135   :  { %v566_v49 = vsel %vm565_vm10, %v519_v2, %v564_v1  ;;  %v547_v9 = vadd.f32 %v546_v7, %v545_v4 }
 0x136   :  { %v671_v0 = vpop.eup %670  ;;  %v568_v28 = vsel %vm567_vm11, %v526_v10, %v566_v49 }
 0x137   :  { %v482_v3 = vmul.f32 %v671_v0, %v922_v58  ;;  %v533_v58 = vadd.f32 %v532_v6, %v531_v63 }
 0x139   :  { %490 = vst.msk [vmem:[%s991_s6 + $0x38] sm:$0xff] %vm58_vm0, %v482_v3  ;;  %v498_v39 = vmul.f32 %v482_v3, %v761_v17  ;;  %v570_v21 = vsel %vm569_vm12, %v533_v58, %v568_v28 }
 0x13a   :  { %v572_v25 = vsel %vm571_vm13, %v540_v32, %v570_v21 }
 0x13b   :  { %v548_v13 = vsel %vm58_vm0, %v498_v39, 0.0  ;;  %v574_v15 = vsel %vm573_vm14, %v547_v9, %v572_v25 }
 0x13c   :  { %v549_v11 = vrot.slane %v548_v13, 4 }
 0x13e   :  { %v550_v19 = vadd.f32 %v549_v11, %v548_v13 }
 0x140   :  { %v551_v22 = vrot.slane %v550_v19, 2 }
 0x142   :  { %v552_v51 = vadd.f32 %v551_v22, %v550_v19 }
 0x144   :  { %v553_v17 = vrot.slane %v552_v51, 1 }
 0x146   :  { %v554_v27 = vadd.f32 %v553_v17, %v552_v51 }
 0x148   :  { %v576_v18 = vsel %vm575_vm15, %v554_v27, %v574_v15 }
 0x149   :  { %578 = vst.msk [vmem:[%s992_s5] sm:$0xff] %vm58_vm0, %v576_v18 }

// kernel: word_attention_forward.4
= control target key start
LH: loop header
LB: loop body
LE: loop exit
PB: predicated region body
PF: predicated region fallthrough
CT: control target
= control target key end

     0   :  { %vm160_vm0 = vcmask 130048   ;;  %v2635_v1 = vmov 0.0   ;;  %vm2636_vm1 = vmmov 0   ;;  %vm58_vm2 = vcmask 261120   ;;  %s2638_s15 = smov 48   ;;  %s2639_s16 = smov 96   ;;  %s3314_s1 = inlined_call_operand.vmem [shape: bf16[32,96], index: 1, kind: input, shape index: {}]   ;;  %s3315_s2 = inlined_call_operand.vmem [shape: f32[16,48], index: 2, kind: input, shape index: {}]   ;;  %s3316_s0 = inlined_call_operand.vmem [shape: f32[8,8,32], index: 0, kind: input, shape index: {}]   ;;  %s3317_s3 = inlined_call_operand.vmem [shape: f32[16,48], index: 3, kind: input, shape index: {}]   ;;  %s3318_s4 = inlined_call_operand.vmem [shape: f32[1,96], index: 4, kind: input, shape index: {}]   ;;  %s3319_s6 = inlined_call_operand.vmem [shape: f32[1,48], index: 6, kind: input, shape index: {}]   ;;  %s3320_s5 = inlined_call_operand.vmem [shape: f32[1,48], index: 5, kind: input, shape index: {}]   ;;  %s3321_s7 = inlined_call_operand.vmem [shape: s32[8,1], index: 7, kind: input, shape index: {}]   ;;  %s3322_s8 = inlined_call_operand.vmem [shape: f32[8,8,32], index: 8, kind: output, shape index: {}]  }
   0x1   :  { %v2537_v0 = vld [vmem:[%s3314_s1 + $0x8] sm:$0xff]   ;;  %2414 = vmatprep.subr.mxu1 %v2635_v1  ;;  %2418 = vmatprep.mubr.msk.f32.mxu1 %vm2636_vm1, %v2635_v1  ;;  %161 = vst.msk [vmem:[#allocation3] sm:$0xff] %vm160_vm0, %v2635_v1  ;;  %162 = vst.msk [vmem:[#allocation4] sm:$0xff] %vm160_vm0, %v2635_v1  ;;  %v2707_v3 = vld [vmem:[%s3315_s2] sm:$0xff]  ;;  %vm151_vm3 = vcmask 785408   ;;  %v2640_v51 = vmov 0  }
   0x2   :  { %v2702_v2 = vld [vmem:[%s3315_s2 + $0x8] sm:$0xff]  ;;  %2402 = vmatprep.subr.bf16.mxu0 %v2537_v0  ;;  %v2538_v4 = vld [vmem:[%s3314_s1] sm:$0xff]   ;;  %v32_v8 = vld [vmem:[%s3316_s0 + $0x10] sm:$0xff]  ;;  %2535 = vset.pattern.permute.xlu1 %v2640_v51  ;;  %s2641_s1 = smov 32   ;;  %s2643_s19 = smov 64   ;;  %vm434_vm12 = vcmask 261248  }
   0x3   :  { %2415 = vmatpush3.msra.mxu1 %v2702_v2  ;;  %2403 = vmatpush3.bf16.msra.mxu0 %v2537_v0  ;;  %v30_v5 = vld [vmem:[%s3316_s0] sm:$0xff]  ;;  %v31_v6 = vld [vmem:[%s3316_s0 + $0x8] sm:$0xff]  ;;  %v33_v9 = vld [vmem:[%s3316_s0 + $0x18] sm:$0xff] }
   0x4   :  { %2416 = vmatprep.subr.mxu1 %v2635_v1  ;;  %2404 = vmatprep.subr.bf16.mxu0 %v2538_v4  ;;  %v38_v7 = vpack.c.bf16 %v31_v6, %v30_v5  ;;  %v34_v10 = vld [vmem:[%s3316_s0 + $0x20] sm:$0xff]  ;;  %v35_v11 = vld [vmem:[%s3316_s0 + $0x28] sm:$0xff]  ;;  %v39_v13 = vpack.c.bf16 %v33_v9, %v32_v8  ;;  %v36_v18 = vld [vmem:[%s3316_s0 + $0x30] sm:$0xff] }
   0x5   :  { %2417 = vmatpush3.msra.mxu1 %v2707_v3  ;;  %v2737_v12 = vld [vmem:[%s3317_s3 + $0x8] sm:$0xff]  ;;  %v40_v15 = vpack.c.bf16 %v35_v11, %v34_v10  ;;  %v2747_v16 = vld [vmem:[%s3317_s3] sm:$0xff]  ;;  %v37_v19 = vld [vmem:[%s3316_s0 + $0x38] sm:$0xff]  ;;  %2536 = vset.pattern.permute.xlu0 %v2640_v51 }
   0x6   :  { %2421 = vmatprep.subr.mxu1 %v2635_v1  ;;  %2406 = vmatprep.mubr.msk.bf16.mxu0 %vm58_vm2, %v38_v7  ;;  %v41_v20 = vpack.c.bf16 %v37_v19, %v36_v18  ;;  %v2277_v24 = vld [vmem:[%s3318_s4] ss:$0 sm:$0xff]  ;;  %s2637_s4 = smov 16  }
   0x7   :  { %2405 = vmatpush3.bf16.msra.mxu0 %v2538_v4  ;;  %v2787_v25 = vld [vmem:[%s3319_s6] ss:$0 sm:$0xff] }
   0x8   :  { %v2740_v14 = vld [vmem:[#allocation3] sm:$0xff]  ;;  %2449 = vmatprep.subr.mxu0 %v2635_v1  ;;  %v2753_v17 = vld [vmem:[#allocation4] sm:$0xff] }
   0x9   :  { %2419 = vmatmul.mubr.msk.f32.vlgmr.msra.gmra.mxu1 %vm160_vm0, %v2740_v14  ;;  %v2794_v31 = vld [vmem:[%s3320_s5] ss:$0 sm:$0xff] }
   0xa   :  { %2422 = vmatpush3.msra.mxu1 %v2737_v12  ;;  %2425 = vmatprep.mubr.msk.f32.mxu1 %vm2636_vm1, %v2635_v1  ;;  %v2810_v55 = vld [vmem:[%s3321_s7] sm:$0xff]  ;;  %s2642_s7 = smov 112  }
   0xb   :  { %2423 = vmatprep.subr.mxu1 %v2635_v1  ;;  %2407 = vmatmul.mubr.msk.bf16.vlgmr.msra.gmra.mxu0 %vm58_vm2, %v39_v13  ;;  %vm277_vm4 = vcmp.gt.s32.totalorder %v2810_v55, 0  ;;  %vm412_vm5 = vcmp.gt.s32.totalorder %v2810_v55, 7  ;;  %vm686_vm6 = vcmp.gt.s32.totalorder %v2810_v55, 6  ;;  %vm550_vm7 = vcmp.gt.s32.totalorder %v2810_v55, 1 }
   0xc   :  { %2424 = vmatpush3.msra.mxu1 %v2747_v16  ;;  %2410 = vmatprep.mubr.msk.bf16.mxu0 %vm58_vm2, %v40_v15  ;;  %v2281_v60 = vsel %vm277_vm4, 1.0, %v2635_v1  ;;  %v2285_v11 = vsel %vm412_vm5, 1.0, %v2635_v1  ;;  %vm959_vm8 = vcmp.gt.s32.totalorder %v2810_v55, 5  ;;  %vm823_vm9 = vcmp.gt.s32.totalorder %v2810_v55, 2 }
   0xd   :  { %2426 = vmatmul.mubr.msk.f32.vlgmr.msra.gmra.mxu1 %vm160_vm0, %v2753_v17  ;;  %2428 = vmatprep.subr.mxu1 %v2635_v1  ;;  %vm1232_vm10 = vcmp.gt.s32.totalorder %v2810_v55, 4  ;;  %vm1096_vm11 = vcmp.gt.s32.totalorder %v2810_v55, 3 }
   0xe   :  { %2429 = vmatpush3.msra.mxu1 %v2702_v2  ;;  %2432 = vmatprep.mubr.msk.f32.mxu1 %vm2636_vm1, %v2635_v1 }
   0xf   :  { %2430 = vmatprep.subr.mxu1 %v2635_v1  ;;  %2450 = vmatpush3.msra.mxu0 %v2737_v12 }
  0x10   :  { %2431 = vmatpush3.msra.mxu1 %v2707_v3  ;;  %2451 = vmatprep.subr.mxu0 %v2635_v1 }
  0x11   :  { %2435 = vmatprep.subr.mxu1 %v2635_v1  ;;  %2452 = vmatpush3.msra.mxu0 %v2747_v16 }
  0x12   :  { %2463 = vmatprep.subr.mxu0 %v2635_v1 }
  0x13   :  { %2411 = vmatmul.mubr.msk.bf16.gmra.mxu0 %vm58_vm2, %v41_v20 }
  0x14   :  { %2453 = vmatprep.mubr.msk.f32.mxu0 %vm2636_vm1, %v2635_v1 }
  0xc9   :  { %v244_v21 = vpop.f32.mrf.mxu1 }
  0xca   :  { %v245_v36 = vadd.f32 %v2794_v31, %v244_v21 }
  0xcb   :  { %v2420_v22 = vpop.f32.mrf.mxu1  ;;  %v2408_v23 = vpop.f32.mrf.mxu0 }
  0xcc   :  { %v145_v26 = vadd.f32 %v2408_v23, %v2277_v24 }
  0xcd   :  { %v376_v27 = vpop.f32.mrf.mxu1  ;;  %v105_v28 = vpop.f32.mrf.mxu0 }
  0xce   :  { %154 = vst.msk [vmem:[#allocation2 + $0x10] sm:$0xff] %vm151_vm3, %v145_v26  ;;  %v377_v29 = vadd.f32 %v2787_v25, %v376_v27  ;;  %v143_v30 = vadd.f32 %v2277_v24, %v105_v28 }
  0xcf   :  { %v2427_v32 = vpop.f32.mrf.mxu1  ;;  %v2409_v33 = vpop.f32.mrf.mxu0 }
  0xd0   :  { %152 = vst.msk [vmem:[#allocation2] sm:$0xff] %vm151_vm3, %v143_v30  ;;  %391 = vrot.lane.b32.xlu1 %v377_v29, %s2637_s4  ;;  %381 = vrot.lane.b32.xlu0 %v377_v29, %s2638_s15  ;;  %v146_v34 = vadd.f32 %v2409_v33, %v2277_v24 }
  0xd1   :  { %v108_v35 = vpop.f32.mrf.mxu0 }
  0xd2   :  { %155 = vst.msk [vmem:[#allocation2 + $0x18] sm:$0xff] %vm151_vm3, %v146_v34  ;;  %v144_v37 = vadd.f32 %v2277_v24, %v108_v35 }
  0xd3   :  { %v2412_v38 = vpop.f32.mrf.mxu0 }
  0xd4   :  { %256 = vrot.lane.b32.xlu0 %v245_v36, %s2639_s16  ;;  %153 = vst.msk [vmem:[#allocation2 + $0x8] sm:$0xff] %vm151_vm3, %v144_v37  ;;  %v149_v39 = vadd.f32 %v2412_v38, %v2277_v24 }
  0xd5   :  { %v121_v40 = vpop.f32.mrf.mxu0 }
  0xd6   :  { %158 = vst.msk [vmem:[#allocation2 + $0x30] sm:$0xff] %vm151_vm3, %v149_v39  ;;  %v147_v41 = vadd.f32 %v2277_v24, %v121_v40 }
  0xd7   :  { %v2413_v42 = vpop.f32.mrf.mxu0  ;;  %v164_v46 = vld [vmem:[#allocation2] sm:$0xff] }
  0xd8   :  { %156 = vst.msk [vmem:[#allocation2 + $0x20] sm:$0xff] %vm151_vm3, %v147_v41  ;;  %v150_v43 = vadd.f32 %v2413_v42, %v2277_v24  ;;  %v248_v47 = vadd.f32 %v245_v36, %v164_v46 }
  0xd9   :  { %v124_v44 = vpop.f32.mrf.mxu0 }
  0xda   :  { %159 = vst.msk [vmem:[#allocation2 + $0x38] sm:$0xff] %vm151_vm3, %v150_v43  ;;  %v148_v45 = vadd.f32 %v2277_v24, %v124_v44  ;;  %v2280_v48 = vmul.f32 -1.442695, %v248_v47 }
  0xdc   :  { %157 = vst.msk [vmem:[#allocation2 + $0x28] sm:$0xff] %vm151_vm3, %v148_v45  ;;  %2539 = vpow2.f32 %v2280_v48 }
  0xe1   :  { %v296_v53 = vld [vmem:[#allocation2 + $0x38] sm:$0xff] }
  0xe9   :  { %v2540_v49 = vpop.eup %2539 }
  0xea   :  { %v252_v50 = vadd.f32 1.0, %v2540_v49 }
  0xec   :  { %2541 = vrcp.f32 %v252_v50 }
  0xf9   :  { %v2542_v57 = vpop.eup %2541 }
  0xfa   :  { %v266_v18 = vsub.f32 1.0, %v2542_v57 }
 0x142   :  { %v382_v52 = vpop.permute.xlu0 %381  ;;  %v392_v0 = vpop.permute.xlu1 %391 }
 0x143   :  { %v384_v54 = vadd.f32 %v382_v52, %v296_v53 }
 0x145   :  { %v2284_v56 = vmul.f32 -1.442695, %v384_v54 }
 0x146   :  { %v257_v58 = vpop.permute.xlu0 %256 }
 0x147   :  { %2543 = vpow2.f32 %v2284_v56  ;;  %v259_v59 = vmul.f32 %v2542_v57, %v257_v58 }
 0x149   :  { %261 = vrot.lane.b32.xlu1 %v259_v59, %s2641_s1  ;;  %v2295_v59 = vsel %vm686_vm6, 1.0, %v2635_v1 }
 0x14d   :  { %283 = vperm.xlu1 %2535, %v2281_v60  }
 0x154   :  { %v2544_v61 = vpop.eup %2543 }
 0x155   :  { %v388_v62 = vadd.f32 1.0, %v2544_v61  ;;  %v2875_v61 = vld [vmem:[#allocation2 + $0x8] sm:$0xff] }
 0x157   :  { %2545 = vrcp.f32 %v388_v62 }
 0x164   :  { %v2546_v63 = vpop.eup %2545 }
 0x165   :  { %v394_v4 = vmul.f32 %v2546_v63, %v392_v0  ;;  %v401_v27 = vsub.f32 1.0, %v2546_v63 }
 0x167   :  { %396 = vrot.lane.b32.xlu0 %v394_v4, %s2641_s1 }
 0x16b   :  { %272 = vrot.lane.b32.xlu0 %v2740_v14, %s2637_s4 }
 0x1bb   :  { %v262_v5 = vpop.permute.xlu1 %261 }
 0x1bc   :  { %v264_v6 = vadd.f32 %v262_v5, %v164_v46  ;;  %v2864_v46 = vld [vmem:[#allocation2 + $0x30] sm:$0xff] }
 0x1be   :  { %2547 = vtanh.f32 %v264_v6 }
 0x1c8   :  { %v2824_v13 = vpop.permute.xlu1 %283 }
 0x1cb   :  { %v2548_v7 = vpop.eup %2547 }
 0x1cc   :  { %268 = vrot.lane.b32.xlu1 %v2548_v7, %s2642_s7 }
 0x1d0   :  { %407 = vrot.lane.b32.xlu1 %v2753_v17, %s2643_s19 }
 0x1d9   :  { %v397_v8 = vpop.permute.xlu0 %396 }
 0x1da   :  { %v399_v9 = vadd.f32 %v397_v8, %v296_v53 }
 0x1dc   :  { %2549 = vtanh.f32 %v399_v9 }
 0x1dd   :  { %v273_v15 = vpop.permute.xlu0 %272 }
 0x1de   :  { %v275_v20 = vmul.f32 %v2542_v57, %v273_v15 }
 0x1e9   :  { %v2550_v10 = vpop.eup %2549 }
 0x1ea   :  { %403 = vrot.lane.b32.xlu0 %v2550_v10, %s2642_s7 }
 0x1ee   :  { %418 = vperm.xlu0 %2536, %v2285_v11  }
 0x23e   :  { %v269_v19 = vpop.permute.xlu1 %268 }
 0x23f   :  { %v271_v21 = vmul.f32 %v269_v19, %v266_v18 }
 0x241   :  { %v276_v22 = vadd.f32 %v275_v20, %v271_v21 }
 0x242   :  { %v408_v28 = vpop.permute.xlu1 %407 }
 0x243   :  { %v280_v23 = vsub.f32 %v276_v22, %v273_v15  ;;  %v410_v30 = vmul.f32 %v2546_v63, %v408_v28 }
 0x245   :  { %v286_v24 = vmul.f32 %v2824_v13, %v280_v23 }
 0x247   :  { %288 = vrot.lane.b32.xlu1 %v286_v24, %s2642_s7 }
 0x25c   :  { %v404_v26 = vpop.permute.xlu0 %403 }
 0x25d   :  { %v406_v29 = vmul.f32 %v404_v26, %v401_v27 }
 0x25f   :  { %v411_v32 = vadd.f32 %v410_v30, %v406_v29  ;;  %v2290_v29 = vsel %vm550_vm7, 1.0, %v2635_v1 }
 0x261   :  { %v415_v33 = vsub.f32 %v411_v32, %v408_v28 }
 0x269   :  { %v2828_v34 = vpop.permute.xlu0 %418 }
 0x26a   :  { %v421_v35 = vmul.f32 %v2828_v34, %v415_v33 }
 0x26c   :  { %423 = vrot.lane.b32.xlu1 %v421_v35, %s2643_s19 }
 0x2b9   :  { %v289_v36 = vpop.permute.xlu1 %288 }
 0x2ba   :  { %v291_v37 = vadd.f32 %v289_v36, %v2740_v14 }
 0x2bc   :  { %292 = vst.msk [vmem:[#allocation3] sm:$0xff] %vm160_vm0, %v291_v37  ;;  %v293_v38 = vmul.f32 %v291_v37, %v2824_v13 }
 0x2be   :  { %294 = vst.msk [vmem:[%s3322_s8] sm:$0xff] %vm160_vm0, %v293_v38 }
 0x2c3   :  { %v2839_v39 = vld [vmem:[#allocation3] sm:$0xff] }
 0x2c4   :  { %2433 = vmatmul.mubr.msk.f32.vlgmr.msra.gmra.mxu1 %vm160_vm0, %v2839_v39 }
 0x2c5   :  { %2436 = vmatpush3.msra.mxu1 %v2737_v12  ;;  %2439 = vmatprep.mubr.msk.f32.mxu1 %vm2636_vm1, %v2635_v1 }
 0x2c6   :  { %2437 = vmatprep.subr.mxu1 %v2635_v1 }
 0x2c7   :  { %2438 = vmatpush3.msra.mxu1 %v2747_v16 }
 0x2c8   :  { %2442 = vmatprep.subr.mxu1 %v2635_v1 }
 0x2de   :  { %v424_v14 = vpop.permute.xlu1 %423 }
 0x2df   :  { %v2850_v40 = vadd.f32 %v424_v14, %v2753_v17 }
 0x2e1   :  { %427 = vst.msk [vmem:[#allocation4] sm:$0xff] %vm160_vm0, %v2850_v40 }
 0x2e8   :  { %v571_v41 = vld [vmem:[#allocation4] sm:$0xff] }
 0x2e9   :  { %2440 = vmatmul.mubr.msk.f32.vlgmr.msra.gmra.mxu1 %vm160_vm0, %v571_v41 }
 0x2ea   :  { %2443 = vmatpush3.msra.mxu1 %v2702_v2  ;;  %2446 = vmatprep.mubr.msk.f32.mxu1 %vm2636_vm1, %v2635_v1 }
 0x2eb   :  { %2444 = vmatprep.subr.mxu1 %v2635_v1 }
 0x2ec   :  { %2445 = vmatpush3.msra.mxu1 %v2707_v3 }
 0x2ed   :  { %2456 = vmatprep.subr.mxu1 %v2635_v1 }
 0x384   :  { %v517_v42 = vpop.f32.mrf.mxu1 }
 0x385   :  { %v518_v60 = vadd.f32 %v2794_v31, %v517_v42 }
 0x386   :  { %v2434_v17 = vpop.f32.mrf.mxu1 }
 0x387   :  { %v521_v62 = vadd.f32 %v518_v60, %v2875_v61 }
 0x389   :  { %v2289_v63 = vmul.f32 -1.442695, %v521_v62 }
 0x3a9   :  { %v650_v43 = vpop.f32.mrf.mxu1 }
 0x3aa   :  { %v651_v44 = vadd.f32 %v2787_v25, %v650_v43 }
 0x3ab   :  { %v2441_v45 = vpop.f32.mrf.mxu1 }
 0x3ac   :  { %665 = vrot.lane.b32.xlu1 %v651_v44, %s2637_s4  ;;  %655 = vrot.lane.b32.xlu0 %v651_v44, %s2638_s15 }
 0x41e   :  { %v656_v47 = vpop.permute.xlu0 %655  ;;  %v666_v53 = vpop.permute.xlu1 %665 }
 0x41f   :  { %v658_v48 = vadd.f32 %v656_v47, %v2864_v46 }
 0x421   :  { %v2294_v49 = vmul.f32 -1.442695, %v658_v48 }
 0x423   :  { %2551 = vpow2.f32 %v2294_v49  ;;  %v2927_v49 = vld [vmem:[#allocation2 + $0x28] sm:$0xff] }
 0x430   :  { %v2552_v50 = vpop.eup %2551 }
 0x431   :  { %v662_v51 = vadd.f32 1.0, %v2552_v50 }
 0x433   :  { %2553 = vrcp.f32 %v662_v51 }
 0x440   :  { %v2554_v52 = vpop.eup %2553 }
 0x441   :  { %v668_v54 = vmul.f32 %v2554_v52, %v666_v53  ;;  %v675_v6 = vsub.f32 1.0, %v2554_v52 }
 0x443   :  { %670 = vrot.lane.b32.xlu0 %v668_v54, %s2641_s1 }
 0x447   :  { %681 = vrot.lane.b32.xlu0 %v571_v41, %s2643_s19 }
 0x4b5   :  { %v671_v56 = vpop.permute.xlu0 %670 }
 0x4b6   :  { %v673_v57 = vadd.f32 %v671_v56, %v2864_v46 }
 0x4b8   :  { %2555 = vtanh.f32 %v673_v57 }
 0x4b9   :  { %2557 = vpow2.f32 %v2289_v63  ;;  %v682_v7 = vpop.permute.xlu0 %681 }
 0x4ba   :  { %v684_v9 = vmul.f32 %v2554_v52, %v682_v7 }
 0x4c5   :  { %v2556_v58 = vpop.eup %2555 }
 0x4c6   :  { %677 = vrot.lane.b32.xlu1 %v2556_v58, %s2642_s7  ;;  %v2558_v0 = vpop.eup %2557 }
 0x4c7   :  { %v525_v4 = vadd.f32 1.0, %v2558_v0  ;;  %v2305_v0 = vsel %vm959_vm8, 1.0, %v2635_v1 }
 0x4c9   :  { %2559 = vrcp.f32 %v525_v4 }
 0x4ca   :  { %692 = vperm.xlu1 %2535, %v2295_v59  }
 0x4ce   :  { %529 = vrot.lane.b32.xlu1 %v518_v60, %s2639_s16 }
 0x4d6   :  { %v2560_v19 = vpop.eup %2559 }
 0x4d7   :  { %v539_v32 = vsub.f32 1.0, %v2560_v19 }
 0x538   :  { %v678_v5 = vpop.permute.xlu1 %677 }
 0x539   :  { %v680_v8 = vmul.f32 %v678_v5, %v675_v6  ;;  %v2939_v5 = vld [vmem:[#allocation2 + $0x10] sm:$0xff] }
 0x53b   :  { %v685_v10 = vadd.f32 %v684_v9, %v680_v8 }
 0x53d   :  { %v689_v11 = vsub.f32 %v685_v10, %v682_v7 }
 0x545   :  { %v2878_v15 = vpop.permute.xlu1 %692 }
 0x546   :  { %v695_v18 = vmul.f32 %v2878_v15, %v689_v11 }
 0x548   :  { %697 = vrot.lane.b32.xlu0 %v695_v18, %s2643_s19 }
 0x549   :  { %v530_v20 = vpop.permute.xlu1 %529 }
 0x54a   :  { %v532_v21 = vmul.f32 %v2560_v19, %v530_v20 }
 0x54c   :  { %534 = vrot.lane.b32.xlu0 %v532_v21, %s2641_s1 }
 0x550   :  { %545 = vrot.lane.b32.xlu0 %v2839_v39, %s2637_s4 }
 0x5ba   :  { %v698_v22 = vpop.permute.xlu0 %697 }
 0x5bb   :  { %v2885_v23 = vadd.f32 %v698_v22, %v571_v41 }
 0x5bd   :  { %701 = vst.msk [vmem:[#allocation4] sm:$0xff] %vm160_vm0, %v2885_v23 }
 0x5be   :  { %v535_v24 = vpop.permute.xlu0 %534 }
 0x5bf   :  { %v537_v26 = vadd.f32 %v535_v24, %v2875_v61 }
 0x5c1   :  { %2561 = vtanh.f32 %v537_v26 }
 0x5c2   :  { %v546_v33 = vpop.permute.xlu0 %545 }
 0x5c3   :  { %v548_v36 = vmul.f32 %v2560_v19, %v546_v33 }
 0x5c4   :  { %v2890_v27 = vld [vmem:[#allocation4] sm:$0xff] }
 0x5c5   :  { %2454 = vmatmul.mubr.msk.f32.vlgmr.msra.gmra.mxu0 %vm160_vm0, %v2890_v27 }
 0x5c6   :  { %2464 = vmatpush3.msra.mxu0 %v2737_v12  ;;  %2467 = vmatprep.mubr.msk.f32.mxu0 %vm2636_vm1, %v2635_v1 }
 0x5c7   :  { %2465 = vmatprep.subr.mxu0 %v2635_v1 }
 0x5c8   :  { %2466 = vmatpush3.msra.mxu0 %v2747_v16 }
 0x5c9   :  { %2477 = vmatprep.subr.mxu0 %v2635_v1 }
 0x5ce   :  { %v2562_v28 = vpop.eup %2561 }
 0x5cf   :  { %541 = vrot.lane.b32.xlu1 %v2562_v28, %s2642_s7 }
 0x5d3   :  { %556 = vperm.xlu1 %2535, %v2290_v29  }
 0x641   :  { %v542_v30 = vpop.permute.xlu1 %541 }
 0x642   :  { %v544_v35 = vmul.f32 %v542_v30, %v539_v32 }
 0x644   :  { %v549_v37 = vadd.f32 %v548_v36, %v544_v35 }
 0x646   :  { %v553_v38 = vsub.f32 %v549_v37, %v546_v33 }
 0x64e   :  { %v2903_v14 = vpop.permute.xlu1 %556 }
 0x64f   :  { %v559_v41 = vmul.f32 %v2903_v14, %v553_v38  ;;  %v2300_v38 = vsel %vm823_vm9, 1.0, %v2635_v1 }
 0x651   :  { %561 = vrot.lane.b32.xlu0 %v559_v41, %s2642_s7 }
 0x685   :  { %v923_v42 = vpop.f32.mrf.mxu0 }
 0x686   :  { %v924_v17 = vadd.f32 %v2787_v25, %v923_v42 }
 0x687   :  { %v2455_v43 = vpop.f32.mrf.mxu0 }
 0x688   :  { %938 = vrot.lane.b32.xlu0 %v924_v17, %s2637_s4  ;;  %928 = vrot.lane.b32.xlu1 %v924_v17, %s2638_s15 }
 0x6c3   :  { %v562_v44 = vpop.permute.xlu0 %561 }
 0x6c4   :  { %v564_v45 = vadd.f32 %v562_v44, %v2839_v39 }
 0x6c6   :  { %565 = vst.msk [vmem:[#allocation3] sm:$0xff] %vm160_vm0, %v564_v45  ;;  %v566_v47 = vmul.f32 %v564_v45, %v2903_v14 }
 0x6c8   :  { %2291 = vst.msk [vmem:[%s3322_s8 + $0x8] sm:$0xff] %vm160_vm0, %v566_v47 }
 0x6cd   :  { %v2917_v48 = vld [vmem:[#allocation3] sm:$0xff] }
 0x6ce   :  { %2447 = vmatmul.mubr.msk.f32.vlgmr.msra.gmra.mxu1 %vm160_vm0, %v2917_v48 }
 0x6cf   :  { %2457 = vmatpush3.msra.mxu1 %v2702_v2  ;;  %2460 = vmatprep.mubr.msk.f32.mxu1 %vm2636_vm1, %v2635_v1 }
 0x6d0   :  { %2458 = vmatprep.subr.mxu1 %v2635_v1 }
 0x6d1   :  { %2459 = vmatpush3.msra.mxu1 %v2707_v3 }
 0x6d2   :  { %2470 = vmatprep.subr.mxu1 %v2635_v1 }
 0x6fa   :  { %v929_v39 = vpop.permute.xlu1 %928  ;;  %v939_v56 = vpop.permute.xlu0 %938 }
 0x6fb   :  { %v931_v50 = vadd.f32 %v929_v39, %v2927_v49 }
 0x6fd   :  { %v2304_v51 = vmul.f32 -1.442695, %v931_v50 }
 0x6ff   :  { %2563 = vpow2.f32 %v2304_v51 }
 0x70c   :  { %v2564_v52 = vpop.eup %2563 }
 0x70d   :  { %v935_v53 = vadd.f32 1.0, %v2564_v52 }
 0x70f   :  { %2565 = vrcp.f32 %v935_v53 }
 0x71c   :  { %v2566_v54 = vpop.eup %2565 }
 0x71d   :  { %v941_v57 = vmul.f32 %v2566_v54, %v939_v56  ;;  %v948_v11 = vsub.f32 1.0, %v2566_v54 }
 0x71f   :  { %943 = vrot.lane.b32.xlu1 %v941_v57, %s2641_s1 }
 0x723   :  { %954 = vrot.lane.b32.xlu1 %v2890_v27, %s2643_s19 }
 0x78e   :  { %v790_v58 = vpop.f32.mrf.mxu1 }
 0x78f   :  { %v791_v4 = vadd.f32 %v2794_v31, %v790_v58 }
 0x790   :  { %v2448_v59 = vpop.f32.mrf.mxu1 }
 0x791   :  { %v944_v60 = vpop.permute.xlu1 %943  ;;  %v794_v6 = vadd.f32 %v791_v4, %v2939_v5 }
 0x792   :  { %v946_v62 = vadd.f32 %v944_v60, %v2927_v49 }
 0x793   :  { %v2299_v7 = vmul.f32 -1.442695, %v794_v6 }
 0x794   :  { %2567 = vtanh.f32 %v946_v62 }
 0x795   :  { %2569 = vpow2.f32 %v2299_v7  ;;  %v955_v18 = vpop.permute.xlu1 %954 }
 0x796   :  { %v957_v20 = vmul.f32 %v2566_v54, %v955_v18 }
 0x7a1   :  { %v2568_v63 = vpop.eup %2567 }
 0x7a2   :  { %950 = vrot.lane.b32.xlu0 %v2568_v63, %s2642_s7  ;;  %v2570_v8 = vpop.eup %2569 }
 0x7a3   :  { %v798_v9 = vadd.f32 1.0, %v2570_v8 }
 0x7a5   :  { %2571 = vrcp.f32 %v798_v9 }
 0x7a6   :  { %965 = vperm.xlu0 %2536, %v2305_v0  }
 0x7aa   :  { %802 = vrot.lane.b32.xlu0 %v791_v4, %s2639_s16 }
 0x7b2   :  { %v2572_v28 = vpop.eup %2571 }
 0x7b3   :  { %v812_v42 = vsub.f32 1.0, %v2572_v28 }
 0x814   :  { %v951_v10 = vpop.permute.xlu0 %950 }
 0x815   :  { %v953_v19 = vmul.f32 %v951_v10, %v948_v11 }
 0x817   :  { %v958_v21 = vadd.f32 %v957_v20, %v953_v19  ;;  %v3004_v19 = vld [vmem:[#allocation2 + $0x18] sm:$0xff] }
 0x819   :  { %v962_v22 = vsub.f32 %v958_v21, %v955_v18  ;;  %v2315_v18 = vsel %vm1232_vm10, 1.0, %v2635_v1 }
 0x821   :  { %v2942_v24 = vpop.permute.xlu0 %965 }
 0x822   :  { %v968_v26 = vmul.f32 %v2942_v24, %v962_v22 }
 0x824   :  { %970 = vrot.lane.b32.xlu1 %v968_v26, %s2643_s19 }
 0x825   :  { %v803_v29 = vpop.permute.xlu0 %802 }
 0x826   :  { %v805_v30 = vmul.f32 %v2572_v28, %v803_v29 }
 0x828   :  { %807 = vrot.lane.b32.xlu1 %v805_v30, %s2641_s1 }
 0x82c   :  { %818 = vrot.lane.b32.xlu1 %v2917_v48, %s2637_s4 }
 0x896   :  { %v971_v32 = vpop.permute.xlu1 %970 }
 0x897   :  { %v2950_v33 = vadd.f32 %v971_v32, %v2890_v27 }
 0x899   :  { %974 = vst.msk [vmem:[#allocation4] sm:$0xff] %vm160_vm0, %v2950_v33 }
 0x89a   :  { %v808_v35 = vpop.permute.xlu1 %807 }
 0x89b   :  { %v810_v36 = vadd.f32 %v808_v35, %v2939_v5 }
 0x89d   :  { %2573 = vtanh.f32 %v810_v36 }
 0x89e   :  { %v819_v17 = vpop.permute.xlu1 %818 }
 0x89f   :  { %v821_v44 = vmul.f32 %v2572_v28, %v819_v17 }
 0x8a0   :  { %v2955_v37 = vld [vmem:[#allocation4] sm:$0xff] }
 0x8a1   :  { %2468 = vmatmul.mubr.msk.f32.vlgmr.msra.gmra.mxu0 %vm160_vm0, %v2955_v37 }
 0x8a2   :  { %2478 = vmatpush3.msra.mxu0 %v2737_v12  ;;  %2481 = vmatprep.mubr.msk.f32.mxu0 %vm2636_vm1, %v2635_v1 }
 0x8a3   :  { %2479 = vmatprep.subr.mxu0 %v2635_v1 }
 0x8a4   :  { %2480 = vmatpush3.msra.mxu0 %v2747_v16 }
 0x8a5   :  { %2491 = vmatprep.subr.mxu0 %v2635_v1 }
 0x8aa   :  { %v2574_v27 = vpop.eup %2573 }
 0x8ab   :  { %814 = vrot.lane.b32.xlu0 %v2574_v27, %s2642_s7 }
 0x8af   :  { %829 = vperm.xlu0 %2536, %v2300_v38  }
 0x91d   :  { %v815_v41 = vpop.permute.xlu0 %814 }
 0x91e   :  { %v817_v43 = vmul.f32 %v815_v41, %v812_v42 }
 0x920   :  { %v822_v45 = vadd.f32 %v821_v44, %v817_v43 }
 0x922   :  { %v826_v47 = vsub.f32 %v822_v45, %v819_v17 }
 0x92a   :  { %v2968_v39 = vpop.permute.xlu0 %829 }
 0x92b   :  { %v832_v50 = vmul.f32 %v2968_v39, %v826_v47 }
 0x92d   :  { %834 = vrot.lane.b32.xlu1 %v832_v50, %s2642_s7  ;;  %v2310_v50 = vsel %vm1096_vm11, 1.0, %v2635_v1 }
 0x961   :  { %v1196_v51 = vpop.f32.mrf.mxu0 }
 0x962   :  { %v1197_v52 = vadd.f32 %v2787_v25, %v1196_v51 }
 0x963   :  { %v2469_v53 = vpop.f32.mrf.mxu0 }
 0x964   :  { %1201 = vrot.lane.b32.xlu0 %v1197_v52, %s2638_s15  ;;  %1211 = vrot.lane.b32.xlu1 %v1197_v52, %s2637_s4 }
 0x99f   :  { %v835_v54 = vpop.permute.xlu1 %834 }
 0x9a0   :  { %v837_v56 = vadd.f32 %v835_v54, %v2917_v48  ;;  %v2992_v48 = vld [vmem:[#allocation2 + $0x20] sm:$0xff] }
 0x9a2   :  { %838 = vst.msk [vmem:[#allocation3] sm:$0xff] %vm160_vm0, %v837_v56  ;;  %v839_v57 = vmul.f32 %v837_v56, %v2968_v39 }
 0x9a4   :  { %2301 = vst.msk [vmem:[%s3322_s8 + $0x10] sm:$0xff] %vm160_vm0, %v839_v57 }
 0x9a9   :  { %v2982_v58 = vld [vmem:[#allocation3] sm:$0xff] }
 0x9aa   :  { %2461 = vmatmul.mubr.msk.f32.vlgmr.msra.gmra.mxu1 %vm160_vm0, %v2982_v58 }
 0x9ab   :  { %2471 = vmatpush3.msra.mxu1 %v2702_v2  ;;  %2474 = vmatprep.mubr.msk.f32.mxu1 %vm2636_vm1, %v2635_v1 }
 0x9ac   :  { %2472 = vmatprep.subr.mxu1 %v2635_v1 }
 0x9ad   :  { %2473 = vmatpush3.msra.mxu1 %v2707_v3 }
 0x9ae   :  { %2484 = vmatprep.subr.mxu1 %v2635_v1 }
 0x9d6   :  { %v1202_v59 = vpop.permute.xlu0 %1201  ;;  %v1212_v4 = vpop.permute.xlu1 %1211 }
 0x9d7   :  { %v1204_v60 = vadd.f32 %v1202_v59, %v2992_v48 }
 0x9d9   :  { %v2314_v62 = vmul.f32 -1.442695, %v1204_v60 }
 0x9db   :  { %2575 = vpow2.f32 %v2314_v62 }
 0x9e8   :  { %v2576_v63 = vpop.eup %2575 }
 0x9e9   :  { %v1208_v0 = vadd.f32 1.0, %v2576_v63 }
 0x9eb   :  { %2577 = vrcp.f32 %v1208_v0 }
 0x9f8   :  { %v2578_v2 = vpop.eup %2577 }
 0x9f9   :  { %v1214_v6 = vmul.f32 %v2578_v2, %v1212_v4  ;;  %v1221_v36 = vsub.f32 1.0, %v2578_v2 }
 0x9fb   :  { %1216 = vrot.lane.b32.xlu0 %v1214_v6, %s2641_s1 }
 0x9ff   :  { %1227 = vrot.lane.b32.xlu0 %v2955_v37, %s2643_s19 }
 0xa6a   :  { %v1063_v3 = vpop.f32.mrf.mxu1 }
 0xa6b   :  { %v1064_v7 = vadd.f32 %v2794_v31, %v1063_v3 }
 0xa6c   :  { %v2462_v8 = vpop.f32.mrf.mxu1 }
 0xa6d   :  { %1075 = vrot.lane.b32.xlu0 %v1064_v7, %s2639_s16  ;;  %v1217_v9 = vpop.permute.xlu0 %1216  ;;  %v1067_v20 = vadd.f32 %v1064_v7, %v3004_v19 }
 0xa6e   :  { %v1219_v10 = vadd.f32 %v1217_v9, %v2992_v48 }
 0xa6f   :  { %v2309_v21 = vmul.f32 -1.442695, %v1067_v20 }
 0xa70   :  { %2579 = vtanh.f32 %v1219_v10 }
 0xa71   :  { %2581 = vpow2.f32 %v2309_v21  ;;  %v1228_v28 = vpop.permute.xlu0 %1227 }
 0xa72   :  { %v1230_v38 = vmul.f32 %v2578_v2, %v1228_v28 }
 0xa7d   :  { %v2580_v11 = vpop.eup %2579 }
 0xa7e   :  { %1223 = vrot.lane.b32.xlu1 %v2580_v11, %s2642_s7  ;;  %v2582_v22 = vpop.eup %2581 }
 0xa7f   :  { %v1071_v26 = vadd.f32 1.0, %v2582_v22 }
 0xa81   :  { %2583 = vrcp.f32 %v1071_v26 }
 0xa82   :  { %1238 = vperm.xlu1 %2535, %v2315_v18  }
 0xa8e   :  { %v2584_v29 = vpop.eup %2583 }
 0xadf   :  { %v1076_v30 = vpop.permute.xlu0 %1075 }
 0xae0   :  { %v1078_v32 = vmul.f32 %v2584_v29, %v1076_v30 }
 0xae2   :  { %1080 = vrot.lane.b32.xlu0 %v1078_v32, %s2641_s1 }
 0xae6   :  { %1091 = vrot.lane.b32.xlu0 %v2982_v58, %s2637_s4 }
 0xaf0   :  { %v1224_v35 = vpop.permute.xlu1 %1223 }
 0xaf1   :  { %v1226_v27 = vmul.f32 %v1224_v35, %v1221_v36 }
 0xaf3   :  { %v1231_v41 = vadd.f32 %v1230_v38, %v1226_v27 }
 0xaf5   :  { %v1235_v42 = vsub.f32 %v1231_v41, %v1228_v28 }
 0xafd   :  { %v3010_v17 = vpop.permute.xlu1 %1238 }
 0xafe   :  { %v1241_v43 = vmul.f32 %v3010_v17, %v1235_v42 }
 0xb00   :  { %1243 = vrot.lane.b32.xlu1 %v1241_v43, %s2643_s19 }
 0xb54   :  { %v1081_v44 = vpop.permute.xlu0 %1080 }
 0xb55   :  { %v1083_v45 = vadd.f32 %v1081_v44, %v3004_v19 }
 0xb57   :  { %2585 = vtanh.f32 %v1083_v45 }
 0xb58   :  { %v1092_v54 = vpop.permute.xlu0 %1091 }
 0xb59   :  { %v1094_v57 = vmul.f32 %v2584_v29, %v1092_v54 }
 0xb64   :  { %v2586_v47 = vpop.eup %2585 }
 0xb65   :  { %1087 = vrot.lane.b32.xlu1 %v2586_v47, %s2642_s7 }
 0xb69   :  { %1102 = vperm.xlu1 %2535, %v2310_v50  }
 0xb72   :  { %v1244_v51 = vpop.permute.xlu1 %1243 }
 0xb73   :  { %v3019_v52 = vadd.f32 %v1244_v51, %v2955_v37  ;;  %v1085_v37 = vsub.f32 1.0, %v2584_v29 }
 0xb75   :  { %1247 = vst.msk [vmem:[#allocation4] sm:$0xff] %vm160_vm0, %v3019_v52 }
 0xb7c   :  { %v3023_v53 = vld [vmem:[#allocation4] sm:$0xff] }
 0xb7d   :  { %2482 = vmatmul.mubr.msk.f32.vlgmr.msra.gmra.mxu0 %vm160_vm0, %v3023_v53 }
 0xb7e   :  { %2492 = vmatpush3.msra.mxu0 %v2737_v12  ;;  %2495 = vmatprep.mubr.msk.f32.mxu0 %vm2636_vm1, %v2635_v1 }
 0xb7f   :  { %2493 = vmatprep.subr.mxu0 %v2635_v1 }
 0xb80   :  { %2494 = vmatpush3.msra.mxu0 %v2747_v16 }
 0xb81   :  { %2505 = vmatprep.subr.mxu0 %v2635_v1 }
 0xbd7   :  { %v1088_v55 = vpop.permute.xlu1 %1087 }
 0xbd8   :  { %v1090_v56 = vmul.f32 %v1088_v55, %v1085_v37 }
 0xbda   :  { %v1095_v59 = vadd.f32 %v1094_v57, %v1090_v56 }
 0xbdc   :  { %v1099_v60 = vsub.f32 %v1095_v59, %v1092_v54 }
 0xbe4   :  { %v3033_v62 = vpop.permute.xlu1 %1102 }
 0xbe5   :  { %v1105_v12 = vmul.f32 %v3033_v62, %v1099_v60  ;;  %v3088_v60 = vld [vmem:[%s3315_s2] sm:$0xff] }
 0xbe7   :  { %1107 = vrot.lane.b32.xlu0 %v1105_v12, %s2642_s7 }
 0xc3d   :  { %v1458_v63 = vpop.f32.mrf.mxu0 }
 0xc3e   :  { %v1459_v0 = vadd.f32 %v2787_v25, %v1458_v63 }
 0xc3f   :  { %v2483_v2 = vpop.f32.mrf.mxu0 }
 0xc40   :  { %1463 = vrot.lane.b32.xlu1 %v1459_v0, %s2638_s15  ;;  %1473 = vrot.lane.b32.xlu0 %v1459_v0, %s2637_s4 }
 0xc59   :  { %v1108_v16 = vpop.permute.xlu0 %1107 }
 0xc5a   :  { %v1110_v4 = vadd.f32 %v1108_v16, %v2982_v58 }
 0xc5c   :  { %1111 = vst.msk [vmem:[#allocation3] sm:$0xff] %vm160_vm0, %v1110_v4  ;;  %v1112_v6 = vmul.f32 %v1110_v4, %v3033_v62 }
 0xc5e   :  { %2311 = vst.msk [vmem:[%s3322_s8 + $0x18] sm:$0xff] %vm160_vm0, %v1112_v6 }
 0xc63   :  { %v3047_v3 = vld [vmem:[#allocation3] sm:$0xff] }
 0xc64   :  { %2475 = vmatmul.mubr.msk.f32.vlgmr.msra.gmra.mxu1 %vm160_vm0, %v3047_v3 }
 0xc65   :  { %2488 = vmatprep.mubr.msk.f32.mxu1 %vm2636_vm1, %v2635_v1 }
 0xcb2   :  { %v1464_v7 = vpop.permute.xlu1 %1463  ;;  %v1474_v18 = vpop.permute.xlu0 %1473 }
 0xcb3   :  { %v1466_v58 = vadd.f32 %v1464_v7, %v3004_v19 }
 0xcb5   :  { %v2323_v8 = vmul.f32 -1.442695, %v1466_v58 }
 0xcb7   :  { %2587 = vpow2.f32 %v2323_v8 }
 0xcc4   :  { %v2588_v9 = vpop.eup %2587 }
 0xcc5   :  { %v1470_v10 = vadd.f32 1.0, %v2588_v9 }
 0xcc7   :  { %2589 = vrcp.f32 %v1470_v10 }
 0xcd4   :  { %v2590_v11 = vpop.eup %2589 }
 0xcd5   :  { %v1476_v20 = vmul.f32 %v2590_v11, %v1474_v18  ;;  %v1483_v41 = vsub.f32 1.0, %v2590_v11 }
 0xcd7   :  { %1478 = vrot.lane.b32.xlu1 %v1476_v20, %s2641_s1 }
 0xcdb   :  { %1489 = vrot.lane.b32.xlu1 %v3023_v53, %s2643_s19 }
 0xd24   :  { %v1335_v21 = vpop.f32.mrf.mxu1 }
 0xd25   :  { %v1336_v30 = vadd.f32 %v2794_v31, %v1335_v21 }
 0xd26   :  { %v2476_v22 = vpop.f32.mrf.mxu1 }
 0xd27   :  { %v1339_v32 = vadd.f32 %v1336_v30, %v2992_v48 }
 0xd29   :  { %v2319_v35 = vmul.f32 -1.442695, %v1339_v32 }
 0xd49   :  { %v1479_v26 = vpop.permute.xlu1 %1478 }
 0xd4a   :  { %v1481_v28 = vadd.f32 %v1479_v26, %v3004_v19 }
 0xd4c   :  { %2591 = vtanh.f32 %v1481_v28 }
 0xd4d   :  { %2593 = vpow2.f32 %v2319_v35  ;;  %v1490_v38 = vpop.permute.xlu1 %1489 }
 0xd4e   :  { %v1492_v43 = vmul.f32 %v2590_v11, %v1490_v38 }
 0xd59   :  { %v2592_v29 = vpop.eup %2591 }
 0xd5a   :  { %1485 = vrot.lane.b32.xlu0 %v2592_v29, %s2642_s7  ;;  %v2594_v36 = vpop.eup %2593  ;;  %v3119_v29 = vld [vmem:[%s3320_s5] ss:$0 sm:$0xff] }
 0xd5b   :  { %v1343_v27 = vadd.f32 1.0, %v2594_v36 }
 0xd5d   :  { %2595 = vrcp.f32 %v1343_v27 }
 0xd5e   :  { %1347 = vrot.lane.b32.xlu0 %v1336_v30, %s2639_s16 }
 0xd6a   :  { %v2596_v45 = vpop.eup %2595 }
 0xd6b   :  { %v1357_v12 = vsub.f32 1.0, %v2596_v45 }
 0xdcc   :  { %v1486_v42 = vpop.permute.xlu0 %1485 }
 0xdcd   :  { %v1488_v19 = vmul.f32 %v1486_v42, %v1483_v41 }
 0xdcf   :  { %v1493_v44 = vadd.f32 %v1492_v43, %v1488_v19 }
 0xdd0   :  { %v1348_v47 = vpop.permute.xlu0 %1347 }
 0xdd1   :  { %v1494_v50 = vsub.f32 %v1493_v44, %v1490_v38  ;;  %v1350_v51 = vmul.f32 %v2596_v45, %v1348_v47 }
 0xdd3   :  { %1352 = vrot.lane.b32.xlu0 %v1350_v51, %s2641_s1  ;;  %v1495_v31 = vmul.f32 %v1494_v50, %v3033_v62 }
 0xdd5   :  { %1497 = vrot.lane.b32.xlu1 %v1495_v31, %s2643_s19 }
 0xdd7   :  { %1363 = vrot.lane.b32.xlu0 %v3047_v3, %s2637_s4 }
 0xe45   :  { %v1353_v55 = vpop.permute.xlu0 %1352 }
 0xe46   :  { %v1355_v37 = vadd.f32 %v1353_v55, %v2992_v48  ;;  %v1886_v55 = vld [vmem:[%s3317_s3] sm:$0xff] }
 0xe47   :  { %v1498_v54 = vpop.permute.xlu1 %1497 }
 0xe48   :  { %2597 = vtanh.f32 %v1355_v37  ;;  %v3069_v56 = vadd.f32 %v1498_v54, %v3023_v53  ;;  %v3083_v53 = vld [vmem:[%s3315_s2 + $0x8] sm:$0xff] }
 0xe49   :  { %v1364_v48 = vpop.permute.xlu0 %1363  ;;  %2485 = vmatpush3.msra.mxu1 %v3083_v53 }
 0xe4a   :  { %1501 = vst.msk [vmem:[#allocation4] sm:$0xff] %vm160_vm0, %v3069_v56  ;;  %2486 = vmatprep.subr.mxu1 %v2635_v1  ;;  %v1366_v0 = vmul.f32 %v2596_v45, %v1364_v48 }
 0xe4b   :  { %2487 = vmatpush3.msra.mxu1 %v3088_v60 }
 0xe4c   :  { %2498 = vmatprep.subr.mxu1 %v2635_v1 }
 0xe51   :  { %v3073_v57 = vld [vmem:[#allocation4] sm:$0xff] }
 0xe52   :  { %2496 = vmatmul.mubr.msk.f32.vlgmr.msra.gmra.mxu0 %vm160_vm0, %v3073_v57 }
 0xe53   :  { %2509 = vmatprep.mubr.msk.f32.mxu0 %vm2636_vm1, %v2635_v1 }
 0xe55   :  { %v2598_v59 = vpop.eup %2597 }
 0xe56   :  { %1359 = vrot.lane.b32.xlu1 %v2598_v59, %s2642_s7 }
 0xec8   :  { %v1360_v63 = vpop.permute.xlu1 %1359 }
 0xec9   :  { %v1362_v2 = vmul.f32 %v1360_v63, %v1357_v12 }
 0xecb   :  { %v1367_v16 = vadd.f32 %v1366_v0, %v1362_v2 }
 0xecd   :  { %v1368_v4 = vsub.f32 %v1367_v16, %v1364_v48 }
 0xecf   :  { %v1369_v6 = vmul.f32 %v1368_v4, %v3010_v17 }
 0xed1   :  { %1371 = vrot.lane.b32.xlu1 %v1369_v6, %s2642_s7 }
 0xf12   :  { %v1711_v7 = vpop.f32.mrf.mxu0 }
 0xf13   :  { %v1712_v58 = vadd.f32 %v2787_v25, %v1711_v7 }
 0xf14   :  { %v2497_v8 = vpop.f32.mrf.mxu0 }
 0xf15   :  { %1716 = vrot.lane.b32.xlu0 %v1712_v58, %s2638_s15  ;;  %1726 = vrot.lane.b32.xlu1 %v1712_v58, %s2637_s4 }
 0xf43   :  { %v1372_v9 = vpop.permute.xlu1 %1371 }
 0xf44   :  { %v3100_v10 = vadd.f32 %v1372_v9, %v3047_v3 }
 0xf46   :  { %1375 = vst.msk [vmem:[#allocation3] sm:$0xff] %vm160_vm0, %v3100_v10 }
 0xf4d   :  { %v3104_v11 = vld [vmem:[#allocation3] sm:$0xff] }
 0xf4e   :  { %2489 = vmatmul.mubr.msk.f32.vlgmr.msra.gmra.mxu1 %vm160_vm0, %v3104_v11 }
 0xf4f   :  { %2499 = vmatpush3.msra.mxu1 %v3083_v53  ;;  %2502 = vmatprep.mubr.msk.f32.mxu1 %vm2636_vm1, %v2635_v1 }
 0xf50   :  { %2500 = vmatprep.subr.mxu1 %v2635_v1 }
 0xf51   :  { %2501 = vmatpush3.msra.mxu1 %v3088_v60 }
 0xf52   :  { %2512 = vmatprep.subr.mxu1 %v2635_v1 }
 0xf87   :  { %v1717_v25 = vpop.permute.xlu0 %1716  ;;  %v1727_v26 = vpop.permute.xlu1 %1726 }
 0xf88   :  { %v1719_v3 = vadd.f32 %v1717_v25, %v2939_v5 }
 0xf8a   :  { %v2331_v18 = vmul.f32 -1.442695, %v1719_v3 }
 0xf8c   :  { %2599 = vpow2.f32 %v2331_v18  ;;  %v3160_v18 = vld [vmem:[%s3319_s6] ss:$0 sm:$0xff] }
 0xf99   :  { %v2600_v20 = vpop.eup %2599 }
 0xf9a   :  { %v1723_v21 = vadd.f32 1.0, %v2600_v20 }
 0xf9c   :  { %2601 = vrcp.f32 %v1723_v21 }
 0xfa9   :  { %v2602_v22 = vpop.eup %2601 }
 0xfaa   :  { %v1729_v28 = vmul.f32 %v2602_v22, %v1727_v26  ;;  %v1736_v51 = vsub.f32 1.0, %v2602_v22 }
 0xfac   :  { %1731 = vrot.lane.b32.xlu0 %v1729_v28, %s2641_s1 }
0x100e   :  { %v1588_v30 = vpop.f32.mrf.mxu1 }
0x100f   :  { %v1589_v32 = vadd.f32 %v3119_v29, %v1588_v30 }
0x1010   :  { %v2490_v35 = vpop.f32.mrf.mxu1 }
0x1011   :  { %1600 = vrot.lane.b32.xlu1 %v1589_v32, %s2639_s16  ;;  %v1592_v41 = vadd.f32 %v1589_v32, %v2927_v49 }
0x1013   :  { %v2327_v42 = vmul.f32 -1.442695, %v1592_v41 }
0x1015   :  { %1742 = vrot.lane.b32.xlu1 %v3073_v57, %s2643_s19 }
0x101e   :  { %v1732_v36 = vpop.permute.xlu0 %1731 }
0x101f   :  { %v1734_v27 = vadd.f32 %v1732_v36, %v2939_v5  ;;  %v1887_v5 = vld [vmem:[%s3317_s3 + $0x8] sm:$0xff] }
0x1020   :  { %2506 = vmatpush3.msra.mxu0 %v1887_v5 }
0x1021   :  { %2603 = vtanh.f32 %v1734_v27  ;;  %2507 = vmatprep.subr.mxu0 %v2635_v1 }
0x1022   :  { %2605 = vpow2.f32 %v2327_v42  ;;  %2508 = vmatpush3.msra.mxu0 %v1886_v55 }
0x1023   :  { %2519 = vmatprep.subr.mxu0 %v2635_v1 }
0x102e   :  { %v2604_v38 = vpop.eup %2603 }
0x102f   :  { %1738 = vrot.lane.b32.xlu0 %v2604_v38, %s2642_s7  ;;  %v2606_v43 = vpop.eup %2605 }
0x1030   :  { %v1596_v19 = vadd.f32 1.0, %v2606_v43 }
0x1032   :  { %2607 = vrcp.f32 %v1596_v19 }
0x103f   :  { %v2608_v44 = vpop.eup %2607 }
0x1040   :  { %v1610_v7 = vsub.f32 1.0, %v2608_v44 }
0x1083   :  { %v1601_v45 = vpop.permute.xlu1 %1600 }
0x1084   :  { %v1603_v47 = vmul.f32 %v2608_v44, %v1601_v45 }
0x1086   :  { %1605 = vrot.lane.b32.xlu0 %v1603_v47, %s2641_s1 }
0x1087   :  { %v1743_v50 = vpop.permute.xlu1 %1742 }
0x1088   :  { %v1745_v37 = vmul.f32 %v2602_v22, %v1743_v50 }
0x10a1   :  { %v1739_v31 = vpop.permute.xlu0 %1738 }
0x10a2   :  { %v1741_v54 = vmul.f32 %v1739_v31, %v1736_v51 }
0x10a4   :  { %v1746_v59 = vadd.f32 %v1745_v37, %v1741_v54 }
0x10a6   :  { %v1747_v48 = vsub.f32 %v1746_v59, %v1743_v50 }
0x10a8   :  { %v1748_v12 = vmul.f32 %v1747_v48, %v2968_v39 }
0x10aa   :  { %1750 = vrot.lane.b32.xlu1 %v1748_v12, %s2643_s19 }
0x10ae   :  { %1616 = vrot.lane.b32.xlu1 %v3104_v11, %s2637_s4 }
0x10f8   :  { %v1606_v63 = vpop.permute.xlu0 %1605 }
0x10f9   :  { %v1608_v0 = vadd.f32 %v1606_v63, %v2927_v49 }
0x10fb   :  { %2609 = vtanh.f32 %v1608_v0 }
0x1108   :  { %v2610_v2 = vpop.eup %2609 }
0x1109   :  { %1612 = vrot.lane.b32.xlu0 %v2610_v2, %s2642_s7 }
0x111c   :  { %v1751_v16 = vpop.permute.xlu1 %1750 }
0x111d   :  { %v3144_v4 = vadd.f32 %v1751_v16, %v3073_v57 }
0x111f   :  { %1754 = vst.msk [vmem:[#allocation4] sm:$0xff] %vm160_vm0, %v3144_v4 }
0x1120   :  { %v1617_v49 = vpop.permute.xlu1 %1616 }
0x1121   :  { %v1619_v57 = vmul.f32 %v2608_v44, %v1617_v49 }
0x1126   :  { %v3148_v6 = vld [vmem:[#allocation4] sm:$0xff] }
0x1127   :  { %2510 = vmatmul.mubr.msk.f32.vlgmr.msra.gmra.mxu0 %vm160_vm0, %v3148_v6 }
0x1128   :  { %2520 = vmatpush3.msra.mxu0 %v1887_v5  ;;  %2523 = vmatprep.mubr.msk.f32.mxu0 %vm2636_vm1, %v2635_v1 }
0x1129   :  { %2521 = vmatprep.subr.mxu0 %v2635_v1 }
0x112a   :  { %2522 = vmatpush3.msra.mxu0 %v1886_v55 }
0x117b   :  { %v1613_v58 = vpop.permute.xlu0 %1612 }
0x117c   :  { %v1615_v8 = vmul.f32 %v1613_v58, %v1610_v7 }
0x117e   :  { %v1620_v9 = vadd.f32 %v1619_v57, %v1615_v8 }
0x1180   :  { %v1621_v25 = vsub.f32 %v1620_v9, %v1617_v49 }
0x1182   :  { %v1622_v3 = vmul.f32 %v1621_v25, %v2942_v24 }
0x1184   :  { %1624 = vrot.lane.b32.xlu0 %v1622_v3, %s2642_s7 }
0x11e7   :  { %v1964_v20 = vpop.f32.mrf.mxu0 }
0x11e8   :  { %v1965_v21 = vadd.f32 %v3160_v18, %v1964_v20 }
0x11e9   :  { %v2511_v22 = vpop.f32.mrf.mxu0 }
0x11ea   :  { %1969 = vrot.lane.b32.xlu1 %v1965_v21, %s2638_s15  ;;  %1979 = vrot.lane.b32.xlu0 %v1965_v21, %s2637_s4 }
0x11f6   :  { %v1625_v26 = vpop.permute.xlu0 %1624 }
0x11f7   :  { %v3166_v28 = vadd.f32 %v1625_v26, %v3104_v11 }
0x11f9   :  { %1628 = vst.msk [vmem:[#allocation3] sm:$0xff] %vm160_vm0, %v3166_v28 }
0x1200   :  { %v3170_v30 = vld [vmem:[#allocation3] sm:$0xff] }
0x1201   :  { %2503 = vmatmul.mubr.msk.f32.vlgmr.msra.gmra.mxu1 %vm160_vm0, %v3170_v30 }
0x1202   :  { %2513 = vmatpush3.msra.mxu1 %v3083_v53  ;;  %2516 = vmatprep.mubr.msk.f32.mxu1 %vm2636_vm1, %v2635_v1 }
0x1203   :  { %2514 = vmatprep.subr.mxu1 %v2635_v1 }
0x1204   :  { %2515 = vmatpush3.msra.mxu1 %v3088_v60 }
0x125c   :  { %v1970_v32 = vpop.permute.xlu1 %1969  ;;  %v1980_v41 = vpop.permute.xlu0 %1979 }
0x125d   :  { %v1972_v11 = vadd.f32 %v1970_v32, %v2875_v61 }
0x125f   :  { %v2339_v35 = vmul.f32 -1.442695, %v1972_v11 }
0x1261   :  { %2611 = vpow2.f32 %v2339_v35 }
0x126e   :  { %v2612_v36 = vpop.eup %2611 }
0x126f   :  { %v1976_v27 = vadd.f32 1.0, %v2612_v36 }
0x1271   :  { %2613 = vrcp.f32 %v1976_v27  ;;  %v2137_v27 = vld [vmem:[#allocation2] sm:$0xff] }
0x127e   :  { %v2614_v38 = vpop.eup %2613 }
0x127f   :  { %v1982_v42 = vmul.f32 %v2614_v38, %v1980_v41  ;;  %v1989_v54 = vsub.f32 1.0, %v2614_v38 }
0x1281   :  { %1984 = vrot.lane.b32.xlu1 %v1982_v42, %s2641_s1 }
0x12c1   :  { %v1841_v53 = vpop.f32.mrf.mxu1 }
0x12c2   :  { %v1842_v43 = vadd.f32 %v3119_v29, %v1841_v53 }
0x12c3   :  { %v2504_v19 = vpop.f32.mrf.mxu1 }
0x12c4   :  { %1853 = vrot.lane.b32.xlu0 %v1842_v43, %s2639_s16  ;;  %v1845_v45 = vadd.f32 %v1842_v43, %v2864_v46 }
0x12c6   :  { %v2335_v47 = vmul.f32 -1.442695, %v1845_v45  ;;  %v2014_v45 = vld [vmem:[#allocation2 + $0x38] sm:$0xff] }
0x12c8   :  { %1995 = vrot.lane.b32.xlu0 %v3148_v6, %s2643_s19 }
0x12f3   :  { %v1985_v1 = vpop.permute.xlu1 %1984 }
0x12f4   :  { %v1987_v60 = vadd.f32 %v1985_v1, %v2875_v61 }
0x12f6   :  { %2615 = vtanh.f32 %v1987_v60 }
0x12f7   :  { %2617 = vpow2.f32 %v2335_v47 }
0x1303   :  { %v2616_v44 = vpop.eup %2615 }
0x1304   :  { %1991 = vrot.lane.b32.xlu1 %v2616_v44, %s2642_s7  ;;  %v2618_v50 = vpop.eup %2617 }
0x1305   :  { %v1849_v51 = vadd.f32 1.0, %v2618_v50 }
0x1307   :  { %2619 = vrcp.f32 %v1849_v51 }
0x1314   :  { %v2620_v31 = vpop.eup %2619 }
0x1315   :  { %v1863_v9 = vsub.f32 1.0, %v2620_v31 }
0x1336   :  { %v1854_v5 = vpop.permute.xlu0 %1853 }
0x1337   :  { %v1856_v55 = vmul.f32 %v2620_v31, %v1854_v5 }
0x1339   :  { %1858 = vrot.lane.b32.xlu1 %v1856_v55, %s2641_s1 }
0x133a   :  { %v1996_v37 = vpop.permute.xlu0 %1995 }
0x133b   :  { %v1998_v61 = vmul.f32 %v2614_v38, %v1996_v37 }
0x1376   :  { %v1992_v59 = vpop.permute.xlu1 %1991 }
0x1377   :  { %v1994_v48 = vmul.f32 %v1992_v59, %v1989_v54 }
0x1379   :  { %v1999_v12 = vadd.f32 %v1998_v61, %v1994_v48 }
0x137b   :  { %v2000_v63 = vsub.f32 %v1999_v12, %v1996_v37 }
0x137d   :  { %v2001_v0 = vmul.f32 %v2000_v63, %v2903_v14 }
0x137f   :  { %2003 = vrot.lane.b32.xlu0 %v2001_v0, %s2643_s19 }
0x1383   :  { %1869 = vrot.lane.b32.xlu0 %v3170_v30, %s2637_s4 }
0x13ab   :  { %v1859_v2 = vpop.permute.xlu1 %1858 }
0x13ac   :  { %v1861_v16 = vadd.f32 %v1859_v2, %v2864_v46 }
0x13ae   :  { %2621 = vtanh.f32 %v1861_v16 }
0x13bb   :  { %v2622_v49 = vpop.eup %2621 }
0x13bc   :  { %1865 = vrot.lane.b32.xlu1 %v2622_v49, %s2642_s7 }
0x13f1   :  { %v2004_v7 = vpop.permute.xlu0 %2003 }
0x13f2   :  { %v3196_v58 = vadd.f32 %v2004_v7, %v3148_v6 }
0x13f4   :  { %2007 = vst.msk [vmem:[#allocation4] sm:$0xff] %vm160_vm0, %v3196_v58 }
0x13f5   :  { %v1870_v8 = vpop.permute.xlu0 %1869 }
0x13f6   :  { %v1872_v46 = vmul.f32 %v2620_v31, %v1870_v8 }
0x13fb   :  { %v3200_v57 = vld [vmem:[#allocation4] sm:$0xff] }
0x13fc   :  { %2524 = vmatmul.mubr.msk.f32.vlgmr.msra.gmra.mxu0 %vm160_vm0, %v3200_v57 }
0x142e   :  { %v1866_v25 = vpop.permute.xlu1 %1865 }
0x142f   :  { %v1868_v3 = vmul.f32 %v1866_v25, %v1863_v9  ;;  %v428_v25 = vmul.f32 %v2850_v40, %v2828_v34 }
0x1431   :  { %v1873_v20 = vadd.f32 %v1872_v46, %v1868_v3  ;;  %v975_v46 = vmul.f32 %v2950_v33, %v2942_v24  ;;  %v1502_v3 = vmul.f32 %v3069_v56, %v3033_v62 }
0x1433   :  { %v1874_v21 = vsub.f32 %v1873_v20, %v1870_v8  ;;  %v2008_v20 = vmul.f32 %v3196_v58, %v2903_v14  ;;  %v702_v14 = vmul.f32 %v2885_v23, %v2878_v15  ;;  %v1629_v58 = vmul.f32 %v3166_v28, %v2942_v24 }
0x1434   :  { %v1755_v24 = vmul.f32 %v3144_v4, %v2968_v39 }
0x1435   :  { %v1875_v22 = vmul.f32 %v1874_v21, %v2878_v15 }
0x1437   :  { %1877 = vrot.lane.b32.xlu1 %v1875_v22, %s2642_s7 }
0x14a9   :  { %v1878_v6 = vpop.permute.xlu1 %1877 }
0x14aa   :  { %v3207_v26 = vadd.f32 %v1878_v6, %v3170_v30 }
0x14ac   :  { %1881 = vst.msk [vmem:[#allocation3] sm:$0xff] %vm160_vm0, %v3207_v26  ;;  %v1882_v39 = vmul.f32 %v3207_v26, %v2878_v15 }
0x14b3   :  { %v3211_v32 = vld [vmem:[#allocation3] sm:$0xff] }
0x14b4   :  { %2517 = vmatmul.mubr.msk.f32.vlgmr.msra.gmra.mxu1 %vm160_vm0, %v3211_v32 }
0x14bc   :  { %v2217_v11 = vpop.f32.mrf.mxu0 }
0x14bd   :  { %v2218_v35 = vadd.f32 %v3160_v18, %v2217_v11 }
0x14be   :  { %v2525_v36 = vpop.f32.mrf.mxu0 }
0x14bf   :  { %2222 = vrot.lane.b32.xlu0 %v2218_v35, %s2638_s15  ;;  %2232 = vrot.lane.b32.xlu1 %v2218_v35, %s2637_s4 }
0x1531   :  { %v2223_v38 = vpop.permute.xlu0 %2222  ;;  %v2233_v19 = vpop.permute.xlu1 %2232 }
0x1532   :  { %v2225_v30 = vadd.f32 %v2223_v38, %v2137_v27  ;;  %v1248_v38 = vmul.f32 %v3019_v52, %v3010_v17 }
0x1534   :  { %v2347_v41 = vmul.f32 -1.442695, %v2225_v30 }
0x1536   :  { %2623 = vpow2.f32 %v2347_v41 }
0x1543   :  { %v2624_v42 = vpop.eup %2623 }
0x1544   :  { %v2229_v53 = vadd.f32 1.0, %v2624_v42 }
0x1546   :  { %2625 = vrcp.f32 %v2229_v53 }
0x1553   :  { %v2626_v43 = vpop.eup %2625 }
0x1554   :  { %v2235_v1 = vmul.f32 %v2626_v43, %v2233_v19  ;;  %v2242_v0 = vsub.f32 1.0, %v2626_v43 }
0x1556   :  { %2237 = vrot.lane.b32.xlu1 %v2235_v1, %s2641_s1 }
0x1574   :  { %v2094_v60 = vpop.f32.mrf.mxu1 }
0x1575   :  { %v2095_v18 = vadd.f32 %v3119_v29, %v2094_v60 }
0x1576   :  { %v2518_v44 = vpop.f32.mrf.mxu1 }
0x1577   :  { %2106 = vrot.lane.b32.xlu0 %v2095_v18, %s2639_s16  ;;  %v2098_v47 = vadd.f32 %v2095_v18, %v2014_v45 }
0x1579   :  { %v2343_v50 = vmul.f32 -1.442695, %v2098_v47 }
0x157b   :  { %2627 = vpow2.f32 %v2343_v50 }
0x1588   :  { %v2628_v5 = vpop.eup %2627 }
0x1589   :  { %v2102_v37 = vadd.f32 1.0, %v2628_v5 }
0x15c8   :  { %v2238_v51 = vpop.permute.xlu1 %2237 }
0x15c9   :  { %v2240_v31 = vadd.f32 %v2238_v51, %v2137_v27 }
0x15cb   :  { %2629 = vtanh.f32 %v2240_v31 }
0x15cc   :  { %2631 = vrcp.f32 %v2102_v37 }
0x15d8   :  { %v2630_v55 = vpop.eup %2629 }
0x15d9   :  { %2244 = vrot.lane.b32.xlu1 %v2630_v55, %s2642_s7  ;;  %v2632_v54 = vpop.eup %2631 }
0x15da   :  { %v2116_v22 = vsub.f32 1.0, %v2632_v54 }
0x15e9   :  { %v2107_v59 = vpop.permute.xlu0 %2106 }
0x15ea   :  { %v2109_v61 = vmul.f32 %v2632_v54, %v2107_v59 }
0x15ec   :  { %2111 = vrot.lane.b32.xlu0 %v2109_v61, %s2641_s1 }
0x15f0   :  { %2248 = vrot.lane.b32.xlu0 %v3200_v57, %s2643_s19 }
0x15f4   :  { %2122 = vrot.lane.b32.xlu0 %v3211_v32, %s2637_s4 }
0x164b   :  { %v2245_v63 = vpop.permute.xlu1 %2244 }
0x164c   :  { %v2247_v16 = vmul.f32 %v2245_v63, %v2242_v0 }
0x165e   :  { %v2112_v29 = vpop.permute.xlu0 %2111 }
0x165f   :  { %v2114_v48 = vadd.f32 %v2112_v29, %v2014_v45 }
0x1661   :  { %2633 = vtanh.f32 %v2114_v48 }
0x1662   :  { %v2249_v12 = vpop.permute.xlu0 %2248 }
0x1663   :  { %v2251_v2 = vmul.f32 %v2626_v43, %v2249_v12 }
0x1665   :  { %v2252_v49 = vadd.f32 %v2251_v2, %v2247_v16 }
0x1666   :  { %v2123_v21 = vpop.permute.xlu0 %2122 }
0x1667   :  { %v2253_v7 = vsub.f32 %v2252_v49, %v2249_v12  ;;  %v2125_v6 = vmul.f32 %v2632_v54, %v2123_v21 }
0x1669   :  { %v2254_v9 = vmul.f32 %v2253_v7, %v2824_v13 }
0x166e   :  { %v2634_v8 = vpop.eup %2633 }
0x166f   :  { %2118 = vrot.lane.b32.xlu1 %v2634_v8, %s2642_s7 }
0x1673   :  { %2256 = vrot.lane.b32.xlu1 %v2254_v9, %s2643_s19 }
0x1677   :  { %430 = vrot.lane.b32.xlu1 %v428_v25, %s2637_s4 }
0x167b   :  { %977 = vrot.lane.b32.xlu1 %v975_v46, %s2637_s4 }
0x167f   :  { %1504 = vrot.lane.b32.xlu1 %v1502_v3, %s2637_s4 }
0x1683   :  { %2010 = vrot.lane.b32.xlu1 %v2008_v20, %s2637_s4 }
0x16e1   :  { %v2119_v40 = vpop.permute.xlu1 %2118 }
0x16e2   :  { %v2121_v11 = vmul.f32 %v2119_v40, %v2116_v22 }
0x16e4   :  { %v2126_v35 = vadd.f32 %v2125_v6, %v2121_v11 }
0x16e5   :  { %v2257_v36 = vpop.permute.xlu1 %2256 }
0x16e6   :  { %v2127_v33 = vsub.f32 %v2126_v35, %v2123_v21  ;;  %v2259_v27 = vadd.f32 %v2257_v36, %v3200_v57 }
0x16e8   :  { %2260 = vst.msk [vmem:[#allocation4] sm:$0xff] %vm160_vm0, %v2259_v27  ;;  %v2128_v62 = vmul.f32 %v2127_v33, %v2828_v34  ;;  %v2261_v52 = vmul.f32 %v2259_v27, %v2824_v13  ;;  %v1376_v13 = vmul.f32 %v3100_v10, %v3010_v17 }
0x16e9   :  { %v431_v56 = vpop.permute.xlu1 %430 }
0x16ea   :  { %2286 = vst.msk [vmem:[%s3322_s8 + $0x38] sm:$0xff] %vm434_vm12, %v431_v56  ;;  %2130 = vrot.lane.b32.xlu0 %v2128_v62, %s2642_s7 }
0x16ed   :  { %v978_v57 = vpop.permute.xlu1 %977 }
0x16ee   :  { %2306 = vst.msk [vmem:[%s3322_s8 + $0x28] sm:$0xff] %vm434_vm12, %v978_v57  ;;  %704 = vrot.lane.b32.xlu0 %v702_v14, %s2637_s4 }
0x16ef   :  { %2328 = vst.msk [vmem:[%s3322_s8 + $0x28] sm:$0xff] %vm160_vm0, %v1629_v58 }
0x16f1   :  { %v1505_v23 = vpop.permute.xlu1 %1504 }
0x16f2   :  { %2324 = vst.msk [vmem:[%s3322_s8 + $0x18] sm:$0xff] %vm434_vm12, %v1505_v23  ;;  %1250 = vrot.lane.b32.xlu0 %v1248_v38, %s2637_s4 }
0x16f5   :  { %v2011_v28 = vpop.permute.xlu1 %2010 }
0x16f6   :  { %2340 = vst.msk [vmem:[%s3322_s8 + $0x8] sm:$0xff] %vm434_vm12, %v2011_v28  ;;  %1757 = vrot.lane.b32.xlu0 %v1755_v24, %s2637_s4 }
0x16fa   :  { %2263 = vrot.lane.b32.xlu0 %v2261_v52, %s2637_s4 }
0x175c   :  { %v2131_v30 = vpop.permute.xlu0 %2130 }
0x175d   :  { %v2133_v41 = vadd.f32 %v2131_v30, %v3211_v32 }
0x175f   :  { %2134 = vst.msk [vmem:[#allocation3] sm:$0xff] %vm160_vm0, %v2133_v41  ;;  %v2135_v42 = vmul.f32 %v2133_v41, %v2828_v34 }
0x1760   :  { %v705_v4 = vpop.permute.xlu0 %704 }
0x1761   :  { %2344 = vst.msk [vmem:[%s3322_s8 + $0x38] sm:$0xff] %vm160_vm0, %v2135_v42 }
0x1762   :  { %2296 = vst.msk [vmem:[%s3322_s8 + $0x30] sm:$0xff] %vm434_vm12, %v705_v4 }
0x1763   :  { %2336 = vst.msk [vmem:[%s3322_s8 + $0x30] sm:$0xff] %vm160_vm0, %v1882_v39 }
0x1764   :  { %v1251_v34 = vpop.permute.xlu0 %1250 }
0x1765   :  { %2316 = vst.msk [vmem:[%s3322_s8 + $0x20] sm:$0xff] %vm434_vm12, %v1251_v34 }
0x1766   :  { %2320 = vst.msk [vmem:[%s3322_s8 + $0x20] sm:$0xff] %vm160_vm0, %v1376_v13 }
0x1768   :  { %v1758_v15 = vpop.permute.xlu0 %1757 }
0x1769   :  { %2332 = vst.msk [vmem:[%s3322_s8 + $0x10] sm:$0xff] %vm434_vm12, %v1758_v15 }
0x176c   :  { %v2264_v26 = vpop.permute.xlu0 %2263 }
0x176d   :  { %2266 = vst.msk [vmem:[%s3322_s8] sm:$0xff] %vm434_vm12, %v2264_v26 }

// kernel: word_attention_forward.3
= control target key start
LH: loop header
LB: loop body
LE: loop exit
PB: predicated region body
PF: predicated region fallthrough
CT: control target
= control target key end

     0   :  { %vm50_vm0 = vcmask 130048   ;;  %v2621_v1 = vmov 0.0   ;;  %vm2622_vm1 = vmmov 0   ;;  %vm143_vm2 = vcmask 785408   ;;  %s2623_s11 = smov 16   ;;  %s2624_s12 = smov 48   ;;  %s3297_s1 = inlined_call_operand.vmem [shape: bf16[16,96], index: 1, kind: input, shape index: {}]   ;;  %s3298_s2 = inlined_call_operand.vmem [shape: f32[16,48], index: 2, kind: input, shape index: {}]   ;;  %s3299_s0 = inlined_call_operand.vmem [shape: f32[8,8,16], index: 0, kind: input, shape index: {}]   ;;  %s3300_s3 = inlined_call_operand.vmem [shape: f32[16,48], index: 3, kind: input, shape index: {}]   ;;  %s3301_s4 = inlined_call_operand.vmem [shape: f32[1,96], index: 4, kind: input, shape index: {}]   ;;  %s3302_s6 = inlined_call_operand.vmem [shape: f32[1,48], index: 6, kind: input, shape index: {}]   ;;  %s3303_s5 = inlined_call_operand.vmem [shape: f32[1,48], index: 5, kind: input, shape index: {}]   ;;  %s3304_s7 = inlined_call_operand.vmem [shape: s32[8,1], index: 7, kind: input, shape index: {}]   ;;  %s3305_s8 = inlined_call_operand.vmem [shape: f32[8,8,32], index: 8, kind: output, shape index: {}]  }
   0x1   :  { %v2524_v0 = vld [vmem:[%s3297_s1] sm:$0xff]   ;;  %2401 = vmatprep.subr.mxu1 %v2621_v1  ;;  %152 = vst.msk [vmem:[#allocation3] sm:$0xff] %vm50_vm0, %v2621_v1  ;;  %153 = vst.msk [vmem:[#allocation4] sm:$0xff] %vm50_vm0, %v2621_v1  ;;  %2405 = vmatprep.mubr.msk.f32.mxu1 %vm2622_vm1, %v2621_v1  ;;  %v2688_v2 = vld [vmem:[%s3298_s2 + $0x8] sm:$0xff]  ;;  %s2625_s13 = smov 96   ;;  %v2626_v50 = vmov 0  }
   0x2   :  { %v30_v3 = vld [vmem:[%s3299_s0] sm:$0xff]  ;;  %v31_v4 = vld [vmem:[%s3299_s0 + $0x8] sm:$0xff]  ;;  %2391 = vmatprep.subr.bf16.mxu0 %v2524_v0  ;;  %2402 = vmatpush3.msra.mxu1 %v2688_v2  ;;  %v32_v7 = vld [vmem:[%s3299_s0 + $0x10] sm:$0xff]  ;;  %s2627_s16 = smov 32   ;;  %s2629_s17 = smov 64   ;;  %vm425_vm11 = vcmask 261248  }
   0x3   :  { %v38_v5 = vpack.c.bf16 %v31_v4, %v30_v3  ;;  %v2700_v6 = vld [vmem:[%s3298_s2] sm:$0xff]  ;;  %v33_v8 = vld [vmem:[%s3299_s0 + $0x18] sm:$0xff]  ;;  %2392 = vmatpush3.bf16.msra.mxu0 %v2524_v0  ;;  %2403 = vmatprep.subr.mxu1 %v2621_v1  ;;  %v35_v11 = vld [vmem:[%s3299_s0 + $0x28] sm:$0xff] }
   0x4   :  { %v39_v9 = vpack.c.bf16 %v33_v8, %v32_v7  ;;  %v34_v10 = vld [vmem:[%s3299_s0 + $0x20] sm:$0xff]  ;;  %2404 = vmatpush3.msra.mxu1 %v2700_v6  ;;  %2429 = vmatprep.subr.mxu0 %v2621_v1  ;;  %v2723_v13 = vld [vmem:[%s3300_s3 + $0x8] sm:$0xff]  ;;  %v36_v15 = vld [vmem:[%s3299_s0 + $0x30] sm:$0xff] }
   0x5   :  { %2393 = vmatprep.mubr.msk.bf16.mxu0 %vm50_vm0, %v38_v5  ;;  %2408 = vmatprep.subr.mxu1 %v2621_v1  ;;  %v40_v12 = vpack.c.bf16 %v35_v11, %v34_v10  ;;  %v37_v16 = vld [vmem:[%s3299_s0 + $0x38] sm:$0xff]  ;;  %v2740_v17 = vld [vmem:[%s3300_s3] sm:$0xff] }
   0x6   :  { %2394 = vmatmul.mubr.msk.bf16.vlgmr.msra.gmra.mxu0 %vm50_vm0, %v39_v9  ;;  %v41_v19 = vpack.c.bf16 %v37_v16, %v36_v15  ;;  %v2267_v21 = vld [vmem:[%s3301_s4] ss:$0 sm:$0xff]  ;;  %2522 = vset.pattern.permute.xlu1 %v2626_v50 }
   0x7   :  { %2397 = vmatprep.mubr.msk.bf16.mxu0 %vm50_vm0, %v40_v12  ;;  %2430 = vmatpush3.msra.mxu0 %v2688_v2  ;;  %v2771_v27 = vld [vmem:[%s3302_s6] ss:$0 sm:$0xff] }
   0x8   :  { %v2725_v14 = vld [vmem:[#allocation3] sm:$0xff]  ;;  %2431 = vmatprep.subr.mxu0 %v2621_v1  ;;  %v2746_v18 = vld [vmem:[#allocation4] sm:$0xff]  ;;  %2523 = vset.pattern.permute.xlu0 %v2626_v50 }
   0x9   :  { %2406 = vmatmul.mubr.msk.f32.vlgmr.msra.gmra.mxu1 %vm50_vm0, %v2725_v14  ;;  %2432 = vmatpush3.msra.mxu0 %v2700_v6  ;;  %v2779_v34 = vld [vmem:[%s3303_s5] ss:$0 sm:$0xff] }
   0xa   :  { %2409 = vmatpush3.msra.mxu1 %v2723_v13  ;;  %2412 = vmatprep.mubr.msk.f32.mxu1 %vm2622_vm1, %v2621_v1  ;;  %v2793_v54 = vld [vmem:[%s3304_s7] sm:$0xff]  ;;  %s2628_s7 = smov 112  }
   0xb   :  { %2410 = vmatprep.subr.mxu1 %v2621_v1  ;;  %2443 = vmatprep.subr.mxu0 %v2621_v1  ;;  %vm268_vm3 = vcmp.gt.s32.totalorder %v2793_v54, 0  ;;  %vm403_vm4 = vcmp.gt.s32.totalorder %v2793_v54, 7  ;;  %vm677_vm5 = vcmp.gt.s32.totalorder %v2793_v54, 6  ;;  %vm541_vm6 = vcmp.gt.s32.totalorder %v2793_v54, 1 }
   0xc   :  { %2411 = vmatpush3.msra.mxu1 %v2740_v17  ;;  %v2271_v59 = vsel %vm268_vm3, 1.0, %v2621_v1  ;;  %v2275_v10 = vsel %vm403_vm4, 1.0, %v2621_v1  ;;  %vm950_vm7 = vcmp.gt.s32.totalorder %v2793_v54, 5  ;;  %vm814_vm8 = vcmp.gt.s32.totalorder %v2793_v54, 2 }
   0xd   :  { %2413 = vmatmul.mubr.msk.f32.vlgmr.msra.gmra.mxu1 %vm50_vm0, %v2746_v18  ;;  %2415 = vmatprep.subr.mxu1 %v2621_v1  ;;  %vm1223_vm9 = vcmp.gt.s32.totalorder %v2793_v54, 4  ;;  %vm1087_vm10 = vcmp.gt.s32.totalorder %v2793_v54, 3 }
   0xe   :  { %2416 = vmatpush3.msra.mxu1 %v2688_v2  ;;  %2419 = vmatprep.mubr.msk.f32.mxu1 %vm2622_vm1, %v2621_v1 }
   0xf   :  { %2398 = vmatmul.mubr.msk.bf16.gmra.mxu0 %vm50_vm0, %v41_v19  ;;  %2417 = vmatprep.subr.mxu1 %v2621_v1 }
  0x10   :  { %2418 = vmatpush3.msra.mxu1 %v2700_v6  ;;  %2433 = vmatprep.mubr.msk.f32.mxu0 %vm2622_vm1, %v2621_v1 }
  0x11   :  { %2422 = vmatprep.subr.mxu1 %v2621_v1 }
  0xc6   :  { %v2395_v20 = vpop.f32.mrf.mxu0 }
  0xc7   :  { %v137_v22 = vadd.f32 %v2395_v20, %v2267_v21 }
  0xc8   :  { %v97_v24 = vpop.f32.mrf.mxu0 }
  0xc9   :  { %v235_v23 = vpop.f32.mrf.mxu1  ;;  %146 = vst.msk [vmem:[#allocation2 + $0x10] sm:$0xff] %vm143_vm2, %v137_v22  ;;  %v135_v25 = vadd.f32 %v2267_v21, %v97_v24 }
  0xca   :  { %v2396_v28 = vpop.f32.mrf.mxu0  ;;  %v236_v39 = vadd.f32 %v2779_v34, %v235_v23 }
  0xcb   :  { %v2407_v26 = vpop.f32.mrf.mxu1  ;;  %144 = vst.msk [vmem:[#allocation2] sm:$0xff] %vm143_vm2, %v135_v25  ;;  %v138_v29 = vadd.f32 %v2396_v28, %v2267_v21 }
  0xcc   :  { %v100_v31 = vpop.f32.mrf.mxu0 }
  0xcd   :  { %v367_v30 = vpop.f32.mrf.mxu1  ;;  %147 = vst.msk [vmem:[#allocation2 + $0x18] sm:$0xff] %vm143_vm2, %v138_v29  ;;  %v136_v33 = vadd.f32 %v2267_v21, %v100_v31 }
  0xce   :  { %v368_v32 = vadd.f32 %v2771_v27, %v367_v30 }
  0xcf   :  { %v2414_v35 = vpop.f32.mrf.mxu1  ;;  %v2399_v36 = vpop.f32.mrf.mxu0  ;;  %145 = vst.msk [vmem:[#allocation2 + $0x8] sm:$0xff] %vm143_vm2, %v136_v33 }
  0xd0   :  { %382 = vrot.lane.b32.xlu1 %v368_v32, %s2623_s11  ;;  %372 = vrot.lane.b32.xlu0 %v368_v32, %s2624_s12  ;;  %v141_v37 = vadd.f32 %v2399_v36, %v2267_v21 }
  0xd1   :  { %v113_v38 = vpop.f32.mrf.mxu0 }
  0xd2   :  { %150 = vst.msk [vmem:[#allocation2 + $0x30] sm:$0xff] %vm143_vm2, %v141_v37  ;;  %v139_v40 = vadd.f32 %v2267_v21, %v113_v38  ;;  %v155_v45 = vld [vmem:[#allocation2] sm:$0xff] }
  0xd3   :  { %v2400_v41 = vpop.f32.mrf.mxu0  ;;  %v239_v46 = vadd.f32 %v236_v39, %v155_v45 }
  0xd4   :  { %247 = vrot.lane.b32.xlu0 %v236_v39, %s2625_s13  ;;  %148 = vst.msk [vmem:[#allocation2 + $0x20] sm:$0xff] %vm143_vm2, %v139_v40  ;;  %v142_v42 = vadd.f32 %v2400_v41, %v2267_v21 }
  0xd5   :  { %v116_v43 = vpop.f32.mrf.mxu0  ;;  %v2270_v47 = vmul.f32 -1.442695, %v239_v46 }
  0xd6   :  { %151 = vst.msk [vmem:[#allocation2 + $0x38] sm:$0xff] %vm143_vm2, %v142_v42  ;;  %v140_v44 = vadd.f32 %v2267_v21, %v116_v43 }
  0xd7   :  { %2525 = vpow2.f32 %v2270_v47 }
  0xd8   :  { %149 = vst.msk [vmem:[#allocation2 + $0x28] sm:$0xff] %vm143_vm2, %v140_v44 }
  0xdd   :  { %v287_v52 = vld [vmem:[#allocation2 + $0x38] sm:$0xff] }
  0xe4   :  { %v2526_v48 = vpop.eup %2525 }
  0xe5   :  { %v243_v49 = vadd.f32 1.0, %v2526_v48 }
  0xe7   :  { %2527 = vrcp.f32 %v243_v49 }
  0xf4   :  { %v2528_v56 = vpop.eup %2527 }
  0xf5   :  { %v257_v15 = vsub.f32 1.0, %v2528_v56 }
 0x142   :  { %v373_v51 = vpop.permute.xlu0 %372  ;;  %v383_v63 = vpop.permute.xlu1 %382 }
 0x143   :  { %v375_v53 = vadd.f32 %v373_v51, %v287_v52 }
 0x145   :  { %v2274_v55 = vmul.f32 -1.442695, %v375_v53 }
 0x146   :  { %v248_v57 = vpop.permute.xlu0 %247 }
 0x147   :  { %2529 = vpow2.f32 %v2274_v55  ;;  %v250_v58 = vmul.f32 %v2528_v56, %v248_v57 }
 0x149   :  { %252 = vrot.lane.b32.xlu1 %v250_v58, %s2627_s16  ;;  %v2285_v58 = vsel %vm677_vm5, 1.0, %v2621_v1 }
 0x14d   :  { %274 = vperm.xlu1 %2522, %v2271_v59  }
 0x154   :  { %v2530_v60 = vpop.eup %2529 }
 0x155   :  { %v379_v61 = vadd.f32 1.0, %v2530_v60  ;;  %v2858_v60 = vld [vmem:[#allocation2 + $0x8] sm:$0xff] }
 0x157   :  { %2531 = vrcp.f32 %v379_v61 }
 0x164   :  { %v2532_v62 = vpop.eup %2531 }
 0x165   :  { %v385_v0 = vmul.f32 %v2532_v62, %v383_v63  ;;  %v392_v25 = vsub.f32 1.0, %v2532_v62 }
 0x167   :  { %387 = vrot.lane.b32.xlu0 %v385_v0, %s2627_s16 }
 0x16b   :  { %263 = vrot.lane.b32.xlu0 %v2725_v14, %s2623_s11 }
 0x1bb   :  { %v253_v3 = vpop.permute.xlu1 %252 }
 0x1bc   :  { %v255_v4 = vadd.f32 %v253_v3, %v155_v45  ;;  %v2847_v45 = vld [vmem:[#allocation2 + $0x30] sm:$0xff] }
 0x1be   :  { %2533 = vtanh.f32 %v255_v4 }
 0x1c8   :  { %v2807_v11 = vpop.permute.xlu1 %274 }
 0x1cb   :  { %v2534_v5 = vpop.eup %2533 }
 0x1cc   :  { %259 = vrot.lane.b32.xlu1 %v2534_v5, %s2628_s7 }
 0x1d0   :  { %398 = vrot.lane.b32.xlu1 %v2746_v18, %s2629_s17 }
 0x1d9   :  { %v388_v7 = vpop.permute.xlu0 %387 }
 0x1da   :  { %v390_v8 = vadd.f32 %v388_v7, %v287_v52 }
 0x1dc   :  { %2535 = vtanh.f32 %v390_v8 }
 0x1dd   :  { %v264_v12 = vpop.permute.xlu0 %263 }
 0x1de   :  { %v266_v19 = vmul.f32 %v2528_v56, %v264_v12 }
 0x1e9   :  { %v2536_v9 = vpop.eup %2535 }
 0x1ea   :  { %394 = vrot.lane.b32.xlu0 %v2536_v9, %s2628_s7 }
 0x1ee   :  { %409 = vperm.xlu0 %2523, %v2275_v10  }
 0x23e   :  { %v260_v16 = vpop.permute.xlu1 %259 }
 0x23f   :  { %v262_v20 = vmul.f32 %v260_v16, %v257_v15 }
 0x241   :  { %v267_v21 = vadd.f32 %v266_v19, %v262_v20 }
 0x242   :  { %v399_v26 = vpop.permute.xlu1 %398 }
 0x243   :  { %v271_v22 = vsub.f32 %v267_v21, %v264_v12  ;;  %v401_v29 = vmul.f32 %v2532_v62, %v399_v26 }
 0x245   :  { %v277_v23 = vmul.f32 %v2807_v11, %v271_v22 }
 0x247   :  { %279 = vrot.lane.b32.xlu1 %v277_v23, %s2628_s7 }
 0x25c   :  { %v395_v24 = vpop.permute.xlu0 %394 }
 0x25d   :  { %v397_v28 = vmul.f32 %v395_v24, %v392_v25 }
 0x25f   :  { %v402_v30 = vadd.f32 %v401_v29, %v397_v28  ;;  %v2280_v28 = vsel %vm541_vm6, 1.0, %v2621_v1 }
 0x261   :  { %v406_v31 = vsub.f32 %v402_v30, %v399_v26 }
 0x269   :  { %v2811_v32 = vpop.permute.xlu0 %409 }
 0x26a   :  { %v412_v33 = vmul.f32 %v2811_v32, %v406_v31 }
 0x26c   :  { %414 = vrot.lane.b32.xlu1 %v412_v33, %s2629_s17 }
 0x2b9   :  { %v280_v35 = vpop.permute.xlu1 %279 }
 0x2ba   :  { %v282_v36 = vadd.f32 %v280_v35, %v2725_v14 }
 0x2bc   :  { %283 = vst.msk [vmem:[#allocation3] sm:$0xff] %vm50_vm0, %v282_v36  ;;  %v284_v37 = vmul.f32 %v282_v36, %v2807_v11 }
 0x2be   :  { %285 = vst.msk [vmem:[%s3305_s8] sm:$0xff] %vm50_vm0, %v284_v37 }
 0x2c3   :  { %v2822_v38 = vld [vmem:[#allocation3] sm:$0xff] }
 0x2c4   :  { %2420 = vmatmul.mubr.msk.f32.vlgmr.msra.gmra.mxu1 %vm50_vm0, %v2822_v38 }
 0x2c5   :  { %2423 = vmatpush3.msra.mxu1 %v2723_v13  ;;  %2426 = vmatprep.mubr.msk.f32.mxu1 %vm2622_vm1, %v2621_v1 }
 0x2c6   :  { %2424 = vmatprep.subr.mxu1 %v2621_v1 }
 0x2c7   :  { %2425 = vmatpush3.msra.mxu1 %v2740_v17 }
 0x2c8   :  { %2436 = vmatprep.subr.mxu1 %v2621_v1 }
 0x2de   :  { %v415_v14 = vpop.permute.xlu1 %414 }
 0x2df   :  { %v2833_v39 = vadd.f32 %v415_v14, %v2746_v18 }
 0x2e1   :  { %418 = vst.msk [vmem:[#allocation4] sm:$0xff] %vm50_vm0, %v2833_v39 }
 0x2e8   :  { %v562_v40 = vld [vmem:[#allocation4] sm:$0xff] }
 0x2e9   :  { %2427 = vmatmul.mubr.msk.f32.vlgmr.msra.gmra.mxu1 %vm50_vm0, %v562_v40 }
 0x2ea   :  { %2437 = vmatpush3.msra.mxu1 %v2723_v13  ;;  %2440 = vmatprep.mubr.msk.f32.mxu1 %vm2622_vm1, %v2621_v1 }
 0x2eb   :  { %2438 = vmatprep.subr.mxu1 %v2621_v1 }
 0x2ec   :  { %2439 = vmatpush3.msra.mxu1 %v2740_v17 }
 0x2ed   :  { %2450 = vmatprep.subr.mxu1 %v2621_v1 }
 0x384   :  { %v508_v41 = vpop.f32.mrf.mxu1 }
 0x385   :  { %v509_v59 = vadd.f32 %v2779_v34, %v508_v41 }
 0x386   :  { %v2421_v18 = vpop.f32.mrf.mxu1 }
 0x387   :  { %v512_v61 = vadd.f32 %v509_v59, %v2858_v60 }
 0x389   :  { %v2279_v62 = vmul.f32 -1.442695, %v512_v61 }
 0x3a9   :  { %v641_v42 = vpop.f32.mrf.mxu1 }
 0x3aa   :  { %v642_v43 = vadd.f32 %v2771_v27, %v641_v42 }
 0x3ab   :  { %v2428_v44 = vpop.f32.mrf.mxu1 }
 0x3ac   :  { %656 = vrot.lane.b32.xlu1 %v642_v43, %s2623_s11  ;;  %646 = vrot.lane.b32.xlu0 %v642_v43, %s2624_s12 }
 0x41e   :  { %v647_v46 = vpop.permute.xlu0 %646  ;;  %v657_v52 = vpop.permute.xlu1 %656 }
 0x41f   :  { %v649_v47 = vadd.f32 %v647_v46, %v2847_v45 }
 0x421   :  { %v2284_v48 = vmul.f32 -1.442695, %v649_v47 }
 0x423   :  { %2537 = vpow2.f32 %v2284_v48  ;;  %v2910_v48 = vld [vmem:[#allocation2 + $0x28] sm:$0xff] }
 0x430   :  { %v2538_v49 = vpop.eup %2537 }
 0x431   :  { %v653_v50 = vadd.f32 1.0, %v2538_v49 }
 0x433   :  { %2539 = vrcp.f32 %v653_v50 }
 0x440   :  { %v2540_v51 = vpop.eup %2539 }
 0x441   :  { %v659_v53 = vmul.f32 %v2540_v51, %v657_v52  ;;  %v666_v4 = vsub.f32 1.0, %v2540_v51 }
 0x443   :  { %661 = vrot.lane.b32.xlu0 %v659_v53, %s2627_s16 }
 0x447   :  { %672 = vrot.lane.b32.xlu0 %v562_v40, %s2629_s17 }
 0x4b5   :  { %v662_v55 = vpop.permute.xlu0 %661 }
 0x4b6   :  { %v664_v56 = vadd.f32 %v662_v55, %v2847_v45 }
 0x4b8   :  { %2541 = vtanh.f32 %v664_v56 }
 0x4b9   :  { %2543 = vpow2.f32 %v2279_v62  ;;  %v673_v5 = vpop.permute.xlu0 %672 }
 0x4ba   :  { %v675_v8 = vmul.f32 %v2540_v51, %v673_v5 }
 0x4c5   :  { %v2542_v57 = vpop.eup %2541 }
 0x4c6   :  { %668 = vrot.lane.b32.xlu1 %v2542_v57, %s2628_s7  ;;  %v2544_v63 = vpop.eup %2543 }
 0x4c7   :  { %v516_v0 = vadd.f32 1.0, %v2544_v63  ;;  %v2295_v63 = vsel %vm950_vm7, 1.0, %v2621_v1 }
 0x4c9   :  { %2545 = vrcp.f32 %v516_v0 }
 0x4ca   :  { %683 = vperm.xlu1 %2522, %v2285_v58  }
 0x4ce   :  { %520 = vrot.lane.b32.xlu1 %v509_v59, %s2625_s13 }
 0x4d6   :  { %v2546_v16 = vpop.eup %2545 }
 0x4d7   :  { %v530_v30 = vsub.f32 1.0, %v2546_v16 }
 0x538   :  { %v669_v3 = vpop.permute.xlu1 %668 }
 0x539   :  { %v671_v7 = vmul.f32 %v669_v3, %v666_v4  ;;  %v2922_v3 = vld [vmem:[#allocation2 + $0x10] sm:$0xff] }
 0x53b   :  { %v676_v9 = vadd.f32 %v675_v8, %v671_v7 }
 0x53d   :  { %v680_v10 = vsub.f32 %v676_v9, %v673_v5 }
 0x545   :  { %v2861_v12 = vpop.permute.xlu1 %683 }
 0x546   :  { %v686_v15 = vmul.f32 %v2861_v12, %v680_v10 }
 0x548   :  { %688 = vrot.lane.b32.xlu0 %v686_v15, %s2629_s17 }
 0x549   :  { %v521_v19 = vpop.permute.xlu1 %520 }
 0x54a   :  { %v523_v20 = vmul.f32 %v2546_v16, %v521_v19 }
 0x54c   :  { %525 = vrot.lane.b32.xlu0 %v523_v20, %s2627_s16 }
 0x550   :  { %536 = vrot.lane.b32.xlu0 %v2822_v38, %s2623_s11 }
 0x5ba   :  { %v689_v21 = vpop.permute.xlu0 %688 }
 0x5bb   :  { %v2868_v22 = vadd.f32 %v689_v21, %v562_v40 }
 0x5bd   :  { %692 = vst.msk [vmem:[#allocation4] sm:$0xff] %vm50_vm0, %v2868_v22 }
 0x5be   :  { %v526_v23 = vpop.permute.xlu0 %525 }
 0x5bf   :  { %v528_v24 = vadd.f32 %v526_v23, %v2858_v60 }
 0x5c1   :  { %2547 = vtanh.f32 %v528_v24 }
 0x5c2   :  { %v537_v31 = vpop.permute.xlu0 %536 }
 0x5c3   :  { %v539_v35 = vmul.f32 %v2546_v16, %v537_v31 }
 0x5c4   :  { %v2873_v25 = vld [vmem:[#allocation4] sm:$0xff] }
 0x5c5   :  { %2441 = vmatmul.mubr.msk.f32.vlgmr.msra.gmra.mxu1 %vm50_vm0, %v2873_v25 }
 0x5c6   :  { %2451 = vmatpush3.msra.mxu1 %v2723_v13  ;;  %2454 = vmatprep.mubr.msk.f32.mxu1 %vm2622_vm1, %v2621_v1 }
 0x5c7   :  { %2452 = vmatprep.subr.mxu1 %v2621_v1 }
 0x5c8   :  { %2453 = vmatpush3.msra.mxu1 %v2740_v17 }
 0x5c9   :  { %2464 = vmatprep.subr.mxu1 %v2621_v1 }
 0x5ce   :  { %v2548_v26 = vpop.eup %2547 }
 0x5cf   :  { %532 = vrot.lane.b32.xlu1 %v2548_v26, %s2628_s7 }
 0x5d3   :  { %547 = vperm.xlu1 %2522, %v2280_v28  }
 0x641   :  { %v533_v29 = vpop.permute.xlu1 %532 }
 0x642   :  { %v535_v33 = vmul.f32 %v533_v29, %v530_v30 }
 0x644   :  { %v540_v36 = vadd.f32 %v539_v35, %v535_v33 }
 0x646   :  { %v544_v37 = vsub.f32 %v540_v36, %v537_v31 }
 0x64e   :  { %v2886_v14 = vpop.permute.xlu1 %547 }
 0x64f   :  { %v550_v40 = vmul.f32 %v2886_v14, %v544_v37  ;;  %v2290_v37 = vsel %vm814_vm8, 1.0, %v2621_v1 }
 0x651   :  { %552 = vrot.lane.b32.xlu0 %v550_v40, %s2628_s7 }
 0x685   :  { %v914_v41 = vpop.f32.mrf.mxu1 }
 0x686   :  { %v915_v18 = vadd.f32 %v2771_v27, %v914_v41 }
 0x687   :  { %v2442_v42 = vpop.f32.mrf.mxu1 }
 0x688   :  { %929 = vrot.lane.b32.xlu0 %v915_v18, %s2623_s11  ;;  %919 = vrot.lane.b32.xlu1 %v915_v18, %s2624_s12 }
 0x6c3   :  { %v553_v43 = vpop.permute.xlu0 %552 }
 0x6c4   :  { %v555_v44 = vadd.f32 %v553_v43, %v2822_v38 }
 0x6c6   :  { %556 = vst.msk [vmem:[#allocation3] sm:$0xff] %vm50_vm0, %v555_v44  ;;  %v557_v46 = vmul.f32 %v555_v44, %v2886_v14 }
 0x6c8   :  { %2281 = vst.msk [vmem:[%s3305_s8 + $0x8] sm:$0xff] %vm50_vm0, %v557_v46 }
 0x6cd   :  { %v2900_v47 = vld [vmem:[#allocation3] sm:$0xff] }
 0x6ce   :  { %2434 = vmatmul.mubr.msk.f32.vlgmr.msra.gmra.mxu0 %vm50_vm0, %v2900_v47 }
 0x6cf   :  { %2444 = vmatpush3.msra.mxu0 %v2688_v2  ;;  %2447 = vmatprep.mubr.msk.f32.mxu0 %vm2622_vm1, %v2621_v1 }
 0x6d0   :  { %2445 = vmatprep.subr.mxu0 %v2621_v1 }
 0x6d1   :  { %2446 = vmatpush3.msra.mxu0 %v2700_v6 }
 0x6d2   :  { %2457 = vmatprep.subr.mxu0 %v2621_v1 }
 0x6fa   :  { %v920_v38 = vpop.permute.xlu1 %919  ;;  %v930_v55 = vpop.permute.xlu0 %929 }
 0x6fb   :  { %v922_v49 = vadd.f32 %v920_v38, %v2910_v48 }
 0x6fd   :  { %v2294_v50 = vmul.f32 -1.442695, %v922_v49 }
 0x6ff   :  { %2549 = vpow2.f32 %v2294_v50 }
 0x70c   :  { %v2550_v51 = vpop.eup %2549 }
 0x70d   :  { %v926_v52 = vadd.f32 1.0, %v2550_v51 }
 0x70f   :  { %2551 = vrcp.f32 %v926_v52 }
 0x71c   :  { %v2552_v53 = vpop.eup %2551 }
 0x71d   :  { %v932_v56 = vmul.f32 %v2552_v53, %v930_v55  ;;  %v939_v10 = vsub.f32 1.0, %v2552_v53 }
 0x71f   :  { %934 = vrot.lane.b32.xlu1 %v932_v56, %s2627_s16 }
 0x723   :  { %945 = vrot.lane.b32.xlu1 %v2873_v25, %s2629_s17 }
 0x78e   :  { %v781_v57 = vpop.f32.mrf.mxu0 }
 0x78f   :  { %v782_v0 = vadd.f32 %v2779_v34, %v781_v57 }
 0x790   :  { %v2435_v58 = vpop.f32.mrf.mxu0 }
 0x791   :  { %v935_v59 = vpop.permute.xlu1 %934  ;;  %v785_v4 = vadd.f32 %v782_v0, %v2922_v3 }
 0x792   :  { %v937_v61 = vadd.f32 %v935_v59, %v2910_v48 }
 0x793   :  { %v2289_v5 = vmul.f32 -1.442695, %v785_v4 }
 0x794   :  { %2553 = vtanh.f32 %v937_v61 }
 0x795   :  { %2555 = vpow2.f32 %v2289_v5  ;;  %v946_v15 = vpop.permute.xlu1 %945 }
 0x796   :  { %v948_v19 = vmul.f32 %v2552_v53, %v946_v15 }
 0x7a1   :  { %v2554_v62 = vpop.eup %2553 }
 0x7a2   :  { %941 = vrot.lane.b32.xlu0 %v2554_v62, %s2628_s7  ;;  %v2556_v7 = vpop.eup %2555 }
 0x7a3   :  { %v789_v8 = vadd.f32 1.0, %v2556_v7 }
 0x7a5   :  { %2557 = vrcp.f32 %v789_v8 }
 0x7a6   :  { %956 = vperm.xlu0 %2523, %v2295_v63  }
 0x7aa   :  { %793 = vrot.lane.b32.xlu0 %v782_v0, %s2625_s13 }
 0x7b2   :  { %v2558_v26 = vpop.eup %2557 }
 0x7b3   :  { %v803_v41 = vsub.f32 1.0, %v2558_v26 }
 0x814   :  { %v942_v9 = vpop.permute.xlu0 %941 }
 0x815   :  { %v944_v16 = vmul.f32 %v942_v9, %v939_v10 }
 0x817   :  { %v949_v20 = vadd.f32 %v948_v19, %v944_v16  ;;  %v2987_v16 = vld [vmem:[#allocation2 + $0x18] sm:$0xff] }
 0x819   :  { %v953_v21 = vsub.f32 %v949_v20, %v946_v15  ;;  %v2305_v15 = vsel %vm1223_vm9, 1.0, %v2621_v1 }
 0x821   :  { %v2925_v23 = vpop.permute.xlu0 %956 }
 0x822   :  { %v959_v24 = vmul.f32 %v2925_v23, %v953_v21 }
 0x824   :  { %961 = vrot.lane.b32.xlu1 %v959_v24, %s2629_s17 }
 0x825   :  { %v794_v28 = vpop.permute.xlu0 %793 }
 0x826   :  { %v796_v29 = vmul.f32 %v2558_v26, %v794_v28 }
 0x828   :  { %798 = vrot.lane.b32.xlu1 %v796_v29, %s2627_s16 }
 0x82c   :  { %809 = vrot.lane.b32.xlu1 %v2900_v47, %s2623_s11 }
 0x896   :  { %v962_v30 = vpop.permute.xlu1 %961 }
 0x897   :  { %v2933_v31 = vadd.f32 %v962_v30, %v2873_v25 }
 0x899   :  { %965 = vst.msk [vmem:[#allocation4] sm:$0xff] %vm50_vm0, %v2933_v31 }
 0x89a   :  { %v799_v33 = vpop.permute.xlu1 %798 }
 0x89b   :  { %v801_v35 = vadd.f32 %v799_v33, %v2922_v3 }
 0x89d   :  { %2559 = vtanh.f32 %v801_v35 }
 0x89e   :  { %v810_v18 = vpop.permute.xlu1 %809 }
 0x89f   :  { %v812_v43 = vmul.f32 %v2558_v26, %v810_v18 }
 0x8a0   :  { %v2938_v36 = vld [vmem:[#allocation4] sm:$0xff] }
 0x8a1   :  { %2455 = vmatmul.mubr.msk.f32.vlgmr.msra.gmra.mxu1 %vm50_vm0, %v2938_v36 }
 0x8a2   :  { %2465 = vmatpush3.msra.mxu1 %v2723_v13  ;;  %2468 = vmatprep.mubr.msk.f32.mxu1 %vm2622_vm1, %v2621_v1 }
 0x8a3   :  { %2466 = vmatprep.subr.mxu1 %v2621_v1 }
 0x8a4   :  { %2467 = vmatpush3.msra.mxu1 %v2740_v17 }
 0x8a5   :  { %2478 = vmatprep.subr.mxu1 %v2621_v1 }
 0x8aa   :  { %v2560_v25 = vpop.eup %2559 }
 0x8ab   :  { %805 = vrot.lane.b32.xlu0 %v2560_v25, %s2628_s7 }
 0x8af   :  { %820 = vperm.xlu0 %2523, %v2290_v37  }
 0x91d   :  { %v806_v40 = vpop.permute.xlu0 %805 }
 0x91e   :  { %v808_v42 = vmul.f32 %v806_v40, %v803_v41 }
 0x920   :  { %v813_v44 = vadd.f32 %v812_v43, %v808_v42 }
 0x922   :  { %v817_v46 = vsub.f32 %v813_v44, %v810_v18 }
 0x92a   :  { %v2951_v38 = vpop.permute.xlu0 %820 }
 0x92b   :  { %v823_v49 = vmul.f32 %v2951_v38, %v817_v46 }
 0x92d   :  { %825 = vrot.lane.b32.xlu1 %v823_v49, %s2628_s7  ;;  %v2300_v49 = vsel %vm1087_vm10, 1.0, %v2621_v1 }
 0x961   :  { %v1187_v50 = vpop.f32.mrf.mxu1 }
 0x962   :  { %v1188_v51 = vadd.f32 %v2771_v27, %v1187_v50 }
 0x963   :  { %v2456_v52 = vpop.f32.mrf.mxu1 }
 0x964   :  { %1192 = vrot.lane.b32.xlu0 %v1188_v51, %s2624_s12  ;;  %1202 = vrot.lane.b32.xlu1 %v1188_v51, %s2623_s11 }
 0x99f   :  { %v826_v53 = vpop.permute.xlu1 %825 }
 0x9a0   :  { %v828_v55 = vadd.f32 %v826_v53, %v2900_v47  ;;  %v2975_v47 = vld [vmem:[#allocation2 + $0x20] sm:$0xff] }
 0x9a2   :  { %829 = vst.msk [vmem:[#allocation3] sm:$0xff] %vm50_vm0, %v828_v55  ;;  %v830_v56 = vmul.f32 %v828_v55, %v2951_v38 }
 0x9a4   :  { %2291 = vst.msk [vmem:[%s3305_s8 + $0x10] sm:$0xff] %vm50_vm0, %v830_v56 }
 0x9a9   :  { %v2965_v57 = vld [vmem:[#allocation3] sm:$0xff] }
 0x9aa   :  { %2448 = vmatmul.mubr.msk.f32.vlgmr.msra.gmra.mxu0 %vm50_vm0, %v2965_v57 }
 0x9ab   :  { %2458 = vmatpush3.msra.mxu0 %v2688_v2  ;;  %2461 = vmatprep.mubr.msk.f32.mxu0 %vm2622_vm1, %v2621_v1 }
 0x9ac   :  { %2459 = vmatprep.subr.mxu0 %v2621_v1 }
 0x9ad   :  { %2460 = vmatpush3.msra.mxu0 %v2700_v6 }
 0x9ae   :  { %2471 = vmatprep.subr.mxu0 %v2621_v1 }
 0x9d6   :  { %v1193_v58 = vpop.permute.xlu0 %1192  ;;  %v1203_v0 = vpop.permute.xlu1 %1202 }
 0x9d7   :  { %v1195_v59 = vadd.f32 %v1193_v58, %v2975_v47 }
 0x9d9   :  { %v2304_v61 = vmul.f32 -1.442695, %v1195_v59 }
 0x9db   :  { %2561 = vpow2.f32 %v2304_v61 }
 0x9e8   :  { %v2562_v62 = vpop.eup %2561 }
 0x9e9   :  { %v1199_v63 = vadd.f32 1.0, %v2562_v62 }
 0x9eb   :  { %2563 = vrcp.f32 %v1199_v63 }
 0x9f8   :  { %v2564_v2 = vpop.eup %2563 }
 0x9f9   :  { %v1205_v4 = vmul.f32 %v2564_v2, %v1203_v0  ;;  %v1212_v35 = vsub.f32 1.0, %v2564_v2 }
 0x9fb   :  { %1207 = vrot.lane.b32.xlu0 %v1205_v4, %s2627_s16 }
 0x9ff   :  { %1218 = vrot.lane.b32.xlu0 %v2938_v36, %s2629_s17 }
 0xa6a   :  { %v1054_v6 = vpop.f32.mrf.mxu0 }
 0xa6b   :  { %v1055_v5 = vadd.f32 %v2779_v34, %v1054_v6 }
 0xa6c   :  { %v2449_v7 = vpop.f32.mrf.mxu0 }
 0xa6d   :  { %1066 = vrot.lane.b32.xlu0 %v1055_v5, %s2625_s13  ;;  %v1208_v8 = vpop.permute.xlu0 %1207  ;;  %v1058_v19 = vadd.f32 %v1055_v5, %v2987_v16 }
 0xa6e   :  { %v1210_v9 = vadd.f32 %v1208_v8, %v2975_v47 }
 0xa6f   :  { %v2299_v20 = vmul.f32 -1.442695, %v1058_v19 }
 0xa70   :  { %2565 = vtanh.f32 %v1210_v9 }
 0xa71   :  { %2567 = vpow2.f32 %v2299_v20  ;;  %v1219_v26 = vpop.permute.xlu0 %1218 }
 0xa72   :  { %v1221_v37 = vmul.f32 %v2564_v2, %v1219_v26 }
 0xa7d   :  { %v2566_v10 = vpop.eup %2565 }
 0xa7e   :  { %1214 = vrot.lane.b32.xlu1 %v2566_v10, %s2628_s7  ;;  %v2568_v21 = vpop.eup %2567 }
 0xa7f   :  { %v1062_v24 = vadd.f32 1.0, %v2568_v21 }
 0xa81   :  { %2569 = vrcp.f32 %v1062_v24 }
 0xa82   :  { %1229 = vperm.xlu1 %2522, %v2305_v15  }
 0xa8e   :  { %v2570_v28 = vpop.eup %2569 }
 0xadf   :  { %v1067_v29 = vpop.permute.xlu0 %1066 }
 0xae0   :  { %v1069_v30 = vmul.f32 %v2570_v28, %v1067_v29 }
 0xae2   :  { %1071 = vrot.lane.b32.xlu0 %v1069_v30, %s2627_s16 }
 0xae6   :  { %1082 = vrot.lane.b32.xlu0 %v2965_v57, %s2623_s11 }
 0xaf0   :  { %v1215_v33 = vpop.permute.xlu1 %1214 }
 0xaf1   :  { %v1217_v25 = vmul.f32 %v1215_v33, %v1212_v35 }
 0xaf3   :  { %v1222_v40 = vadd.f32 %v1221_v37, %v1217_v25 }
 0xaf5   :  { %v1226_v41 = vsub.f32 %v1222_v40, %v1219_v26 }
 0xafd   :  { %v2993_v18 = vpop.permute.xlu1 %1229 }
 0xafe   :  { %v1232_v42 = vmul.f32 %v2993_v18, %v1226_v41 }
 0xb00   :  { %1234 = vrot.lane.b32.xlu1 %v1232_v42, %s2629_s17 }
 0xb54   :  { %v1072_v43 = vpop.permute.xlu0 %1071 }
 0xb55   :  { %v1074_v44 = vadd.f32 %v1072_v43, %v2987_v16 }
 0xb57   :  { %2571 = vtanh.f32 %v1074_v44 }
 0xb58   :  { %v1083_v53 = vpop.permute.xlu0 %1082 }
 0xb59   :  { %v1085_v56 = vmul.f32 %v2570_v28, %v1083_v53 }
 0xb64   :  { %v2572_v46 = vpop.eup %2571 }
 0xb65   :  { %1078 = vrot.lane.b32.xlu1 %v2572_v46, %s2628_s7 }
 0xb69   :  { %1093 = vperm.xlu1 %2522, %v2300_v49  }
 0xb72   :  { %v1235_v50 = vpop.permute.xlu1 %1234 }
 0xb73   :  { %v3002_v51 = vadd.f32 %v1235_v50, %v2938_v36  ;;  %v1076_v36 = vsub.f32 1.0, %v2570_v28 }
 0xb75   :  { %1238 = vst.msk [vmem:[#allocation4] sm:$0xff] %vm50_vm0, %v3002_v51 }
 0xb7c   :  { %v3006_v52 = vld [vmem:[#allocation4] sm:$0xff] }
 0xb7d   :  { %2469 = vmatmul.mubr.msk.f32.vlgmr.msra.gmra.mxu1 %vm50_vm0, %v3006_v52 }
 0xb7e   :  { %2479 = vmatpush3.msra.mxu1 %v2723_v13  ;;  %2482 = vmatprep.mubr.msk.f32.mxu1 %vm2622_vm1, %v2621_v1 }
 0xb7f   :  { %2480 = vmatprep.subr.mxu1 %v2621_v1 }
 0xb80   :  { %2481 = vmatpush3.msra.mxu1 %v2740_v17 }
 0xb81   :  { %2492 = vmatprep.subr.mxu1 %v2621_v1 }
 0xbd7   :  { %v1079_v54 = vpop.permute.xlu1 %1078 }
 0xbd8   :  { %v1081_v55 = vmul.f32 %v1079_v54, %v1076_v36 }
 0xbda   :  { %v1086_v58 = vadd.f32 %v1085_v56, %v1081_v55 }
 0xbdc   :  { %v1090_v59 = vsub.f32 %v1086_v58, %v1083_v53 }
 0xbe4   :  { %v3016_v61 = vpop.permute.xlu1 %1093 }
 0xbe5   :  { %v1096_v13 = vmul.f32 %v3016_v61, %v1090_v59 }
 0xbe7   :  { %1098 = vrot.lane.b32.xlu0 %v1096_v13, %s2628_s7  ;;  %v3071_v13 = vld [vmem:[%s3298_s2] sm:$0xff] }
 0xc3d   :  { %v1449_v62 = vpop.f32.mrf.mxu1 }
 0xc3e   :  { %v1450_v63 = vadd.f32 %v2771_v27, %v1449_v62 }
 0xc3f   :  { %v2470_v2 = vpop.f32.mrf.mxu1 }
 0xc40   :  { %1454 = vrot.lane.b32.xlu1 %v1450_v63, %s2624_s12  ;;  %1464 = vrot.lane.b32.xlu0 %v1450_v63, %s2623_s11 }
 0xc59   :  { %v1099_v17 = vpop.permute.xlu0 %1098 }
 0xc5a   :  { %v1101_v0 = vadd.f32 %v1099_v17, %v2965_v57 }
 0xc5c   :  { %1102 = vst.msk [vmem:[#allocation3] sm:$0xff] %vm50_vm0, %v1101_v0  ;;  %v1103_v4 = vmul.f32 %v1101_v0, %v3016_v61 }
 0xc5e   :  { %2301 = vst.msk [vmem:[%s3305_s8 + $0x18] sm:$0xff] %vm50_vm0, %v1103_v4 }
 0xc63   :  { %v3030_v6 = vld [vmem:[#allocation3] sm:$0xff] }
 0xc64   :  { %2462 = vmatmul.mubr.msk.f32.vlgmr.msra.gmra.mxu0 %vm50_vm0, %v3030_v6 }
 0xc65   :  { %2475 = vmatprep.mubr.msk.f32.mxu0 %vm2622_vm1, %v2621_v1 }
 0xcb2   :  { %v1455_v5 = vpop.permute.xlu1 %1454  ;;  %v1465_v15 = vpop.permute.xlu0 %1464 }
 0xcb3   :  { %v1457_v57 = vadd.f32 %v1455_v5, %v2987_v16 }
 0xcb5   :  { %v2313_v7 = vmul.f32 -1.442695, %v1457_v57 }
 0xcb7   :  { %2573 = vpow2.f32 %v2313_v7 }
 0xcc4   :  { %v2574_v8 = vpop.eup %2573 }
 0xcc5   :  { %v1461_v9 = vadd.f32 1.0, %v2574_v8 }
 0xcc7   :  { %2575 = vrcp.f32 %v1461_v9 }
 0xcd4   :  { %v2576_v10 = vpop.eup %2575 }
 0xcd5   :  { %v1467_v19 = vmul.f32 %v2576_v10, %v1465_v15  ;;  %v1474_v40 = vsub.f32 1.0, %v2576_v10 }
 0xcd7   :  { %1469 = vrot.lane.b32.xlu1 %v1467_v19, %s2627_s16 }
 0xcdb   :  { %1480 = vrot.lane.b32.xlu1 %v3006_v52, %s2629_s17 }
 0xd24   :  { %v1326_v20 = vpop.f32.mrf.mxu0 }
 0xd25   :  { %v1327_v29 = vadd.f32 %v2779_v34, %v1326_v20 }
 0xd26   :  { %v2463_v21 = vpop.f32.mrf.mxu0 }
 0xd27   :  { %v1330_v30 = vadd.f32 %v1327_v29, %v2975_v47 }
 0xd29   :  { %v2309_v33 = vmul.f32 -1.442695, %v1330_v30 }
 0xd49   :  { %v1470_v24 = vpop.permute.xlu1 %1469 }
 0xd4a   :  { %v1472_v26 = vadd.f32 %v1470_v24, %v2987_v16 }
 0xd4c   :  { %2577 = vtanh.f32 %v1472_v26 }
 0xd4d   :  { %2579 = vpow2.f32 %v2309_v33  ;;  %v1481_v37 = vpop.permute.xlu1 %1480 }
 0xd4e   :  { %v1483_v42 = vmul.f32 %v2576_v10, %v1481_v37 }
 0xd59   :  { %v2578_v28 = vpop.eup %2577 }
 0xd5a   :  { %1476 = vrot.lane.b32.xlu0 %v2578_v28, %s2628_s7  ;;  %v2580_v35 = vpop.eup %2579 }
 0xd5b   :  { %v1334_v25 = vadd.f32 1.0, %v2580_v35 }
 0xd5d   :  { %2581 = vrcp.f32 %v1334_v25 }
 0xd5e   :  { %1338 = vrot.lane.b32.xlu0 %v1327_v29, %s2625_s13 }
 0xd6a   :  { %v2582_v44 = vpop.eup %2581 }
 0xd6b   :  { %v1348_v62 = vsub.f32 1.0, %v2582_v44 }
 0xdcc   :  { %v1477_v41 = vpop.permute.xlu0 %1476 }
 0xdcd   :  { %v1479_v16 = vmul.f32 %v1477_v41, %v1474_v40 }
 0xdcf   :  { %v1484_v43 = vadd.f32 %v1483_v42, %v1479_v16 }
 0xdd0   :  { %v1339_v46 = vpop.permute.xlu0 %1338 }
 0xdd1   :  { %v1485_v49 = vsub.f32 %v1484_v43, %v1481_v37  ;;  %v1341_v50 = vmul.f32 %v2582_v44, %v1339_v46 }
 0xdd3   :  { %1343 = vrot.lane.b32.xlu0 %v1341_v50, %s2627_s16  ;;  %v1486_v54 = vmul.f32 %v1485_v49, %v3016_v61 }
 0xdd5   :  { %1488 = vrot.lane.b32.xlu1 %v1486_v54, %s2629_s17  ;;  %v1877_v54 = vld [vmem:[%s3300_s3] sm:$0xff] }
 0xdd7   :  { %1354 = vrot.lane.b32.xlu0 %v3030_v6, %s2623_s11 }
 0xe45   :  { %v1344_v36 = vpop.permute.xlu0 %1343 }
 0xe46   :  { %v1346_v53 = vadd.f32 %v1344_v36, %v2975_v47 }
 0xe47   :  { %v1489_v55 = vpop.permute.xlu1 %1488 }
 0xe48   :  { %2583 = vtanh.f32 %v1346_v53  ;;  %v3052_v56 = vadd.f32 %v1489_v55, %v3006_v52  ;;  %v3066_v52 = vld [vmem:[%s3298_s2 + $0x8] sm:$0xff] }
 0xe49   :  { %v1355_v47 = vpop.permute.xlu0 %1354  ;;  %2472 = vmatpush3.msra.mxu0 %v3066_v52 }
 0xe4a   :  { %1492 = vst.msk [vmem:[#allocation4] sm:$0xff] %vm50_vm0, %v3052_v56  ;;  %2473 = vmatprep.subr.mxu0 %v2621_v1  ;;  %v1357_v2 = vmul.f32 %v2582_v44, %v1355_v47 }
 0xe4b   :  { %2474 = vmatpush3.msra.mxu0 %v3071_v13 }
 0xe4c   :  { %2485 = vmatprep.subr.mxu0 %v2621_v1 }
 0xe51   :  { %v3056_v58 = vld [vmem:[#allocation4] sm:$0xff] }
 0xe52   :  { %2483 = vmatmul.mubr.msk.f32.vlgmr.msra.gmra.mxu1 %vm50_vm0, %v3056_v58 }
 0xe53   :  { %2496 = vmatprep.mubr.msk.f32.mxu1 %vm2622_vm1, %v2621_v1 }
 0xe55   :  { %v2584_v59 = vpop.eup %2583 }
 0xe56   :  { %1350 = vrot.lane.b32.xlu1 %v2584_v59, %s2628_s7 }
 0xec8   :  { %v1351_v63 = vpop.permute.xlu1 %1350 }
 0xec9   :  { %v1353_v17 = vmul.f32 %v1351_v63, %v1348_v62 }
 0xecb   :  { %v1358_v0 = vadd.f32 %v1357_v2, %v1353_v17 }
 0xecd   :  { %v1359_v4 = vsub.f32 %v1358_v0, %v1355_v47 }
 0xecf   :  { %v1360_v5 = vmul.f32 %v1359_v4, %v2993_v18 }
 0xed1   :  { %1362 = vrot.lane.b32.xlu1 %v1360_v5, %s2628_s7 }
 0xf12   :  { %v1702_v57 = vpop.f32.mrf.mxu1 }
 0xf13   :  { %v1703_v7 = vadd.f32 %v2771_v27, %v1702_v57 }
 0xf14   :  { %v2484_v8 = vpop.f32.mrf.mxu1 }
 0xf15   :  { %1707 = vrot.lane.b32.xlu0 %v1703_v7, %s2624_s12  ;;  %1717 = vrot.lane.b32.xlu1 %v1703_v7, %s2623_s11 }
 0xf43   :  { %v1363_v9 = vpop.permute.xlu1 %1362 }
 0xf44   :  { %v3083_v10 = vadd.f32 %v1363_v9, %v3030_v6 }
 0xf46   :  { %1366 = vst.msk [vmem:[#allocation3] sm:$0xff] %vm50_vm0, %v3083_v10 }
 0xf4d   :  { %v3087_v15 = vld [vmem:[#allocation3] sm:$0xff] }
 0xf4e   :  { %2476 = vmatmul.mubr.msk.f32.vlgmr.msra.gmra.mxu0 %vm50_vm0, %v3087_v15 }
 0xf4f   :  { %2486 = vmatpush3.msra.mxu0 %v3066_v52  ;;  %2489 = vmatprep.mubr.msk.f32.mxu0 %vm2622_vm1, %v2621_v1 }
 0xf50   :  { %2487 = vmatprep.subr.mxu0 %v2621_v1 }
 0xf51   :  { %2488 = vmatpush3.msra.mxu0 %v3071_v13 }
 0xf52   :  { %2499 = vmatprep.subr.mxu0 %v2621_v1 }
 0xf87   :  { %v1708_v27 = vpop.permute.xlu0 %1707  ;;  %v1718_v26 = vpop.permute.xlu1 %1717 }
 0xf88   :  { %v1710_v6 = vadd.f32 %v1708_v27, %v2922_v3 }
 0xf8a   :  { %v2321_v19 = vmul.f32 -1.442695, %v1710_v6  ;;  %v3138_v6 = vld [vmem:[%s3302_s6] ss:$0 sm:$0xff] }
 0xf8c   :  { %2585 = vpow2.f32 %v2321_v19 }
 0xf99   :  { %v2586_v20 = vpop.eup %2585 }
 0xf9a   :  { %v1714_v21 = vadd.f32 1.0, %v2586_v20 }
 0xf9c   :  { %2587 = vrcp.f32 %v1714_v21 }
 0xfa9   :  { %v2588_v24 = vpop.eup %2587 }
 0xfaa   :  { %v1720_v28 = vmul.f32 %v2588_v24, %v1718_v26  ;;  %v1727_v49 = vsub.f32 1.0, %v2588_v24 }
 0xfac   :  { %1722 = vrot.lane.b32.xlu0 %v1720_v28, %s2627_s16 }
0x100e   :  { %v1579_v29 = vpop.f32.mrf.mxu0 }
0x100f   :  { %v1580_v30 = vadd.f32 %v2779_v34, %v1579_v29 }
0x1010   :  { %v2477_v33 = vpop.f32.mrf.mxu0 }
0x1011   :  { %1591 = vrot.lane.b32.xlu1 %v1580_v30, %s2625_s13  ;;  %v1583_v40 = vadd.f32 %v1580_v30, %v2910_v48 }
0x1013   :  { %v2317_v41 = vmul.f32 -1.442695, %v1583_v40 }
0x1015   :  { %1733 = vrot.lane.b32.xlu1 %v3056_v58, %s2629_s17 }
0x101e   :  { %v1723_v35 = vpop.permute.xlu0 %1722 }
0x101f   :  { %v1725_v25 = vadd.f32 %v1723_v35, %v2922_v3  ;;  %v1878_v3 = vld [vmem:[%s3300_s3 + $0x8] sm:$0xff] }
0x1020   :  { %2493 = vmatpush3.msra.mxu1 %v1878_v3 }
0x1021   :  { %2589 = vtanh.f32 %v1725_v25  ;;  %2494 = vmatprep.subr.mxu1 %v2621_v1 }
0x1022   :  { %2591 = vpow2.f32 %v2317_v41  ;;  %2495 = vmatpush3.msra.mxu1 %v1877_v54 }
0x1023   :  { %2506 = vmatprep.subr.mxu1 %v2621_v1 }
0x102e   :  { %v2590_v37 = vpop.eup %2589 }
0x102f   :  { %1729 = vrot.lane.b32.xlu0 %v2590_v37, %s2628_s7  ;;  %v2592_v42 = vpop.eup %2591 }
0x1030   :  { %v1587_v16 = vadd.f32 1.0, %v2592_v42 }
0x1032   :  { %2593 = vrcp.f32 %v1587_v16 }
0x103f   :  { %v2594_v34 = vpop.eup %2593 }
0x1040   :  { %v1601_v5 = vsub.f32 1.0, %v2594_v34 }
0x1083   :  { %v1592_v43 = vpop.permute.xlu1 %1591 }
0x1084   :  { %v1594_v44 = vmul.f32 %v2594_v34, %v1592_v43 }
0x1086   :  { %1596 = vrot.lane.b32.xlu0 %v1594_v44, %s2627_s16 }
0x1087   :  { %v1734_v46 = vpop.permute.xlu1 %1733 }
0x1088   :  { %v1736_v36 = vmul.f32 %v2588_v24, %v1734_v46 }
0x10a1   :  { %v1730_v50 = vpop.permute.xlu0 %1729 }
0x10a2   :  { %v1732_v53 = vmul.f32 %v1730_v50, %v1727_v49 }
0x10a4   :  { %v1737_v55 = vadd.f32 %v1736_v36, %v1732_v53 }
0x10a6   :  { %v1738_v59 = vsub.f32 %v1737_v55, %v1734_v46 }
0x10a8   :  { %v1739_v47 = vmul.f32 %v1738_v59, %v2951_v38 }
0x10aa   :  { %1741 = vrot.lane.b32.xlu1 %v1739_v47, %s2629_s17 }
0x10ae   :  { %1607 = vrot.lane.b32.xlu1 %v3087_v15, %s2623_s11 }
0x10f8   :  { %v1597_v62 = vpop.permute.xlu0 %1596 }
0x10f9   :  { %v1599_v63 = vadd.f32 %v1597_v62, %v2910_v48 }
0x10fb   :  { %2595 = vtanh.f32 %v1599_v63 }
0x1108   :  { %v2596_v2 = vpop.eup %2595 }
0x1109   :  { %1603 = vrot.lane.b32.xlu0 %v2596_v2, %s2628_s7 }
0x111c   :  { %v1742_v17 = vpop.permute.xlu1 %1741 }
0x111d   :  { %v3122_v0 = vadd.f32 %v1742_v17, %v3056_v58 }
0x111f   :  { %1745 = vst.msk [vmem:[#allocation4] sm:$0xff] %vm50_vm0, %v3122_v0 }
0x1120   :  { %v1608_v48 = vpop.permute.xlu1 %1607 }
0x1121   :  { %v1610_v58 = vmul.f32 %v2594_v34, %v1608_v48 }
0x1126   :  { %v3126_v4 = vld [vmem:[#allocation4] sm:$0xff] }
0x1127   :  { %2497 = vmatmul.mubr.msk.f32.vlgmr.msra.gmra.mxu1 %vm50_vm0, %v3126_v4 }
0x1128   :  { %2507 = vmatpush3.msra.mxu1 %v1878_v3  ;;  %2510 = vmatprep.mubr.msk.f32.mxu1 %vm2622_vm1, %v2621_v1 }
0x1129   :  { %2508 = vmatprep.subr.mxu1 %v2621_v1 }
0x112a   :  { %2509 = vmatpush3.msra.mxu1 %v1877_v54 }
0x117b   :  { %v1604_v57 = vpop.permute.xlu0 %1603 }
0x117c   :  { %v1606_v7 = vmul.f32 %v1604_v57, %v1601_v5 }
0x117e   :  { %v1611_v8 = vadd.f32 %v1610_v58, %v1606_v7 }
0x1180   :  { %v1612_v9 = vsub.f32 %v1611_v8, %v1608_v48 }
0x1182   :  { %v1613_v27 = vmul.f32 %v1612_v9, %v2925_v23 }
0x1184   :  { %1615 = vrot.lane.b32.xlu0 %v1613_v27, %s2628_s7 }
0x11e7   :  { %v1955_v19 = vpop.f32.mrf.mxu1 }
0x11e8   :  { %v1956_v20 = vadd.f32 %v3138_v6, %v1955_v19 }
0x11e9   :  { %v2498_v21 = vpop.f32.mrf.mxu1 }
0x11ea   :  { %1960 = vrot.lane.b32.xlu1 %v1956_v20, %s2624_s12  ;;  %1970 = vrot.lane.b32.xlu0 %v1956_v20, %s2623_s11 }
0x11f6   :  { %v1616_v24 = vpop.permute.xlu0 %1615 }
0x11f7   :  { %v3144_v26 = vadd.f32 %v1616_v24, %v3087_v15 }
0x11f9   :  { %1619 = vst.msk [vmem:[#allocation3] sm:$0xff] %vm50_vm0, %v3144_v26 }
0x1200   :  { %v3148_v28 = vld [vmem:[#allocation3] sm:$0xff] }
0x1201   :  { %2490 = vmatmul.mubr.msk.f32.vlgmr.msra.gmra.mxu0 %vm50_vm0, %v3148_v28 }
0x1202   :  { %2500 = vmatpush3.msra.mxu0 %v3066_v52  ;;  %2503 = vmatprep.mubr.msk.f32.mxu0 %vm2622_vm1, %v2621_v1  ;;  %v3162_v52 = vld [vmem:[%s3303_s5] ss:$0 sm:$0xff] }
0x1203   :  { %2501 = vmatprep.subr.mxu0 %v2621_v1 }
0x1204   :  { %2502 = vmatpush3.msra.mxu0 %v3071_v13 }
0x125c   :  { %v1961_v29 = vpop.permute.xlu1 %1960  ;;  %v1971_v37 = vpop.permute.xlu0 %1970 }
0x125d   :  { %v1963_v15 = vadd.f32 %v1961_v29, %v2858_v60 }
0x125f   :  { %v2329_v30 = vmul.f32 -1.442695, %v1963_v15 }
0x1261   :  { %2597 = vpow2.f32 %v2329_v30 }
0x126e   :  { %v2598_v33 = vpop.eup %2597 }
0x126f   :  { %v1967_v35 = vadd.f32 1.0, %v2598_v33 }
0x1271   :  { %2599 = vrcp.f32 %v1967_v35  ;;  %v2128_v35 = vld [vmem:[#allocation2] sm:$0xff] }
0x127e   :  { %v2600_v25 = vpop.eup %2599 }
0x127f   :  { %v1973_v40 = vmul.f32 %v2600_v25, %v1971_v37  ;;  %v1980_v53 = vsub.f32 1.0, %v2600_v25 }
0x1281   :  { %1975 = vrot.lane.b32.xlu1 %v1973_v40, %s2627_s16 }
0x12c1   :  { %v1832_v1 = vpop.f32.mrf.mxu0 }
0x12c2   :  { %v1833_v13 = vadd.f32 %v3162_v52, %v1832_v1 }
0x12c3   :  { %v2491_v41 = vpop.f32.mrf.mxu0 }
0x12c4   :  { %1844 = vrot.lane.b32.xlu0 %v1833_v13, %s2625_s13  ;;  %v1836_v43 = vadd.f32 %v1833_v13, %v2847_v45 }
0x12c6   :  { %v2325_v44 = vmul.f32 -1.442695, %v1836_v43  ;;  %v2005_v43 = vld [vmem:[#allocation2 + $0x38] sm:$0xff] }
0x12c8   :  { %1986 = vrot.lane.b32.xlu0 %v3126_v4, %s2629_s17 }
0x12f3   :  { %v1976_v42 = vpop.permute.xlu1 %1975 }
0x12f4   :  { %v1978_v16 = vadd.f32 %v1976_v42, %v2858_v60 }
0x12f6   :  { %2601 = vtanh.f32 %v1978_v16 }
0x12f7   :  { %2603 = vpow2.f32 %v2325_v44 }
0x1303   :  { %v2602_v34 = vpop.eup %2601 }
0x1304   :  { %1982 = vrot.lane.b32.xlu1 %v2602_v34, %s2628_s7  ;;  %v2604_v46 = vpop.eup %2603 }
0x1305   :  { %v1840_v49 = vadd.f32 1.0, %v2604_v46 }
0x1307   :  { %2605 = vrcp.f32 %v1840_v49 }
0x1314   :  { %v2606_v50 = vpop.eup %2605 }
0x1315   :  { %v1854_v8 = vsub.f32 1.0, %v2606_v50 }
0x1336   :  { %v1845_v3 = vpop.permute.xlu0 %1844 }
0x1337   :  { %v1847_v54 = vmul.f32 %v2606_v50, %v1845_v3 }
0x1339   :  { %1849 = vrot.lane.b32.xlu1 %v1847_v54, %s2627_s16 }
0x133a   :  { %v1987_v36 = vpop.permute.xlu0 %1986 }
0x133b   :  { %v1989_v60 = vmul.f32 %v2600_v25, %v1987_v36 }
0x1376   :  { %v1983_v55 = vpop.permute.xlu1 %1982 }
0x1377   :  { %v1985_v59 = vmul.f32 %v1983_v55, %v1980_v53 }
0x1379   :  { %v1990_v47 = vadd.f32 %v1989_v60, %v1985_v59 }
0x137b   :  { %v1991_v62 = vsub.f32 %v1990_v47, %v1987_v36 }
0x137d   :  { %v1992_v63 = vmul.f32 %v1991_v62, %v2886_v14 }
0x137f   :  { %1994 = vrot.lane.b32.xlu0 %v1992_v63, %s2629_s17 }
0x1383   :  { %1860 = vrot.lane.b32.xlu0 %v3148_v28, %s2623_s11 }
0x13ab   :  { %v1850_v2 = vpop.permute.xlu1 %1849 }
0x13ac   :  { %v1852_v17 = vadd.f32 %v1850_v2, %v2847_v45 }
0x13ae   :  { %2607 = vtanh.f32 %v1852_v17 }
0x13bb   :  { %v2608_v48 = vpop.eup %2607 }
0x13bc   :  { %1856 = vrot.lane.b32.xlu1 %v2608_v48, %s2628_s7 }
0x13f1   :  { %v1995_v5 = vpop.permute.xlu0 %1994 }
0x13f2   :  { %v3179_v57 = vadd.f32 %v1995_v5, %v3126_v4 }
0x13f4   :  { %1998 = vst.msk [vmem:[#allocation4] sm:$0xff] %vm50_vm0, %v3179_v57 }
0x13f5   :  { %v1861_v7 = vpop.permute.xlu0 %1860 }
0x13f6   :  { %v1863_v45 = vmul.f32 %v2606_v50, %v1861_v7 }
0x13fb   :  { %v3183_v58 = vld [vmem:[#allocation4] sm:$0xff] }
0x13fc   :  { %2511 = vmatmul.mubr.msk.f32.vlgmr.msra.gmra.mxu1 %vm50_vm0, %v3183_v58 }
0x142e   :  { %v1857_v9 = vpop.permute.xlu1 %1856 }
0x142f   :  { %v1859_v27 = vmul.f32 %v1857_v9, %v1854_v8  ;;  %v419_v9 = vmul.f32 %v2833_v39, %v2811_v32 }
0x1431   :  { %v1864_v19 = vadd.f32 %v1863_v45, %v1859_v27  ;;  %v966_v45 = vmul.f32 %v2933_v31, %v2925_v23  ;;  %v1493_v27 = vmul.f32 %v3052_v56, %v3016_v61 }
0x1433   :  { %v1865_v20 = vsub.f32 %v1864_v19, %v1861_v7  ;;  %v1999_v19 = vmul.f32 %v3179_v57, %v2886_v14  ;;  %v693_v14 = vmul.f32 %v2868_v22, %v2861_v12  ;;  %v1620_v57 = vmul.f32 %v3144_v26, %v2925_v23 }
0x1434   :  { %v1746_v23 = vmul.f32 %v3122_v0, %v2951_v38 }
0x1435   :  { %v1866_v21 = vmul.f32 %v1865_v20, %v2861_v12 }
0x1437   :  { %1868 = vrot.lane.b32.xlu1 %v1866_v21, %s2628_s7 }
0x14a9   :  { %v1869_v4 = vpop.permute.xlu1 %1868 }
0x14aa   :  { %v3190_v24 = vadd.f32 %v1869_v4, %v3148_v28 }
0x14ac   :  { %1872 = vst.msk [vmem:[#allocation3] sm:$0xff] %vm50_vm0, %v3190_v24  ;;  %v1873_v38 = vmul.f32 %v3190_v24, %v2861_v12 }
0x14b3   :  { %v3194_v29 = vld [vmem:[#allocation3] sm:$0xff] }
0x14b4   :  { %2504 = vmatmul.mubr.msk.f32.vlgmr.msra.gmra.mxu0 %vm50_vm0, %v3194_v29 }
0x14bc   :  { %v2208_v15 = vpop.f32.mrf.mxu1 }
0x14bd   :  { %v2209_v30 = vadd.f32 %v3138_v6, %v2208_v15 }
0x14be   :  { %v2512_v33 = vpop.f32.mrf.mxu1 }
0x14bf   :  { %2213 = vrot.lane.b32.xlu0 %v2209_v30, %s2624_s12  ;;  %2223 = vrot.lane.b32.xlu1 %v2209_v30, %s2623_s11 }
0x1531   :  { %v2214_v25 = vpop.permute.xlu0 %2213  ;;  %v2224_v41 = vpop.permute.xlu1 %2223 }
0x1532   :  { %v2216_v28 = vadd.f32 %v2214_v25, %v2128_v35  ;;  %v1239_v25 = vmul.f32 %v3002_v51, %v2993_v18 }
0x1534   :  { %v2337_v37 = vmul.f32 -1.442695, %v2216_v28 }
0x1536   :  { %2609 = vpow2.f32 %v2337_v37 }
0x1543   :  { %v2610_v40 = vpop.eup %2609 }
0x1544   :  { %v2220_v1 = vadd.f32 1.0, %v2610_v40 }
0x1546   :  { %2611 = vrcp.f32 %v2220_v1 }
0x1553   :  { %v2612_v13 = vpop.eup %2611 }
0x1554   :  { %v2226_v42 = vmul.f32 %v2612_v13, %v2224_v41  ;;  %v2233_v63 = vsub.f32 1.0, %v2612_v13 }
0x1556   :  { %2228 = vrot.lane.b32.xlu1 %v2226_v42, %s2627_s16 }
0x1574   :  { %v2085_v16 = vpop.f32.mrf.mxu0 }
0x1575   :  { %v2086_v6 = vadd.f32 %v3162_v52, %v2085_v16 }
0x1576   :  { %v2505_v34 = vpop.f32.mrf.mxu0 }
0x1577   :  { %2097 = vrot.lane.b32.xlu0 %v2086_v6, %s2625_s13  ;;  %v2089_v44 = vadd.f32 %v2086_v6, %v2005_v43 }
0x1579   :  { %v2333_v46 = vmul.f32 -1.442695, %v2089_v44 }
0x157b   :  { %2613 = vpow2.f32 %v2333_v46 }
0x1588   :  { %v2614_v3 = vpop.eup %2613 }
0x1589   :  { %v2093_v36 = vadd.f32 1.0, %v2614_v3 }
0x15c8   :  { %v2229_v49 = vpop.permute.xlu1 %2228 }
0x15c9   :  { %v2231_v50 = vadd.f32 %v2229_v49, %v2128_v35 }
0x15cb   :  { %2615 = vtanh.f32 %v2231_v50 }
0x15cc   :  { %2617 = vrcp.f32 %v2093_v36 }
0x15d8   :  { %v2616_v54 = vpop.eup %2615 }
0x15d9   :  { %2235 = vrot.lane.b32.xlu1 %v2616_v54, %s2628_s7  ;;  %v2618_v53 = vpop.eup %2617 }
0x15da   :  { %v2107_v21 = vsub.f32 1.0, %v2618_v53 }
0x15e9   :  { %v2098_v55 = vpop.permute.xlu0 %2097 }
0x15ea   :  { %v2100_v60 = vmul.f32 %v2618_v53, %v2098_v55 }
0x15ec   :  { %2102 = vrot.lane.b32.xlu0 %v2100_v60, %s2627_s16 }
0x15f0   :  { %2239 = vrot.lane.b32.xlu0 %v3183_v58, %s2629_s17 }
0x15f4   :  { %2113 = vrot.lane.b32.xlu0 %v3194_v29, %s2623_s11 }
0x164b   :  { %v2236_v62 = vpop.permute.xlu1 %2235 }
0x164c   :  { %v2238_v17 = vmul.f32 %v2236_v62, %v2233_v63 }
0x165e   :  { %v2103_v52 = vpop.permute.xlu0 %2102 }
0x165f   :  { %v2105_v59 = vadd.f32 %v2103_v52, %v2005_v43 }
0x1661   :  { %2619 = vtanh.f32 %v2105_v59 }
0x1662   :  { %v2240_v47 = vpop.permute.xlu0 %2239 }
0x1663   :  { %v2242_v2 = vmul.f32 %v2612_v13, %v2240_v47 }
0x1665   :  { %v2243_v48 = vadd.f32 %v2242_v2, %v2238_v17 }
0x1666   :  { %v2114_v20 = vpop.permute.xlu0 %2113 }
0x1667   :  { %v2244_v5 = vsub.f32 %v2243_v48, %v2240_v47  ;;  %v2116_v4 = vmul.f32 %v2618_v53, %v2114_v20 }
0x1669   :  { %v2245_v8 = vmul.f32 %v2244_v5, %v2807_v11 }
0x166e   :  { %v2620_v7 = vpop.eup %2619 }
0x166f   :  { %2109 = vrot.lane.b32.xlu1 %v2620_v7, %s2628_s7 }
0x1673   :  { %2247 = vrot.lane.b32.xlu1 %v2245_v8, %s2629_s17 }
0x1677   :  { %421 = vrot.lane.b32.xlu1 %v419_v9, %s2623_s11 }
0x167b   :  { %968 = vrot.lane.b32.xlu1 %v966_v45, %s2623_s11 }
0x167f   :  { %1495 = vrot.lane.b32.xlu1 %v1493_v27, %s2623_s11 }
0x1683   :  { %2001 = vrot.lane.b32.xlu1 %v1999_v19, %s2623_s11 }
0x16e1   :  { %v2110_v39 = vpop.permute.xlu1 %2109 }
0x16e2   :  { %v2112_v15 = vmul.f32 %v2110_v39, %v2107_v21 }
0x16e4   :  { %v2117_v30 = vadd.f32 %v2116_v4, %v2112_v15 }
0x16e5   :  { %v2248_v33 = vpop.permute.xlu1 %2247 }
0x16e6   :  { %v2118_v31 = vsub.f32 %v2117_v30, %v2114_v20  ;;  %v2250_v35 = vadd.f32 %v2248_v33, %v3183_v58 }
0x16e8   :  { %2251 = vst.msk [vmem:[#allocation4] sm:$0xff] %vm50_vm0, %v2250_v35  ;;  %v2119_v61 = vmul.f32 %v2118_v31, %v2811_v32  ;;  %v2252_v51 = vmul.f32 %v2250_v35, %v2807_v11  ;;  %v1367_v11 = vmul.f32 %v3083_v10, %v2993_v18 }
0x16e9   :  { %v422_v56 = vpop.permute.xlu1 %421 }
0x16ea   :  { %2276 = vst.msk [vmem:[%s3305_s8 + $0x38] sm:$0xff] %vm425_vm11, %v422_v56  ;;  %2121 = vrot.lane.b32.xlu0 %v2119_v61, %s2628_s7 }
0x16ed   :  { %v969_v58 = vpop.permute.xlu1 %968 }
0x16ee   :  { %2296 = vst.msk [vmem:[%s3305_s8 + $0x28] sm:$0xff] %vm425_vm11, %v969_v58  ;;  %695 = vrot.lane.b32.xlu0 %v693_v14, %s2623_s11 }
0x16ef   :  { %2318 = vst.msk [vmem:[%s3305_s8 + $0x28] sm:$0xff] %vm50_vm0, %v1620_v57 }
0x16f1   :  { %v1496_v22 = vpop.permute.xlu1 %1495 }
0x16f2   :  { %2314 = vst.msk [vmem:[%s3305_s8 + $0x18] sm:$0xff] %vm425_vm11, %v1496_v22  ;;  %1241 = vrot.lane.b32.xlu0 %v1239_v25, %s2623_s11 }
0x16f5   :  { %v2002_v26 = vpop.permute.xlu1 %2001 }
0x16f6   :  { %2330 = vst.msk [vmem:[%s3305_s8 + $0x8] sm:$0xff] %vm425_vm11, %v2002_v26  ;;  %1748 = vrot.lane.b32.xlu0 %v1746_v23, %s2623_s11 }
0x16fa   :  { %2254 = vrot.lane.b32.xlu0 %v2252_v51, %s2623_s11 }
0x175c   :  { %v2122_v28 = vpop.permute.xlu0 %2121 }
0x175d   :  { %v2124_v37 = vadd.f32 %v2122_v28, %v3194_v29 }
0x175f   :  { %2125 = vst.msk [vmem:[#allocation3] sm:$0xff] %vm50_vm0, %v2124_v37  ;;  %v2126_v40 = vmul.f32 %v2124_v37, %v2811_v32 }
0x1760   :  { %v696_v0 = vpop.permute.xlu0 %695 }
0x1761   :  { %2334 = vst.msk [vmem:[%s3305_s8 + $0x38] sm:$0xff] %vm50_vm0, %v2126_v40 }
0x1762   :  { %2286 = vst.msk [vmem:[%s3305_s8 + $0x30] sm:$0xff] %vm425_vm11, %v696_v0 }
0x1763   :  { %2326 = vst.msk [vmem:[%s3305_s8 + $0x30] sm:$0xff] %vm50_vm0, %v1873_v38 }
0x1764   :  { %v1242_v32 = vpop.permute.xlu0 %1241 }
0x1765   :  { %2306 = vst.msk [vmem:[%s3305_s8 + $0x20] sm:$0xff] %vm425_vm11, %v1242_v32 }
0x1766   :  { %2310 = vst.msk [vmem:[%s3305_s8 + $0x20] sm:$0xff] %vm50_vm0, %v1367_v11 }
0x1768   :  { %v1749_v12 = vpop.permute.xlu0 %1748 }
0x1769   :  { %2322 = vst.msk [vmem:[%s3305_s8 + $0x10] sm:$0xff] %vm425_vm11, %v1749_v12 }
0x176c   :  { %v2255_v24 = vpop.permute.xlu0 %2254 }
0x176d   :  { %2257 = vst.msk [vmem:[%s3305_s8] sm:$0xff] %vm425_vm11, %v2255_v24 }

</bundles_post_ra>
